<compile_context>
chip_gen: v5e
topology: v5e:2x2
jax: 0.10.0
libtpu: 0.0.40
codegen_flags: <defaults>
</compile_context>

<pallas_src>
import functools

import numpy as np
import jax
import jax.numpy as jnp
from jax import lax
from jax.experimental import pallas as pl
from jax.experimental.pallas import tpu as pltpu

KSIZE = 4
PAD = 1
BN_EPS = 1e-5
LRELU_SLOPE = 0.2


# ---------------------------------------------------------------------------
# Host-side parameter folding (done once per model, reused across calls).
# ---------------------------------------------------------------------------

def _out_dim(n, k, stride):
    return (n + 2 * PAD - k) // stride + 1


def _fold_weight_stack(w_hwio, w_in, w_out, stride):
    """Conv weight (K,K,Cin,Cout) -> M_stack (K*Win*Cin, Wo*Cout).

    Row index (kh, w, ci); column index (ow, co).  Folds the kw taps, the W-stride,
    the W zero-padding and the conv weights, stacking the K kh-taps along the
    contraction dim so a single deep matmul computes the whole conv given the
    per-tap row-selected activations."""
    w_np = np.asarray(w_hwio, np.float32)
    k, _, cin, cout = w_np.shape
    m = np.zeros((k, w_in, cin, w_out, cout), np.float32)
    ow = np.arange(w_out)
    for kh in range(k):
        for kw in range(k):
            wi = stride * ow + kw - PAD
            valid = (wi >= 0) & (wi < w_in)
            if np.any(valid):
                m[kh, wi[valid], :, ow[valid], :] += w_np[kh, kw]
    return m.reshape(k * w_in * cin, w_out * cout)


def _fold_rowsel_stack(batch, h_in, h_out, k, stride):
    """0/1 row selectors (K, B*Ho, B*Hin): tap kh selects rows stride*oh + kh - PAD
    per batch block (taps landing in the zero padding are dropped)."""
    sel = np.zeros((k, batch, h_out, batch, h_in), np.float32)
    oh = np.arange(h_out)
    for kh in range(k):
        hi = stride * oh + kh - PAD
        valid = (hi >= 0) & (hi < h_in)
        for b in range(batch):
            sel[kh, b, oh[valid], b, hi[valid]] = 1.0
    return sel.reshape(k, batch * h_out, batch * h_in)


def _group_mats(w_out, cout):
    """Column-grouping matrices for per-channel BN stats in the (.., Wo*Cout) layout."""
    g = np.tile(np.eye(cout, dtype=np.float32), (w_out, 1))      # (Wo*Cout, Cout)
    return g, np.ascontiguousarray(g.T)                           # (Cout, Wo*Cout)


def _tile_cols(vec, w_out):
    v = np.asarray(vec, np.float32).reshape(1, -1)
    return np.tile(v, (1, w_out))                                  # (1, Wo*Cout)


# ---------------------------------------------------------------------------
# Fused kernel: the whole network in one invocation, everything in VMEM.
# ---------------------------------------------------------------------------

def _make_fused_kernel(metas):
    def kernel(*refs):
        o_ref = refs[-1]
        y = refs[0][...]                                   # (B*H, W*Cin) f32 input
        for m in metas:
            k = m["K"]
            yb = y.astype(jnp.bfloat16)
            l_ref = refs[m["L"]]                           # (K, B*Ho, B*Hin) bf16

            # Row selection per kh tap (small bf16 MXU gathers), lane-concatenated.
            parts = []
            for kh in range(k):
                z = jnp.dot(l_ref[kh], yb, preferred_element_type=jnp.float32)
                parts.append(z.astype(jnp.bfloat16))       # exact (0/1 selection)
            xsel = jnp.concatenate(parts, axis=1)          # (B*Ho, K*Win*Cin) bf16

            # One deep matmul does the whole conv for this layer.
            acc = jnp.dot(xsel, refs[m["M"]][...],
                          preferred_element_type=jnp.float32)   # (B*Ho, Wo*Cout) f32

            if m["bias"] is not None:
                acc = acc + refs[m["bias"]][...]

            if m["bn"]:
                # Training-mode BatchNorm (batch stats, biased variance), all f32.
                inv_n = 1.0 / float(m["count"])
                s1 = jnp.sum(acc, axis=0, keepdims=True)
                s2 = jnp.sum(acc * acc, axis=0, keepdims=True)
                stats = jnp.dot(jnp.concatenate([s1, s2], axis=0), refs[m["G"]][...],
                                preferred_element_type=jnp.float32) * inv_n  # (2, Cout)
                mean = stats[0:1]
                var = jnp.maximum(stats[1:2] - mean * mean, 0.0)
                a = refs[m["gamma"]][...] * lax.rsqrt(var + BN_EPS)           # (1, Cout)
                b = refs[m["beta"]][...] - mean * a                           # (1, Cout)
                ab = jnp.dot(jnp.concatenate([a, b], axis=0), refs[m["GT"]][...],
                             preferred_element_type=jnp.float32)   # (2, Wo*Cout)
                acc = acc * ab[0:1] + ab[1:2]

            if m["act"]:
                acc = jnp.where(acc > 0, acc, LRELU_SLOPE * acc)

            y = acc

        o_ref[...] = y.astype(o_ref.dtype)
    return kernel


# ---------------------------------------------------------------------------
# Public builder: fold params once, return a jitted forward (NCHW in / NCHW out).
# ---------------------------------------------------------------------------

def make_patch_discriminator(params, x_shape):
    B, C, H, W = x_shape
    operands = []            # fixed operands; ref index 0 is the activation input
    metas = []
    flops = 0
    transcendentals = 0
    next_idx = 1

    def add(arr):
        nonlocal next_idx
        operands.append(arr)
        idx = next_idx
        next_idx += 1
        return idx

    h, w, cin = H, W, C
    for p in params:
        k = int(p["w"].shape[0])
        cout = int(p["w"].shape[3])
        s = int(p["stride"])
        ho, wo = _out_dim(h, k, s), _out_dim(w, k, s)
        assert ho > 0 and wo > 0, "spatial extent collapsed; use a larger input"

        meta = dict(K=k, count=B * ho * wo, bn=p["use_bn"], act=p["use_act"], bias=None)
        meta["L"] = add(jnp.asarray(_fold_rowsel_stack(B, h, ho, k, s), jnp.bfloat16))
        meta["M"] = add(jnp.asarray(_fold_weight_stack(p["w"], w, wo, s), jnp.bfloat16))
        if p["has_bias"]:
            meta["bias"] = add(jnp.asarray(_tile_cols(p["b"], wo), jnp.float32))
        if p["use_bn"]:
            g, gt = _group_mats(wo, cout)
            meta["G"] = add(jnp.asarray(g, jnp.float32))
            meta["GT"] = add(jnp.asarray(gt, jnp.float32))
            meta["gamma"] = add(jnp.asarray(np.asarray(p["gamma"], np.float32).reshape(1, -1)))
            meta["beta"] = add(jnp.asarray(np.asarray(p["beta"], np.float32).reshape(1, -1)))
            transcendentals += cout

        flops += 2 * k * (B * ho) * (B * h) * (w * cin)          # row-selection gathers
        flops += 2 * (B * ho) * (k * w * cin) * (wo * cout)      # fused deep conv matmul
        metas.append(meta)
        h, w, cin = ho, wo, cout

    out_rows, out_cols = B * h, w * cin
    x_bytes = B * H * W * C * 4
    op_bytes = sum(int(o.size) * o.dtype.itemsize for o in operands)
    out_bytes = out_rows * out_cols * 4
    bytes_accessed = x_bytes + op_bytes + out_bytes
    vmem_budget = int(min(100 * 2**20, max(32 * 2**20, 3 * bytes_accessed + 8 * 2**20)))

    vmem = pl.BlockSpec(memory_space=pltpu.MemorySpace.VMEM)
    call = pl.pallas_call(
        _make_fused_kernel(metas),
        out_shape=jax.ShapeDtypeStruct((out_rows, out_cols), jnp.float32),
        in_specs=[vmem] * (1 + len(operands)),
        out_specs=vmem,
        compiler_params=pltpu.CompilerParams(vmem_limit_bytes=vmem_budget),
        cost_estimate=pl.CostEstimate(flops=int(flops),
                                      transcendentals=int(transcendentals),
                                      bytes_accessed=int(bytes_accessed)),
    )

    ho_f, wo_f, co_f = h, w, cin

    @jax.jit
    def forward(x_nchw, *ops):
        # NCHW -> NHWC -> lane-dense 2D (B*H, W*C); layout plumbing only.
        x2d = jnp.transpose(x_nchw, (0, 2, 3, 1)).reshape(B * H, W * C).astype(jnp.float32)
        out2d = call(x2d, *ops)
        return jnp.transpose(out2d.reshape(B, ho_f, wo_f, co_f), (0, 3, 1, 2))

    return lambda x: forward(x, *operands)


# ---------------------------------------------------------------------------
# Synthetic parameters matching PatchDiscriminator2D.__init__ shapes.
# ---------------------------------------------------------------------------

def init_params(key, channels_in, channels, n_layers=2, channels_max=512):
    cfgs = [dict(cin=channels_in, cout=channels, stride=2, bias=True, bn=False, act=True)]
    for i in range(n_layers):
        ca = min(channels * (2 ** i), channels_max)
        cb = min(channels * (2 ** (i + 1)), channels_max)
        cfgs.append(dict(cin=ca, cout=cb, stride=2, bias=False, bn=True, act=True))
    ca = min(channels * (2 ** n_layers), channels_max)
    cb = min(channels * (2 ** (n_layers + 1)), channels_max)
    cfgs.append(dict(cin=ca, cout=cb, stride=1, bias=False, bn=True, act=True))
    cfgs.append(dict(cin=cb, cout=1, stride=1, bias=True, bn=False, act=False))

    params = []
    for cfg in cfgs:
        key, k1, k2, k3, k4 = jax.random.split(key, 5)
        w = 0.1 * jax.random.normal(k1, (KSIZE, KSIZE, cfg["cin"], cfg["cout"]), jnp.float32)
        b = (0.05 * jax.random.normal(k2, (cfg["cout"],), jnp.float32)
             if cfg["bias"] else jnp.zeros((cfg["cout"],), jnp.float32))
        gamma = (1.0 + 0.1 * jax.random.normal(k3, (cfg["cout"],), jnp.float32)
                 if cfg["bn"] else jnp.ones((cfg["cout"],), jnp.float32))
        beta = (0.1 * jax.random.normal(k4, (cfg["cout"],), jnp.float32)
                if cfg["bn"] else jnp.zeros((cfg["cout"],), jnp.float32))
        params.append(dict(w=w, b=b, gamma=gamma, beta=beta, stride=cfg["stride"],
                           has_bias=cfg["bias"], use_bn=cfg["bn"], use_act=cfg["act"]))
    return params


def reference_forward(x_nchw, params, matmul_dtype=jnp.float32):
    """Pure-JAX reference.  matmul_dtype=bfloat16 mirrors the kernel's MXU dtype."""
    x = jnp.transpose(x_nchw, (0, 2, 3, 1)).astype(jnp.float32)
    for p in params:
        y = lax.conv_general_dilated(
            x.astype(matmul_dtype), p["w"].astype(matmul_dtype),
            window_strides=(p["stride"], p["stride"]),
            padding=((PAD, PAD), (PAD, PAD)),
            dimension_numbers=("NHWC", "HWIO", "NHWC"),
            preferred_element_type=jnp.float32)
        y = y + p["b"].reshape(1, 1, 1, -1)
        if p["use_bn"]:
            mean = jnp.mean(y, axis=(0, 1, 2), keepdims=True)
            var = jnp.mean((y - mean) ** 2, axis=(0, 1, 2), keepdims=True)
            y = (y - mean) * lax.rsqrt(var + BN_EPS)
            y = y * p["gamma"].reshape(1, 1, 1, -1) + p["beta"].reshape(1, 1, 1, -1)
        if p["use_act"]:
            y = jnp.where(y > 0, y, LRELU_SLOPE * y)
        x = y
    return jnp.transpose(x, (0, 3, 1, 2))


if __name__ == "__main__":
    key = jax.random.PRNGKey(0)
    kx, kp = jax.random.split(key)

    # Spatial size 32 so the 5-conv (4x4, pad=1) stack keeps a >0 spatial extent:
    # 32 -> 16 -> 8 -> 4 -> 3 -> 2   => output (B, 1, 2, 2), same as PyTorch.
    B, C, H, W = 2, 4, 32, 32
    x = jax.random.normal(kx, (B, C, H, W), jnp.float32)

    params = init_params(kp, channels_in=C, channels=16, n_layers=2, channels_max=512)

    fwd = make_patch_discriminator(params, (B, C, H, W))
    out = jax.block_until_ready(fwd(x))

    ref32 = jax.block_until_ready(reference_forward(x, params, jnp.float32))
    refbf = jax.block_until_ready(reference_forward(x, params, jnp.bfloat16))

    assert out.shape == (B, 1, 2, 2), out.shape
    scale = max(1.0, float(jnp.max(jnp.abs(ref32))))
    err_bf = float(jnp.max(jnp.abs(out - refbf))) / scale
    err_32 = float(jnp.max(jnp.abs(out - ref32))) / scale
    assert err_bf < 1e-2, f"relative error vs bf16-matmul reference: {err_bf}"
    assert err_32 < 1e-1, f"relative error vs f32 reference: {err_32}"

    print("KERNEL_OK")
</pallas_src>

<mosaic_0001>
module attributes {stable_mosaic.version = 11 : i64} {
  func.func @kernel(%arg0: memref<64x128xf32, #tpu.memory_space<vmem>>, %arg1: memref<4x32x64xbf16, #tpu.memory_space<vmem>>, %arg2: memref<512x256xbf16, #tpu.memory_space<vmem>>, %arg3: memref<1x256xf32, #tpu.memory_space<vmem>>, %arg4: memref<4x16x32xbf16, #tpu.memory_space<vmem>>, %arg5: memref<1024x256xbf16, #tpu.memory_space<vmem>>, %arg6: memref<256x32xf32, #tpu.memory_space<vmem>>, %arg7: memref<32x256xf32, #tpu.memory_space<vmem>>, %arg8: memref<1x32xf32, #tpu.memory_space<vmem>>, %arg9: memref<1x32xf32, #tpu.memory_space<vmem>>, %arg10: memref<4x8x16xbf16, #tpu.memory_space<vmem>>, %arg11: memref<1024x256xbf16, #tpu.memory_space<vmem>>, %arg12: memref<256x64xf32, #tpu.memory_space<vmem>>, %arg13: memref<64x256xf32, #tpu.memory_space<vmem>>, %arg14: memref<1x64xf32, #tpu.memory_space<vmem>>, %arg15: memref<1x64xf32, #tpu.memory_space<vmem>>, %arg16: memref<4x6x8xbf16, #tpu.memory_space<vmem>>, %arg17: memref<1024x384xbf16, #tpu.memory_space<vmem>>, %arg18: memref<384x128xf32, #tpu.memory_space<vmem>>, %arg19: memref<128x384xf32, #tpu.memory_space<vmem>>, %arg20: memref<1x128xf32, #tpu.memory_space<vmem>>, %arg21: memref<1x128xf32, #tpu.memory_space<vmem>>, %arg22: memref<4x4x6xbf16, #tpu.memory_space<vmem>>, %arg23: memref<1536x2xbf16, #tpu.memory_space<vmem>>, %arg24: memref<1x2xf32, #tpu.memory_space<vmem>>, %arg25: memref<4x2xf32, #tpu.memory_space<vmem>>) attributes {dimension_semantics = [], scalar_prefetch = 0 : i64, scratch_operands = 0 : i64, tpu.core_type = #tpu.core_type<tc>} {
    %c0 = arith.constant 0 : index
    %c0_0 = arith.constant 0 : index
    %0 = vector.load %arg0[%c0, %c0_0] : memref<64x128xf32, #tpu.memory_space<vmem>>, vector<64x128xf32>
    %1 = arith.truncf %0 : vector<64x128xf32> to vector<64x128xbf16>
    %c0_1 = arith.constant 0 : index
    %c0_2 = arith.constant 0 : index
    %c0_3 = arith.constant 0 : index
    %2 = vector.load %arg1[%c0_1, %c0_2, %c0_3] : memref<4x32x64xbf16, #tpu.memory_space<vmem>>, vector<1x32x64xbf16>
    %3 = vector.shape_cast %2 : vector<1x32x64xbf16> to vector<32x64xbf16>
    %cst = arith.constant dense<0.000000e+00> : vector<32x128xf32>
    %4 = tpu.matmul %3, %1, %cst {dimension_numbers = #tpu.dot_dimension_numbers<[1], [0], [0], [1], [0, 0, 1, 1], [], []>} : vector<32x64xbf16>, vector<64x128xbf16>, vector<32x128xf32> -> vector<32x128xf32>
    %5 = arith.truncf %4 : vector<32x128xf32> to vector<32x128xbf16>
    %c1 = arith.constant 1 : index
    %c0_4 = arith.constant 0 : index
    %c0_5 = arith.constant 0 : index
    %6 = vector.load %arg1[%c1, %c0_4, %c0_5] : memref<4x32x64xbf16, #tpu.memory_space<vmem>>, vector<1x32x64xbf16>
    %7 = vector.shape_cast %6 : vector<1x32x64xbf16> to vector<32x64xbf16>
    %cst_6 = arith.constant dense<0.000000e+00> : vector<32x128xf32>
    %8 = tpu.matmul %7, %1, %cst_6 {dimension_numbers = #tpu.dot_dimension_numbers<[1], [0], [0], [1], [0, 0, 1, 1], [], []>} : vector<32x64xbf16>, vector<64x128xbf16>, vector<32x128xf32> -> vector<32x128xf32>
    %9 = arith.truncf %8 : vector<32x128xf32> to vector<32x128xbf16>
    %c2 = arith.constant 2 : index
    %c0_7 = arith.constant 0 : index
    %c0_8 = arith.constant 0 : index
    %10 = vector.load %arg1[%c2, %c0_7, %c0_8] : memref<4x32x64xbf16, #tpu.memory_space<vmem>>, vector<1x32x64xbf16>
    %11 = vector.shape_cast %10 : vector<1x32x64xbf16> to vector<32x64xbf16>
    %cst_9 = arith.constant dense<0.000000e+00> : vector<32x128xf32>
    %12 = tpu.matmul %11, %1, %cst_9 {dimension_numbers = #tpu.dot_dimension_numbers<[1], [0], [0], [1], [0, 0, 1, 1], [], []>} : vector<32x64xbf16>, vector<64x128xbf16>, vector<32x128xf32> -> vector<32x128xf32>
    %13 = arith.truncf %12 : vector<32x128xf32> to vector<32x128xbf16>
    %c3 = arith.constant 3 : index
    %c0_10 = arith.constant 0 : index
    %c0_11 = arith.constant 0 : index
    %14 = vector.load %arg1[%c3, %c0_10, %c0_11] : memref<4x32x64xbf16, #tpu.memory_space<vmem>>, vector<1x32x64xbf16>
    %15 = vector.shape_cast %14 : vector<1x32x64xbf16> to vector<32x64xbf16>
    %cst_12 = arith.constant dense<0.000000e+00> : vector<32x128xf32>
    %16 = tpu.matmul %15, %1, %cst_12 {dimension_numbers = #tpu.dot_dimension_numbers<[1], [0], [0], [1], [0, 0, 1, 1], [], []>} : vector<32x64xbf16>, vector<64x128xbf16>, vector<32x128xf32> -> vector<32x128xf32>
    %17 = arith.truncf %16 : vector<32x128xf32> to vector<32x128xbf16>
    %18 = tpu.concatenate %5, %9, %13, %17 in 1 : vector<32x128xbf16>, vector<32x128xbf16>, vector<32x128xbf16>, vector<32x128xbf16> -> vector<32x512xbf16>
    %c0_13 = arith.constant 0 : index
    %c0_14 = arith.constant 0 : index
    %19 = vector.load %arg2[%c0_13, %c0_14] : memref<512x256xbf16, #tpu.memory_space<vmem>>, vector<512x256xbf16>
    %cst_15 = arith.constant dense<0.000000e+00> : vector<32x256xf32>
    %20 = tpu.matmul %18, %19, %cst_15 {dimension_numbers = #tpu.dot_dimension_numbers<[1], [0], [0], [1], [0, 0, 1, 1], [], []>} : vector<32x512xbf16>, vector<512x256xbf16>, vector<32x256xf32> -> vector<32x256xf32>
    %c0_16 = arith.constant 0 : index
    %c0_17 = arith.constant 0 : index
    %21 = vector.load %arg3[%c0_16, %c0_17] : memref<1x256xf32, #tpu.memory_space<vmem>>, vector<1x256xf32>
    %22 = vector.broadcast %21 : vector<1x256xf32> to vector<32x256xf32>
    %23 = arith.addf %20, %22 : vector<32x256xf32>
    %cst_18 = arith.constant 0.000000e+00 : f32
    %24 = vector.broadcast %cst_18 : f32 to vector<32x256xf32>
    %25 = arith.cmpf ogt, %23, %24 : vector<32x256xf32>
    %cst_19 = arith.constant 2.000000e-01 : f32
    %26 = vector.broadcast %cst_19 : f32 to vector<32x256xf32>
    %27 = arith.mulf %26, %23 : vector<32x256xf32>
    %28 = arith.select %25, %23, %27 : vector<32x256xi1>, vector<32x256xf32>
    %29 = arith.truncf %28 : vector<32x256xf32> to vector<32x256xbf16>
    %c0_20 = arith.constant 0 : index
    %c0_21 = arith.constant 0 : index
    %c0_22 = arith.constant 0 : index
    %30 = vector.load %arg4[%c0_20, %c0_21, %c0_22] : memref<4x16x32xbf16, #tpu.memory_space<vmem>>, vector<1x16x32xbf16>
    %31 = vector.shape_cast %30 : vector<1x16x32xbf16> to vector<16x32xbf16>
    %cst_23 = arith.constant dense<0.000000e+00> : vector<16x256xf32>
    %32 = tpu.matmul %31, %29, %cst_23 {dimension_numbers = #tpu.dot_dimension_numbers<[1], [0], [0], [1], [0, 0, 1, 1], [], []>} : vector<16x32xbf16>, vector<32x256xbf16>, vector<16x256xf32> -> vector<16x256xf32>
    %33 = arith.truncf %32 : vector<16x256xf32> to vector<16x256xbf16>
    %c1_24 = arith.constant 1 : index
    %c0_25 = arith.constant 0 : index
    %c0_26 = arith.constant 0 : index
    %34 = vector.load %arg4[%c1_24, %c0_25, %c0_26] : memref<4x16x32xbf16, #tpu.memory_space<vmem>>, vector<1x16x32xbf16>
    %35 = vector.shape_cast %34 : vector<1x16x32xbf16> to vector<16x32xbf16>
    %cst_27 = arith.constant dense<0.000000e+00> : vector<16x256xf32>
    %36 = tpu.matmul %35, %29, %cst_27 {dimension_numbers = #tpu.dot_dimension_numbers<[1], [0], [0], [1], [0, 0, 1, 1], [], []>} : vector<16x32xbf16>, vector<32x256xbf16>, vector<16x256xf32> -> vector<16x256xf32>
    %37 = arith.truncf %36 : vector<16x256xf32> to vector<16x256xbf16>
    %c2_28 = arith.constant 2 : index
    %c0_29 = arith.constant 0 : index
    %c0_30 = arith.constant 0 : index
    %38 = vector.load %arg4[%c2_28, %c0_29, %c0_30] : memref<4x16x32xbf16, #tpu.memory_space<vmem>>, vector<1x16x32xbf16>
    %39 = vector.shape_cast %38 : vector<1x16x32xbf16> to vector<16x32xbf16>
    %cst_31 = arith.constant dense<0.000000e+00> : vector<16x256xf32>
    %40 = tpu.matmul %39, %29, %cst_31 {dimension_numbers = #tpu.dot_dimension_numbers<[1], [0], [0], [1], [0, 0, 1, 1], [], []>} : vector<16x32xbf16>, vector<32x256xbf16>, vector<16x256xf32> -> vector<16x256xf32>
    %41 = arith.truncf %40 : vector<16x256xf32> to vector<16x256xbf16>
    %c3_32 = arith.constant 3 : index
    %c0_33 = arith.constant 0 : index
    %c0_34 = arith.constant 0 : index
    %42 = vector.load %arg4[%c3_32, %c0_33, %c0_34] : memref<4x16x32xbf16, #tpu.memory_space<vmem>>, vector<1x16x32xbf16>
    %43 = vector.shape_cast %42 : vector<1x16x32xbf16> to vector<16x32xbf16>
    %cst_35 = arith.constant dense<0.000000e+00> : vector<16x256xf32>
    %44 = tpu.matmul %43, %29, %cst_35 {dimension_numbers = #tpu.dot_dimension_numbers<[1], [0], [0], [1], [0, 0, 1, 1], [], []>} : vector<16x32xbf16>, vector<32x256xbf16>, vector<16x256xf32> -> vector<16x256xf32>
    %45 = arith.truncf %44 : vector<16x256xf32> to vector<16x256xbf16>
    %46 = tpu.concatenate %33, %37, %41, %45 in 1 : vector<16x256xbf16>, vector<16x256xbf16>, vector<16x256xbf16>, vector<16x256xbf16> -> vector<16x1024xbf16>
    %c0_36 = arith.constant 0 : index
    %c0_37 = arith.constant 0 : index
    %47 = vector.load %arg5[%c0_36, %c0_37] : memref<1024x256xbf16, #tpu.memory_space<vmem>>, vector<1024x256xbf16>
    %cst_38 = arith.constant dense<0.000000e+00> : vector<16x256xf32>
    %48 = tpu.matmul %46, %47, %cst_38 {dimension_numbers = #tpu.dot_dimension_numbers<[1], [0], [0], [1], [0, 0, 1, 1], [], []>} : vector<16x1024xbf16>, vector<1024x256xbf16>, vector<16x256xf32> -> vector<16x256xf32>
    %cst_39 = arith.constant dense<0.000000e+00> : vector<256xf32>
    %49 = vector.multi_reduction <add>, %48, %cst_39 [0] : vector<16x256xf32> to vector<256xf32>
    %50 = vector.shape_cast %49 : vector<256xf32> to vector<1x256xf32>
    %51 = arith.mulf %48, %48 : vector<16x256xf32>
    %cst_40 = arith.constant dense<0.000000e+00> : vector<256xf32>
    %52 = vector.multi_reduction <add>, %51, %cst_40 [0] : vector<16x256xf32> to vector<256xf32>
    %53 = vector.shape_cast %52 : vector<256xf32> to vector<1x256xf32>
    %54 = tpu.concatenate %50, %53 in 0 : vector<1x256xf32>, vector<1x256xf32> -> vector<2x256xf32>
    %c0_41 = arith.constant 0 : index
    %c0_42 = arith.constant 0 : index
    %55 = vector.load %arg6[%c0_41, %c0_42] : memref<256x32xf32, #tpu.memory_space<vmem>>, vector<256x32xf32>
    %cst_43 = arith.constant dense<0.000000e+00> : vector<2x32xf32>
    %56 = tpu.matmul %54, %55, %cst_43 {dimension_numbers = #tpu.dot_dimension_numbers<[1], [0], [0], [1], [0, 0, 1, 1], [], []>} : vector<2x256xf32>, vector<256x32xf32>, vector<2x32xf32> -> vector<2x32xf32>
    %cst_44 = arith.constant 7.812500e-03 : f32
    %57 = vector.broadcast %cst_44 : f32 to vector<2x32xf32>
    %58 = arith.mulf %56, %57 : vector<2x32xf32>
    %59 = vector.extract_strided_slice %58 {offsets = [0, 0], sizes = [1, 32], strides = [1, 1]} : vector<2x32xf32> to vector<1x32xf32>
    %60 = vector.extract_strided_slice %58 {offsets = [1, 0], sizes = [1, 32], strides = [1, 1]} : vector<2x32xf32> to vector<1x32xf32>
    %61 = arith.mulf %59, %59 : vector<1x32xf32>
    %62 = arith.subf %60, %61 : vector<1x32xf32>
    %cst_45 = arith.constant 0.000000e+00 : f32
    %63 = vector.broadcast %cst_45 : f32 to vector<1x32xf32>
    %64 = arith.maximumf %62, %63 : vector<1x32xf32>
    %c0_46 = arith.constant 0 : index
    %c0_47 = arith.constant 0 : index
    %65 = vector.load %arg8[%c0_46, %c0_47] : memref<1x32xf32, #tpu.memory_space<vmem>>, vector<1x32xf32>
    %cst_48 = arith.constant 9.99999974E-6 : f32
    %66 = vector.broadcast %cst_48 : f32 to vector<1x32xf32>
    %67 = arith.addf %64, %66 : vector<1x32xf32>
    %68 = math.rsqrt %67 : vector<1x32xf32>
    %69 = arith.mulf %65, %68 : vector<1x32xf32>
    %c0_49 = arith.constant 0 : index
    %c0_50 = arith.constant 0 : index
    %70 = vector.load %arg9[%c0_49, %c0_50] : memref<1x32xf32, #tpu.memory_space<vmem>>, vector<1x32xf32>
    %71 = arith.mulf %59, %69 : vector<1x32xf32>
    %72 = arith.subf %70, %71 : vector<1x32xf32>
    %73 = tpu.concatenate %69, %72 in 0 : vector<1x32xf32>, vector<1x32xf32> -> vector<2x32xf32>
    %c0_51 = arith.constant 0 : index
    %c0_52 = arith.constant 0 : index
    %74 = vector.load %arg7[%c0_51, %c0_52] : memref<32x256xf32, #tpu.memory_space<vmem>>, vector<32x256xf32>
    %cst_53 = arith.constant dense<0.000000e+00> : vector<2x256xf32>
    %75 = tpu.matmul %73, %74, %cst_53 {dimension_numbers = #tpu.dot_dimension_numbers<[1], [0], [0], [1], [0, 0, 1, 1], [], []>} : vector<2x32xf32>, vector<32x256xf32>, vector<2x256xf32> -> vector<2x256xf32>
    %76 = vector.extract_strided_slice %75 {offsets = [0, 0], sizes = [1, 256], strides = [1, 1]} : vector<2x256xf32> to vector<1x256xf32>
    %77 = vector.broadcast %76 : vector<1x256xf32> to vector<16x256xf32>
    %78 = arith.mulf %48, %77 : vector<16x256xf32>
    %79 = vector.extract_strided_slice %75 {offsets = [1, 0], sizes = [1, 256], strides = [1, 1]} : vector<2x256xf32> to vector<1x256xf32>
    %80 = vector.broadcast %79 : vector<1x256xf32> to vector<16x256xf32>
    %81 = arith.addf %78, %80 : vector<16x256xf32>
    %cst_54 = arith.constant 0.000000e+00 : f32
    %82 = vector.broadcast %cst_54 : f32 to vector<16x256xf32>
    %83 = arith.cmpf ogt, %81, %82 : vector<16x256xf32>
    %cst_55 = arith.constant 2.000000e-01 : f32
    %84 = vector.broadcast %cst_55 : f32 to vector<16x256xf32>
    %85 = arith.mulf %84, %81 : vector<16x256xf32>
    %86 = arith.select %83, %81, %85 : vector<16x256xi1>, vector<16x256xf32>
    %87 = arith.truncf %86 : vector<16x256xf32> to vector<16x256xbf16>
    %c0_56 = arith.constant 0 : index
    %c0_57 = arith.constant 0 : index
    %c0_58 = arith.constant 0 : index
    %88 = vector.load %arg10[%c0_56, %c0_57, %c0_58] : memref<4x8x16xbf16, #tpu.memory_space<vmem>>, vector<1x8x16xbf16>
    %89 = vector.shape_cast %88 : vector<1x8x16xbf16> to vector<8x16xbf16>
    %cst_59 = arith.constant dense<0.000000e+00> : vector<8x256xf32>
    %90 = tpu.matmul %89, %87, %cst_59 {dimension_numbers = #tpu.dot_dimension_numbers<[1], [0], [0], [1], [0, 0, 1, 1], [], []>} : vector<8x16xbf16>, vector<16x256xbf16>, vector<8x256xf32> -> vector<8x256xf32>
    %91 = arith.truncf %90 : vector<8x256xf32> to vector<8x256xbf16>
    %c1_60 = arith.constant 1 : index
    %c0_61 = arith.constant 0 : index
    %c0_62 = arith.constant 0 : index
    %92 = vector.load %arg10[%c1_60, %c0_61, %c0_62] : memref<4x8x16xbf16, #tpu.memory_space<vmem>>, vector<1x8x16xbf16>
    %93 = vector.shape_cast %92 : vector<1x8x16xbf16> to vector<8x16xbf16>
    %cst_63 = arith.constant dense<0.000000e+00> : vector<8x256xf32>
    %94 = tpu.matmul %93, %87, %cst_63 {dimension_numbers = #tpu.dot_dimension_numbers<[1], [0], [0], [1], [0, 0, 1, 1], [], []>} : vector<8x16xbf16>, vector<16x256xbf16>, vector<8x256xf32> -> vector<8x256xf32>
    %95 = arith.truncf %94 : vector<8x256xf32> to vector<8x256xbf16>
    %c2_64 = arith.constant 2 : index
    %c0_65 = arith.constant 0 : index
    %c0_66 = arith.constant 0 : index
    %96 = vector.load %arg10[%c2_64, %c0_65, %c0_66] : memref<4x8x16xbf16, #tpu.memory_space<vmem>>, vector<1x8x16xbf16>
    %97 = vector.shape_cast %96 : vector<1x8x16xbf16> to vector<8x16xbf16>
    %cst_67 = arith.constant dense<0.000000e+00> : vector<8x256xf32>
    %98 = tpu.matmul %97, %87, %cst_67 {dimension_numbers = #tpu.dot_dimension_numbers<[1], [0], [0], [1], [0, 0, 1, 1], [], []>} : vector<8x16xbf16>, vector<16x256xbf16>, vector<8x256xf32> -> vector<8x256xf32>
    %99 = arith.truncf %98 : vector<8x256xf32> to vector<8x256xbf16>
    %c3_68 = arith.constant 3 : index
    %c0_69 = arith.constant 0 : index
    %c0_70 = arith.constant 0 : index
    %100 = vector.load %arg10[%c3_68, %c0_69, %c0_70] : memref<4x8x16xbf16, #tpu.memory_space<vmem>>, vector<1x8x16xbf16>
    %101 = vector.shape_cast %100 : vector<1x8x16xbf16> to vector<8x16xbf16>
    %cst_71 = arith.constant dense<0.000000e+00> : vector<8x256xf32>
    %102 = tpu.matmul %101, %87, %cst_71 {dimension_numbers = #tpu.dot_dimension_numbers<[1], [0], [0], [1], [0, 0, 1, 1], [], []>} : vector<8x16xbf16>, vector<16x256xbf16>, vector<8x256xf32> -> vector<8x256xf32>
    %103 = arith.truncf %102 : vector<8x256xf32> to vector<8x256xbf16>
    %104 = tpu.concatenate %91, %95, %99, %103 in 1 : vector<8x256xbf16>, vector<8x256xbf16>, vector<8x256xbf16>, vector<8x256xbf16> -> vector<8x1024xbf16>
    %c0_72 = arith.constant 0 : index
    %c0_73 = arith.constant 0 : index
    %105 = vector.load %arg11[%c0_72, %c0_73] : memref<1024x256xbf16, #tpu.memory_space<vmem>>, vector<1024x256xbf16>
    %cst_74 = arith.constant dense<0.000000e+00> : vector<8x256xf32>
    %106 = tpu.matmul %104, %105, %cst_74 {dimension_numbers = #tpu.dot_dimension_numbers<[1], [0], [0], [1], [0, 0, 1, 1], [], []>} : vector<8x1024xbf16>, vector<1024x256xbf16>, vector<8x256xf32> -> vector<8x256xf32>
    %cst_75 = arith.constant dense<0.000000e+00> : vector<256xf32>
    %107 = vector.multi_reduction <add>, %106, %cst_75 [0] : vector<8x256xf32> to vector<256xf32>
    %108 = vector.shape_cast %107 : vector<256xf32> to vector<1x256xf32>
    %109 = arith.mulf %106, %106 : vector<8x256xf32>
    %cst_76 = arith.constant dense<0.000000e+00> : vector<256xf32>
    %110 = vector.multi_reduction <add>, %109, %cst_76 [0] : vector<8x256xf32> to vector<256xf32>
    %111 = vector.shape_cast %110 : vector<256xf32> to vector<1x256xf32>
    %112 = tpu.concatenate %108, %111 in 0 : vector<1x256xf32>, vector<1x256xf32> -> vector<2x256xf32>
    %c0_77 = arith.constant 0 : index
    %c0_78 = arith.constant 0 : index
    %113 = vector.load %arg12[%c0_77, %c0_78] : memref<256x64xf32, #tpu.memory_space<vmem>>, vector<256x64xf32>
    %cst_79 = arith.constant dense<0.000000e+00> : vector<2x64xf32>
    %114 = tpu.matmul %112, %113, %cst_79 {dimension_numbers = #tpu.dot_dimension_numbers<[1], [0], [0], [1], [0, 0, 1, 1], [], []>} : vector<2x256xf32>, vector<256x64xf32>, vector<2x64xf32> -> vector<2x64xf32>
    %cst_80 = arith.constant 3.125000e-02 : f32
    %115 = vector.broadcast %cst_80 : f32 to vector<2x64xf32>
    %116 = arith.mulf %114, %115 : vector<2x64xf32>
    %117 = vector.extract_strided_slice %116 {offsets = [0, 0], sizes = [1, 64], strides = [1, 1]} : vector<2x64xf32> to vector<1x64xf32>
    %118 = vector.extract_strided_slice %116 {offsets = [1, 0], sizes = [1, 64], strides = [1, 1]} : vector<2x64xf32> to vector<1x64xf32>
    %119 = arith.mulf %117, %117 : vector<1x64xf32>
    %120 = arith.subf %118, %119 : vector<1x64xf32>
    %cst_81 = arith.constant 0.000000e+00 : f32
    %121 = vector.broadcast %cst_81 : f32 to vector<1x64xf32>
    %122 = arith.maximumf %120, %121 : vector<1x64xf32>
    %c0_82 = arith.constant 0 : index
    %c0_83 = arith.constant 0 : index
    %123 = vector.load %arg14[%c0_82, %c0_83] : memref<1x64xf32, #tpu.memory_space<vmem>>, vector<1x64xf32>
    %cst_84 = arith.constant 9.99999974E-6 : f32
    %124 = vector.broadcast %cst_84 : f32 to vector<1x64xf32>
    %125 = arith.addf %122, %124 : vector<1x64xf32>
    %126 = math.rsqrt %125 : vector<1x64xf32>
    %127 = arith.mulf %123, %126 : vector<1x64xf32>
    %c0_85 = arith.constant 0 : index
    %c0_86 = arith.constant 0 : index
    %128 = vector.load %arg15[%c0_85, %c0_86] : memref<1x64xf32, #tpu.memory_space<vmem>>, vector<1x64xf32>
    %129 = arith.mulf %117, %127 : vector<1x64xf32>
    %130 = arith.subf %128, %129 : vector<1x64xf32>
    %131 = tpu.concatenate %127, %130 in 0 : vector<1x64xf32>, vector<1x64xf32> -> vector<2x64xf32>
    %c0_87 = arith.constant 0 : index
    %c0_88 = arith.constant 0 : index
    %132 = vector.load %arg13[%c0_87, %c0_88] : memref<64x256xf32, #tpu.memory_space<vmem>>, vector<64x256xf32>
    %cst_89 = arith.constant dense<0.000000e+00> : vector<2x256xf32>
    %133 = tpu.matmul %131, %132, %cst_89 {dimension_numbers = #tpu.dot_dimension_numbers<[1], [0], [0], [1], [0, 0, 1, 1], [], []>} : vector<2x64xf32>, vector<64x256xf32>, vector<2x256xf32> -> vector<2x256xf32>
    %134 = vector.extract_strided_slice %133 {offsets = [0, 0], sizes = [1, 256], strides = [1, 1]} : vector<2x256xf32> to vector<1x256xf32>
    %135 = vector.broadcast %134 : vector<1x256xf32> to vector<8x256xf32>
    %136 = arith.mulf %106, %135 : vector<8x256xf32>
    %137 = vector.extract_strided_slice %133 {offsets = [1, 0], sizes = [1, 256], strides = [1, 1]} : vector<2x256xf32> to vector<1x256xf32>
    %138 = vector.broadcast %137 : vector<1x256xf32> to vector<8x256xf32>
    %139 = arith.addf %136, %138 : vector<8x256xf32>
    %cst_90 = arith.constant 0.000000e+00 : f32
    %140 = vector.broadcast %cst_90 : f32 to vector<8x256xf32>
    %141 = arith.cmpf ogt, %139, %140 : vector<8x256xf32>
    %cst_91 = arith.constant 2.000000e-01 : f32
    %142 = vector.broadcast %cst_91 : f32 to vector<8x256xf32>
    %143 = arith.mulf %142, %139 : vector<8x256xf32>
    %144 = arith.select %141, %139, %143 : vector<8x256xi1>, vector<8x256xf32>
    %145 = arith.truncf %144 : vector<8x256xf32> to vector<8x256xbf16>
    %c0_92 = arith.constant 0 : index
    %c0_93 = arith.constant 0 : index
    %c0_94 = arith.constant 0 : index
    %146 = vector.load %arg16[%c0_92, %c0_93, %c0_94] : memref<4x6x8xbf16, #tpu.memory_space<vmem>>, vector<1x6x8xbf16>
    %147 = vector.shape_cast %146 : vector<1x6x8xbf16> to vector<6x8xbf16>
    %cst_95 = arith.constant dense<0.000000e+00> : vector<6x256xf32>
    %148 = tpu.matmul %147, %145, %cst_95 {dimension_numbers = #tpu.dot_dimension_numbers<[1], [0], [0], [1], [0, 0, 1, 1], [], []>} : vector<6x8xbf16>, vector<8x256xbf16>, vector<6x256xf32> -> vector<6x256xf32>
    %149 = arith.truncf %148 : vector<6x256xf32> to vector<6x256xbf16>
    %c1_96 = arith.constant 1 : index
    %c0_97 = arith.constant 0 : index
    %c0_98 = arith.constant 0 : index
    %150 = vector.load %arg16[%c1_96, %c0_97, %c0_98] : memref<4x6x8xbf16, #tpu.memory_space<vmem>>, vector<1x6x8xbf16>
    %151 = vector.shape_cast %150 : vector<1x6x8xbf16> to vector<6x8xbf16>
    %cst_99 = arith.constant dense<0.000000e+00> : vector<6x256xf32>
    %152 = tpu.matmul %151, %145, %cst_99 {dimension_numbers = #tpu.dot_dimension_numbers<[1], [0], [0], [1], [0, 0, 1, 1], [], []>} : vector<6x8xbf16>, vector<8x256xbf16>, vector<6x256xf32> -> vector<6x256xf32>
    %153 = arith.truncf %152 : vector<6x256xf32> to vector<6x256xbf16>
    %c2_100 = arith.constant 2 : index
    %c0_101 = arith.constant 0 : index
    %c0_102 = arith.constant 0 : index
    %154 = vector.load %arg16[%c2_100, %c0_101, %c0_102] : memref<4x6x8xbf16, #tpu.memory_space<vmem>>, vector<1x6x8xbf16>
    %155 = vector.shape_cast %154 : vector<1x6x8xbf16> to vector<6x8xbf16>
    %cst_103 = arith.constant dense<0.000000e+00> : vector<6x256xf32>
    %156 = tpu.matmul %155, %145, %cst_103 {dimension_numbers = #tpu.dot_dimension_numbers<[1], [0], [0], [1], [0, 0, 1, 1], [], []>} : vector<6x8xbf16>, vector<8x256xbf16>, vector<6x256xf32> -> vector<6x256xf32>
    %157 = arith.truncf %156 : vector<6x256xf32> to vector<6x256xbf16>
    %c3_104 = arith.constant 3 : index
    %c0_105 = arith.constant 0 : index
    %c0_106 = arith.constant 0 : index
    %158 = vector.load %arg16[%c3_104, %c0_105, %c0_106] : memref<4x6x8xbf16, #tpu.memory_space<vmem>>, vector<1x6x8xbf16>
    %159 = vector.shape_cast %158 : vector<1x6x8xbf16> to vector<6x8xbf16>
    %cst_107 = arith.constant dense<0.000000e+00> : vector<6x256xf32>
    %160 = tpu.matmul %159, %145, %cst_107 {dimension_numbers = #tpu.dot_dimension_numbers<[1], [0], [0], [1], [0, 0, 1, 1], [], []>} : vector<6x8xbf16>, vector<8x256xbf16>, vector<6x256xf32> -> vector<6x256xf32>
    %161 = arith.truncf %160 : vector<6x256xf32> to vector<6x256xbf16>
    %162 = tpu.concatenate %149, %153, %157, %161 in 1 : vector<6x256xbf16>, vector<6x256xbf16>, vector<6x256xbf16>, vector<6x256xbf16> -> vector<6x1024xbf16>
    %c0_108 = arith.constant 0 : index
    %c0_109 = arith.constant 0 : index
    %163 = vector.load %arg17[%c0_108, %c0_109] : memref<1024x384xbf16, #tpu.memory_space<vmem>>, vector<1024x384xbf16>
    %cst_110 = arith.constant dense<0.000000e+00> : vector<6x384xf32>
    %164 = tpu.matmul %162, %163, %cst_110 {dimension_numbers = #tpu.dot_dimension_numbers<[1], [0], [0], [1], [0, 0, 1, 1], [], []>} : vector<6x1024xbf16>, vector<1024x384xbf16>, vector<6x384xf32> -> vector<6x384xf32>
    %cst_111 = arith.constant dense<0.000000e+00> : vector<384xf32>
    %165 = vector.multi_reduction <add>, %164, %cst_111 [0] : vector<6x384xf32> to vector<384xf32>
    %166 = vector.shape_cast %165 : vector<384xf32> to vector<1x384xf32>
    %167 = arith.mulf %164, %164 : vector<6x384xf32>
    %cst_112 = arith.constant dense<0.000000e+00> : vector<384xf32>
    %168 = vector.multi_reduction <add>, %167, %cst_112 [0] : vector<6x384xf32> to vector<384xf32>
    %169 = vector.shape_cast %168 : vector<384xf32> to vector<1x384xf32>
    %170 = tpu.concatenate %166, %169 in 0 : vector<1x384xf32>, vector<1x384xf32> -> vector<2x384xf32>
    %c0_113 = arith.constant 0 : index
    %c0_114 = arith.constant 0 : index
    %171 = vector.load %arg18[%c0_113, %c0_114] : memref<384x128xf32, #tpu.memory_space<vmem>>, vector<384x128xf32>
    %cst_115 = arith.constant dense<0.000000e+00> : vector<2x128xf32>
    %172 = tpu.matmul %170, %171, %cst_115 {dimension_numbers = #tpu.dot_dimension_numbers<[1], [0], [0], [1], [0, 0, 1, 1], [], []>} : vector<2x384xf32>, vector<384x128xf32>, vector<2x128xf32> -> vector<2x128xf32>
    %cst_116 = arith.constant 0.055555556 : f32
    %173 = vector.broadcast %cst_116 : f32 to vector<2x128xf32>
    %174 = arith.mulf %172, %173 : vector<2x128xf32>
    %175 = vector.extract_strided_slice %174 {offsets = [0, 0], sizes = [1, 128], strides = [1, 1]} : vector<2x128xf32> to vector<1x128xf32>
    %176 = vector.extract_strided_slice %174 {offsets = [1, 0], sizes = [1, 128], strides = [1, 1]} : vector<2x128xf32> to vector<1x128xf32>
    %177 = arith.mulf %175, %175 : vector<1x128xf32>
    %178 = arith.subf %176, %177 : vector<1x128xf32>
    %cst_117 = arith.constant 0.000000e+00 : f32
    %179 = vector.broadcast %cst_117 : f32 to vector<1x128xf32>
    %180 = arith.maximumf %178, %179 : vector<1x128xf32>
    %c0_118 = arith.constant 0 : index
    %c0_119 = arith.constant 0 : index
    %181 = vector.load %arg20[%c0_118, %c0_119] : memref<1x128xf32, #tpu.memory_space<vmem>>, vector<1x128xf32>
    %cst_120 = arith.constant 9.99999974E-6 : f32
    %182 = vector.broadcast %cst_120 : f32 to vector<1x128xf32>
    %183 = arith.addf %180, %182 : vector<1x128xf32>
    %184 = math.rsqrt %183 : vector<1x128xf32>
    %185 = arith.mulf %181, %184 : vector<1x128xf32>
    %c0_121 = arith.constant 0 : index
    %c0_122 = arith.constant 0 : index
    %186 = vector.load %arg21[%c0_121, %c0_122] : memref<1x128xf32, #tpu.memory_space<vmem>>, vector<1x128xf32>
    %187 = arith.mulf %175, %185 : vector<1x128xf32>
    %188 = arith.subf %186, %187 : vector<1x128xf32>
    %189 = tpu.concatenate %185, %188 in 0 : vector<1x128xf32>, vector<1x128xf32> -> vector<2x128xf32>
    %c0_123 = arith.constant 0 : index
    %c0_124 = arith.constant 0 : index
    %190 = vector.load %arg19[%c0_123, %c0_124] : memref<128x384xf32, #tpu.memory_space<vmem>>, vector<128x384xf32>
    %cst_125 = arith.constant dense<0.000000e+00> : vector<2x384xf32>
    %191 = tpu.matmul %189, %190, %cst_125 {dimension_numbers = #tpu.dot_dimension_numbers<[1], [0], [0], [1], [0, 0, 1, 1], [], []>} : vector<2x128xf32>, vector<128x384xf32>, vector<2x384xf32> -> vector<2x384xf32>
    %192 = vector.extract_strided_slice %191 {offsets = [0, 0], sizes = [1, 384], strides = [1, 1]} : vector<2x384xf32> to vector<1x384xf32>
    %193 = vector.broadcast %192 : vector<1x384xf32> to vector<6x384xf32>
    %194 = arith.mulf %164, %193 : vector<6x384xf32>
    %195 = vector.extract_strided_slice %191 {offsets = [1, 0], sizes = [1, 384], strides = [1, 1]} : vector<2x384xf32> to vector<1x384xf32>
    %196 = vector.broadcast %195 : vector<1x384xf32> to vector<6x384xf32>
    %197 = arith.addf %194, %196 : vector<6x384xf32>
    %cst_126 = arith.constant 0.000000e+00 : f32
    %198 = vector.broadcast %cst_126 : f32 to vector<6x384xf32>
    %199 = arith.cmpf ogt, %197, %198 : vector<6x384xf32>
    %cst_127 = arith.constant 2.000000e-01 : f32
    %200 = vector.broadcast %cst_127 : f32 to vector<6x384xf32>
    %201 = arith.mulf %200, %197 : vector<6x384xf32>
    %202 = arith.select %199, %197, %201 : vector<6x384xi1>, vector<6x384xf32>
    %203 = arith.truncf %202 : vector<6x384xf32> to vector<6x384xbf16>
    %c0_128 = arith.constant 0 : index
    %c0_129 = arith.constant 0 : index
    %c0_130 = arith.constant 0 : index
    %204 = vector.load %arg22[%c0_128, %c0_129, %c0_130] : memref<4x4x6xbf16, #tpu.memory_space<vmem>>, vector<1x4x6xbf16>
    %205 = vector.shape_cast %204 : vector<1x4x6xbf16> to vector<4x6xbf16>
    %cst_131 = arith.constant dense<0.000000e+00> : vector<4x384xf32>
    %206 = tpu.matmul %205, %203, %cst_131 {dimension_numbers = #tpu.dot_dimension_numbers<[1], [0], [0], [1], [0, 0, 1, 1], [], []>} : vector<4x6xbf16>, vector<6x384xbf16>, vector<4x384xf32> -> vector<4x384xf32>
    %207 = arith.truncf %206 : vector<4x384xf32> to vector<4x384xbf16>
    %c1_132 = arith.constant 1 : index
    %c0_133 = arith.constant 0 : index
    %c0_134 = arith.constant 0 : index
    %208 = vector.load %arg22[%c1_132, %c0_133, %c0_134] : memref<4x4x6xbf16, #tpu.memory_space<vmem>>, vector<1x4x6xbf16>
    %209 = vector.shape_cast %208 : vector<1x4x6xbf16> to vector<4x6xbf16>
    %cst_135 = arith.constant dense<0.000000e+00> : vector<4x384xf32>
    %210 = tpu.matmul %209, %203, %cst_135 {dimension_numbers = #tpu.dot_dimension_numbers<[1], [0], [0], [1], [0, 0, 1, 1], [], []>} : vector<4x6xbf16>, vector<6x384xbf16>, vector<4x384xf32> -> vector<4x384xf32>
    %211 = arith.truncf %210 : vector<4x384xf32> to vector<4x384xbf16>
    %c2_136 = arith.constant 2 : index
    %c0_137 = arith.constant 0 : index
    %c0_138 = arith.constant 0 : index
    %212 = vector.load %arg22[%c2_136, %c0_137, %c0_138] : memref<4x4x6xbf16, #tpu.memory_space<vmem>>, vector<1x4x6xbf16>
    %213 = vector.shape_cast %212 : vector<1x4x6xbf16> to vector<4x6xbf16>
    %cst_139 = arith.constant dense<0.000000e+00> : vector<4x384xf32>
    %214 = tpu.matmul %213, %203, %cst_139 {dimension_numbers = #tpu.dot_dimension_numbers<[1], [0], [0], [1], [0, 0, 1, 1], [], []>} : vector<4x6xbf16>, vector<6x384xbf16>, vector<4x384xf32> -> vector<4x384xf32>
    %215 = arith.truncf %214 : vector<4x384xf32> to vector<4x384xbf16>
    %c3_140 = arith.constant 3 : index
    %c0_141 = arith.constant 0 : index
    %c0_142 = arith.constant 0 : index
    %216 = vector.load %arg22[%c3_140, %c0_141, %c0_142] : memref<4x4x6xbf16, #tpu.memory_space<vmem>>, vector<1x4x6xbf16>
    %217 = vector.shape_cast %216 : vector<1x4x6xbf16> to vector<4x6xbf16>
    %cst_143 = arith.constant dense<0.000000e+00> : vector<4x384xf32>
    %218 = tpu.matmul %217, %203, %cst_143 {dimension_numbers = #tpu.dot_dimension_numbers<[1], [0], [0], [1], [0, 0, 1, 1], [], []>} : vector<4x6xbf16>, vector<6x384xbf16>, vector<4x384xf32> -> vector<4x384xf32>
    %219 = arith.truncf %218 : vector<4x384xf32> to vector<4x384xbf16>
    %220 = tpu.concatenate %207, %211, %215, %219 in 1 : vector<4x384xbf16>, vector<4x384xbf16>, vector<4x384xbf16>, vector<4x384xbf16> -> vector<4x1536xbf16>
    %c0_144 = arith.constant 0 : index
    %c0_145 = arith.constant 0 : index
    %221 = vector.load %arg23[%c0_144, %c0_145] : memref<1536x2xbf16, #tpu.memory_space<vmem>>, vector<1536x2xbf16>
    %cst_146 = arith.constant dense<0.000000e+00> : vector<4x2xf32>
    %222 = tpu.matmul %220, %221, %cst_146 {dimension_numbers = #tpu.dot_dimension_numbers<[1], [0], [0], [1], [0, 0, 1, 1], [], []>} : vector<4x1536xbf16>, vector<1536x2xbf16>, vector<4x2xf32> -> vector<4x2xf32>
    %c0_147 = arith.constant 0 : index
    %c0_148 = arith.constant 0 : index
    %223 = vector.load %arg24[%c0_147, %c0_148] : memref<1x2xf32, #tpu.memory_space<vmem>>, vector<1x2xf32>
    %224 = vector.broadcast %223 : vector<1x2xf32> to vector<4x2xf32>
    %225 = arith.addf %222, %224 : vector<4x2xf32>
    %c0_149 = arith.constant 0 : index
    %c0_150 = arith.constant 0 : index
    %226 = vector.load %arg25[%c0_149, %c0_150] : memref<4x2xf32, #tpu.memory_space<vmem>>, vector<4x2xf32>
    tpu.vector_store %arg25[%c0_149, %c0_150], %225 {strides = array<i32>} : memref<4x2xf32, #tpu.memory_space<vmem>>, vector<4x2xf32>,
    return
  }
}

</mosaic_0001>

<bundles_post_ra>
// kernel: forward.1
= control target key start
LH: loop header
LB: loop body
LE: loop exit
PB: predicated region body
PF: predicated region fallthrough
CT: control target
= control target key end

     0   :  { %s13627_s0 = inlined_call_operand.vmem [shape: f32[64,128], index: 0, kind: input, shape index: {}]   ;;  %s13628_s1 = inlined_call_operand.hbm [shape: bf16[4,32,64], index: 1, kind: input, shape index: {}]   ;;  %s13629_s2 = inlined_call_operand.hbm [shape: bf16[512,256], index: 2, kind: input, shape index: {}]   ;;  %s13630_s3 = inlined_call_operand.hbm [shape: f32[1,256], index: 3, kind: input, shape index: {}]   ;;  %s13631_s4 = inlined_call_operand.vmem [shape: bf16[4,16,32], index: 4, kind: input, shape index: {}]   ;;  %s13632_s5 = inlined_call_operand.vmem [shape: bf16[1024,256], index: 5, kind: input, shape index: {}]   ;;  %s13633_s6 = inlined_call_operand.vmem [shape: f32[256,32], index: 6, kind: input, shape index: {}]   ;;  %s13634_s7 = inlined_call_operand.hbm [shape: f32[32,256], index: 7, kind: input, shape index: {}]   ;;  %s13635_s8 = inlined_call_operand.vmem [shape: f32[1,32], index: 8, kind: input, shape index: {}]   ;;  %s13636_s9 = inlined_call_operand.hbm [shape: f32[1,32], index: 9, kind: input, shape index: {}]   ;;  %s13637_s10 = inlined_call_operand.vmem [shape: bf16[4,8,16], index: 10, kind: input, shape index: {}]   ;;  %s13638_s11 = inlined_call_operand.hbm [shape: bf16[1024,256], index: 11, kind: input, shape index: {}]   ;;  %s13639_s12 = inlined_call_operand.vmem [shape: f32[256,64], index: 12, kind: input, shape index: {}]   ;;  %s13640_s13 = inlined_call_operand.hbm [shape: f32[64,256], index: 13, kind: input, shape index: {}]   ;;  %s13641_s14 = inlined_call_operand.hbm [shape: f32[1,64], index: 14, kind: input, shape index: {}]   ;;  %s13642_s15 = inlined_call_operand.hbm [shape: f32[1,64], index: 15, kind: input, shape index: {}]   ;;  %s13643_s16 = inlined_call_operand.vmem [shape: bf16[4,6,8], index: 16, kind: input, shape index: {}]   ;;  %s13644_s17 = inlined_call_operand.vmem [shape: bf16[1024,384], index: 17, kind: input, shape index: {}]   ;;  %s13645_s18 = inlined_call_operand.hbm [shape: f32[384,128], index: 18, kind: input, shape index: {}]   ;;  %s13646_s19 = inlined_call_operand.hbm [shape: f32[128,384], index: 19, kind: input, shape index: {}]   ;;  %s13647_s20 = inlined_call_operand.hbm [shape: f32[1,128], index: 20, kind: input, shape index: {}]   ;;  %s13648_s21 = inlined_call_operand.hbm [shape: f32[1,128], index: 21, kind: input, shape index: {}]   ;;  %s13649_s22 = inlined_call_operand.vmem [shape: bf16[4,4,6], index: 22, kind: input, shape index: {}]   ;;  %s13650_s23 = inlined_call_operand.vmem [shape: bf16[1536,2], index: 23, kind: input, shape index: {}]   ;;  %s13651_s24 = inlined_call_operand.hbm [shape: f32[1,2], index: 24, kind: input, shape index: {}]   ;;  %s13652_s25 = inlined_call_operand.hbm [shape: f32[4,2], index: 25, kind: output, shape index: {}]  }
   0x1   :  { %13658 = sst [smem:[#allocation35_spill]] %s13627_s0 }
   0x2   :  { %13659 = sst [smem:[#allocation36_spill]] %s13628_s1 }
   0x3   :  { %13660 = sst [smem:[#allocation37_spill]] %s13629_s2 }
   0x4   :  { %13661 = sst [smem:[#allocation38_spill]] %s13630_s3 }
   0x5   :  { %13662 = sst [smem:[#allocation39_spill]] %s13631_s4 }
   0x6   :  { %13663 = sst [smem:[#allocation40_spill]] %s13632_s5 }
   0x7   :  { %13664 = sst [smem:[#allocation41_spill]] %s13633_s6 }
   0x8   :  { %13665 = sst [smem:[#allocation42_spill]] %s13634_s7 }
   0x9   :  { %13666 = sst [smem:[#allocation43_spill]] %s13635_s8 }
   0xa   :  { %13667 = sst [smem:[#allocation44_spill]] %s13636_s9 }
   0xb   :  { %13668 = sst [smem:[#allocation45_spill]] %s13652_s25 }
   0xc   :  { %30 = vsyncpa [#allocation3], 0 }
   0xd   :  { %31 = vsyncpa [#allocation6], 0 }
   0xe   :  { %32 = vsyncpa [#allocation9], 0 }
   0xf   :  { %33 = vsyncpa [#allocation12], 0 }
  0x10   :  { %34 = vsyncpa [#allocation15], 0 }
  0x11   :  { %35 = vsyncpa [#allocation18], 0 }
  0x12   :  { %36 = vsyncpa [#allocation21], 0 }
  0x13   :  { %37 = vsyncpa [#allocation24], 0  ;;  %s13669_s6 = sld [smem:[#allocation37_spill]] }
  0x19   :  { %s58_s30 = sshll.u32 %s13669_s6, 4  ;;  %s59_s30 = int_to_ptr.hbm [resolvable:$true] %s58_s30 }
  0x1a   :  { %38 = vsyncpa [#allocation4], 0  ;;  %s10682_s7 = smov [#allocation5]   ;;  %s13670_s8 = sld [smem:[#allocation42_spill]] }
  0x1b   :  { %s60_s3 = sshll.u32 %s10682_s7, 4  ;;  %s10683_s4 = smov 128   ;;  %s61_s3 = int_to_ptr.vmem [resolvable:$true] %s60_s3 }
  0x1c   :  { %s10684_s28 = smov 8   ;;  %s10685_s9 = smov [#allocation8]  }
  0x1d   :  { %66 = dma.hbm_to_vmem [thread:$0]  %s59_s30, 8192, %s61_s3, [#allocation6], %s10683_s4, %s10683_s4, %s10684_s28  }
  0x1e   :  { %s90_s5 = sshll.u32 %s10685_s9, 4  ;;  %s13657_s0 = smov 256   ;;  %s91_s5 = int_to_ptr.vmem [resolvable:$true] %s90_s5 }
  0x1f   :  { %s10687_s29 = smov 16   ;;  %s116_s7 = sshll.u32 %s13638_s11, 4  ;;  %s117_s7 = int_to_ptr.hbm [resolvable:$true] %s116_s7 }
  0x20   :  { %s88_s27 = sshll.u32 %s13670_s8, 4  ;;  %s10688_s26 = smov [#allocation11]   ;;  %s89_s27 = int_to_ptr.hbm [resolvable:$true] %s88_s27 }
  0x21   :  { %96 = dma.hbm_to_vmem [thread:$0]  %s89_s27, 1024, %s91_s5, [#allocation9], %s13657_s0, %s13657_s0, %s10687_s29  }
  0x22   :  { %s118_s1 = sshll.u32 %s10688_s26, 4  ;;  %s145_s3 = sshll.u32 %s13641_s14, 4  ;;  %s119_s1 = int_to_ptr.vmem [resolvable:$true] %s118_s1  ;;  %s146_s3 = int_to_ptr.hbm [resolvable:$true] %s145_s3 }
  0x23   :  { %124 = dma.hbm_to_vmem [thread:$0]  %s117_s7, 16384, %s119_s1, [#allocation12], %s10683_s4, %s10683_s4, %s10684_s28  }
  0x24   :  { %s10689_s9 = smov [#allocation14]   ;;  %s170_s2 = sshll.u32 %s13645_s18, 4  ;;  %s171_s2 = int_to_ptr.hbm [resolvable:$true] %s170_s2 }
  0x25   :  { %s147_s25 = sshll.u32 %s10689_s9, 4  ;;  %s197_s26 = sshll.u32 %s13647_s20, 4  ;;  %s148_s25 = int_to_ptr.vmem [resolvable:$true] %s147_s25  ;;  %s198_s26 = int_to_ptr.hbm [resolvable:$true] %s197_s26 }
  0x26   :  { %150 = dma.hbm_to_vmem [thread:$0]  %s146_s3, 16, %s148_s25, [#allocation15]  }
  0x27   :  { %s10690_s8 = smov [#allocation17]   ;;  %s10691_s7 = smov [#allocation20]  }
  0x28   :  { %s172_s14 = sshll.u32 %s10690_s8, 4  ;;  %s199_s1 = sshll.u32 %s10691_s7, 4  ;;  %s173_s14 = int_to_ptr.vmem [resolvable:$true] %s172_s14  ;;  %s200_s1 = int_to_ptr.vmem [resolvable:$true] %s199_s1 }
  0x29   :  { %178 = dma.hbm_to_vmem [thread:$0]  %s171_s2, 6144, %s173_s14, [#allocation18], %s10683_s4, %s10683_s4, %s10684_s28  }
  0x2a   :  { %s13671_s18 = sld [smem:[#allocation36_spill]]  ;;  %s10692_s25 = smov [#allocation2]  }
  0x2b   :  { %202 = dma.hbm_to_vmem [thread:$0]  %s198_s26, 16, %s200_s1, [#allocation21]  }
  0x2c   :  { %s47_s3 = sshll.u32 %s10692_s25, 4  ;;  %s13672_s11 = sld [smem:[#allocation38_spill]]  ;;  %s48_s3 = int_to_ptr.vmem [resolvable:$true] %s47_s3 }
  0x2d   :  { %s10693_s8 = smov 64   ;;  %s10694_s0 = smov 4  }
  0x2e   :  { %s10695_s4 = smov [#allocation7]   ;;  %s13673_s7 = sld [smem:[#allocation44_spill]] }
  0x2f   :  { %s74_s28 = sshll.u32 %s10695_s4, 4  ;;  %s131_s9 = sshll.u32 %s13640_s13, 4  ;;  %s75_s28 = int_to_ptr.vmem [resolvable:$true] %s74_s28  ;;  %s132_s9 = int_to_ptr.hbm [resolvable:$true] %s131_s9 }
  0x30   :  { %s45_s27 = sshll.u32 %s13671_s18, 4  ;;  %s10696_s18 = smov [#allocation10]   ;;  %s46_s27 = int_to_ptr.hbm [resolvable:$true] %s45_s27 }
  0x31   :  { %53 = dma.hbm_to_vmem [thread:$0]  %s46_s27, 1024, %s48_s3, [#allocation3], %s10693_s8, %s10693_s8, %s10694_s0  }
  0x32   :  { %s72_s6 = sshll.u32 %s13672_s11, 4  ;;  %s106_s25 = sshll.u32 %s10696_s18, 4  ;;  %s73_s6 = int_to_ptr.hbm [resolvable:$true] %s72_s6  ;;  %s107_s25 = int_to_ptr.vmem [resolvable:$true] %s106_s25 }
  0x33   :  { %77 = dma.hbm_to_vmem [thread:$0]  %s73_s6, 32, %s75_s28, [#allocation6]  }
  0x34   :  { %s104_s30 = sshll.u32 %s13673_s7, 4  ;;  %s10697_s0 = smov [#allocation13]   ;;  %s105_s30 = int_to_ptr.hbm [resolvable:$true] %s104_s30 }
  0x35   :  { %109 = dma.hbm_to_vmem [thread:$0]  %s105_s30, 16, %s107_s25, [#allocation9]  }
  0x36   :  { %s133_s27 = sshll.u32 %s10697_s0, 4  ;;  %s156_s5 = sshll.u32 %s13642_s15, 4  ;;  %s134_s27 = int_to_ptr.vmem [resolvable:$true] %s133_s27  ;;  %s157_s5 = int_to_ptr.hbm [resolvable:$true] %s156_s5 }
  0x37   :  { %s13674_s11 = smov 256   ;;  %s183_s13 = sshll.u32 %s13646_s19, 4  ;;  %s184_s13 = int_to_ptr.hbm [resolvable:$true] %s183_s13 }
  0x38   :  { %139 = dma.hbm_to_vmem [thread:$0]  %s132_s9, 2048, %s134_s27, [#allocation12], %s13674_s11, %s13674_s11, %s10687_s29  }
  0x39   :  { %s10698_s4 = smov [#allocation16]   ;;  %s10699_s2 = smov [#allocation19]  }
  0x3a   :  { %s158_s28 = sshll.u32 %s10698_s4, 4  ;;  %s185_s14 = sshll.u32 %s10699_s2, 4  ;;  %s159_s28 = int_to_ptr.vmem [resolvable:$true] %s158_s28  ;;  %s186_s14 = int_to_ptr.vmem [resolvable:$true] %s185_s14 }
  0x3b   :  { %161 = dma.hbm_to_vmem [thread:$0]  %s157_s5, 16, %s159_s28, [#allocation15]  }
  0x3c   :  { %s10700_s7 = smov 384   ;;  %s10701_s15 = smov 24  }
  0x3d   :  { %191 = dma.hbm_to_vmem [thread:$0]  %s184_s13, 6144, %s186_s14, [#allocation18], %s10700_s7, %s10700_s7, %s10701_s15  }
  0x3e   :  { %s208_s1 = sshll.u32 %s13648_s21, 4  ;;  %s10702_s29 = smov [#allocation22]   ;;  %s209_s1 = int_to_ptr.hbm [resolvable:$true] %s208_s1 }
  0x3f   :  { %s210_s9 = sshll.u32 %s10702_s29, 4  ;;  %s223_s25 = sshll.u32 %s13651_s24, 4  ;;  %s211_s9 = int_to_ptr.vmem [resolvable:$true] %s210_s9  ;;  %s224_s25 = int_to_ptr.hbm [resolvable:$true] %s223_s25 }
  0x40   :  { %213 = dma.hbm_to_vmem [thread:$0]  %s209_s1, 16, %s211_s9, [#allocation21]  }
  0x41   :  { %s10703_s0 = smov [#allocation23]  }
  0x42   :  { %s225_s27 = sshll.u32 %s10703_s0, 4  ;;  %s226_s27 = int_to_ptr.vmem [resolvable:$true] %s225_s27 }
  0x43   :  { %228 = dma.hbm_to_vmem [thread:$0]  %s224_s25, 16, %s226_s27, [#allocation24]  }
  0x44   :  { %10664 = dma.done.wait [#allocation3], 1024  }
  0x45   :  { %10665 = vsyncadd [#allocation3], 4294966272 }
  0x46   :  { %10666 = dma.done.wait [#allocation6], 8224  }
  0x47   :  { %10667 = vsyncadd [#allocation6], 4294959072 }
  0x48   :  { %10668 = dma.done.wait [#allocation9], 1040  }
  0x49   :  { %10669 = vsyncadd [#allocation9], 4294966256 }
  0x4a   :  { %10670 = dma.done.wait [#allocation12], 18432  }
  0x4b   :  { %10671 = vsyncadd [#allocation12], 4294948864 }
  0x4c   :  { %10672 = dma.done.wait [#allocation15], 32  }
  0x4d   :  { %10673 = vsyncadd [#allocation15], 4294967264 }
  0x4e   :  { %10674 = dma.done.wait [#allocation18], 12288  }
  0x4f   :  { %10675 = vsyncadd [#allocation18], 4294955008 }
  0x50   :  { %10676 = dma.done.wait [#allocation21], 32  }
  0x51   :  { %10677 = vsyncadd [#allocation21], 4294967264 }
  0x52   :  { %10678 = dma.done.wait [#allocation24], 16  }
  0x53   :  { %10679 = vsyncadd [#allocation24], 4294967280  ;;  %s13675_s3 = sld [smem:[#allocation35_spill]]  ;;  %v7209_v11 = vld [vmem:[#allocation5 + $0x70] sm:$0xf]  ;;  %v9654_v16 = vld [vmem:[#allocation2] sm:$0xff] }
  0x54   :  { %v9677_v12 = vld [vmem:[#allocation5 + $0x74] sm:$0xf0]  ;;  %v7273_v13 = vld [vmem:[#allocation5 + $0xf0] sm:$0xf]  ;;  %v7201_v18 = vld [vmem:[#allocation5 + $0x60] sm:$0xf] }
  0x55   :  { %v9693_v14 = vld [vmem:[#allocation5 + $0xf4] sm:$0xf0]  ;;  %v9656_v17 = vld [vmem:[#allocation2 + $0x10] sm:$0xff]  ;;  %v9675_v19 = vld [vmem:[#allocation5 + $0x64] sm:$0xf0]  ;;  %v7210_v21 = vor.u32 %v9677_v12, %v7209_v11  ;;  %vm312_vm0 = vcmask 523264  }
  0x56   :  { %v7337_v20 = vld [vmem:[#allocation5 + $0x170] sm:$0xf]  ;;  %v7274_v22 = vor.u32 %v9693_v14, %v7273_v13  ;;  %v9709_v23 = vld [vmem:[#allocation5 + $0x174] sm:$0xf0]  ;;  %v7265_v26 = vld [vmem:[#allocation5 + $0xe0] sm:$0xf]  ;;  %v7202_v34 = vor.u32 %v9675_v19, %v7201_v18 }
  0x57   :  { %v7401_v24 = vld [vmem:[#allocation5 + $0x1f0] sm:$0xf]  ;;  %v9725_v25 = vld [vmem:[#allocation5 + $0x1f4] sm:$0xf0]  ;;  %v9691_v27 = vld [vmem:[#allocation5 + $0xe4] sm:$0xf0]  ;;  %v7338_v30 = vor.u32 %v9709_v23, %v7337_v20 }
  0x58   :  { %v9658_v28 = vld [vmem:[#allocation2 + $0x20] sm:$0xff]  ;;  %v9660_v29 = vld [vmem:[#allocation2 + $0x30] sm:$0xff]  ;;  %v7402_v31 = vor.u32 %v9725_v25, %v7401_v24  ;;  %v7266_v35 = vor.u32 %v9691_v27, %v7265_v26  ;;  %v9707_v36 = vld [vmem:[#allocation5 + $0x164] sm:$0xf0]  ;;  %s13676_s9 = sld [smem:[#allocation39_spill]]  ;;  %vm1099_vm5 = vcmask 261120  }
  0x59   :  { %v292_v0 = vld [vmem:[%s13675_s3 + $0x30] sm:$0xff]  ;;  %v293_v1 = vld [vmem:[%s13675_s3 + $0x38] sm:$0xff]  ;;  %v290_v2 = vld [vmem:[%s13675_s3 + $0x20] sm:$0xff]  ;;  %s13677_s20 = sld [smem:[#allocation40_spill]]  ;;  %vm2320_vm10 = vcmask 1040384  }
  0x5a   :  { %v297_v3 = vpack.c.bf16 %v293_v1, %v292_v0  ;;  %v291_v4 = vld [vmem:[%s13675_s3 + $0x28] sm:$0xff]  ;;  %v288_v6 = vld [vmem:[%s13675_s3 + $0x10] sm:$0xff]  ;;  %v289_v7 = vld [vmem:[%s13675_s3 + $0x18] sm:$0xff]  ;;  %s13678_s14 = sld [smem:[#allocation41_spill]] }
  0x5b   :  { %v296_v5 = vpack.c.bf16 %v291_v4, %v290_v2  ;;  %v295_v8 = vpack.c.bf16 %v289_v7, %v288_v6  ;;  %v286_v9 = vld [vmem:[%s13675_s3] sm:$0xff]  ;;  %v287_v10 = vld [vmem:[%s13675_s3 + $0x8] sm:$0xff]  ;;  %v7193_v32 = vld [vmem:[#allocation5 + $0x50] sm:$0xf]  ;;  %s13679_s3 = sld [smem:[#allocation43_spill]] }
  0x5c   :  { %323 = vmatpush.bf16.msra.mxu0 %v297_v3  ;;  %367 = vmatpush.bf16.msra.mxu1 %v297_v3  ;;  %v294_v15 = vpack.c.bf16 %v287_v10, %v286_v9  ;;  %v7329_v33 = vld [vmem:[#allocation5 + $0x160] sm:$0xf]  ;;  %v9723_v38 = vld [vmem:[#allocation5 + $0x1e4] sm:$0xf0]  ;;  %v9673_v39 = vld [vmem:[#allocation5 + $0x54] sm:$0xf0] }
  0x5d   :  { %411 = vmatpush.bf16.msra.mxu2 %v297_v3  ;;  %455 = vmatpush.bf16.msra.mxu3 %v297_v3  ;;  %v7393_v37 = vld [vmem:[#allocation5 + $0x1e0] sm:$0xf]  ;;  %v7257_v40 = vld [vmem:[#allocation5 + $0xd0] sm:$0xf]  ;;  %v9689_v41 = vld [vmem:[#allocation5 + $0xd4] sm:$0xf0]  ;;  %v7330_v42 = vor.u32 %v9707_v36, %v7329_v33  ;;  %v7194_v46 = vor.u32 %v9673_v39, %v7193_v32 }
  0x5e   :  { %v7394_v43 = vor.u32 %v9723_v38, %v7393_v37  ;;  %v7185_v44 = vld [vmem:[#allocation5 + $0x40] sm:$0xf]  ;;  %v7321_v45 = vld [vmem:[#allocation5 + $0x150] sm:$0xf]  ;;  %v7258_v47 = vor.u32 %v9689_v41, %v7257_v40  ;;  %v9705_v48 = vld [vmem:[#allocation5 + $0x154] sm:$0xf0] }
  0x5f   :  { %v7385_v49 = vld [vmem:[#allocation5 + $0x1d0] sm:$0xf]  ;;  %v9721_v50 = vld [vmem:[#allocation5 + $0x1d4] sm:$0xf0]  ;;  %v9671_v51 = vld [vmem:[#allocation5 + $0x44] sm:$0xf0]  ;;  %v7322_v54 = vor.u32 %v9705_v48, %v7321_v45 }
  0x60   :  { %324 = vmatpush.bf16.msra.mxu0 %v296_v5  ;;  %368 = vmatpush.bf16.msra.mxu1 %v296_v5  ;;  %v7249_v52 = vld [vmem:[#allocation5 + $0xc0] sm:$0xf]  ;;  %v9687_v53 = vld [vmem:[#allocation5 + $0xc4] sm:$0xf0]  ;;  %v7386_v55 = vor.u32 %v9721_v50, %v7385_v49  ;;  %v7186_v56 = vor.u32 %v9671_v51, %v7185_v44  ;;  %v9657_v59 = vld [vmem:[#allocation2 + $0x18] sm:$0xff] }
  0x61   :  { %412 = vmatpush.bf16.msra.mxu2 %v296_v5  ;;  %456 = vmatpush.bf16.msra.mxu3 %v296_v5  ;;  %v7250_v57 = vor.u32 %v9687_v53, %v7249_v52  ;;  %v9655_v58 = vld [vmem:[#allocation2 + $0x8] sm:$0xff]  ;;  %v9661_v61 = vld [vmem:[#allocation2 + $0x38] sm:$0xff]  ;;  %v7177_v62 = vld [vmem:[#allocation5 + $0x30] sm:$0xf] }
  0x62   :  { %v9659_v60 = vld [vmem:[#allocation2 + $0x28] sm:$0xff]  ;;  %v9669_v63 = vld [vmem:[#allocation5 + $0x34] sm:$0xf0]  ;;  %v7241_v0 = vld [vmem:[#allocation5 + $0xb0] sm:$0xf] }
  0x63   :  { %v7178_v1 = vor.u32 %v9669_v63, %v7177_v62  ;;  %v9685_v2 = vld [vmem:[#allocation5 + $0xb4] sm:$0xf0]  ;;  %v7313_v4 = vld [vmem:[#allocation5 + $0x140] sm:$0xf]  ;;  %v9703_v5 = vld [vmem:[#allocation5 + $0x144] sm:$0xf0] }
  0x64   :  { %325 = vmatpush.bf16.msra.mxu0 %v295_v8  ;;  %369 = vmatpush.bf16.msra.mxu1 %v295_v8  ;;  %v7242_v3 = vor.u32 %v9685_v2, %v7241_v0  ;;  %v7377_v6 = vld [vmem:[#allocation5 + $0x1c0] sm:$0xf]  ;;  %v7314_v7 = vor.u32 %v9703_v5, %v7313_v4  ;;  %v9667_v11 = vld [vmem:[#allocation5 + $0x24] sm:$0xf0]  ;;  %v7369_v18 = vld [vmem:[#allocation5 + $0x1b0] sm:$0xf] }
  0x65   :  { %413 = vmatpush.bf16.msra.mxu2 %v295_v8  ;;  %457 = vmatpush.bf16.msra.mxu3 %v295_v8  ;;  %v9719_v8 = vld [vmem:[#allocation5 + $0x1c4] sm:$0xf0]  ;;  %v7169_v10 = vld [vmem:[#allocation5 + $0x20] sm:$0xf]  ;;  %v9717_v20 = vld [vmem:[#allocation5 + $0x1b4] sm:$0xf0] }
  0x66   :  { %v7378_v9 = vor.u32 %v9719_v8, %v7377_v6  ;;  %v7233_v12 = vld [vmem:[#allocation5 + $0xa0] sm:$0xf]  ;;  %v7170_v13 = vor.u32 %v9667_v11, %v7169_v10  ;;  %v9683_v14 = vld [vmem:[#allocation5 + $0xa4] sm:$0xf0]  ;;  %v9665_v23 = vld [vmem:[#allocation5 + $0x14] sm:$0xf0] }
  0x67   :  { %v7225_v24 = vld [vmem:[#allocation5 + $0x90] sm:$0xf]  ;;  %v9681_v26 = vld [vmem:[#allocation5 + $0x94] sm:$0xf0]  ;;  %v9715_v32 = vld [vmem:[#allocation5 + $0x1a4] sm:$0xf0] }
  0x68   :  { %326 = vmatpush.bf16.msra.mxu0 %v294_v15  ;;  %370 = vmatpush.bf16.msra.mxu1 %v294_v15  ;;  %v7226_v27 = vor.u32 %v9681_v26, %v7225_v24  ;;  %v7217_v36 = vld [vmem:[#allocation5 + $0x80] sm:$0xf]  ;;  %v9679_v38 = vld [vmem:[#allocation5 + $0x84] sm:$0xf0]  ;;  %v7289_v40 = vld [vmem:[#allocation5 + $0x110] sm:$0xf] }
  0x69   :  { %414 = vmatpush.bf16.msra.mxu2 %v294_v15  ;;  %458 = vmatpush.bf16.msra.mxu3 %v294_v15  ;;  %v7234_v15 = vor.u32 %v9683_v14, %v7233_v12  ;;  %v7218_v39 = vor.u32 %v9679_v38, %v7217_v36  ;;  %v9697_v41 = vld [vmem:[#allocation5 + $0x114] sm:$0xf0]  ;;  %v9692_v48 = vld [vmem:[#allocation5 + $0xf4] sm:$0xf]  ;;  %v7275_v50 = vld [vmem:[#allocation5 + $0xf8] sm:$0xf0] }
  0x6a   :  { %v9713_v44 = vld [vmem:[#allocation5 + $0x194] sm:$0xf0]  ;;  %v7278_v51 = vor.u32 %v9692_v48, %v7275_v50  ;;  %v7281_v52 = vld [vmem:[#allocation5 + $0x100] sm:$0xf]  ;;  %v9695_v53 = vld [vmem:[#allocation5 + $0x104] sm:$0xf0] }
  0x6b   :  { %7119 = vmatmul.msk.bf16.vlgmr.msra.gmra.mxu0 %vm312_vm0, %v9654_v16  ;;  %7129 = vmatmul.msk.bf16.vlgmr.msra.gmra.mxu1 %vm312_vm0, %v9656_v17  ;;  %v7305_v16 = vld [vmem:[#allocation5 + $0x130] sm:$0xf]  ;;  %v9701_v17 = vld [vmem:[#allocation5 + $0x134] sm:$0xf0]  ;;  %v7267_v62 = vld [vmem:[#allocation5 + $0xe8] sm:$0xf0] }
  0x6c   :  { %912 = vmatpush.bf16.msrb.mxu0 %v7210_v21  ;;  %931 = vmatpush.bf16.msrb.mxu1 %v7274_v22  ;;  %v7306_v19 = vor.u32 %v9701_v17, %v7305_v16  ;;  %v7370_v21 = vor.u32 %v9717_v20, %v7369_v18  ;;  %v7161_v22 = vld [vmem:[#allocation5 + $0x10] sm:$0xf]  ;;  %v9708_v0 = vld [vmem:[#allocation5 + $0x174] sm:$0xf]  ;;  %v7403_v4 = vld [vmem:[#allocation5 + $0x1f8] sm:$0xf0] }
  0x6d   :  { %7139 = vmatmul.msk.bf16.vlgmr.msra.gmra.mxu2 %vm312_vm0, %v9658_v28  ;;  %7149 = vmatmul.msk.bf16.vlgmr.msra.gmra.mxu3 %vm312_vm0, %v9660_v29  ;;  %v7162_v25 = vor.u32 %v9665_v23, %v7161_v22  ;;  %v7297_v28 = vld [vmem:[#allocation5 + $0x120] sm:$0xf]  ;;  %v9699_v29 = vld [vmem:[#allocation5 + $0x124] sm:$0xf0]  ;;  %v9724_v2 = vld [vmem:[#allocation5 + $0x1f4] sm:$0xf] }
  0x6e   :  { %950 = vmatpush.bf16.msrb.mxu2 %v7338_v30  ;;  %969 = vmatpush.bf16.msrb.mxu3 %v7402_v31  ;;  %v7361_v30 = vld [vmem:[#allocation5 + $0x1a0] sm:$0xf]  ;;  %v7298_v31 = vor.u32 %v9699_v29, %v7297_v28  ;;  %v7406_v5 = vor.u32 %v9724_v2, %v7403_v4  ;;  %v9672_v6 = vld [vmem:[#allocation5 + $0x54] sm:$0xf]  ;;  %v7259_v10 = vld [vmem:[#allocation5 + $0xd8] sm:$0xf0] }
  0x6f   :  { %v7362_v33 = vor.u32 %v9715_v32, %v7361_v30  ;;  %v9688_v8 = vld [vmem:[#allocation5 + $0xd4] sm:$0xf]  ;;  %v9706_v12 = vld [vmem:[#allocation5 + $0x164] sm:$0xf]  ;;  %v7395_v16 = vld [vmem:[#allocation5 + $0x1e8] sm:$0xf0] }
  0x70   :  { %913 = vmatpush.bf16.msrb.mxu0 %v7202_v34  ;;  %932 = vmatpush.bf16.msrb.mxu1 %v7266_v35  ;;  %v7153_v34 = vld [vmem:[#allocation5] sm:$0xf]  ;;  %v9663_v35 = vld [vmem:[#allocation5 + $0x4] sm:$0xf0]  ;;  %v7262_v11 = vor.u32 %v9688_v8, %v7259_v10  ;;  %v9722_v14 = vld [vmem:[#allocation5 + $0x1e4] sm:$0xf] }
  0x71   :  { %v7154_v37 = vor.u32 %v9663_v35, %v7153_v34  ;;  %v7398_v17 = vor.u32 %v9722_v14, %v7395_v16  ;;  %v9670_v18 = vld [vmem:[#allocation5 + $0x44] sm:$0xf]  ;;  %v7251_v22 = vld [vmem:[#allocation5 + $0xc8] sm:$0xf0]  ;;  %v9704_v24 = vld [vmem:[#allocation5 + $0x154] sm:$0xf] }
  0x72   :  { %951 = vmatpush.bf16.msrb.mxu2 %v7330_v42  ;;  %970 = vmatpush.bf16.msrb.mxu3 %v7394_v43  ;;  %v7353_v42 = vld [vmem:[#allocation5 + $0x190] sm:$0xf]  ;;  %v7290_v43 = vor.u32 %v9697_v41, %v7289_v40  ;;  %v9686_v20 = vld [vmem:[#allocation5 + $0xc4] sm:$0xf]  ;;  %v9720_v26 = vld [vmem:[#allocation5 + $0x1d4] sm:$0xf] }
  0x73   :  { %v7354_v45 = vor.u32 %v9713_v44, %v7353_v42  ;;  %v7254_v23 = vor.u32 %v9686_v20, %v7251_v22  ;;  %v7387_v28 = vld [vmem:[#allocation5 + $0x1d8] sm:$0xf0]  ;;  %v9668_v30 = vld [vmem:[#allocation5 + $0x34] sm:$0xf]  ;;  %v9702_v38 = vld [vmem:[#allocation5 + $0x144] sm:$0xf] }
  0x74   :  { %914 = vmatpush.bf16.msrb.mxu0 %v7194_v46  ;;  %933 = vmatpush.bf16.msrb.mxu1 %v7258_v47  ;;  %v9676_v46 = vld [vmem:[#allocation5 + $0x74] sm:$0xf]  ;;  %v7211_v47 = vld [vmem:[#allocation5 + $0x78] sm:$0xf0]  ;;  %v7390_v29 = vor.u32 %v9720_v26, %v7387_v28  ;;  %v9718_v40 = vld [vmem:[#allocation5 + $0x1c4] sm:$0xf] }
  0x75   :  { %v7214_v49 = vor.u32 %v9676_v46, %v7211_v47  ;;  %v9684_v32 = vld [vmem:[#allocation5 + $0xb4] sm:$0xf]  ;;  %v7243_v34 = vld [vmem:[#allocation5 + $0xb8] sm:$0xf0]  ;;  %v7379_v42 = vld [vmem:[#allocation5 + $0x1c8] sm:$0xf0] }
  0x76   :  { %952 = vmatpush.bf16.msrb.mxu2 %v7322_v54  ;;  %971 = vmatpush.bf16.msrb.mxu3 %v7386_v55  ;;  %v7345_v54 = vld [vmem:[#allocation5 + $0x180] sm:$0xf]  ;;  %v7282_v55 = vor.u32 %v9695_v53, %v7281_v52  ;;  %v9666_v44 = vld [vmem:[#allocation5 + $0x24] sm:$0xf]  ;;  %v7235_v48 = vld [vmem:[#allocation5 + $0xa8] sm:$0xf0] }
  0x77   :  { %v9682_v46 = vld [vmem:[#allocation5 + $0xa4] sm:$0xf]  ;;  %v7307_v52 = vld [vmem:[#allocation5 + $0x138] sm:$0xf0]  ;;  %v9716_v53 = vld [vmem:[#allocation5 + $0x1b4] sm:$0xf] }
  0x78   :  { %915 = vmatpush.bf16.msrb.mxu0 %v7186_v56  ;;  %934 = vmatpush.bf16.msrb.mxu1 %v7250_v57  ;;  %v9711_v56 = vld [vmem:[#allocation5 + $0x184] sm:$0xf0]  ;;  %v7238_v50 = vor.u32 %v9682_v46, %v7235_v48  ;;  %v7299_v2 = vld [vmem:[#allocation5 + $0x128] sm:$0xf0]  ;;  %v9714_v8 = vld [vmem:[#allocation5 + $0x1a4] sm:$0xf] }
  0x79   :  { %v7346_v57 = vor.u32 %v9711_v56, %v7345_v54  ;;  %v7371_v56 = vld [vmem:[#allocation5 + $0x1b8] sm:$0xf0]  ;;  %v9662_v10 = vld [vmem:[#allocation5 + $0x4] sm:$0xf]  ;;  %v9696_v20 = vld [vmem:[#allocation5 + $0x114] sm:$0xf] }
  0x7a   :  { %953 = vmatpush.bf16.msrb.mxu2 %v7314_v7  ;;  %972 = vmatpush.bf16.msrb.mxu3 %v7378_v9  ;;  %v7195_v7 = vld [vmem:[#allocation5 + $0x58] sm:$0xf0]  ;;  %v9678_v16 = vld [vmem:[#allocation5 + $0x84] sm:$0xf]  ;;  %v9712_v22 = vld [vmem:[#allocation5 + $0x194] sm:$0xf] }
  0x7b   :  { %7120 = vmatmul.msk.bf16.gmra.mxu0 %vm312_vm0, %v9655_v58  ;;  %7130 = vmatmul.msk.bf16.gmra.mxu1 %vm312_vm0, %v9657_v59  ;;  %v9674_v58 = vld [vmem:[#allocation5 + $0x64] sm:$0xf]  ;;  %v7203_v59 = vld [vmem:[#allocation5 + $0x68] sm:$0xf0]  ;;  %v7198_v9 = vor.u32 %v9672_v6, %v7195_v7 }
  0x7c   :  { %916 = vmatpush.bf16.msrb.mxu0 %v7178_v1  ;;  %935 = vmatpush.bf16.msrb.mxu1 %v7242_v3  ;;  %v7339_v1 = vld [vmem:[#allocation5 + $0x178] sm:$0xf0] }
  0x7d   :  { %7140 = vmatmul.msk.bf16.gmra.mxu2 %vm312_vm0, %v9659_v60  ;;  %7150 = vmatmul.msk.bf16.gmra.mxu3 %vm312_vm0, %v9661_v61  ;;  %v9690_v60 = vld [vmem:[#allocation5 + $0xe4] sm:$0xf]  ;;  %v7206_v61 = vor.u32 %v9674_v58, %v7203_v59  ;;  %v7342_v3 = vor.u32 %v9708_v0, %v7339_v1  ;;  %v9664_v58 = vld [vmem:[#allocation5 + $0x14] sm:$0xf]  ;;  %v7163_v59 = vld [vmem:[#allocation5 + $0x18] sm:$0xf0] }
  0x7e   :  { %954 = vmatpush.bf16.msrb.mxu2 %v7306_v19  ;;  %973 = vmatpush.bf16.msrb.mxu3 %v7370_v21  ;;  %v7270_v63 = vor.u32 %v9690_v60, %v7267_v62  ;;  %v7187_v19 = vld [vmem:[#allocation5 + $0x48] sm:$0xf0]  ;;  %v9680_v60 = vld [vmem:[#allocation5 + $0x94] sm:$0xf]  ;;  %v7227_v0 = vld [vmem:[#allocation5 + $0x98] sm:$0xf0] }
  0x7f   :  { %v7190_v21 = vor.u32 %v9670_v18, %v7187_v19  ;;  %v9698_v1 = vld [vmem:[#allocation5 + $0x124] sm:$0xf]  ;;  %v7230_v6 = vor.u32 %v9680_v60, %v7227_v0 }
  0x80   :  { %917 = vmatpush.bf16.msrb.mxu0 %v7170_v13  ;;  %936 = vmatpush.bf16.msrb.mxu1 %v7234_v15  ;;  %v7331_v13 = vld [vmem:[#allocation5 + $0x168] sm:$0xf0]  ;;  %v7302_v7 = vor.u32 %v9698_v1, %v7299_v2 }
  0x81   :  { %v7334_v15 = vor.u32 %v9706_v12, %v7331_v13 }
  0x82   :  { %955 = vmatpush.bf16.msrb.mxu2 %v7298_v31  ;;  %974 = vmatpush.bf16.msrb.mxu3 %v7362_v33  ;;  %v7179_v31 = vld [vmem:[#allocation5 + $0x38] sm:$0xf0] }
  0x83   :  { %v7182_v33 = vor.u32 %v9668_v30, %v7179_v31 }
  0x84   :  { %918 = vmatpush.bf16.msrb.mxu0 %v7162_v25  ;;  %937 = vmatpush.bf16.msrb.mxu1 %v7226_v27  ;;  %v7323_v25 = vld [vmem:[#allocation5 + $0x158] sm:$0xf0] }
  0x85   :  { %v7326_v27 = vor.u32 %v9704_v24, %v7323_v25  ;;  %v7355_v25 = vld [vmem:[#allocation5 + $0x198] sm:$0xf0] }
  0x86   :  { %956 = vmatpush.bf16.msrb.mxu2 %v7290_v43  ;;  %975 = vmatpush.bf16.msrb.mxu3 %v7354_v45  ;;  %v7382_v43 = vor.u32 %v9718_v40, %v7379_v42  ;;  %v7171_v45 = vld [vmem:[#allocation5 + $0x28] sm:$0xf0] }
  0x87   :  { %v7174_v47 = vor.u32 %v9666_v44, %v7171_v45  ;;  %v7347_v42 = vld [vmem:[#allocation5 + $0x188] sm:$0xf0] }
  0x88   :  { %919 = vmatpush.bf16.msrb.mxu0 %v7154_v37  ;;  %938 = vmatpush.bf16.msrb.mxu1 %v7218_v39  ;;  %v7246_v37 = vor.u32 %v9684_v32, %v7243_v34  ;;  %v7315_v39 = vld [vmem:[#allocation5 + $0x148] sm:$0xf0]  ;;  %v9694_v34 = vld [vmem:[#allocation5 + $0x104] sm:$0xf] }
  0x89   :  { %v7318_v41 = vor.u32 %v9702_v38, %v7315_v39 }
  0x8a   :  { %957 = vmatpush.bf16.msrb.mxu2 %v7282_v55  ;;  %976 = vmatpush.bf16.msrb.mxu3 %v7346_v57  ;;  %v7374_v57 = vor.u32 %v9716_v53, %v7371_v56 }
  0x8c   :  { %988 = vmatpush.bf16.msra.mxu0 %v7214_v49  ;;  %1007 = vmatpush.bf16.msra.mxu1 %v7278_v51  ;;  %v9700_v51 = vld [vmem:[#allocation5 + $0x134] sm:$0xf] }
  0x8d   :  { %v7310_v55 = vor.u32 %v9700_v51, %v7307_v52 }
  0x8e   :  { %1026 = vmatpush.bf16.msra.mxu2 %v7342_v3  ;;  %1045 = vmatpush.bf16.msra.mxu3 %v7406_v5 }
  0x90   :  { %989 = vmatpush.bf16.msra.mxu0 %v7206_v61  ;;  %1008 = vmatpush.bf16.msra.mxu1 %v7270_v63  ;;  %v7166_v63 = vor.u32 %v9664_v58, %v7163_v59 }
  0x92   :  { %1027 = vmatpush.bf16.msra.mxu2 %v7334_v15  ;;  %1046 = vmatpush.bf16.msra.mxu3 %v7398_v17  ;;  %v7155_v15 = vld [vmem:[#allocation5 + $0x8] sm:$0xf0] }
  0x93   :  { %v7219_v17 = vld [vmem:[#allocation5 + $0x88] sm:$0xf0]  ;;  %v7158_v18 = vor.u32 %v9662_v10, %v7155_v15 }
  0x94   :  { %990 = vmatpush.bf16.msra.mxu0 %v7198_v9  ;;  %1009 = vmatpush.bf16.msra.mxu1 %v7262_v11  ;;  %v7363_v9 = vld [vmem:[#allocation5 + $0x1a8] sm:$0xf0]  ;;  %v7222_v19 = vor.u32 %v9678_v16, %v7219_v17 }
  0x95   :  { %v7366_v14 = vor.u32 %v9714_v8, %v7363_v9 }
  0x96   :  { %1028 = vmatpush.bf16.msra.mxu2 %v7326_v27  ;;  %1047 = vmatpush.bf16.msra.mxu3 %v7390_v29  ;;  %v7358_v27 = vor.u32 %v9712_v22, %v7355_v25 }
  0x98   :  { %991 = vmatpush.bf16.msra.mxu0 %v7190_v21  ;;  %1010 = vmatpush.bf16.msra.mxu1 %v7254_v23  ;;  %v7291_v21 = vld [vmem:[#allocation5 + $0x118] sm:$0xf0] }
  0x99   :  { %v7294_v26 = vor.u32 %v9696_v20, %v7291_v21  ;;  %v586_v20 = vld [vmem:[#allocation7] sm:$0x3] }
  0x9a   :  { %1029 = vmatpush.bf16.msra.mxu2 %v7318_v41  ;;  %1048 = vmatpush.bf16.msra.mxu3 %v7382_v43 }
  0x9c   :  { %992 = vmatpush.bf16.msra.mxu0 %v7182_v33  ;;  %1011 = vmatpush.bf16.msra.mxu1 %v7246_v37 }
  0x9e   :  { %1030 = vmatpush.bf16.msra.mxu2 %v7310_v55  ;;  %1049 = vmatpush.bf16.msra.mxu3 %v7374_v57 }
  0xa0   :  { %993 = vmatpush.bf16.msra.mxu0 %v7174_v47  ;;  %1012 = vmatpush.bf16.msra.mxu1 %v7238_v50 }
  0xa2   :  { %1031 = vmatpush.bf16.msra.mxu2 %v7302_v7  ;;  %1050 = vmatpush.bf16.msra.mxu3 %v7366_v14 }
  0xa4   :  { %994 = vmatpush.bf16.msra.mxu0 %v7166_v63  ;;  %1013 = vmatpush.bf16.msra.mxu1 %v7230_v6 }
  0xa6   :  { %1032 = vmatpush.bf16.msra.mxu2 %v7294_v26  ;;  %1051 = vmatpush.bf16.msra.mxu3 %v7358_v27 }
  0xa8   :  { %995 = vmatpush.bf16.msra.mxu0 %v7158_v18  ;;  %1014 = vmatpush.bf16.msra.mxu1 %v7222_v19 }
  0xe8   :  { %v328_v35 = vpop.f32.mrf.mxu0  ;;  %v372_v36 = vpop.f32.mrf.mxu1 }
  0xe9   :  { %v338_v49 = vpack.c.bf16 %v328_v35, %v328_v35  ;;  %v382_v54 = vpack.c.bf16 %v372_v36, %v372_v36  ;;  %v7283_v35 = vld [vmem:[#allocation5 + $0x108] sm:$0xf0]  ;;  %v9710_v36 = vld [vmem:[#allocation5 + $0x184] sm:$0xf] }
  0xea   :  { %v7286_v41 = vor.u32 %v9694_v34, %v7283_v35  ;;  %v7350_v43 = vor.u32 %v9710_v36, %v7347_v42 }
  0xeb   :  { %v478_v3 = vunpack.c.l.b16 %v338_v49  ;;  %v490_v11 = vunpack.c.l.b16 %v382_v54 }
  0xec   :  { %1033 = vmatpush.bf16.msra.mxu2 %v7286_v41  ;;  %1052 = vmatpush.bf16.msra.mxu3 %v7350_v43 }
  0xf0   :  { %v416_v61 = vpop.f32.mrf.mxu2  ;;  %v460_v62 = vpop.f32.mrf.mxu3 }
  0xf1   :  { %v330_v4 = vpop.f32.mrf.mxu0  ;;  %v374_v5 = vpop.f32.mrf.mxu1  ;;  %v426_v30 = vpack.c.bf16 %v416_v61, %v416_v61  ;;  %v470_v31 = vpack.c.bf16 %v460_v62, %v460_v62 }
  0xf2   :  { %v339_v12 = vpack.c.bf16 %v330_v4, %v330_v4  ;;  %v383_v13 = vpack.c.bf16 %v374_v5, %v374_v5 }
  0xf3   :  { %v502_v44 = vunpack.c.l.b16 %v426_v30  ;;  %v514_v45 = vunpack.c.l.b16 %v470_v31 }
  0xf4   :  { %v479_v23 = vunpack.c.l.b16 %v339_v12  ;;  %v491_v24 = vunpack.c.l.b16 %v383_v13 }
  0xf6   :  { %v482_v28 = vpack.c.b16 %v479_v23, %v478_v3  ;;  %v494_v29 = vpack.c.b16 %v491_v24, %v490_v11  ;;  %v588_v23 = vperm.slane %v586_v20, 0 }
  0xf8   :  { %v418_v32 = vpop.f32.mrf.mxu2  ;;  %v462_v33 = vpop.f32.mrf.mxu3  ;;  %920 = vmatmul.bf16.vlgmr.msrb.gmra.mxu0 %v482_v28  ;;  %939 = vmatmul.bf16.vlgmr.msrb.gmra.mxu1 %v494_v29 }
  0xf9   :  { %v427_v37 = vpack.c.bf16 %v418_v32, %v418_v32  ;;  %v471_v38 = vpack.c.bf16 %v462_v33, %v462_v33  ;;  %v333_v39 = vpop.f32.mrf.mxu0  ;;  %v377_v40 = vpop.f32.mrf.mxu1 }
  0xfa   :  { %v340_v50 = vpack.c.bf16 %v333_v39, %v333_v39  ;;  %v384_v51 = vpack.c.bf16 %v377_v40, %v377_v40 }
  0xfb   :  { %v503_v46 = vunpack.c.l.b16 %v427_v37  ;;  %v515_v47 = vunpack.c.l.b16 %v471_v38 }
  0xfc   :  { %v480_v56 = vunpack.c.l.b16 %v340_v50  ;;  %v492_v57 = vunpack.c.l.b16 %v384_v51 }
  0xfd   :  { %v506_v48 = vpack.c.b16 %v503_v46, %v502_v44  ;;  %v518_v49 = vpack.c.b16 %v515_v47, %v514_v45 }
  0xff   :  { %958 = vmatmul.bf16.vlgmr.msrb.gmra.mxu2 %v506_v48  ;;  %977 = vmatmul.bf16.vlgmr.msrb.gmra.mxu3 %v518_v49 }
 0x100   :  { %v421_v52 = vpop.f32.mrf.mxu2  ;;  %v465_v53 = vpop.f32.mrf.mxu3 }
 0x101   :  { %v335_v54 = vpop.f32.mrf.mxu0  ;;  %v379_v55 = vpop.f32.mrf.mxu1  ;;  %v428_v0 = vpack.c.bf16 %v421_v52, %v421_v52  ;;  %v472_v1 = vpack.c.bf16 %v465_v53, %v465_v53 }
 0x102   :  { %v341_v58 = vpack.c.bf16 %v335_v54, %v335_v54  ;;  %v385_v59 = vpack.c.bf16 %v379_v55, %v379_v55 }
 0x103   :  { %v504_v6 = vunpack.c.l.b16 %v428_v0  ;;  %v516_v7 = vunpack.c.l.b16 %v472_v1  ;;  %v10932_v0 = vld [vmem:[%s13676_s9] sm:$0xff] }
 0x104   :  { %v481_v60 = vunpack.c.l.b16 %v341_v58  ;;  %v493_v61 = vunpack.c.l.b16 %v385_v59 }
 0x106   :  { %v483_v62 = vpack.c.b16 %v481_v60, %v480_v56  ;;  %v495_v63 = vpack.c.b16 %v493_v61, %v492_v57 }
 0x108   :  { %v423_v2 = vpop.f32.mrf.mxu2  ;;  %v467_v3 = vpop.f32.mrf.mxu3  ;;  %925 = vmatmul.bf16.gmra.mxu0 %v483_v62  ;;  %944 = vmatmul.bf16.gmra.mxu1 %v495_v63 }
 0x109   :  { %v429_v4 = vpack.c.bf16 %v423_v2, %v423_v2  ;;  %v473_v5 = vpack.c.bf16 %v467_v3, %v467_v3  ;;  %v589_v3 = vperm.slane %v586_v20, 1 }
 0x10b   :  { %v505_v8 = vunpack.c.l.b16 %v429_v4  ;;  %v517_v9 = vunpack.c.l.b16 %v473_v5 }
 0x10d   :  { %v507_v10 = vpack.c.b16 %v505_v8, %v504_v6  ;;  %v519_v11 = vpack.c.b16 %v517_v9, %v516_v7 }
 0x10f   :  { %963 = vmatmul.bf16.gmra.mxu2 %v507_v10  ;;  %982 = vmatmul.bf16.gmra.mxu3 %v519_v11 }
 0x118   :  { %996 = vmatmul.bf16.vlgmr.msra.gmra.mxu0 %v482_v28  ;;  %1015 = vmatmul.bf16.vlgmr.msra.gmra.mxu1 %v494_v29 }
 0x11f   :  { %1034 = vmatmul.bf16.vlgmr.msra.gmra.mxu2 %v506_v48  ;;  %1053 = vmatmul.bf16.vlgmr.msra.gmra.mxu3 %v518_v49 }
 0x128   :  { %1001 = vmatmul.bf16.gmra.mxu0 %v483_v62  ;;  %1020 = vmatmul.bf16.gmra.mxu1 %v495_v63  ;;  %v10927_v63 = vld [vmem:[%s13676_s9 + $0x8] sm:$0xff] }
 0x12f   :  { %1039 = vmatmul.bf16.gmra.mxu2 %v507_v10  ;;  %1058 = vmatmul.bf16.gmra.mxu3 %v519_v11 }
 0x175   :  { %v921_v12 = vpop.f32.mrf.mxu0  ;;  %v940_v13 = vpop.f32.mrf.mxu1 }
 0x176   :  { %v922_v30 = vadd.f32 %v921_v12, %v588_v23 }
 0x178   :  { %v941_v36 = vadd.f32 %v940_v13, %v922_v30  ;;  %v7487_v30 = vld [vmem:[%s13677_s20 + $0x60] sm:$0xf] }
 0x17d   :  { %v923_v14 = vpop.f32.mrf.mxu0  ;;  %v942_v15 = vpop.f32.mrf.mxu1 }
 0x17e   :  { %v924_v27 = vadd.f32 %v923_v14, %v588_v23 }
 0x180   :  { %v943_v32 = vadd.f32 %v942_v15, %v924_v27  ;;  %v9745_v27 = vld [vmem:[%s13677_s20 + $0x74] sm:$0xf0] }
 0x182   :  { %v959_v16 = vpop.f32.mrf.mxu2  ;;  %v978_v17 = vpop.f32.mrf.mxu3 }
 0x183   :  { %v960_v38 = vadd.f32 %v959_v16, %v941_v36 }
 0x185   :  { %v926_v18 = vpop.f32.mrf.mxu0  ;;  %v945_v19 = vpop.f32.mrf.mxu1  ;;  %v979_v46 = vadd.f32 %v978_v17, %v960_v38  ;;  %v10941_v17 = vld [vmem:[%s13676_s9 + $0x10] sm:$0xff]  ;;  %v9777_v38 = vld [vmem:[%s13677_s20 + $0x174] sm:$0xf0] }
 0x186   :  { %v927_v25 = vadd.f32 %v926_v18, %v588_v23 }
 0x187   :  { %v1072_v52 = vmul.f32 0.2, %v979_v46  ;;  %vm1064_vm4 = vcmp.gt.f32.partialorder %v979_v46, 0.0 }
 0x188   :  { %v946_v31 = vadd.f32 %v945_v19, %v927_v25 }
 0x189   :  { %v1080_v60 = vsel %vm1064_vm4, %v979_v46, %v1072_v52  ;;  %v7615_v46 = vld [vmem:[%s13677_s20 + $0x160] sm:$0xf] }
 0x18a   :  { %v961_v21 = vpop.f32.mrf.mxu2  ;;  %v980_v22 = vpop.f32.mrf.mxu3  ;;  %v7471_v52 = vld [vmem:[%s13677_s20 + $0x40] sm:$0xf] }
 0x18b   :  { %v962_v37 = vadd.f32 %v961_v21, %v943_v32 }
 0x18d   :  { %v928_v24 = vpop.f32.mrf.mxu0  ;;  %v947_v26 = vpop.f32.mrf.mxu1  ;;  %v981_v44 = vadd.f32 %v980_v22, %v962_v37  ;;  %v10946_v22 = vld [vmem:[%s13676_s9 + $0x18] sm:$0xff] }
 0x18e   :  { %v929_v33 = vadd.f32 %v928_v24, %v588_v23 }
 0x18f   :  { %v1074_v50 = vmul.f32 0.2, %v981_v44  ;;  %vm1066_vm3 = vcmp.gt.f32.partialorder %v981_v44, 0.0 }
 0x190   :  { %v948_v39 = vadd.f32 %v947_v26, %v929_v33  ;;  %v7495_v26 = vld [vmem:[%s13677_s20 + $0x70] sm:$0xf] }
 0x191   :  { %v1082_v58 = vsel %vm1066_vm3, %v981_v44, %v1074_v50  ;;  %vm2505_vm3 = vcmask 130048  }
 0x192   :  { %v964_v28 = vpop.f32.mrf.mxu2  ;;  %v983_v29 = vpop.f32.mrf.mxu3  ;;  %v1088_v61 = vpack.c.bf16 %v1082_v58, %v1080_v60  ;;  %v7559_v58 = vld [vmem:[%s13677_s20 + $0xf0] sm:$0xf] }
 0x193   :  { %v965_v34 = vadd.f32 %v964_v28, %v946_v31  ;;  %v9743_v31 = vld [vmem:[%s13677_s20 + $0x64] sm:$0xf0] }
 0x194   :  { %v7488_v37 = vor.u32 %v9743_v31, %v7487_v30  ;;  %v7535_v31 = vld [vmem:[%s13677_s20 + $0xc0] sm:$0xf] }
 0x195   :  { %v997_v35 = vpop.f32.mrf.mxu0  ;;  %v984_v40 = vadd.f32 %v983_v29, %v965_v34  ;;  %v1016_v41 = vpop.f32.mrf.mxu1  ;;  %v7496_v29 = vor.u32 %v9745_v27, %v7495_v26  ;;  %v7447_v26 = vld [vmem:[%s13677_s20 + $0x10] sm:$0xf]  ;;  %v9733_v27 = vld [vmem:[%s13677_s20 + $0x14] sm:$0xf0] }
 0x196   :  { %v998_v10 = vadd.f32 %v997_v35, %v589_v3  ;;  %v7623_v35 = vld [vmem:[%s13677_s20 + $0x170] sm:$0xf] }
 0x197   :  { %v1076_v47 = vmul.f32 0.2, %v984_v40  ;;  %vm1068_vm1 = vcmp.gt.f32.partialorder %v984_v40, 0.0 }
 0x198   :  { %v1017_v16 = vadd.f32 %v1016_v41, %v998_v10  ;;  %v7479_v41 = vld [vmem:[%s13677_s20 + $0x50] sm:$0xf]  ;;  %v7679_v10 = vld [vmem:[%s13677_s20 + $0x1e0] sm:$0xf] }
 0x199   :  { %v1084_v53 = vsel %vm1068_vm1, %v984_v40, %v1076_v47  ;;  %v7624_v40 = vor.u32 %v9777_v38, %v7623_v35  ;;  %v9775_v47 = vld [vmem:[%s13677_s20 + $0x164] sm:$0xf0]  ;;  %v7439_v38 = vld [vmem:[%s13677_s20] sm:$0xf] }
 0x19a   :  { %v966_v42 = vpop.f32.mrf.mxu2  ;;  %v985_v43 = vpop.f32.mrf.mxu3  ;;  %v7616_v50 = vor.u32 %v9775_v47, %v7615_v46  ;;  %v9787_v35 = vld [vmem:[%s13677_s20 + $0x1c4] sm:$0xf0]  ;;  %v9809_v46 = vld [vmem:[%s13677_s20 + $0x274] sm:$0xf0] }
 0x19b   :  { %v967_v45 = vadd.f32 %v966_v42, %v948_v39  ;;  %v9741_v42 = vld [vmem:[%s13677_s20 + $0x54] sm:$0xf0] }
 0x19c   :  { %v9753_v47 = vld [vmem:[%s13677_s20 + $0xb4] sm:$0xf0] }
 0x19d   :  { %v986_v48 = vadd.f32 %v985_v43, %v967_v45  ;;  %v999_v49 = vpop.f32.mrf.mxu0  ;;  %v1018_v59 = vpop.f32.mrf.mxu1 }
 0x19e   :  { %v1000_v6 = vadd.f32 %v999_v49, %v589_v3  ;;  %v7480_v49 = vor.u32 %v9741_v42, %v7479_v41  ;;  %v9765_v41 = vld [vmem:[%s13677_s20 + $0x114] sm:$0xf0] }
 0x19f   :  { %vm1070_vm2 = vcmp.gt.f32.partialorder %v986_v48, 0.0  ;;  %v1078_v51 = vmul.f32 0.2, %v986_v48 }
 0x1a0   :  { %v1019_v12 = vadd.f32 %v1018_v59, %v1000_v6  ;;  %v9761_v59 = vld [vmem:[%s13677_s20 + $0xf4] sm:$0xf0] }
 0x1a1   :  { %v1086_v54 = vsel %vm1070_vm2, %v986_v48, %v1078_v51  ;;  %v7560_v6 = vor.u32 %v9761_v59, %v7559_v58  ;;  %v9807_v59 = vld [vmem:[%s13677_s20 + $0x264] sm:$0xf0] }
 0x1a2   :  { %v1090_v55 = vpack.c.bf16 %v1086_v54, %v1084_v53  ;;  %v1035_v56 = vpop.f32.mrf.mxu2  ;;  %v1054_v57 = vpop.f32.mrf.mxu3  ;;  %v9739_v53 = vld [vmem:[%s13677_s20 + $0x44] sm:$0xf0]  ;;  %v7607_v54 = vld [vmem:[%s13677_s20 + $0x150] sm:$0xf] }
 0x1a3   :  { %v1036_v19 = vadd.f32 %v1035_v56, %v1017_v16  ;;  %v7472_v60 = vor.u32 %v9739_v53, %v7471_v52  ;;  %v7519_v52 = vld [vmem:[%s13677_s20 + $0xa0] sm:$0xf] }
 0x1a4   :  { %1109 = vmatpush.bf16.msrb.mxu0 %v1090_v55  ;;  %1150 = vmatpush.bf16.msrb.mxu2 %v1090_v55 }
 0x1a5   :  { %v1002_v62 = vpop.f32.mrf.mxu0  ;;  %v1021_v4 = vpop.f32.mrf.mxu1  ;;  %v1055_v32 = vadd.f32 %v1054_v57, %v1036_v19  ;;  %v9757_v19 = vld [vmem:[%s13677_s20 + $0xd4] sm:$0xf0] }
 0x1a6   :  { %v1003_v5 = vadd.f32 %v1002_v62, %v589_v3  ;;  %v7687_v62 = vld [vmem:[%s13677_s20 + $0x1f0] sm:$0xf] }
 0x1a7   :  { %v1073_v43 = vmul.f32 0.2, %v1055_v32  ;;  %vm1065_vm9 = vcmp.gt.f32.partialorder %v1055_v32, 0.0 }
 0x1a8   :  { %1110 = vmatpush.bf16.msrb.mxu0 %v1088_v61  ;;  %1151 = vmatpush.bf16.msrb.mxu2 %v1088_v61  ;;  %v1022_v11 = vadd.f32 %v1021_v4, %v1003_v5  ;;  %v7599_v4 = vld [vmem:[%s13677_s20 + $0x140] sm:$0xf]  ;;  %v9771_v5 = vld [vmem:[%s13677_s20 + $0x144] sm:$0xf0] }
 0x1a9   :  { %v1081_v56 = vsel %vm1065_vm9, %v1055_v32, %v1073_v43  ;;  %v7527_v43 = vld [vmem:[%s13677_s20 + $0xb0] sm:$0xf]  ;;  %vm3848_vm9 = vcmask 1043456  }
 0x1aa   :  { %v1037_v1 = vpop.f32.mrf.mxu2  ;;  %v1056_v2 = vpop.f32.mrf.mxu3 }
 0x1ab   :  { %7419 = vmatmul.msk.bf16.vlgmr.msrb.gmra.mxu2 %vm1099_vm5, %v10927_v63  ;;  %7411 = vmatmul.msk.bf16.vlgmr.msrb.gmra.mxu0 %vm1099_vm5, %v10932_v0  ;;  %v1038_v15 = vadd.f32 %v1037_v1, %v1019_v12  ;;  %v9793_v1 = vld [vmem:[%s13677_s20 + $0x1f4] sm:$0xf0] }
 0x1ac   :  { %1191 = vmatpush.bf16.msra.mxu0 %v1090_v55  ;;  %1232 = vmatpush.bf16.msra.mxu2 %v1090_v55  ;;  %v9773_v55 = vld [vmem:[%s13677_s20 + $0x154] sm:$0xf0] }
 0x1ad   :  { %v1004_v7 = vpop.f32.mrf.mxu0  ;;  %v1023_v18 = vpop.f32.mrf.mxu1  ;;  %v1057_v23 = vadd.f32 %v1056_v2, %v1038_v15  ;;  %v7463_v2 = vld [vmem:[%s13677_s20 + $0x30] sm:$0xf]  ;;  %v9769_v15 = vld [vmem:[%s13677_s20 + $0x134] sm:$0xf0] }
 0x1ae   :  { %v1005_v13 = vadd.f32 %v1004_v7, %v589_v3  ;;  %v9737_v3 = vld [vmem:[%s13677_s20 + $0x34] sm:$0xf0]  ;;  %v7551_v7 = vld [vmem:[%s13677_s20 + $0xe0] sm:$0xf] }
 0x1af   :  { %v1075_v36 = vmul.f32 0.2, %v1057_v23  ;;  %vm1067_vm8 = vcmp.gt.f32.partialorder %v1057_v23, 0.0  ;;  %v7464_v12 = vor.u32 %v9737_v3, %v7463_v2  ;;  %v9783_v2 = vld [vmem:[%s13677_s20 + $0x1a4] sm:$0xf0] }
 0x1b0   :  { %1192 = vmatpush.bf16.msra.mxu0 %v1088_v61  ;;  %1233 = vmatpush.bf16.msra.mxu2 %v1088_v61  ;;  %v1024_v20 = vadd.f32 %v1023_v18, %v1005_v13  ;;  %v7608_v61 = vor.u32 %v9773_v55, %v7607_v54  ;;  %v7600_v13 = vor.u32 %v9771_v5, %v7599_v4  ;;  %v7543_v18 = vld [vmem:[%s13677_s20 + $0xd0] sm:$0xf]  ;;  %v7743_v54 = vld [vmem:[%s13677_s20 + $0x260] sm:$0xf] }
 0x1b1   :  { %v1083_v51 = vsel %vm1067_vm8, %v1057_v23, %v1075_v36  ;;  %v9789_v23 = vld [vmem:[%s13677_s20 + $0x1d4] sm:$0xf0]  ;;  %v7544_v30 = vor.u32 %v9757_v19, %v7543_v18  ;;  %v7448_v36 = vor.u32 %v9733_v27, %v7447_v26  ;;  %v7567_v55 = vld [vmem:[%s13677_s20 + $0x100] sm:$0xf]  ;;  %v7735_v5 = vld [vmem:[%s13677_s20 + $0x250] sm:$0xf] }
 0x1b2   :  { %v1040_v8 = vpop.f32.mrf.mxu2  ;;  %v1059_v9 = vpop.f32.mrf.mxu3  ;;  %v1089_v57 = vpack.c.bf16 %v1083_v51, %v1081_v56  ;;  %v9763_v56 = vld [vmem:[%s13677_s20 + $0x104] sm:$0xf0]  ;;  %v7815_v19 = vld [vmem:[%s13677_s20 + $0x2f0] sm:$0xf] }
 0x1b3   :  { %v1041_v14 = vadd.f32 %v1040_v8, %v1022_v11  ;;  %v9759_v8 = vld [vmem:[%s13677_s20 + $0xe4] sm:$0xf0]  ;;  %v7568_v3 = vor.u32 %v9763_v56, %v7567_v55  ;;  %v9817_v55 = vld [vmem:[%s13677_s20 + $0x2b4] sm:$0xf0] }
 0x1b4   :  { %2064 = vmatpush.bf16.msrb.mxu0 %v7496_v29  ;;  %2092 = vmatpush.bf16.msrb.mxu2 %v7624_v40  ;;  %v9791_v11 = vld [vmem:[%s13677_s20 + $0x1e4] sm:$0xf0]  ;;  %v7552_v16 = vor.u32 %v9759_v8, %v7551_v7  ;;  %v7575_v40 = vld [vmem:[%s13677_s20 + $0x110] sm:$0xf]  ;;  %v9805_v8 = vld [vmem:[%s13677_s20 + $0x254] sm:$0xf0] }
 0x1b5   :  { %v1060_v21 = vadd.f32 %v1059_v9, %v1041_v14  ;;  %v7688_v9 = vor.u32 %v9793_v1, %v7687_v62  ;;  %v7455_v14 = vld [vmem:[%s13677_s20 + $0x20] sm:$0xf]  ;;  %v9767_v29 = vld [vmem:[%s13677_s20 + $0x124] sm:$0xf0]  ;;  %v7576_v51 = vor.u32 %v9765_v41, %v7575_v40 }
 0x1b6   :  { %v9751_v62 = vld [vmem:[%s13677_s20 + $0xa4] sm:$0xf0]  ;;  %v7647_v1 = vld [vmem:[%s13677_s20 + $0x1a0] sm:$0xf] }
 0x1b7   :  { %v1077_v33 = vmul.f32 0.2, %v1060_v21  ;;  %vm1069_vm6 = vcmp.gt.f32.partialorder %v1060_v21, 0.0  ;;  %v7648_v7 = vor.u32 %v9783_v2, %v7647_v1  ;;  %v9803_v40 = vld [vmem:[%s13677_s20 + $0x244] sm:$0xf0] }
 0x1b8   :  { %2065 = vmatpush.bf16.msrb.mxu0 %v7488_v37  ;;  %2093 = vmatpush.bf16.msrb.mxu2 %v7616_v50  ;;  %v7791_v41 = vld [vmem:[%s13677_s20 + $0x2c0] sm:$0xf]  ;;  %v9799_v2 = vld [vmem:[%s13677_s20 + $0x224] sm:$0xf0] }
 0x1b9   :  { %v1085_v44 = vsel %vm1069_vm6, %v1060_v21, %v1077_v33  ;;  %v7671_v21 = vld [vmem:[%s13677_s20 + $0x1d0] sm:$0xf]  ;;  %v9755_v33 = vld [vmem:[%s13677_s20 + $0xc4] sm:$0xf0]  ;;  %v7711_v1 = vld [vmem:[%s13677_s20 + $0x220] sm:$0xf] }
 0x1ba   :  { %v1042_v24 = vpop.f32.mrf.mxu2  ;;  %v1061_v28 = vpop.f32.mrf.mxu3  ;;  %v7672_v32 = vor.u32 %v9789_v23, %v7671_v21  ;;  %v7536_v42 = vor.u32 %v9755_v33, %v7535_v31  ;;  %v9779_v21 = vld [vmem:[%s13677_s20 + $0x184] sm:$0xf0]  ;;  %v9825_v23 = vld [vmem:[%s13677_s20 + $0x2f4] sm:$0xf0] }
 0x1bb   :  { %v1043_v25 = vadd.f32 %v1042_v24, %v1024_v20  ;;  %7427 = vmatmul.msk.bf16.vlgmr.msra.gmra.mxu0 %vm1099_vm5, %v10941_v17  ;;  %7435 = vmatmul.msk.bf16.vlgmr.msra.gmra.mxu2 %vm1099_vm5, %v10946_v22  ;;  %v7680_v20 = vor.u32 %v9791_v11, %v7679_v10  ;;  %v9839_v10 = vld [vmem:[%s13677_s20 + $0x364] sm:$0xf0]  ;;  %v9749_v11 = vld [vmem:[%s13677_s20 + $0x94] sm:$0xf0] }
 0x1bc   :  { %2066 = vmatpush.bf16.msrb.mxu0 %v7480_v49  ;;  %2094 = vmatpush.bf16.msrb.mxu2 %v7608_v61  ;;  %v9785_v49 = vld [vmem:[%s13677_s20 + $0x1b4] sm:$0xf0]  ;;  %v9823_v31 = vld [vmem:[%s13677_s20 + $0x2e4] sm:$0xf0] }
 0x1bd   :  { %v1062_v34 = vadd.f32 %v1061_v28, %v1043_v25  ;;  %v7583_v28 = vld [vmem:[%s13677_s20 + $0x120] sm:$0xf]  ;;  %v9841_v61 = vld [vmem:[%s13677_s20 + $0x374] sm:$0xf0]  ;;  %v9855_v33 = vld [vmem:[%s13677_s20 + $0x3e4] sm:$0xf0] }
 0x1be   :  { %v7584_v37 = vor.u32 %v9767_v29, %v7583_v28  ;;  %v7816_v28 = vor.u32 %v9825_v23, %v7815_v19  ;;  %v7807_v29 = vld [vmem:[%s13677_s20 + $0x2e0] sm:$0xf] }
 0x1bf   :  { %vm1071_vm7 = vcmp.gt.f32.partialorder %v1062_v34, 0.0  ;;  %v1079_v39 = vmul.f32 0.2, %v1062_v34  ;;  %v7695_v23 = vld [vmem:[%s13677_s20 + $0x200] sm:$0xf] }
 0x1c0   :  { %2067 = vmatpush.bf16.msrb.mxu0 %v7472_v60  ;;  %2095 = vmatpush.bf16.msrb.mxu2 %v7600_v13  ;;  %v7879_v60 = vld [vmem:[%s13677_s20 + $0x370] sm:$0xf]  ;;  %v9781_v13 = vld [vmem:[%s13677_s20 + $0x194] sm:$0xf0] }
 0x1c1   :  { %v1087_v45 = vsel %vm1071_vm7, %v1062_v34, %v1079_v39  ;;  %v7663_v34 = vld [vmem:[%s13677_s20 + $0x1c0] sm:$0xf]  ;;  %v9731_v39 = vld [vmem:[%s13677_s20 + $0x4] sm:$0xf0]  ;;  %v7880_v4 = vor.u32 %v9841_v61, %v7879_v60 }
 0x1c2   :  { %v1091_v48 = vpack.c.bf16 %v1087_v45, %v1085_v44  ;;  %v7664_v44 = vor.u32 %v9787_v35, %v7663_v34  ;;  %v7751_v45 = vld [vmem:[%s13677_s20 + $0x270] sm:$0xf]  ;;  %v7440_v50 = vor.u32 %v9731_v39, %v7439_v38  ;;  %v7808_v34 = vor.u32 %v9823_v31, %v7807_v29  ;;  %v7727_v39 = vld [vmem:[%s13677_s20 + $0x240] sm:$0xf]  ;;  %v9851_v61 = vld [vmem:[%s13677_s20 + $0x3c4] sm:$0xf0] }
 0x1c3   :  { %v7752_v53 = vor.u32 %v9809_v46, %v7751_v45  ;;  %v7863_v45 = vld [vmem:[%s13677_s20 + $0x350] sm:$0xf]  ;;  %v9837_v46 = vld [vmem:[%s13677_s20 + $0x354] sm:$0xf0] }
 0x1c4   :  { %1123 = vmatpush.bf16.msrb.mxu1 %v1091_v48  ;;  %1164 = vmatpush.bf16.msrb.mxu3 %v1091_v48  ;;  %v7831_v29 = vld [vmem:[%s13677_s20 + $0x310] sm:$0xf] }
 0x1c5   :  { %2068 = vmatpush.bf16.msrb.mxu0 %v7464_v12  ;;  %v7639_v12 = vld [vmem:[%s13677_s20 + $0x190] sm:$0xf] }
 0x1c6   :  { %v7640_v18 = vor.u32 %v9781_v13, %v7639_v12  ;;  %v9797_v12 = vld [vmem:[%s13677_s20 + $0x214] sm:$0xf0]  ;;  %v7767_v13 = vld [vmem:[%s13677_s20 + $0x290] sm:$0xf] }
 0x1c7   :  { %v7895_v31 = vld [vmem:[%s13677_s20 + $0x390] sm:$0xf] }
 0x1c8   :  { %1124 = vmatpush.bf16.msrb.mxu1 %v1089_v57  ;;  %1165 = vmatpush.bf16.msrb.mxu3 %v1089_v57 }
 0x1cb   :  { %7412 = vmatmul.msk.bf16.vlgmr.msrb.gmra.mxu1 %vm1099_vm5, %v10932_v0  ;;  %7420 = vmatmul.msk.bf16.vlgmr.msrb.gmra.mxu3 %vm1099_vm5, %v10927_v63  ;;  %v9735_v0 = vld [vmem:[%s13677_s20 + $0x24] sm:$0xf0]  ;;  %v7591_v63 = vld [vmem:[%s13677_s20 + $0x130] sm:$0xf] }
 0x1cc   :  { %1205 = vmatpush.bf16.msra.mxu1 %v1091_v48  ;;  %1246 = vmatpush.bf16.msra.mxu3 %v1091_v48  ;;  %v7456_v24 = vor.u32 %v9735_v0, %v7455_v14  ;;  %v7592_v25 = vor.u32 %v9769_v15, %v7591_v63  ;;  %v7655_v48 = vld [vmem:[%s13677_s20 + $0x1b0] sm:$0xf]  ;;  %v7736_v14 = vor.u32 %v9805_v8, %v7735_v5  ;;  %v7503_v15 = vld [vmem:[%s13677_s20 + $0x80] sm:$0xf] }
 0x1cd   :  { %v7656_v58 = vor.u32 %v9785_v49, %v7655_v48  ;;  %v7864_v48 = vor.u32 %v9837_v46, %v7863_v45  ;;  %v9853_v49 = vld [vmem:[%s13677_s20 + $0x3d4] sm:$0xf0]  ;;  %v7847_v5 = vld [vmem:[%s13677_s20 + $0x330] sm:$0xf] }
 0x1ce   :  { %2069 = vmatpush.bf16.msrb.mxu0 %v7456_v24  ;;  %2096 = vmatpush.bf16.msrb.mxu2 %v7592_v25  ;;  %v7943_v24 = vld [vmem:[%s13677_s20 + $0x3f0] sm:$0xf]  ;;  %v9857_v25 = vld [vmem:[%s13677_s20 + $0x3f4] sm:$0xf0] }
 0x1d0   :  { %1206 = vmatpush.bf16.msra.mxu1 %v1089_v57  ;;  %1247 = vmatpush.bf16.msra.mxu3 %v1089_v57  ;;  %v7528_v57 = vor.u32 %v9753_v47, %v7527_v43  ;;  %v9819_v43 = vld [vmem:[%s13677_s20 + $0x2c4] sm:$0xf0]  ;;  %v7927_v47 = vld [vmem:[%s13677_s20 + $0x3d0] sm:$0xf] }
 0x1d2   :  { %2070 = vmatpush.bf16.msrb.mxu0 %v7448_v36  ;;  %2097 = vmatpush.bf16.msrb.mxu2 %v7584_v37  ;;  %v7799_v36 = vld [vmem:[%s13677_s20 + $0x2d0] sm:$0xf]  ;;  %v9821_v37 = vld [vmem:[%s13677_s20 + $0x2d4] sm:$0xf0] }
 0x1d3   :  { %v7800_v38 = vor.u32 %v9821_v37, %v7799_v36  ;;  %v9827_v36 = vld [vmem:[%s13677_s20 + $0x304] sm:$0xf0] }
 0x1d4   :  { %2078 = vmatpush.bf16.msrb.mxu1 %v7560_v6  ;;  %2106 = vmatpush.bf16.msrb.mxu3 %v7688_v9  ;;  %v7520_v6 = vor.u32 %v9751_v62, %v7519_v52  ;;  %v7871_v9 = vld [vmem:[%s13677_s20 + $0x360] sm:$0xf]  ;;  %v9801_v52 = vld [vmem:[%s13677_s20 + $0x234] sm:$0xf0] }
 0x1d5   :  { %v7872_v0 = vor.u32 %v9839_v10, %v7871_v9  ;;  %v9849_v9 = vld [vmem:[%s13677_s20 + $0x3b4] sm:$0xf0] }
 0x1d6   :  { %2071 = vmatpush.bf16.msrb.mxu0 %v7440_v50  ;;  %2098 = vmatpush.bf16.msrb.mxu2 %v7576_v51  ;;  %v7928_v50 = vor.u32 %v9853_v49, %v7927_v47  ;;  %v7719_v51 = vld [vmem:[%s13677_s20 + $0x230] sm:$0xf] }
 0x1d8   :  { %2079 = vmatpush.bf16.msrb.mxu1 %v7552_v16  ;;  %2107 = vmatpush.bf16.msrb.mxu3 %v7680_v20  ;;  %v9747_v16 = vld [vmem:[%s13677_s20 + $0x84] sm:$0xf0]  ;;  %v7631_v20 = vld [vmem:[%s13677_s20 + $0x180] sm:$0xf] }
 0x1d9   :  { %v7504_v26 = vor.u32 %v9747_v16, %v7503_v15  ;;  %v7632_v27 = vor.u32 %v9779_v21, %v7631_v20  ;;  %v7839_v15 = vld [vmem:[%s13677_s20 + $0x320] sm:$0xf]  ;;  %v9831_v16 = vld [vmem:[%s13677_s20 + $0x324] sm:$0xf0] }
 0x1da   :  { %2120 = vmatpush.bf16.msra.mxu0 %v7752_v53  ;;  %2099 = vmatpush.bf16.msrb.mxu2 %v7568_v3  ;;  %v7783_v53 = vld [vmem:[%s13677_s20 + $0x2b0] sm:$0xf]  ;;  %v7775_v3 = vld [vmem:[%s13677_s20 + $0x2a0] sm:$0xf]  ;;  %v7840_v19 = vor.u32 %v9831_v16, %v7839_v15  ;;  %v9847_v20 = vld [vmem:[%s13677_s20 + $0x3a4] sm:$0xf0] }
 0x1db   :  { %7428 = vmatmul.msk.bf16.vlgmr.msra.gmra.mxu1 %vm1099_vm5, %v10941_v17  ;;  %7436 = vmatmul.msk.bf16.vlgmr.msra.gmra.mxu3 %vm1099_vm5, %v10946_v22  ;;  %v7511_v17 = vld [vmem:[%s13677_s20 + $0x90] sm:$0xf]  ;;  %v7744_v22 = vor.u32 %v9807_v59, %v7743_v54  ;;  %v7720_v54 = vor.u32 %v9801_v52, %v7719_v51  ;;  %v7784_v56 = vor.u32 %v9817_v55, %v7783_v53  ;;  %v7919_v59 = vld [vmem:[%s13677_s20 + $0x3c0] sm:$0xf]  ;;  %v7497_v52 = vld [vmem:[%s13677_s20 + $0x78] sm:$0xf0] }
 0x1dc   :  { %2080 = vmatpush.bf16.msrb.mxu1 %v7544_v30  ;;  %2108 = vmatpush.bf16.msrb.mxu3 %v7672_v32  ;;  %v7512_v63 = vor.u32 %v9749_v11, %v7511_v17  ;;  %v7944_v30 = vor.u32 %v9857_v25, %v7943_v24  ;;  %v7935_v32 = vld [vmem:[%s13677_s20 + $0x3e0] sm:$0xf]  ;;  %v7920_v62 = vor.u32 %v9851_v61, %v7919_v59  ;;  %v7703_v11 = vld [vmem:[%s13677_s20 + $0x210] sm:$0xf]  ;;  %v9795_v24 = vld [vmem:[%s13677_s20 + $0x204] sm:$0xf0] }
 0x1dd   :  { %v7936_v35 = vor.u32 %v9855_v33, %v7935_v32  ;;  %v7712_v17 = vor.u32 %v9799_v2, %v7711_v1  ;;  %v7759_v25 = vld [vmem:[%s13677_s20 + $0x280] sm:$0xf]  ;;  %v9845_v33 = vld [vmem:[%s13677_s20 + $0x394] sm:$0xf0]  ;;  %v9760_v53 = vld [vmem:[%s13677_s20 + $0xf4] sm:$0xf] }
 0x1de   :  { %2121 = vmatpush.bf16.msra.mxu0 %v7744_v22  ;;  %2148 = vmatpush.bf16.msra.mxu2 %v7880_v4  ;;  %v9815_v22 = vld [vmem:[%s13677_s20 + $0x2a4] sm:$0xf0]  ;;  %v9742_v61 = vld [vmem:[%s13677_s20 + $0x64] sm:$0xf]  ;;  %v7481_v16 = vld [vmem:[%s13677_s20 + $0x58] sm:$0xf0] }
 0x1df   :  { %v7776_v4 = vor.u32 %v9815_v22, %v7775_v3  ;;  %v7489_v3 = vld [vmem:[%s13677_s20 + $0x68] sm:$0xf0] }
 0x1e0   :  { %2081 = vmatpush.bf16.msrb.mxu1 %v7536_v42  ;;  %2109 = vmatpush.bf16.msrb.mxu3 %v7664_v44  ;;  %v7728_v42 = vor.u32 %v9803_v40, %v7727_v39  ;;  %v7792_v44 = vor.u32 %v9819_v43, %v7791_v41  ;;  %v9843_v39 = vld [vmem:[%s13677_s20 + $0x384] sm:$0xf0]  ;;  %v7553_v22 = vld [vmem:[%s13677_s20 + $0xe8] sm:$0xf0] }
 0x1e2   :  { %2122 = vmatpush.bf16.msra.mxu0 %v7736_v14  ;;  %2149 = vmatpush.bf16.msra.mxu2 %v7872_v0  ;;  %v7704_v14 = vor.u32 %v9797_v12, %v7703_v11  ;;  %v9813_v0 = vld [vmem:[%s13677_s20 + $0x294] sm:$0xf0]  ;;  %v7492_v11 = vor.u32 %v9742_v61, %v7489_v3  ;;  %v7601_v61 = vld [vmem:[%s13677_s20 + $0x148] sm:$0xf0] }
 0x1e3   :  { %v7665_v3 = vld [vmem:[%s13677_s20 + $0x1c8] sm:$0xf0] }
 0x1e4   :  { %2082 = vmatpush.bf16.msrb.mxu1 %v7528_v57  ;;  %2110 = vmatpush.bf16.msrb.mxu3 %v7656_v58  ;;  %v7855_v57 = vld [vmem:[%s13677_s20 + $0x340] sm:$0xf]  ;;  %v9835_v58 = vld [vmem:[%s13677_s20 + $0x344] sm:$0xf0] }
 0x1e5   :  { %v7856_v60 = vor.u32 %v9835_v58, %v7855_v57 }
 0x1e6   :  { %2123 = vmatpush.bf16.msra.mxu0 %v7728_v42  ;;  %2150 = vmatpush.bf16.msra.mxu2 %v7864_v48  ;;  %v9744_v48 = vld [vmem:[%s13677_s20 + $0x74] sm:$0xf] }
 0x1e7   :  { %v7500_v58 = vor.u32 %v9744_v48, %v7497_v52  ;;  %v9736_v48 = vld [vmem:[%s13677_s20 + $0x34] sm:$0xf]  ;;  %v7465_v52 = vld [vmem:[%s13677_s20 + $0x38] sm:$0xf0] }
 0x1e8   :  { %2083 = vmatpush.bf16.msrb.mxu1 %v7520_v6  ;;  %2111 = vmatpush.bf16.msrb.mxu3 %v7648_v7  ;;  %v9833_v6 = vld [vmem:[%s13677_s20 + $0x334] sm:$0xf0]  ;;  %v7911_v7 = vld [vmem:[%s13677_s20 + $0x3b0] sm:$0xf] }
 0x1e9   :  { %v7848_v8 = vor.u32 %v9833_v6, %v7847_v5  ;;  %v7912_v10 = vor.u32 %v9849_v9, %v7911_v7  ;;  %v9776_v5 = vld [vmem:[%s13677_s20 + $0x174] sm:$0xf]  ;;  %v7625_v7 = vld [vmem:[%s13677_s20 + $0x178] sm:$0xf0] }
 0x1ea   :  { %2124 = vmatpush.bf16.msra.mxu0 %v7720_v54  ;;  %2151 = vmatpush.bf16.msra.mxu2 %v7856_v60  ;;  %v7561_v54 = vld [vmem:[%s13677_s20 + $0xf8] sm:$0xf0] }
 0x1eb   :  { %v7564_v59 = vor.u32 %v9760_v53, %v7561_v54  ;;  %v7689_v9 = vld [vmem:[%s13677_s20 + $0x1f8] sm:$0xf0]  ;;  %v9752_v53 = vld [vmem:[%s13677_s20 + $0xb4] sm:$0xf] }
 0x1ec   :  { %2084 = vmatpush.bf16.msrb.mxu1 %v7512_v63  ;;  %2112 = vmatpush.bf16.msrb.mxu3 %v7640_v18  ;;  %v7768_v63 = vor.u32 %v9813_v0, %v7767_v13  ;;  %v7903_v18 = vld [vmem:[%s13677_s20 + $0x3a0] sm:$0xf]  ;;  %v9740_v13 = vld [vmem:[%s13677_s20 + $0x54] sm:$0xf]  ;;  %v7529_v54 = vld [vmem:[%s13677_s20 + $0xb8] sm:$0xf0] }
 0x1ed   :  { %v7904_v21 = vor.u32 %v9847_v20, %v7903_v18  ;;  %v9756_v18 = vld [vmem:[%s13677_s20 + $0xd4] sm:$0xf]  ;;  %v7628_v20 = vor.u32 %v9776_v5, %v7625_v7  ;;  %v9734_v5 = vld [vmem:[%s13677_s20 + $0x24] sm:$0xf] }
 0x1ee   :  { %2125 = vmatpush.bf16.msra.mxu0 %v7712_v17  ;;  %2152 = vmatpush.bf16.msra.mxu2 %v7848_v8  ;;  %v9758_v17 = vld [vmem:[%s13677_s20 + $0xe4] sm:$0xf]  ;;  %v9792_v8 = vld [vmem:[%s13677_s20 + $0x1f4] sm:$0xf] }
 0x1ef   :  { %v7556_v12 = vor.u32 %v9758_v17, %v7553_v22  ;;  %v7468_v22 = vor.u32 %v9736_v48, %v7465_v52  ;;  %v7577_v52 = vld [vmem:[%s13677_s20 + $0x118] sm:$0xf0] }
 0x1f0   :  { %2085 = vmatpush.bf16.msrb.mxu1 %v7504_v26  ;;  %2113 = vmatpush.bf16.msrb.mxu3 %v7632_v27  ;;  %v7696_v26 = vor.u32 %v9795_v24, %v7695_v23  ;;  %v9811_v27 = vld [vmem:[%s13677_s20 + $0x284] sm:$0xf0]  ;;  %v9774_v24 = vld [vmem:[%s13677_s20 + $0x164] sm:$0xf] }
 0x1f2   :  { %2126 = vmatpush.bf16.msra.mxu0 %v7704_v14  ;;  %2153 = vmatpush.bf16.msra.mxu2 %v7840_v19  ;;  %v7545_v19 = vld [vmem:[%s13677_s20 + $0xd8] sm:$0xf0] }
 0x1f4   :  { %2134 = vmatpush.bf16.msra.mxu1 %v7816_v28  ;;  %2162 = vmatpush.bf16.msra.mxu3 %v7944_v30  ;;  %v7760_v28 = vor.u32 %v9811_v27, %v7759_v25  ;;  %v9829_v30 = vld [vmem:[%s13677_s20 + $0x314] sm:$0xf0]  ;;  %v7617_v27 = vld [vmem:[%s13677_s20 + $0x168] sm:$0xf0] }
 0x1f5   :  { %v7832_v32 = vor.u32 %v9829_v30, %v7831_v29  ;;  %v7681_v29 = vld [vmem:[%s13677_s20 + $0x1e8] sm:$0xf0]  ;;  %v7484_v30 = vor.u32 %v9740_v13, %v7481_v16  ;;  %v7593_v16 = vld [vmem:[%s13677_s20 + $0x138] sm:$0xf0] }
 0x1f6   :  { %2127 = vmatpush.bf16.msra.mxu0 %v7696_v26 }
 0x1f7   :  { %2154 = vmatpush.bf16.msra.mxu2 %v7832_v32  ;;  %v9738_v32 = vld [vmem:[%s13677_s20 + $0x44] sm:$0xf] }
 0x1f8   :  { %2135 = vmatpush.bf16.msra.mxu1 %v7808_v34  ;;  %2163 = vmatpush.bf16.msra.mxu3 %v7936_v35  ;;  %v7896_v34 = vor.u32 %v9845_v33, %v7895_v31  ;;  %v7823_v35 = vld [vmem:[%s13677_s20 + $0x300] sm:$0xf]  ;;  %v7548_v31 = vor.u32 %v9756_v18, %v7545_v19  ;;  %v9784_v18 = vld [vmem:[%s13677_s20 + $0x1b4] sm:$0xf]  ;;  %v7657_v19 = vld [vmem:[%s13677_s20 + $0x1b8] sm:$0xf0] }
 0x1f9   :  { %v7824_v37 = vor.u32 %v9827_v36, %v7823_v35  ;;  %v9754_v35 = vld [vmem:[%s13677_s20 + $0xc4] sm:$0xf]  ;;  %v7537_v36 = vld [vmem:[%s13677_s20 + $0xc8] sm:$0xf0] }
 0x1fb   :  { %2155 = vmatpush.bf16.msra.mxu2 %v7824_v37 }
 0x1fc   :  { %2136 = vmatpush.bf16.msra.mxu1 %v7800_v38  ;;  %2164 = vmatpush.bf16.msra.mxu3 %v7928_v50  ;;  %v7887_v38 = vld [vmem:[%s13677_s20 + $0x380] sm:$0xf] }
 0x1fd   :  { %v7888_v40 = vor.u32 %v9843_v39, %v7887_v38  ;;  %v7620_v39 = vor.u32 %v9774_v24, %v7617_v27 }
 0x200   :  { %2137 = vmatpush.bf16.msra.mxu1 %v7792_v44  ;;  %2165 = vmatpush.bf16.msra.mxu3 %v7920_v62 }
 0x204   :  { %2138 = vmatpush.bf16.msra.mxu1 %v7784_v56  ;;  %2166 = vmatpush.bf16.msra.mxu3 %v7912_v10 }
 0x208   :  { %2139 = vmatpush.bf16.msra.mxu1 %v7776_v4  ;;  %2167 = vmatpush.bf16.msra.mxu3 %v7904_v21  ;;  %v7692_v21 = vor.u32 %v9792_v8, %v7689_v9  ;;  %v7457_v8 = vld [vmem:[%s13677_s20 + $0x28] sm:$0xf0]  ;;  %v9750_v9 = vld [vmem:[%s13677_s20 + $0xa4] sm:$0xf] }
 0x20c   :  { %2140 = vmatpush.bf16.msra.mxu1 %v7768_v63  ;;  %2168 = vmatpush.bf16.msra.mxu3 %v7896_v34  ;;  %v7473_v34 = vld [vmem:[%s13677_s20 + $0x48] sm:$0xf0] }
 0x210   :  { %2141 = vmatpush.bf16.msra.mxu1 %v7760_v28  ;;  %2169 = vmatpush.bf16.msra.mxu3 %v7888_v40  ;;  %v9790_v28 = vld [vmem:[%s13677_s20 + $0x1e4] sm:$0xf] }
 0x211   :  { %v7684_v40 = vor.u32 %v9790_v28, %v7681_v29  ;;  %v7449_v28 = vld [vmem:[%s13677_s20 + $0x18] sm:$0xf0]  ;;  %v9748_v29 = vld [vmem:[%s13677_s20 + $0x94] sm:$0xf] }
 0x228   :  { %v1112_v41 = vpop.f32.mrf.mxu0 }
 0x22e   :  { %v1153_v42 = vpop.f32.mrf.mxu2 }
 0x230   :  { %v1114_v44 = vpop.f32.mrf.mxu0 }
 0x236   :  { %v1155_v55 = vpop.f32.mrf.mxu2 }
 0x238   :  { %v1194_v60 = vpop.f32.mrf.mxu0 }
 0x23e   :  { %v1235_v23 = vpop.f32.mrf.mxu2 }
 0x240   :  { %v1196_v38 = vpop.f32.mrf.mxu0 }
 0x246   :  { %v1237_v17 = vpop.f32.mrf.mxu2 }
 0x248   :  { %v1126_v43 = vpop.f32.mrf.mxu1 }
 0x249   :  { %v1131_v45 = vpack.c.bf16 %v1126_v43, %v1112_v41  ;;  %v9772_v41 = vld [vmem:[%s13677_s20 + $0x154] sm:$0xf] }
 0x24a   :  { %v9788_v43 = vld [vmem:[%s13677_s20 + $0x1d4] sm:$0xf] }
 0x24b   :  { %v1258_v49 = vunpack.c.l.b16 %v1131_v45  ;;  %v1259_v50 = vunpack.c.h.b16 %v1131_v45 }
 0x24e   :  { %v1167_v46 = vpop.f32.mrf.mxu3 }
 0x24f   :  { %v1172_v62 = vpack.c.bf16 %v1167_v46, %v1153_v42  ;;  %v7609_v42 = vld [vmem:[%s13677_s20 + $0x158] sm:$0xf0]  ;;  %v7476_v46 = vor.u32 %v9738_v32, %v7473_v34  ;;  %v7660_v32 = vor.u32 %v9784_v18, %v7657_v19  ;;  %v9820_v18 = vld [vmem:[%s13677_s20 + $0x2d4] sm:$0xf] }
 0x250   :  { %v1128_v47 = vpop.f32.mrf.mxu1  ;;  %v7801_v19 = vld [vmem:[%s13677_s20 + $0x2d8] sm:$0xf0] }
 0x251   :  { %v1132_v51 = vpack.c.bf16 %v1128_v47, %v1114_v44  ;;  %v1268_v14 = vunpack.c.l.b16 %v1172_v62  ;;  %v1269_v0 = vunpack.c.h.b16 %v1172_v62  ;;  %v7673_v44 = vld [vmem:[%s13677_s20 + $0x1d8] sm:$0xf0]  ;;  %v7540_v47 = vor.u32 %v9754_v35, %v7537_v36  ;;  %v9786_v62 = vld [vmem:[%s13677_s20 + $0x1c4] sm:$0xf]  ;;  %v7585_v36 = vld [vmem:[%s13677_s20 + $0x128] sm:$0xf0] }
 0x252   :  { %v7668_v13 = vor.u32 %v9786_v62, %v7665_v3 }
 0x253   :  { %v1260_v56 = vunpack.c.l.b16 %v1132_v51  ;;  %v1261_v57 = vunpack.c.h.b16 %v1132_v51 }
 0x255   :  { %v11359_v1 = vpack.c.b16 %v1260_v56, %v1258_v49  ;;  %v11361_v2 = vpack.c.b16 %v1261_v57, %v1259_v50  ;;  %v7676_v56 = vor.u32 %v9788_v43, %v7673_v44  ;;  %v9770_v57 = vld [vmem:[%s13677_s20 + $0x144] sm:$0xf]  ;;  %v7505_v44 = vld [vmem:[%s13677_s20 + $0x88] sm:$0xf0] }
 0x256   :  { %v1169_v4 = vpop.f32.mrf.mxu3  ;;  %v9746_v43 = vld [vmem:[%s13677_s20 + $0x84] sm:$0xf] }
 0x257   :  { %v1173_v6 = vpack.c.bf16 %v1169_v4, %v1155_v55  ;;  %2072 = vmatmul.bf16.vlgmr.msrb.gmra.mxu0 %v11359_v1  ;;  %2086 = vmatmul.bf16.vlgmr.msrb.gmra.mxu1 %v11361_v2  ;;  %v7612_v55 = vor.u32 %v9772_v41, %v7609_v42  ;;  %v7532_v4 = vor.u32 %v9752_v53, %v7529_v54  ;;  %v9730_v41 = vld [vmem:[%s13677_s20 + $0x4] sm:$0xf]  ;;  %v7441_v42 = vld [vmem:[%s13677_s20 + $0x8] sm:$0xf0]  ;;  %v9780_v53 = vld [vmem:[%s13677_s20 + $0x194] sm:$0xf] }
 0x258   :  { %2176 = vmatpush.bf16.msrb.mxu0 %v7500_v58  ;;  %2190 = vmatpush.bf16.msrb.mxu1 %v7564_v59  ;;  %v1208_v10 = vpop.f32.mrf.mxu1  ;;  %v7641_v54 = vld [vmem:[%s13677_s20 + $0x198] sm:$0xf0] }
 0x259   :  { %v1270_v63 = vunpack.c.l.b16 %v1173_v6  ;;  %v1271_v15 = vunpack.c.h.b16 %v1173_v6  ;;  %v1213_v33 = vpack.c.bf16 %v1208_v10, %v1194_v60  ;;  %v7521_v10 = vld [vmem:[%s13677_s20 + $0xa8] sm:$0xf0]  ;;  %v7644_v3 = vor.u32 %v9780_v53, %v7641_v54  ;;  %v9798_v53 = vld [vmem:[%s13677_s20 + $0x224] sm:$0xf] }
 0x25a   :  { %v7713_v54 = vld [vmem:[%s13677_s20 + $0x228] sm:$0xf0] }
 0x25b   :  { %v11401_v25 = vpack.c.b16 %v1270_v63, %v1268_v14  ;;  %v11403_v26 = vpack.c.b16 %v1271_v15, %v1269_v0  ;;  %v1278_v49 = vunpack.c.l.b16 %v1213_v33  ;;  %v1279_v50 = vunpack.c.h.b16 %v1213_v33  ;;  %v9768_v14 = vld [vmem:[%s13677_s20 + $0x134] sm:$0xf]  ;;  %v9766_v33 = vld [vmem:[%s13677_s20 + $0x124] sm:$0xf] }
 0x25c   :  { %2177 = vmatpush.bf16.msrb.mxu0 %v7492_v11  ;;  %2191 = vmatpush.bf16.msrb.mxu1 %v7556_v12  ;;  %v7604_v12 = vor.u32 %v9770_v57, %v7601_v61  ;;  %v9822_v61 = vld [vmem:[%s13677_s20 + $0x2e4] sm:$0xf] }
 0x25d   :  { %2100 = vmatmul.bf16.vlgmr.msrb.gmra.mxu2 %v11401_v25  ;;  %2114 = vmatmul.bf16.vlgmr.msrb.gmra.mxu3 %v11403_v26 }
 0x25e   :  { %2204 = vmatpush.bf16.msrb.mxu2 %v7628_v20  ;;  %2218 = vmatpush.bf16.msrb.mxu3 %v7692_v21  ;;  %v1249_v37 = vpop.f32.mrf.mxu3  ;;  %v7460_v20 = vor.u32 %v9734_v5, %v7457_v8  ;;  %v7524_v21 = vor.u32 %v9750_v9, %v7521_v10  ;;  %v9778_v5 = vld [vmem:[%s13677_s20 + $0x184] sm:$0xf]  ;;  %v7633_v8 = vld [vmem:[%s13677_s20 + $0x188] sm:$0xf0]  ;;  %v9840_v9 = vld [vmem:[%s13677_s20 + $0x374] sm:$0xf] }
 0x25f   :  { %v1254_v58 = vpack.c.bf16 %v1249_v37, %v1235_v23  ;;  %v9732_v23 = vld [vmem:[%s13677_s20 + $0x14] sm:$0xf]  ;;  %v9782_v37 = vld [vmem:[%s13677_s20 + $0x1a4] sm:$0xf]  ;;  %v7881_v10 = vld [vmem:[%s13677_s20 + $0x378] sm:$0xf0] }
 0x260   :  { %2178 = vmatpush.bf16.msrb.mxu0 %v7484_v30  ;;  %2192 = vmatpush.bf16.msrb.mxu1 %v7548_v31  ;;  %v1210_v45 = vpop.f32.mrf.mxu1  ;;  %v7513_v30 = vld [vmem:[%s13677_s20 + $0x98] sm:$0xf0]  ;;  %v7596_v31 = vor.u32 %v9768_v14, %v7593_v16 }
 0x261   :  { %v1214_v51 = vpack.c.bf16 %v1210_v45, %v1196_v38  ;;  %v1288_v0 = vunpack.c.l.b16 %v1254_v58  ;;  %v1289_v63 = vunpack.c.h.b16 %v1254_v58  ;;  %v7649_v38 = vld [vmem:[%s13677_s20 + $0x1a8] sm:$0xf0]  ;;  %v9808_v45 = vld [vmem:[%s13677_s20 + $0x274] sm:$0xf]  ;;  %v7737_v16 = vld [vmem:[%s13677_s20 + $0x258] sm:$0xf0] }
 0x262   :  { %2205 = vmatpush.bf16.msrb.mxu2 %v7620_v39  ;;  %2219 = vmatpush.bf16.msrb.mxu3 %v7684_v40  ;;  %v7452_v39 = vor.u32 %v9732_v23, %v7449_v28  ;;  %v7516_v40 = vor.u32 %v9748_v29, %v7513_v30  ;;  %v7652_v48 = vor.u32 %v9782_v37, %v7649_v38  ;;  %v9838_v23 = vld [vmem:[%s13677_s20 + $0x364] sm:$0xf]  ;;  %v7729_v30 = vld [vmem:[%s13677_s20 + $0x248] sm:$0xf0]  ;;  %v9836_v37 = vld [vmem:[%s13677_s20 + $0x354] sm:$0xf] }
 0x263   :  { %v1280_v59 = vunpack.c.l.b16 %v1214_v51  ;;  %v1281_v60 = vunpack.c.h.b16 %v1214_v51  ;;  %v9764_v51 = vld [vmem:[%s13677_s20 + $0x114] sm:$0xf]  ;;  %v7804_v28 = vor.u32 %v9820_v18, %v7801_v19  ;;  %v9802_v29 = vld [vmem:[%s13677_s20 + $0x244] sm:$0xf]  ;;  %v7865_v38 = vld [vmem:[%s13677_s20 + $0x358] sm:$0xf0] }
 0x264   :  { %2179 = vmatpush.bf16.msrb.mxu0 %v7476_v46  ;;  %2193 = vmatpush.bf16.msrb.mxu1 %v7540_v47  ;;  %v7753_v46 = vld [vmem:[%s13677_s20 + $0x278] sm:$0xf0]  ;;  %v7588_v47 = vor.u32 %v9766_v33, %v7585_v36  ;;  %v7580_v62 = vor.u32 %v9764_v51, %v7577_v52  ;;  %v9810_v18 = vld [vmem:[%s13677_s20 + $0x284] sm:$0xf]  ;;  %v7761_v19 = vld [vmem:[%s13677_s20 + $0x288] sm:$0xf0] }
 0x265   :  { %v11467_v6 = vpack.c.b16 %v1280_v59, %v1278_v49  ;;  %v11469_v7 = vpack.c.b16 %v1281_v60, %v1279_v50  ;;  %v9824_v49 = vld [vmem:[%s13677_s20 + $0x2f4] sm:$0xf]  ;;  %v7817_v50 = vld [vmem:[%s13677_s20 + $0x2f8] sm:$0xf0]  ;;  %v7756_v57 = vor.u32 %v9808_v45, %v7753_v46  ;;  %v9806_v59 = vld [vmem:[%s13677_s20 + $0x264] sm:$0xf] }
 0x266   :  { %2206 = vmatpush.bf16.msrb.mxu2 %v7612_v55  ;;  %2220 = vmatpush.bf16.msrb.mxu3 %v7676_v56  ;;  %v1251_v11 = vpop.f32.mrf.mxu3  ;;  %v7444_v55 = vor.u32 %v9730_v41, %v7441_v42  ;;  %v7508_v56 = vor.u32 %v9746_v43, %v7505_v44  ;;  %v7820_v58 = vor.u32 %v9824_v49, %v7817_v50  ;;  %v7745_v60 = vld [vmem:[%s13677_s20 + $0x268] sm:$0xf0]  ;;  %v9800_v43 = vld [vmem:[%s13677_s20 + $0x234] sm:$0xf]  ;;  %v7721_v44 = vld [vmem:[%s13677_s20 + $0x238] sm:$0xf0] }
 0x267   :  { %v1255_v15 = vpack.c.bf16 %v1251_v11, %v1237_v17  ;;  %2128 = vmatmul.bf16.vlgmr.msra.gmra.mxu0 %v11467_v6  ;;  %2142 = vmatmul.bf16.vlgmr.msra.gmra.mxu1 %v11469_v7  ;;  %v7809_v17 = vld [vmem:[%s13677_s20 + $0x2e8] sm:$0xf0]  ;;  %v9856_v11 = vld [vmem:[%s13677_s20 + $0x3f4] sm:$0xf]  ;;  %v7732_v41 = vor.u32 %v9802_v29, %v7729_v30  ;;  %v7785_v46 = vld [vmem:[%s13677_s20 + $0x2b8] sm:$0xf0]  ;;  %v7724_v51 = vor.u32 %v9800_v43, %v7721_v44 }
 0x268   :  { %2180 = vmatpush.bf16.msrb.mxu0 %v7468_v22  ;;  %2194 = vmatpush.bf16.msrb.mxu1 %v7532_v4  ;;  %v9762_v22 = vld [vmem:[%s13677_s20 + $0x104] sm:$0xf]  ;;  %v7569_v4 = vld [vmem:[%s13677_s20 + $0x108] sm:$0xf0]  ;;  %v7812_v14 = vor.u32 %v9822_v61, %v7809_v17  ;;  %v9816_v45 = vld [vmem:[%s13677_s20 + $0x2b4] sm:$0xf] }
 0x269   :  { %v1290_v24 = vunpack.c.l.b16 %v1255_v15  ;;  %v1291_v27 = vunpack.c.h.b16 %v1255_v15  ;;  %v7636_v15 = vor.u32 %v9778_v5, %v7633_v8  ;;  %v9850_v49 = vld [vmem:[%s13677_s20 + $0x3c4] sm:$0xf]  ;;  %v7921_v50 = vld [vmem:[%s13677_s20 + $0x3c8] sm:$0xf0]  ;;  %v7788_v52 = vor.u32 %v9816_v45, %v7785_v46  ;;  %v9848_v61 = vld [vmem:[%s13677_s20 + $0x3b4] sm:$0xf] }
 0x26a   :  { %2207 = vmatpush.bf16.msrb.mxu2 %v7604_v12  ;;  %2221 = vmatpush.bf16.msrb.mxu3 %v7668_v13  ;;  %v7945_v12 = vld [vmem:[%s13677_s20 + $0x3f8] sm:$0xf0]  ;;  %v7748_v13 = vor.u32 %v9806_v59, %v7745_v60  ;;  %v9832_v59 = vld [vmem:[%s13677_s20 + $0x334] sm:$0xf]  ;;  %v2332_v43 = vld [vmem:[%s13678_s14 + $0x48] sm:$0xff] }
 0x26b   :  { %v11509_v34 = vpack.c.b16 %v1290_v24, %v1288_v0  ;;  %v11511_v35 = vpack.c.b16 %v1291_v27, %v1289_v63  ;;  %v9804_v0 = vld [vmem:[%s13677_s20 + $0x254] sm:$0xf]  ;;  %v7572_v63 = vor.u32 %v9762_v22, %v7569_v4  ;;  %v7873_v24 = vld [vmem:[%s13677_s20 + $0x368] sm:$0xf0]  ;;  %v9854_v27 = vld [vmem:[%s13677_s20 + $0x3e4] sm:$0xf] }
 0x26c   :  { %2181 = vmatpush.bf16.msrb.mxu0 %v7460_v20  ;;  %2195 = vmatpush.bf16.msrb.mxu1 %v7524_v21  ;;  %v7884_v20 = vor.u32 %v9840_v9, %v7881_v10  ;;  %v7948_v21 = vor.u32 %v9856_v11, %v7945_v12  ;;  %v7876_v33 = vor.u32 %v9838_v23, %v7873_v24  ;;  %v7849_v60 = vld [vmem:[%s13677_s20 + $0x338] sm:$0xf0]  ;;  %v9796_v22 = vld [vmem:[%s13677_s20 + $0x214] sm:$0xf]  ;;  %v9830_v11 = vld [vmem:[%s13677_s20 + $0x324] sm:$0xf] }
 0x26d   :  { %2156 = vmatmul.bf16.vlgmr.msra.gmra.mxu2 %v11509_v34  ;;  %2170 = vmatmul.bf16.vlgmr.msra.gmra.mxu3 %v11511_v35  ;;  %v7705_v4 = vld [vmem:[%s13677_s20 + $0x218] sm:$0xf0]  ;;  %v9812_v5 = vld [vmem:[%s13677_s20 + $0x294] sm:$0xf]  ;;  %v7852_v9 = vor.u32 %v9832_v59, %v7849_v60  ;;  %v7841_v12 = vld [vmem:[%s13677_s20 + $0x328] sm:$0xf0] }
 0x26e   :  { %2208 = vmatpush.bf16.msrb.mxu2 %v7596_v31  ;;  %2222 = vmatpush.bf16.msrb.mxu3 %v7660_v32  ;;  %v9818_v31 = vld [vmem:[%s13677_s20 + $0x2c4] sm:$0xf]  ;;  %v7793_v32 = vld [vmem:[%s13677_s20 + $0x2c8] sm:$0xf0]  ;;  %v7769_v8 = vld [vmem:[%s13677_s20 + $0x298] sm:$0xf0] }
 0x26f   :  { %v7796_v42 = vor.u32 %v9818_v31, %v7793_v32  ;;  %v9828_v23 = vld [vmem:[%s13677_s20 + $0x314] sm:$0xf]  ;;  %v7833_v24 = vld [vmem:[%s13677_s20 + $0x318] sm:$0xf0]  ;;  %v9826_v31 = vld [vmem:[%s13677_s20 + $0x304] sm:$0xf] }
 0x270   :  { %2182 = vmatpush.bf16.msrb.mxu0 %v7452_v39  ;;  %2196 = vmatpush.bf16.msrb.mxu1 %v7516_v40  ;;  %v9852_v39 = vld [vmem:[%s13677_s20 + $0x3d4] sm:$0xf]  ;;  %v7929_v40 = vld [vmem:[%s13677_s20 + $0x3d8] sm:$0xf0]  ;;  %v7836_v29 = vor.u32 %v9828_v23, %v7833_v24  ;;  %v7825_v32 = vld [vmem:[%s13677_s20 + $0x308] sm:$0xf0] }
 0x271   :  { %v2331_v45 = vld [vmem:[%s13678_s14 + $0x40] sm:$0xff]  ;;  %v2330_v46 = vld [vmem:[%s13678_s14 + $0x38] sm:$0xff]  ;;  %v2353_v23 = vld [vmem:[%s13678_s14 + $0xf0] sm:$0xff] }
 0x272   :  { %2209 = vmatpush.bf16.msrb.mxu2 %v7588_v47  ;;  %2223 = vmatpush.bf16.msrb.mxu3 %v7652_v48  ;;  %v7868_v47 = vor.u32 %v9836_v37, %v7865_v38  ;;  %v7932_v48 = vor.u32 %v9852_v39, %v7929_v40  ;;  %v7828_v37 = vor.u32 %v9826_v31, %v7825_v32  ;;  %v2338_v39 = vld [vmem:[%s13678_s14 + $0x78] sm:$0xff]  ;;  %v2337_v40 = vld [vmem:[%s13678_s14 + $0x70] sm:$0xff] }
 0x273   :  { %v2350_v31 = vld [vmem:[%s13678_s14 + $0xd8] sm:$0xff] }
 0x274   :  { %2183 = vmatpush.bf16.msrb.mxu0 %v7444_v55  ;;  %2197 = vmatpush.bf16.msrb.mxu1 %v7508_v56  ;;  %v9814_v55 = vld [vmem:[%s13677_s20 + $0x2a4] sm:$0xf]  ;;  %v7777_v56 = vld [vmem:[%s13677_s20 + $0x2a8] sm:$0xf0] }
 0x275   :  { %v7780_v17 = vor.u32 %v9814_v55, %v7777_v56 }
 0x276   :  { %2210 = vmatpush.bf16.msrb.mxu2 %v7580_v62  ;;  %2224 = vmatpush.bf16.msrb.mxu3 %v7644_v3  ;;  %v7913_v62 = vld [vmem:[%s13677_s20 + $0x3b8] sm:$0xf0]  ;;  %v7716_v3 = vor.u32 %v9798_v53, %v7713_v54 }
 0x277   :  { %2184 = vmatmul.bf16.vlgmr.msrb.gmra.mxu0 %v11359_v1  ;;  %2198 = vmatmul.bf16.vlgmr.msrb.gmra.mxu1 %v11361_v2  ;;  %v7937_v1 = vld [vmem:[%s13677_s20 + $0x3e8] sm:$0xf0]  ;;  %v7740_v2 = vor.u32 %v9804_v0, %v7737_v16  ;;  %v7916_v10 = vor.u32 %v9848_v61, %v7913_v62  ;;  %v7708_v0 = vor.u32 %v9796_v22, %v7705_v4  ;;  %v2326_v53 = vld [vmem:[%s13678_s14 + $0x18] sm:$0xff] }
 0x278   :  { %2232 = vmatpush.bf16.msra.mxu0 %v7756_v57  ;;  %2246 = vmatpush.bf16.msra.mxu1 %v7820_v58  ;;  %v7940_v36 = vor.u32 %v9854_v27, %v7937_v1  ;;  %v7924_v58 = vor.u32 %v9850_v49, %v7921_v50  ;;  %v7697_v16 = vld [vmem:[%s13677_s20 + $0x208] sm:$0xf0]  ;;  %v9844_v27 = vld [vmem:[%s13677_s20 + $0x394] sm:$0xf]  ;;  %v7897_v1 = vld [vmem:[%s13677_s20 + $0x398] sm:$0xf0] }
 0x279   :  { %v7900_v30 = vor.u32 %v9844_v27, %v7897_v1  ;;  %v2328_v49 = vld [vmem:[%s13678_s14 + $0x28] sm:$0xff] }
 0x27a   :  { %2211 = vmatpush.bf16.msrb.mxu2 %v7572_v63  ;;  %2225 = vmatpush.bf16.msrb.mxu3 %v7636_v15  ;;  %v7772_v63 = vor.u32 %v9812_v5, %v7769_v8  ;;  %v9794_v15 = vld [vmem:[%s13677_s20 + $0x204] sm:$0xf]  ;;  %v2324_v61 = vld [vmem:[%s13678_s14 + $0x8] sm:$0xff] }
 0x27b   :  { %v2352_v1 = vld [vmem:[%s13678_s14 + $0xe8] sm:$0xff] }
 0x27c   :  { %2233 = vmatpush.bf16.msra.mxu0 %v7748_v13  ;;  %2247 = vmatpush.bf16.msra.mxu1 %v7812_v14  ;;  %v9846_v13 = vld [vmem:[%s13677_s20 + $0x3a4] sm:$0xf]  ;;  %v7905_v14 = vld [vmem:[%s13677_s20 + $0x3a8] sm:$0xf0] }
 0x27d   :  { %2212 = vmatmul.bf16.vlgmr.msrb.gmra.mxu2 %v11401_v25  ;;  %2226 = vmatmul.bf16.vlgmr.msrb.gmra.mxu3 %v11403_v26  ;;  %v9834_v25 = vld [vmem:[%s13677_s20 + $0x344] sm:$0xf]  ;;  %v7857_v26 = vld [vmem:[%s13677_s20 + $0x348] sm:$0xf0] }
 0x27e   :  { %2260 = vmatpush.bf16.msra.mxu2 %v7884_v20  ;;  %2274 = vmatpush.bf16.msra.mxu3 %v7948_v21  ;;  %v7860_v57 = vor.u32 %v9834_v25, %v7857_v26  ;;  %v7844_v20 = vor.u32 %v9830_v11, %v7841_v12  ;;  %v7908_v21 = vor.u32 %v9846_v13, %v7905_v14  ;;  %v2329_v25 = vld [vmem:[%s13678_s14 + $0x30] sm:$0xff] }
 0x280   :  { %2234 = vmatpush.bf16.msra.mxu0 %v7740_v2  ;;  %2248 = vmatpush.bf16.msra.mxu1 %v7804_v28  ;;  %v7700_v2 = vor.u32 %v9794_v15, %v7697_v16  ;;  %v7764_v28 = vor.u32 %v9810_v18, %v7761_v19  ;;  %v2354_v18 = vld [vmem:[%s13678_s14 + $0xf8] sm:$0xff] }
 0x282   :  { %2261 = vmatpush.bf16.msra.mxu2 %v7876_v33  ;;  %2275 = vmatpush.bf16.msra.mxu3 %v7940_v36  ;;  %v9842_v33 = vld [vmem:[%s13677_s20 + $0x384] sm:$0xf]  ;;  %v7889_v36 = vld [vmem:[%s13677_s20 + $0x388] sm:$0xf0] }
 0x283   :  { %v7892_v38 = vor.u32 %v9842_v33, %v7889_v36 }
 0x284   :  { %2235 = vmatpush.bf16.msra.mxu0 %v7732_v41  ;;  %2249 = vmatpush.bf16.msra.mxu1 %v7796_v42  ;;  %v2333_v42 = vld [vmem:[%s13678_s14 + $0x50] sm:$0xff] }
 0x286   :  { %2262 = vmatpush.bf16.msra.mxu2 %v7868_v47  ;;  %2276 = vmatpush.bf16.msra.mxu3 %v7932_v48 }
 0x288   :  { %2236 = vmatpush.bf16.msra.mxu0 %v7724_v51  ;;  %2250 = vmatpush.bf16.msra.mxu1 %v7788_v52  ;;  %v2327_v52 = vld [vmem:[%s13678_s14 + $0x20] sm:$0xff] }
 0x28a   :  { %2263 = vmatpush.bf16.msra.mxu2 %v7860_v57  ;;  %2277 = vmatpush.bf16.msra.mxu3 %v7924_v58  ;;  %v2325_v58 = vld [vmem:[%s13678_s14 + $0x10] sm:$0xff] }
 0x28c   :  { %2237 = vmatpush.bf16.msra.mxu0 %v7716_v3  ;;  %2251 = vmatpush.bf16.msra.mxu1 %v7780_v17  ;;  %v2323_v3 = vld [vmem:[%s13678_s14] sm:$0xff] }
 0x28e   :  { %2264 = vmatpush.bf16.msra.mxu2 %v7852_v9  ;;  %2278 = vmatpush.bf16.msra.mxu3 %v7916_v10 }
 0x290   :  { %2238 = vmatpush.bf16.msra.mxu0 %v7708_v0  ;;  %2252 = vmatpush.bf16.msra.mxu1 %v7772_v63 }
 0x292   :  { %2265 = vmatpush.bf16.msra.mxu2 %v7844_v20  ;;  %2279 = vmatpush.bf16.msra.mxu3 %v7908_v21 }
 0x294   :  { %2239 = vmatpush.bf16.msra.mxu0 %v7700_v2  ;;  %2253 = vmatpush.bf16.msra.mxu1 %v7764_v28 }
 0x296   :  { %2266 = vmatpush.bf16.msra.mxu2 %v7836_v29  ;;  %2280 = vmatpush.bf16.msra.mxu3 %v7900_v30  ;;  %v2351_v30 = vld [vmem:[%s13678_s14 + $0xe0] sm:$0xff] }
 0x297   :  { %2240 = vmatmul.bf16.vlgmr.msra.gmra.mxu0 %v11467_v6  ;;  %2254 = vmatmul.bf16.vlgmr.msra.gmra.mxu1 %v11469_v7  ;;  %v2336_v6 = vld [vmem:[%s13678_s14 + $0x68] sm:$0xff] }
 0x298   :  { %2355 = vmatpush.msrb.mxu0 %v2338_v39  ;;  %2375 = vmatpush.msrb.mxu1 %v2354_v18 }
 0x29a   :  { %2267 = vmatpush.bf16.msra.mxu2 %v7828_v37  ;;  %2281 = vmatpush.bf16.msra.mxu3 %v7892_v38  ;;  %v2349_v38 = vld [vmem:[%s13678_s14 + $0xd0] sm:$0xff] }
 0x29b   :  { %2356 = vmatpush.msrb.mxu0 %v2337_v40  ;;  %2376 = vmatpush.msrb.mxu1 %v2353_v23 }
 0x29d   :  { %2268 = vmatmul.bf16.vlgmr.msra.gmra.mxu2 %v11509_v34  ;;  %2282 = vmatmul.bf16.vlgmr.msra.gmra.mxu3 %v11511_v35  ;;  %v2335_v34 = vld [vmem:[%s13678_s14 + $0x60] sm:$0xff]  ;;  %v2334_v35 = vld [vmem:[%s13678_s14 + $0x58] sm:$0xff] }
 0x29e   :  { %2357 = vmatpush.msrb.mxu0 %v2336_v6  ;;  %2377 = vmatpush.msrb.mxu1 %v2352_v1 }
 0x2a0   :  { %2358 = vmatpush.msrb.mxu0 %v2335_v34  ;;  %2378 = vmatpush.msrb.mxu1 %v2351_v30 }
 0x2a2   :  { %2359 = vmatpush.msrb.mxu0 %v2334_v35  ;;  %2379 = vmatpush.msrb.mxu1 %v2350_v31  ;;  %v2347_v35 = vld [vmem:[%s13678_s14 + $0xc0] sm:$0xff] }
 0x2a4   :  { %2360 = vmatpush.msrb.mxu0 %v2333_v42  ;;  %2380 = vmatpush.msrb.mxu1 %v2349_v38 }
 0x2a6   :  { %2361 = vmatpush.msrb.mxu0 %v2332_v43 }
 0x2a8   :  { %2362 = vmatpush.msrb.mxu0 %v2331_v45 }
 0x2aa   :  { %2363 = vmatpush.msrb.mxu0 %v2330_v46  ;;  %v2346_v46 = vld [vmem:[%s13678_s14 + $0xb8] sm:$0xff] }
 0x2ac   :  { %2364 = vmatpush.msrb.mxu0 %v2329_v25  ;;  %v2344_v25 = vld [vmem:[%s13678_s14 + $0xa8] sm:$0xff] }
 0x2ae   :  { %2365 = vmatpush.msrb.mxu0 %v2328_v49  ;;  %v2343_v49 = vld [vmem:[%s13678_s14 + $0xa0] sm:$0xff] }
 0x2b0   :  { %2366 = vmatpush.msrb.mxu0 %v2327_v52  ;;  %v2341_v52 = vld [vmem:[%s13678_s14 + $0x90] sm:$0xff] }
 0x2b2   :  { %2367 = vmatpush.msrb.mxu0 %v2326_v53 }
 0x2b4   :  { %2368 = vmatpush.msrb.mxu0 %v2325_v58  ;;  %v2339_v58 = vld [vmem:[%s13678_s14 + $0x80] sm:$0xff] }
 0x2b6   :  { %2369 = vmatpush.msrb.mxu0 %v2324_v61 }
 0x2b8   :  { %2370 = vmatpush.msrb.mxu0 %v2323_v3 }
 0x2d4   :  { %v2073_v7 = vpop.f32.mrf.mxu0  ;;  %v2087_v41 = vpop.f32.mrf.mxu1 }
 0x2d5   :  { %v2088_v50 = vadd.f32 %v2087_v41, %v2073_v7  ;;  %v2348_v7 = vld [vmem:[%s13678_s14 + $0xc8] sm:$0xff] }
 0x2d6   :  { %2381 = vmatpush.msrb.mxu1 %v2348_v7 }
 0x2d8   :  { %2382 = vmatpush.msrb.mxu1 %v2347_v35 }
 0x2da   :  { %2383 = vmatpush.msrb.mxu1 %v2346_v46  ;;  %v2432_v46 = vld [vmem:[#allocation8 + $0x28] sm:$0xff] }
 0x2dc   :  { %v2075_v44 = vpop.f32.mrf.mxu0  ;;  %v2089_v26 = vpop.f32.mrf.mxu1 }
 0x2dd   :  { %v2090_v57 = vadd.f32 %v2089_v26, %v2075_v44 }
 0x2e0   :  { %v2101_v47 = vpop.f32.mrf.mxu2  ;;  %v2115_v48 = vpop.f32.mrf.mxu3 }
 0x2e1   :  { %v2102_v54 = vadd.f32 %v2101_v47, %v2088_v50 }
 0x2e3   :  { %v2116_v59 = vadd.f32 %v2115_v48, %v2102_v54  ;;  %v2345_v48 = vld [vmem:[%s13678_s14 + $0xb0] sm:$0xff] }
 0x2e4   :  { %v2129_v51 = vpop.f32.mrf.mxu0  ;;  %v2143_v62 = vpop.f32.mrf.mxu1  ;;  %2384 = vmatpush.msrb.mxu1 %v2345_v48  ;;  %v2429_v48 = vld [vmem:[#allocation8 + $0x10] sm:$0xff] }
 0x2e5   :  { %v2130_v17 = vadd.f32 %v2129_v51, %v2116_v59  ;;  %v2342_v51 = vld [vmem:[%s13678_s14 + $0x98] sm:$0xff] }
 0x2e6   :  { %2385 = vmatpush.msrb.mxu1 %v2344_v25  ;;  %v2430_v25 = vld [vmem:[#allocation8 + $0x18] sm:$0xff] }
 0x2e7   :  { %v2144_v9 = vadd.f32 %v2143_v62, %v2130_v17 }
 0x2e8   :  { %v2103_v55 = vpop.f32.mrf.mxu2  ;;  %v2117_v56 = vpop.f32.mrf.mxu3  ;;  %2386 = vmatpush.msrb.mxu1 %v2343_v49  ;;  %v2428_v49 = vld [vmem:[#allocation8 + $0x8] sm:$0xff] }
 0x2e9   :  { %v2104_v60 = vadd.f32 %v2103_v55, %v2090_v57 }
 0x2ea   :  { %2387 = vmatpush.msrb.mxu1 %v2342_v51 }
 0x2eb   :  { %v2118_v22 = vadd.f32 %v2117_v56, %v2104_v60  ;;  %v2340_v56 = vld [vmem:[%s13678_s14 + $0x88] sm:$0xff] }
 0x2ec   :  { %v2131_v4 = vpop.f32.mrf.mxu0  ;;  %v2145_v12 = vpop.f32.mrf.mxu1  ;;  %2388 = vmatpush.msrb.mxu1 %v2341_v52 }
 0x2ed   :  { %v2132_v10 = vadd.f32 %v2131_v4, %v2118_v22 }
 0x2ee   :  { %2389 = vmatpush.msrb.mxu1 %v2340_v56 }
 0x2ef   :  { %v2146_v13 = vadd.f32 %v2145_v12, %v2132_v10 }
 0x2f0   :  { %v2157_v5 = vpop.f32.mrf.mxu2  ;;  %v2171_v8 = vpop.f32.mrf.mxu3  ;;  %2390 = vmatpush.msrb.mxu1 %v2339_v58 }
 0x2f1   :  { %v2158_v11 = vadd.f32 %v2157_v5, %v2144_v9 }
 0x2f3   :  { %v11808_v0 = vadd.f32 %v2171_v8, %v2158_v11 }
 0x2f4   :  { %v2185_v2 = vpop.f32.mrf.mxu0  ;;  %v2199_v39 = vpop.f32.mrf.mxu1 }
 0x2f5   :  { %v2302_v19 = vmul.f32 %v11808_v0, %v11808_v0  ;;  %v2200_v53 = vadd.f32 %v2199_v39, %v2185_v2 }
 0x2f8   :  { %v2159_v14 = vpop.f32.mrf.mxu2  ;;  %v2173_v15 = vpop.f32.mrf.mxu3 }
 0x2f9   :  { %v2160_v63 = vadd.f32 %v2159_v14, %v2146_v13 }
 0x2fb   :  { %v11810_v16 = vadd.f32 %v2173_v15, %v2160_v63 }
 0x2fc   :  { %v2187_v41 = vpop.f32.mrf.mxu0  ;;  %v2201_v26 = vpop.f32.mrf.mxu1 }
 0x2fd   :  { %v2288_v20 = vadd.f32 %v11810_v16, %v11808_v0  ;;  %v2304_v21 = vmul.f32 %v11810_v16, %v11810_v16  ;;  %v2202_v59 = vadd.f32 %v2201_v26, %v2187_v41  ;;  %v2427_v26 = vld [vmem:[#allocation8] sm:$0xff] }
 0x2ff   :  { %v2289_v24 = vrot.slane %v2288_v20, 4  ;;  %v2306_v27 = vadd.f32 %v2304_v21, %v2302_v19 }
 0x300   :  { %v2213_v42 = vpop.f32.mrf.mxu2  ;;  %v2227_v43 = vpop.f32.mrf.mxu3 }
 0x301   :  { %v2290_v28 = vadd.f32 %v2289_v24, %v2288_v20  ;;  %v2307_v29 = vrot.slane %v2306_v27, 4  ;;  %v2214_v57 = vadd.f32 %v2213_v42, %v2200_v53  ;;  %v2433_v42 = vld [vmem:[#allocation8 + $0x30] sm:$0xff] }
 0x302   :  { %2450 = vmatpush.msrb.mxu2 %v2433_v42  ;;  %v9919_v42 = vld [vmem:[#allocation11 + $0x1e4] sm:$0xf0] }
 0x303   :  { %v2291_v32 = vrot.slane %v2290_v28, 2  ;;  %v2308_v33 = vadd.f32 %v2307_v29, %v2306_v27  ;;  %v2228_v61 = vadd.f32 %v2227_v43, %v2214_v57  ;;  %v2434_v43 = vld [vmem:[#allocation8 + $0x38] sm:$0xff]  ;;  %v2402_v57 = vld [vmem:[%s13679_s3] sm:$0x1] }
 0x304   :  { %2470 = vmatpush.msrb.mxu3 %v2434_v43 }
 0x305   :  { %v2292_v36 = vadd.f32 %v2291_v32, %v2290_v28  ;;  %v2309_v37 = vrot.slane %v2308_v33, 2 }
 0x306   :  { %2471 = vmatpush.msrb.mxu3 %v2432_v46  ;;  %v9871_v46 = vld [vmem:[#allocation11 + $0x64] sm:$0xf0] }
 0x307   :  { %v2293_v40 = vrot.slane %v2292_v36, 1  ;;  %v2310_v6 = vadd.f32 %v2309_v37, %v2308_v33 }
 0x308   :  { %v2215_v54 = vpop.f32.mrf.mxu2  ;;  %v2229_v55 = vpop.f32.mrf.mxu3  ;;  %2472 = vmatpush.msrb.mxu3 %v2430_v25 }
 0x309   :  { %v2311_v34 = vrot.slane %v2310_v6, 1  ;;  %v2294_v44 = vadd.f32 %v2293_v40, %v2292_v36  ;;  %v2216_v62 = vadd.f32 %v2215_v54, %v2202_v59 }
 0x30a   :  { %2473 = vmatpush.msrb.mxu3 %v2428_v49  ;;  %v8132_v49 = vld [vmem:[#allocation11 + $0x150] sm:$0xf] }
 0x30b   :  { %v2312_v45 = vadd.f32 %v2311_v34, %v2310_v6  ;;  %v2230_v5 = vadd.f32 %v2229_v55, %v2216_v62 }
 0x30d   :  { %v2321_v47 = vsel %vm2320_vm10, %v2294_v44, %v2312_v45  ;;  %v2431_v45 = vld [vmem:[#allocation8 + $0x20] sm:$0xff] }
 0x30e   :  { %2371 = vmatmul.f32.vlgmr.msrb.gmra.mxu0 %v2321_v47  ;;  %2451 = vmatpush.msrb.mxu2 %v2431_v45  ;;  %v8012_v45 = vld [vmem:[#allocation11 + $0x60] sm:$0xf] }
 0x310   :  { %2452 = vmatpush.msrb.mxu2 %v2429_v48  ;;  %v9887_v48 = vld [vmem:[#allocation11 + $0xe4] sm:$0xf0] }
 0x312   :  { %2453 = vmatpush.msrb.mxu2 %v2427_v26 }
 0x314   :  { %v2241_v50 = vpop.f32.mrf.mxu0  ;;  %v2255_v60 = vpop.f32.mrf.mxu1 }
 0x315   :  { %v2242_v3 = vadd.f32 %v2241_v50, %v2228_v61 }
 0x317   :  { %v2256_v8 = vadd.f32 %v2255_v60, %v2242_v3  ;;  %v2420_v60 = vld [vmem:[#allocation10] sm:$0x1] }
 0x31c   :  { %v2243_v17 = vpop.f32.mrf.mxu0  ;;  %v2257_v11 = vpop.f32.mrf.mxu1 }
 0x31d   :  { %v2244_v9 = vadd.f32 %v2243_v17, %v2230_v5 }
 0x31f   :  { %v2258_v12 = vadd.f32 %v2257_v11, %v2244_v9 }
 0x320   :  { %v2269_v22 = vpop.f32.mrf.mxu2  ;;  %v2283_v4 = vpop.f32.mrf.mxu3 }
 0x321   :  { %v2270_v10 = vadd.f32 %v2269_v22, %v2256_v8 }
 0x323   :  { %v11867_v14 = vadd.f32 %v2283_v4, %v2270_v10 }
 0x325   :  { %v2303_v19 = vmul.f32 %v11867_v14, %v11867_v14 }
 0x328   :  { %v2271_v13 = vpop.f32.mrf.mxu2  ;;  %v2285_v15 = vpop.f32.mrf.mxu3 }
 0x329   :  { %v2272_v63 = vadd.f32 %v2271_v13, %v2258_v12 }
 0x32b   :  { %v11869_v18 = vadd.f32 %v2285_v15, %v2272_v63 }
 0x32d   :  { %v2295_v20 = vadd.f32 %v11869_v18, %v11867_v14  ;;  %v2305_v21 = vmul.f32 %v11869_v18, %v11869_v18 }
 0x32f   :  { %v2296_v23 = vrot.slane %v2295_v20, 4  ;;  %v2313_v24 = vadd.f32 %v2305_v21, %v2303_v19 }
 0x331   :  { %v2297_v27 = vadd.f32 %v2296_v23, %v2295_v20  ;;  %v2314_v1 = vrot.slane %v2313_v24, 4 }
 0x333   :  { %v2298_v2 = vrot.slane %v2297_v27, 2  ;;  %v2315_v28 = vadd.f32 %v2314_v1, %v2313_v24 }
 0x335   :  { %v2299_v29 = vadd.f32 %v2298_v2, %v2297_v27  ;;  %v2316_v30 = vrot.slane %v2315_v28, 2 }
 0x337   :  { %v2300_v31 = vrot.slane %v2299_v29, 1  ;;  %v2317_v32 = vadd.f32 %v2316_v30, %v2315_v28  ;;  %v9905_v30 = vld [vmem:[#allocation11 + $0x174] sm:$0xf0] }
 0x339   :  { %v2318_v33 = vrot.slane %v2317_v32, 1  ;;  %v2301_v36 = vadd.f32 %v2300_v31, %v2299_v29  ;;  %v8212_v31 = vld [vmem:[#allocation11 + $0x1f0] sm:$0xf] }
 0x33b   :  { %v2319_v37 = vadd.f32 %v2318_v33, %v2317_v32  ;;  %v9921_v32 = vld [vmem:[#allocation11 + $0x1f4] sm:$0xf0]  ;;  %v8020_v33 = vld [vmem:[#allocation11 + $0x70] sm:$0xf] }
 0x33d   :  { %v2322_v38 = vsel %vm2320_vm10, %v2301_v36, %v2319_v37  ;;  %v9873_v36 = vld [vmem:[#allocation11 + $0x74] sm:$0xf0]  ;;  %v8084_v37 = vld [vmem:[#allocation11 + $0xf0] sm:$0xf] }
 0x33e   :  { %2391 = vmatmul.f32.vlgmr.msrb.gmra.mxu1 %v2322_v38  ;;  %v9889_v38 = vld [vmem:[#allocation11 + $0xf4] sm:$0xf0]  ;;  %v8021_v43 = vor.u32 %v9873_v36, %v8020_v33  ;;  %v7980_v33 = vld [vmem:[#allocation11 + $0x20] sm:$0xf]  ;;  %v9863_v36 = vld [vmem:[#allocation11 + $0x24] sm:$0xf0] }
 0x38b   :  { %v2372_v39 = vpop.f32.mrf.mxu0 }
 0x3bb   :  { %v2392_v40 = vpop.f32.mrf.mxu1 }
 0x3bc   :  { %v2393_v6 = vadd.f32 %v2392_v40, %v2372_v39  ;;  %v2504_v39 = vld [vmem:[%s13637_s10] sm:$0xf]  ;;  %v7953_v40 = vld [vmem:[%s13637_s10 + $0x4] sm:$0xf] }
 0x3be   :  { %v2395_v7 = vmul.f32 0.0078125, %v2393_v6 }
 0x3c0   :  { %v2396_v34 = vmul.f32 %v2395_v7, %v2395_v7 }
 0x3c2   :  { %v2398_v35 = vrot.slane %v2396_v34, 7  ;;  %v8140_v34 = vld [vmem:[#allocation11 + $0x160] sm:$0xf] }
 0x3c4   :  { %v2400_v41 = vsub.f32 %v2395_v7, %v2398_v35  ;;  %v9903_v35 = vld [vmem:[#allocation11 + $0x164] sm:$0xf0] }
 0x3c5   :  { %v8141_v25 = vor.u32 %v9903_v35, %v8140_v34  ;;  %v8164_v34 = vld [vmem:[#allocation11 + $0x190] sm:$0xf]  ;;  %v9909_v35 = vld [vmem:[#allocation11 + $0x194] sm:$0xf0] }
 0x3c6   :  { %v2401_v44 = vmax.f32 %v2400_v41, 0.0  ;;  %v8204_v41 = vld [vmem:[#allocation11 + $0x1e0] sm:$0xf] }
 0x3c7   :  { %v8205_v26 = vor.u32 %v9919_v42, %v8204_v41  ;;  %v7981_v41 = vor.u32 %v9863_v36, %v7980_v33 }
 0x3c8   :  { %v2403_v47 = vadd.f32 1e-05, %v2401_v44  ;;  %v8085_v44 = vor.u32 %v9889_v38, %v8084_v37  ;;  %v8044_v37 = vld [vmem:[#allocation11 + $0xa0] sm:$0xf]  ;;  %v9879_v38 = vld [vmem:[#allocation11 + $0xa4] sm:$0xf0] }
 0x3c9   :  { %v8045_v42 = vor.u32 %v9879_v38, %v8044_v37  ;;  %v8380_v37 = vld [vmem:[#allocation11 + $0x340] sm:$0xf]  ;;  %v9963_v38 = vld [vmem:[#allocation11 + $0x344] sm:$0xf0] }
 0x3ca   :  { %10298 = vrsqrt.f32 %v2403_v47  ;;  %vm2410_vm12 = vweird.f32 %v2403_v47 }
 0x3d0   :  { %v10299_v50 = vpop.eup %10298 }
 0x3d1   :  { %v2405_v51 = vmul.f32 %v10299_v50, %v2403_v47  ;;  %vm2411_vm11 = vweird.f32 %v10299_v50  ;;  %v8076_v47 = vld [vmem:[#allocation11 + $0xe0] sm:$0xf] }
 0x3d2   :  { %vm2412_vm13 = vmor %vm2410_vm12, %vm2411_vm11  ;;  %vm5598_vm11 = vcmask 1045504  }
 0x3d3   :  { %v2406_v52 = vmul.f32 %v10299_v50, %v2405_v51  ;;  %v8196_v51 = vld [vmem:[#allocation11 + $0x1d0] sm:$0xf] }
 0x3d5   :  { %v2407_v53 = vmul.f32 0.5, %v2406_v52  ;;  %v9917_v52 = vld [vmem:[#allocation11 + $0x1d4] sm:$0xf0] }
 0x3d7   :  { %v2408_v54 = vsub.f32 1.5, %v2407_v53  ;;  %v8013_v53 = vor.u32 %v9871_v46, %v8012_v45  ;;  %v8036_v45 = vld [vmem:[#allocation11 + $0x90] sm:$0xf]  ;;  %v9877_v46 = vld [vmem:[#allocation11 + $0x94] sm:$0xf0] }
 0x3d9   :  { %v2409_v55 = vmul.f32 %v10299_v50, %v2408_v54  ;;  %v8077_v54 = vor.u32 %v9887_v48, %v8076_v47  ;;  %v8092_v47 = vld [vmem:[#allocation11 + $0x100] sm:$0xf] }
 0x3db   :  { %v2413_v56 = vsel %vm2412_vm13, %v10299_v50, %v2409_v55  ;;  %v9901_v50 = vld [vmem:[#allocation11 + $0x154] sm:$0xf0]  ;;  %v8004_v55 = vld [vmem:[#allocation11 + $0x50] sm:$0xf] }
 0x3dc   :  { %2415 = vst [vmem:[#allocation1] sm:$0xff] %v2413_v56  ;;  %v9869_v56 = vld [vmem:[#allocation11 + $0x54] sm:$0xf0] }
 0x3e3   :  { %v2417_v58 = vld [vmem:[#allocation1 + $0x1] ss:$9 sm:$0xff] }
 0x3e4   :  { %v2419_v59 = vmul.f32 %v2417_v58, %v2402_v57  ;;  %v8068_v57 = vld [vmem:[#allocation11 + $0xd0] sm:$0xf]  ;;  %v9885_v58 = vld [vmem:[#allocation11 + $0xd4] sm:$0xf0] }
 0x3e6   :  { %v2421_v61 = vmul.f32 %v2419_v59, %v2395_v7  ;;  %v8213_v7 = vor.u32 %v9921_v32, %v8212_v31 }
 0x3e8   :  { %v2422_v62 = vsub.f32 %v2420_v60, %v2421_v61  ;;  %v8197_v60 = vor.u32 %v9917_v52, %v8196_v51  ;;  %v8124_v61 = vld [vmem:[#allocation11 + $0x140] sm:$0xf]  ;;  %v8404_v51 = vld [vmem:[#allocation11 + $0x370] sm:$0xf]  ;;  %v9969_v52 = vld [vmem:[#allocation11 + $0x374] sm:$0xf0] }
 0x3ea   :  { %v2424_v3 = vperm.slane %v2422_v62, 0  ;;  %v9899_v62 = vld [vmem:[#allocation11 + $0x144] sm:$0xf0] }
 0x3ec   :  { %v2426_v17 = vsel %vm2320_vm10, %v2419_v59, %v2424_v3  ;;  %v8133_v59 = vor.u32 %v9901_v50, %v8132_v49  ;;  %v8188_v3 = vld [vmem:[#allocation11 + $0x1c0] sm:$0xf]  ;;  %v9907_v50 = vld [vmem:[#allocation11 + $0x184] sm:$0xf0] }
 0x3ed   :  { %7949 = vmatmul.msk.f32.vlgmr.msrb.gmra.mxu2 %vm1099_vm5, %v2426_v17  ;;  %7950 = vmatmul.msk.f32.vlgmr.msrb.gmra.mxu3 %vm1099_vm5, %v2426_v17  ;;  %v9915_v17 = vld [vmem:[#allocation11 + $0x1c4] sm:$0xf0]  ;;  %v8156_v49 = vld [vmem:[#allocation11 + $0x180] sm:$0xf] }
 0x470   :  { %v2455_v22 = vpop.f32.mrf.mxu2  ;;  %v2475_v4 = vpop.f32.mrf.mxu3 }
 0x471   :  { %v2478_v5 = vperm.slane %v2455_v22, 0  ;;  %v2479_v8 = vperm.slane %v2475_v4, 0  ;;  %v2484_v9 = vperm.slane %v2455_v22, 1  ;;  %v2485_v10 = vperm.slane %v2475_v4, 1 }
 0x472   :  { %v8005_v22 = vor.u32 %v9869_v56, %v8004_v55  ;;  %v8069_v4 = vor.u32 %v9885_v58, %v8068_v57  ;;  %v8037_v55 = vor.u32 %v9877_v46, %v8036_v45  ;;  %v9985_v56 = vld [vmem:[#allocation11 + $0x3f4] sm:$0xf0]  ;;  %v7964_v57 = vld [vmem:[#allocation11] sm:$0xf]  ;;  %v9859_v58 = vld [vmem:[#allocation11 + $0x4] sm:$0xf0] }
 0x473   :  { %v2480_v11 = vmul.f32 %v2478_v5, %v11808_v0  ;;  %v2482_v12 = vmul.f32 %v2478_v5, %v11810_v16  ;;  %v2481_v13 = vmul.f32 %v2479_v8, %v11867_v14  ;;  %v2483_v63 = vmul.f32 %v2479_v8, %v11869_v18  ;;  %v8148_v14 = vld [vmem:[#allocation11 + $0x170] sm:$0xf]  ;;  %v7996_v5 = vld [vmem:[#allocation11 + $0x40] sm:$0xf]  ;;  %v9867_v8 = vld [vmem:[#allocation11 + $0x44] sm:$0xf0] }
 0x474   :  { %v8149_v6 = vor.u32 %v9905_v30, %v8148_v14  ;;  %v9895_v14 = vld [vmem:[#allocation11 + $0x124] sm:$0xf0]  ;;  %v8172_v30 = vld [vmem:[#allocation11 + $0x1a0] sm:$0xf]  ;;  %v8372_v45 = vld [vmem:[#allocation11 + $0x330] sm:$0xf] }
 0x475   :  { %v2486_v15 = vadd.f32 %v2484_v9, %v2480_v11  ;;  %v2488_v19 = vadd.f32 %v2484_v9, %v2482_v12  ;;  %v2487_v20 = vadd.f32 %v2485_v10, %v2481_v13  ;;  %v2489_v21 = vadd.f32 %v2485_v10, %v2483_v63  ;;  %v8060_v9 = vld [vmem:[#allocation11 + $0xc0] sm:$0xf]  ;;  %v9883_v10 = vld [vmem:[#allocation11 + $0xc4] sm:$0xf0]  ;;  %v8116_v13 = vld [vmem:[#allocation11 + $0x130] sm:$0xf] }
 0x476   :  { %v8125_v11 = vor.u32 %v9899_v62, %v8124_v61  ;;  %v8189_v12 = vor.u32 %v9915_v17, %v8188_v3  ;;  %v9897_v63 = vld [vmem:[#allocation11 + $0x134] sm:$0xf0]  ;;  %v8276_v61 = vld [vmem:[#allocation11 + $0x270] sm:$0xf]  ;;  %v8157_v3 = vor.u32 %v9907_v50, %v8156_v49 }
 0x477   :  { %vm2490_vm14 = vcmp.gt.f32.partialorder %v2486_v15, 0.0  ;;  %vm2492_vm15 = vcmp.gt.f32.partialorder %v2488_v19, 0.0  ;;  %v2494_v23 = vmul.f32 0.2, %v2486_v15  ;;  %v2496_v24 = vmul.f32 0.2, %v2488_v19 }
 0x478   :  { %vm2491_vm1 = vcmp.gt.f32.partialorder %v2487_v20, 0.0  ;;  %vm2493_vm2 = vcmp.gt.f32.partialorder %v2489_v21, 0.0  ;;  %v2495_v27 = vmul.f32 0.2, %v2487_v20  ;;  %v2497_v1 = vmul.f32 0.2, %v2489_v21 }
 0x479   :  { %v2498_v2 = vsel %vm2490_vm14, %v2486_v15, %v2494_v23  ;;  %v2500_v0 = vsel %vm2492_vm15, %v2488_v19, %v2496_v24  ;;  %v8180_v15 = vld [vmem:[#allocation11 + $0x1b0] sm:$0xf]  ;;  %v9913_v19 = vld [vmem:[#allocation11 + $0x1b4] sm:$0xf0] }
 0x47a   :  { %v2499_v28 = vsel %vm2491_vm1, %v2487_v20, %v2495_v27  ;;  %v2501_v16 = vsel %vm2493_vm2, %v2489_v21, %v2497_v1  ;;  %v2502_v29 = vpack.c.bf16 %v2500_v0, %v2498_v2  ;;  %v7997_v20 = vor.u32 %v9867_v8, %v7996_v5  ;;  %v7988_v23 = vld [vmem:[#allocation11 + $0x30] sm:$0xf]  ;;  %v9865_v24 = vld [vmem:[#allocation11 + $0x34] sm:$0xf0]  ;;  %v7956_v2 = vld [vmem:[%s13637_s10 + $0x8] sm:$0xf] }
 0x47b   :  { %v2503_v18 = vpack.c.bf16 %v2501_v16, %v2499_v28  ;;  %v8061_v21 = vor.u32 %v9883_v10, %v8060_v9  ;;  %v8052_v27 = vld [vmem:[#allocation11 + $0xb0] sm:$0xf]  ;;  %v9881_v1 = vld [vmem:[#allocation11 + $0xb4] sm:$0xf0]  ;;  %v7959_v0 = vld [vmem:[%s13637_s10 + $0xc] sm:$0xf]  ;;  %v8117_v28 = vor.u32 %v9897_v63, %v8116_v13  ;;  %v8181_v16 = vor.u32 %v9913_v19, %v8180_v15 }
 0x47c   :  { %2516 = vmatpush.bf16.msra.mxu2 %v2502_v29  ;;  %2548 = vmatpush.bf16.msra.mxu0 %v2502_v29  ;;  %v7989_v31 = vor.u32 %v9865_v24, %v7988_v23  ;;  %v8053_v32 = vor.u32 %v9881_v1, %v8052_v27  ;;  %v9937_v17 = vld [vmem:[#allocation11 + $0x274] sm:$0xf0]  ;;  %v8405_v5 = vor.u32 %v9969_v52, %v8404_v51  ;;  %v8396_v9 = vld [vmem:[#allocation11 + $0x360] sm:$0xf]  ;;  %v9967_v10 = vld [vmem:[#allocation11 + $0x364] sm:$0xf0] }
 0x47d   :  { %2529 = vmatpush.bf16.msra.mxu3 %v2503_v18  ;;  %2561 = vmatpush.bf16.msra.mxu1 %v2503_v18  ;;  %v7965_v13 = vor.u32 %v9859_v58, %v7964_v57  ;;  %v8277_v15 = vor.u32 %v9937_v17, %v8276_v61  ;;  %v8332_v23 = vld [vmem:[#allocation11 + $0x2e0] sm:$0xf]  ;;  %v9951_v24 = vld [vmem:[#allocation11 + $0x2e4] sm:$0xf0]  ;;  %v8397_v27 = vor.u32 %v9967_v10, %v8396_v9  ;;  %v9961_v46 = vld [vmem:[#allocation11 + $0x334] sm:$0xf0] }
 0x47e   :  { %v8373_v49 = vor.u32 %v9961_v46, %v8372_v45  ;;  %v8364_v51 = vld [vmem:[#allocation11 + $0x320] sm:$0xf]  ;;  %v9959_v52 = vld [vmem:[#allocation11 + $0x324] sm:$0xf0]  ;;  %v8244_v57 = vld [vmem:[#allocation11 + $0x230] sm:$0xf] }
 0x47f   :  { %7951 = vmatmul.msk.bf16.vlgmr.msra.gmra.mxu2 %vm2505_vm3, %v2504_v39  ;;  %7954 = vmatmul.msk.bf16.vlgmr.msra.gmra.mxu0 %vm2505_vm3, %v7953_v40  ;;  %v9929_v58 = vld [vmem:[#allocation11 + $0x234] sm:$0xf0]  ;;  %v8236_v9 = vld [vmem:[#allocation11 + $0x220] sm:$0xf]  ;;  %v9927_v10 = vld [vmem:[#allocation11 + $0x224] sm:$0xf0] }
 0x480   :  { %2580 = vmatpush.bf16.msrb.mxu2 %v2502_v29  ;;  %2612 = vmatpush.bf16.msrb.mxu0 %v2502_v29  ;;  %v8108_v29 = vld [vmem:[#allocation11 + $0x120] sm:$0xf]  ;;  %v9945_v61 = vld [vmem:[#allocation11 + $0x2b4] sm:$0xf0]  ;;  %vm5924_vm1 = vcmask 1042432   ;;  %vm5920_vm2 = vcmask 48128  }
 0x481   :  { %2593 = vmatpush.bf16.msrb.mxu3 %v2503_v18  ;;  %2625 = vmatpush.bf16.msrb.mxu1 %v2503_v18  ;;  %v9911_v18 = vld [vmem:[#allocation11 + $0x1a4] sm:$0xf0]  ;;  %v9957_v17 = vld [vmem:[#allocation11 + $0x314] sm:$0xf0]  ;;  %s13680_s10 = sld [smem:[#allocation45_spill]] }
 0x482   :  { %7952 = vmatmul.msk.bf16.vlgmr.msra.gmra.mxu3 %vm2505_vm3, %v2504_v39  ;;  %7955 = vmatmul.msk.bf16.vlgmr.msra.gmra.mxu1 %vm2505_vm3, %v7953_v40  ;;  %v8109_v39 = vor.u32 %v9895_v14, %v8108_v29  ;;  %v8173_v40 = vor.u32 %v9911_v18, %v8172_v30  ;;  %v8333_v14 = vor.u32 %v9951_v24, %v8332_v23  ;;  %v8260_v30 = vld [vmem:[#allocation11 + $0x250] sm:$0xf]  ;;  %v9933_v18 = vld [vmem:[#allocation11 + $0x254] sm:$0xf0]  ;;  %v9971_v23 = vld [vmem:[#allocation11 + $0x384] sm:$0xf0] }
 0x484   :  { %3454 = vmatpush.bf16.msra.mxu0 %v8149_v6  ;;  %3428 = vmatpush.bf16.msra.mxu2 %v8021_v43  ;;  %v8100_v6 = vld [vmem:[#allocation11 + $0x110] sm:$0xf] }
 0x485   :  { %3467 = vmatpush.bf16.msra.mxu1 %v8213_v7  ;;  %3441 = vmatpush.bf16.msra.mxu3 %v8085_v44  ;;  %v9893_v7 = vld [vmem:[#allocation11 + $0x114] sm:$0xf0]  ;;  %v7972_v43 = vld [vmem:[#allocation11 + $0x10] sm:$0xf] }
 0x486   :  { %v9861_v44 = vld [vmem:[#allocation11 + $0x14] sm:$0xf0]  ;;  %v8101_v48 = vor.u32 %v9893_v7, %v8100_v6  ;;  %v8261_v6 = vor.u32 %v9933_v18, %v8260_v30  ;;  %v8284_v18 = vld [vmem:[#allocation11 + $0x280] sm:$0xf] }
 0x487   :  { %s7094_s20 = sshll.u32 %s13680_s10, 4  ;;  %s7095_s20 = int_to_ptr.hbm [resolvable:$true] %s7094_s20 }
 0x488   :  { %3455 = vmatpush.bf16.msra.mxu0 %v8141_v25  ;;  %3429 = vmatpush.bf16.msra.mxu2 %v8013_v53  ;;  %v8165_v25 = vor.u32 %v9909_v35, %v8164_v34  ;;  %v8468_v53 = vld [vmem:[#allocation11 + $0x3f0] sm:$0xf]  ;;  %v8252_v34 = vld [vmem:[#allocation11 + $0x240] sm:$0xf]  ;;  %v9931_v35 = vld [vmem:[#allocation11 + $0x244] sm:$0xf0] }
 0x489   :  { %3468 = vmatpush.bf16.msra.mxu1 %v8205_v26  ;;  %3442 = vmatpush.bf16.msra.mxu3 %v8077_v54  ;;  %v9891_v26 = vld [vmem:[#allocation11 + $0x104] sm:$0xf0]  ;;  %v7973_v54 = vor.u32 %v9861_v44, %v7972_v43  ;;  %v8469_v8 = vor.u32 %v9985_v56, %v8468_v53  ;;  %v8381_v43 = vor.u32 %v9963_v38, %v8380_v37  ;;  %v8428_v53 = vld [vmem:[#allocation11 + $0x3a0] sm:$0xf]  ;;  %v9904_v37 = vld [vmem:[#allocation11 + $0x174] sm:$0xf] }
 0x48a   :  { %v8093_v62 = vor.u32 %v9891_v26, %v8092_v47  ;;  %v8436_v47 = vld [vmem:[#allocation11 + $0x3b0] sm:$0xf] }
 0x48c   :  { %3456 = vmatpush.bf16.msra.mxu0 %v8133_v59  ;;  %3430 = vmatpush.bf16.msra.mxu2 %v8005_v22  ;;  %v8028_v59 = vld [vmem:[#allocation11 + $0x80] sm:$0xf]  ;;  %v8340_v22 = vld [vmem:[#allocation11 + $0x2f0] sm:$0xf] }
 0x48d   :  { %3469 = vmatpush.bf16.msra.mxu1 %v8197_v60  ;;  %3443 = vmatpush.bf16.msra.mxu3 %v8069_v4  ;;  %v9875_v60 = vld [vmem:[#allocation11 + $0x84] sm:$0xf0]  ;;  %v9953_v4 = vld [vmem:[#allocation11 + $0x2f4] sm:$0xf0] }
 0x48e   :  { %v8029_v63 = vor.u32 %v9875_v60, %v8028_v59  ;;  %v8341_v19 = vor.u32 %v9953_v4, %v8340_v22  ;;  %v8308_v59 = vld [vmem:[#allocation11 + $0x2b0] sm:$0xf]  ;;  %v8245_v60 = vor.u32 %v9929_v58, %v8244_v57 }
 0x48f   :  { %7957 = vmatmul.msk.bf16.vlgmr.msrb.gmra.mxu2 %vm2505_vm3, %v7956_v2  ;;  %7960 = vmatmul.msk.bf16.vlgmr.msrb.gmra.mxu0 %vm2505_vm3, %v7959_v0  ;;  %v8420_v22 = vld [vmem:[#allocation11 + $0x390] sm:$0xf] }
 0x490   :  { %3457 = vmatpush.bf16.msra.mxu0 %v8125_v11  ;;  %3431 = vmatpush.bf16.msra.mxu2 %v7997_v20  ;;  %v8460_v11 = vld [vmem:[#allocation11 + $0x3e0] sm:$0xf] }
 0x491   :  { %3470 = vmatpush.bf16.msra.mxu1 %v8189_v12  ;;  %3444 = vmatpush.bf16.msra.mxu3 %v8061_v21  ;;  %v9983_v12 = vld [vmem:[#allocation11 + $0x3e4] sm:$0xf0]  ;;  %v8268_v20 = vld [vmem:[#allocation11 + $0x260] sm:$0xf] }
 0x492   :  { %7958 = vmatmul.msk.bf16.vlgmr.msrb.gmra.mxu3 %vm2505_vm3, %v7956_v2  ;;  %7961 = vmatmul.msk.bf16.vlgmr.msrb.gmra.mxu1 %vm2505_vm3, %v7959_v0  ;;  %v9935_v21 = vld [vmem:[#allocation11 + $0x264] sm:$0xf0]  ;;  %v8461_v1 = vor.u32 %v9983_v12, %v8460_v11  ;;  %v8388_v2 = vld [vmem:[#allocation11 + $0x350] sm:$0xf]  ;;  %v9965_v0 = vld [vmem:[#allocation11 + $0x354] sm:$0xf0]  ;;  %v8237_v12 = vor.u32 %v9927_v10, %v8236_v9 }
 0x493   :  { %v8269_v29 = vor.u32 %v9935_v21, %v8268_v20  ;;  %v8389_v33 = vor.u32 %v9965_v0, %v8388_v2  ;;  %v8300_v11 = vld [vmem:[#allocation11 + $0x2a0] sm:$0xf]  ;;  %v8292_v2 = vld [vmem:[#allocation11 + $0x290] sm:$0xf]  ;;  %v9886_v9 = vld [vmem:[#allocation11 + $0xe4] sm:$0xf] }
 0x494   :  { %3458 = vmatpush.bf16.msra.mxu0 %v8117_v28  ;;  %3432 = vmatpush.bf16.msra.mxu2 %v7989_v31  ;;  %v8452_v28 = vld [vmem:[#allocation11 + $0x3d0] sm:$0xf]  ;;  %v8412_v20 = vld [vmem:[#allocation11 + $0x380] sm:$0xf]  ;;  %v8078_v10 = vld [vmem:[#allocation11 + $0xe8] sm:$0xf0] }
 0x495   :  { %3471 = vmatpush.bf16.msra.mxu1 %v8181_v16  ;;  %3445 = vmatpush.bf16.msra.mxu3 %v8053_v32  ;;  %v9981_v16 = vld [vmem:[#allocation11 + $0x3d4] sm:$0xf0]  ;;  %v8324_v31 = vld [vmem:[#allocation11 + $0x2d0] sm:$0xf]  ;;  %v8413_v24 = vor.u32 %v9971_v23, %v8412_v20  ;;  %v9914_v20 = vld [vmem:[#allocation11 + $0x1c4] sm:$0xf] }
 0x496   :  { %v9949_v32 = vld [vmem:[#allocation11 + $0x2d4] sm:$0xf0]  ;;  %v8453_v36 = vor.u32 %v9981_v16, %v8452_v28 }
 0x497   :  { %v8325_v7 = vor.u32 %v9949_v32, %v8324_v31  ;;  %v9941_v28 = vld [vmem:[#allocation11 + $0x294] sm:$0xf0]  ;;  %v9939_v31 = vld [vmem:[#allocation11 + $0x284] sm:$0xf0] }
 0x498   :  { %3459 = vmatpush.bf16.msra.mxu0 %v8109_v39  ;;  %3433 = vmatpush.bf16.msra.mxu2 %v7981_v41  ;;  %v8444_v39 = vld [vmem:[#allocation11 + $0x3c0] sm:$0xf]  ;;  %v8293_v16 = vor.u32 %v9941_v28, %v8292_v2  ;;  %v8285_v32 = vor.u32 %v9939_v31, %v8284_v18  ;;  %v9884_v2 = vld [vmem:[#allocation11 + $0xd4] sm:$0xf]  ;;  %v8118_v31 = vld [vmem:[#allocation11 + $0x138] sm:$0xf0] }
 0x499   :  { %3472 = vmatpush.bf16.msra.mxu1 %v8173_v40  ;;  %3446 = vmatpush.bf16.msra.mxu3 %v8045_v42  ;;  %v9979_v40 = vld [vmem:[#allocation11 + $0x3c4] sm:$0xf0]  ;;  %v8316_v41 = vld [vmem:[#allocation11 + $0x2c0] sm:$0xf] }
 0x49a   :  { %v9947_v42 = vld [vmem:[#allocation11 + $0x2c4] sm:$0xf0]  ;;  %v8445_v44 = vor.u32 %v9979_v40, %v8444_v39  ;;  %v8150_v39 = vld [vmem:[#allocation11 + $0x178] sm:$0xf0]  ;;  %v9920_v40 = vld [vmem:[#allocation11 + $0x1f4] sm:$0xf] }
 0x49b   :  { %v8317_v26 = vor.u32 %v9947_v42, %v8316_v41  ;;  %v9902_v42 = vld [vmem:[#allocation11 + $0x164] sm:$0xf] }
 0x49c   :  { %3460 = vmatpush.bf16.msra.mxu0 %v8101_v48  ;;  %3434 = vmatpush.bf16.msra.mxu2 %v7973_v54  ;;  %v9977_v48 = vld [vmem:[#allocation11 + $0x3b4] sm:$0xf0]  ;;  %v9975_v54 = vld [vmem:[#allocation11 + $0x3a4] sm:$0xf0] }
 0x49d   :  { %3473 = vmatpush.bf16.msra.mxu1 %v8165_v25  ;;  %3447 = vmatpush.bf16.msra.mxu3 %v8037_v55  ;;  %v8253_v25 = vor.u32 %v9931_v35, %v8252_v34  ;;  %v8437_v50 = vor.u32 %v9977_v48, %v8436_v47  ;;  %v8365_v55 = vor.u32 %v9959_v52, %v8364_v51  ;;  %v8142_v47 = vld [vmem:[#allocation11 + $0x168] sm:$0xf0]  ;;  %v9918_v48 = vld [vmem:[#allocation11 + $0x1e4] sm:$0xf]  ;;  %v9888_v51 = vld [vmem:[#allocation11 + $0xf4] sm:$0xf] }
 0x49e   :  { %v8429_v56 = vor.u32 %v9975_v54, %v8428_v53  ;;  %v8153_v35 = vor.u32 %v9904_v37, %v8150_v39  ;;  %v8086_v52 = vld [vmem:[#allocation11 + $0xf8] sm:$0xf0]  ;;  %v8145_v57 = vor.u32 %v9902_v42, %v8142_v47  ;;  %v9894_v42 = vld [vmem:[#allocation11 + $0x124] sm:$0xf] }
 0x4a0   :  { %3461 = vmatpush.bf16.msra.mxu0 %v8093_v62  ;;  %3435 = vmatpush.bf16.msra.mxu2 %v7965_v13  ;;  %v8309_v62 = vor.u32 %v9945_v61, %v8308_v59  ;;  %v9943_v13 = vld [vmem:[#allocation11 + $0x2a4] sm:$0xf0]  ;;  %v9900_v59 = vld [vmem:[#allocation11 + $0x154] sm:$0xf] }
 0x4a1   :  { %3474 = vmatpush.bf16.msra.mxu1 %v8157_v3  ;;  %3448 = vmatpush.bf16.msra.mxu3 %v8029_v63  ;;  %v8356_v3 = vld [vmem:[#allocation11 + $0x310] sm:$0xf]  ;;  %v8301_v63 = vor.u32 %v9943_v13, %v8300_v11  ;;  %v9916_v61 = vld [vmem:[#allocation11 + $0x1d4] sm:$0xf]  ;;  %v9898_v13 = vld [vmem:[#allocation11 + $0x144] sm:$0xf] }
 0x4a2   :  { %v8357_v4 = vor.u32 %v9957_v17, %v8356_v3 }
 0x4a4   :  { %3506 = vmatpush.bf16.msrb.mxu0 %v8405_v5  ;;  %3480 = vmatpush.bf16.msrb.mxu2 %v8277_v15  ;;  %v9973_v5 = vld [vmem:[#allocation11 + $0x394] sm:$0xf0]  ;;  %v8348_v15 = vld [vmem:[#allocation11 + $0x300] sm:$0xf] }
 0x4a5   :  { %3519 = vmatpush.bf16.msrb.mxu1 %v8469_v8  ;;  %3493 = vmatpush.bf16.msrb.mxu3 %v8341_v19  ;;  %v8421_v8 = vor.u32 %v9973_v5, %v8420_v22  ;;  %v9955_v19 = vld [vmem:[#allocation11 + $0x304] sm:$0xf0]  ;;  %v9870_v5 = vld [vmem:[#allocation11 + $0x64] sm:$0xf] }
 0x4a6   :  { %v8349_v21 = vor.u32 %v9955_v19, %v8348_v15  ;;  %v8126_v19 = vld [vmem:[#allocation11 + $0x148] sm:$0xf0] }
 0x4a8   :  { %3507 = vmatpush.bf16.msrb.mxu0 %v8397_v27  ;;  %3481 = vmatpush.bf16.msrb.mxu2 %v8269_v29  ;;  %v8228_v27 = vld [vmem:[#allocation11 + $0x210] sm:$0xf]  ;;  %v8220_v29 = vld [vmem:[#allocation11 + $0x200] sm:$0xf] }
 0x4a9   :  { %3520 = vmatpush.bf16.msrb.mxu1 %v8461_v1  ;;  %3494 = vmatpush.bf16.msrb.mxu3 %v8333_v14  ;;  %v9925_v1 = vld [vmem:[#allocation11 + $0x214] sm:$0xf0]  ;;  %v9923_v14 = vld [vmem:[#allocation11 + $0x204] sm:$0xf0] }
 0x4aa   :  { %v8229_v0 = vor.u32 %v9925_v1, %v8228_v27  ;;  %v8221_v30 = vor.u32 %v9923_v14, %v8220_v29  ;;  %v9868_v27 = vld [vmem:[#allocation11 + $0x54] sm:$0xf]  ;;  %v8006_v1 = vld [vmem:[#allocation11 + $0x58] sm:$0xf0]  ;;  %v8129_v29 = vor.u32 %v9898_v13, %v8126_v19  ;;  %v9862_v13 = vld [vmem:[#allocation11 + $0x24] sm:$0xf] }
 0x4ab   :  { %v8046_v19 = vld [vmem:[#allocation11 + $0xa8] sm:$0xf0] }
 0x4ac   :  { %3508 = vmatpush.bf16.msrb.mxu0 %v8389_v33  ;;  %3482 = vmatpush.bf16.msrb.mxu2 %v8261_v6  ;;  %v8214_v6 = vld [vmem:[#allocation11 + $0x1f8] sm:$0xf0] }
 0x4ad   :  { %3521 = vmatpush.bf16.msrb.mxu1 %v8453_v36  ;;  %3495 = vmatpush.bf16.msrb.mxu3 %v8325_v7  ;;  %v8217_v41 = vor.u32 %v9920_v40, %v8214_v6  ;;  %v7998_v6 = vld [vmem:[#allocation11 + $0x48] sm:$0xf0] }
 0x4b0   :  { %3509 = vmatpush.bf16.msrb.mxu0 %v8381_v43  ;;  %3483 = vmatpush.bf16.msrb.mxu2 %v8253_v25  ;;  %v8206_v25 = vld [vmem:[#allocation11 + $0x1e8] sm:$0xf0] }
 0x4b1   :  { %3522 = vmatpush.bf16.msrb.mxu1 %v8445_v44  ;;  %3496 = vmatpush.bf16.msrb.mxu3 %v8317_v26  ;;  %v8209_v58 = vor.u32 %v9918_v48, %v8206_v25  ;;  %v8110_v25 = vld [vmem:[#allocation11 + $0x128] sm:$0xf0] }
 0x4b4   :  { %3510 = vmatpush.bf16.msrb.mxu0 %v8373_v49  ;;  %3484 = vmatpush.bf16.msrb.mxu2 %v8245_v60  ;;  %v9872_v49 = vld [vmem:[#allocation11 + $0x74] sm:$0xf]  ;;  %v8134_v60 = vld [vmem:[#allocation11 + $0x158] sm:$0xf0] }
 0x4b5   :  { %3523 = vmatpush.bf16.msrb.mxu1 %v8437_v50  ;;  %3497 = vmatpush.bf16.msrb.mxu3 %v8309_v62  ;;  %v8022_v50 = vld [vmem:[#allocation11 + $0x78] sm:$0xf0]  ;;  %v8137_v11 = vor.u32 %v9900_v59, %v8134_v60  ;;  %v8113_v59 = vor.u32 %v9894_v42, %v8110_v25  ;;  %v8462_v42 = vld [vmem:[#allocation11 + $0x3e8] sm:$0xf0]  ;;  %v9874_v25 = vld [vmem:[#allocation11 + $0x84] sm:$0xf] }
 0x4b6   :  { %v8198_v62 = vld [vmem:[#allocation11 + $0x1d8] sm:$0xf0]  ;;  %v8025_v22 = vor.u32 %v9872_v49, %v8022_v50  ;;  %v8174_v49 = vld [vmem:[#allocation11 + $0x1a8] sm:$0xf0] }
 0x4b8   :  { %3511 = vmatpush.bf16.msrb.mxu0 %v8365_v55  ;;  %3485 = vmatpush.bf16.msrb.mxu2 %v8237_v12  ;;  %v8201_v12 = vor.u32 %v9916_v61, %v8198_v62  ;;  %v9892_v61 = vld [vmem:[#allocation11 + $0x114] sm:$0xf] }
 0x4b9   :  { %3524 = vmatpush.bf16.msrb.mxu1 %v8429_v56  ;;  %3498 = vmatpush.bf16.msrb.mxu3 %v8301_v63 }
 0x4bc   :  { %3512 = vmatpush.bf16.msrb.mxu0 %v8357_v4  ;;  %3486 = vmatpush.bf16.msrb.mxu2 %v8229_v0  ;;  %v8089_v4 = vor.u32 %v9888_v51, %v8086_v52  ;;  %v8070_v0 = vld [vmem:[#allocation11 + $0xd8] sm:$0xf0] }
 0x4bd   :  { %3525 = vmatpush.bf16.msrb.mxu1 %v8421_v8  ;;  %3499 = vmatpush.bf16.msrb.mxu3 %v8293_v16  ;;  %v8014_v8 = vld [vmem:[#allocation11 + $0x68] sm:$0xf0]  ;;  %v8073_v37 = vor.u32 %v9884_v2, %v8070_v0 }
 0x4be   :  { %v8017_v23 = vor.u32 %v9870_v5, %v8014_v8  ;;  %v8102_v5 = vld [vmem:[#allocation11 + $0x118] sm:$0xf0]  ;;  %v9908_v8 = vld [vmem:[#allocation11 + $0x194] sm:$0xf]  ;;  %v8158_v0 = vld [vmem:[#allocation11 + $0x188] sm:$0xf0] }
 0x4c0   :  { %3513 = vmatpush.bf16.msrb.mxu0 %v8349_v21  ;;  %3487 = vmatpush.bf16.msrb.mxu2 %v8221_v30  ;;  %v8190_v21 = vld [vmem:[#allocation11 + $0x1c8] sm:$0xf0]  ;;  %v9896_v30 = vld [vmem:[#allocation11 + $0x134] sm:$0xf] }
 0x4c1   :  { %3526 = vmatpush.bf16.msrb.mxu1 %v8413_v24  ;;  %3500 = vmatpush.bf16.msrb.mxu3 %v8285_v32  ;;  %v8081_v24 = vor.u32 %v9886_v9, %v8078_v10  ;;  %v8193_v14 = vor.u32 %v9914_v20, %v8190_v21  ;;  %v9912_v32 = vld [vmem:[#allocation11 + $0x1b4] sm:$0xf]  ;;  %v8166_v9 = vld [vmem:[#allocation11 + $0x198] sm:$0xf0]  ;;  %v8105_v20 = vor.u32 %v9892_v61, %v8102_v5  ;;  %v9950_v5 = vld [vmem:[#allocation11 + $0x2e4] sm:$0xf] }
 0x4c2   :  { %v8169_v21 = vor.u32 %v9908_v8, %v8166_v9  ;;  %v8334_v8 = vld [vmem:[#allocation11 + $0x2e8] sm:$0xf0] }
 0x4fc   :  { %v2550_v33 = vpop.f32.mrf.mxu0 }
 0x4ff   :  { %v2563_v36 = vpop.f32.mrf.mxu1 }
 0x500   :  { %v2567_v38 = vpack.c.bf16 %v2563_v36, %v2550_v33  ;;  %v8182_v33 = vld [vmem:[#allocation11 + $0x1b8] sm:$0xf0]  ;;  %v8009_v36 = vor.u32 %v9868_v27, %v8006_v1  ;;  %v9906_v27 = vld [vmem:[#allocation11 + $0x184] sm:$0xf] }
 0x502   :  { %v2640_v7 = vunpack.c.l.b16 %v2567_v38  ;;  %v2641_v34 = vunpack.c.h.b16 %v2567_v38  ;;  %v2518_v45 = vpop.f32.mrf.mxu2  ;;  %v9866_v38 = vld [vmem:[#allocation11 + $0x44] sm:$0xf] }
 0x503   :  { %v8001_v51 = vor.u32 %v9866_v38, %v7998_v6  ;;  %v8161_v38 = vor.u32 %v9906_v27, %v8158_v0  ;;  %v9966_v6 = vld [vmem:[#allocation11 + $0x364] sm:$0xf]  ;;  %v8374_v0 = vld [vmem:[#allocation11 + $0x338] sm:$0xf0] }
 0x504   :  { %v11908_v43 = vpack.c.b16 %v2640_v7, %v2640_v7  ;;  %v11910_v44 = vpack.c.b16 %v2641_v34, %v2641_v34  ;;  %v2552_v55 = vpop.f32.mrf.mxu0  ;;  %v9882_v7 = vld [vmem:[#allocation11 + $0xc4] sm:$0xf]  ;;  %v8062_v34 = vld [vmem:[#allocation11 + $0xc8] sm:$0xf0] }
 0x505   :  { %v2531_v46 = vpop.f32.mrf.mxu3  ;;  %v8065_v52 = vor.u32 %v9882_v7, %v8062_v34  ;;  %v9880_v55 = vld [vmem:[#allocation11 + $0xb4] sm:$0xf]  ;;  %v8398_v7 = vld [vmem:[#allocation11 + $0x368] sm:$0xf0]  ;;  %v9982_v34 = vld [vmem:[#allocation11 + $0x3e4] sm:$0xf] }
 0x506   :  { %v2535_v26 = vpack.c.bf16 %v2531_v46, %v2518_v45  ;;  %3462 = vmatmul.bf16.vlgmr.msra.gmra.mxu0 %v11908_v43  ;;  %3475 = vmatmul.bf16.vlgmr.msra.gmra.mxu1 %v11910_v44 }
 0x507   :  { %3558 = vmatpush.bf16.msra.mxu0 %v8153_v35  ;;  %3571 = vmatpush.bf16.msra.mxu1 %v8217_v41  ;;  %v2565_v56 = vpop.f32.mrf.mxu1  ;;  %v8121_v35 = vor.u32 %v9896_v30, %v8118_v31  ;;  %v8185_v41 = vor.u32 %v9912_v32, %v8182_v33  ;;  %v9984_v30 = vld [vmem:[#allocation11 + $0x3f4] sm:$0xf]  ;;  %v7974_v32 = vld [vmem:[#allocation11 + $0x18] sm:$0xf0] }
 0x508   :  { %v2633_v53 = vunpack.c.l.b16 %v2535_v26  ;;  %v2634_v54 = vunpack.c.h.b16 %v2535_v26  ;;  %v9910_v26 = vld [vmem:[#allocation11 + $0x1a4] sm:$0xf]  ;;  %v8054_v56 = vld [vmem:[#allocation11 + $0xb8] sm:$0xf0]  ;;  %v9860_v31 = vld [vmem:[#allocation11 + $0x14] sm:$0xf] }
 0x509   :  { %v8177_v60 = vor.u32 %v9910_v26, %v8174_v49  ;;  %v9876_v33 = vld [vmem:[#allocation11 + $0x94] sm:$0xf]  ;;  %v8030_v26 = vld [vmem:[#allocation11 + $0x88] sm:$0xf0] }
 0x50a   :  { %v11914_v3 = vpack.c.b16 %v2633_v53, %v2633_v53  ;;  %v11916_v17 = vpack.c.b16 %v2634_v54, %v2634_v54  ;;  %v2520_v63 = vpop.f32.mrf.mxu2  ;;  %v9864_v53 = vld [vmem:[#allocation11 + $0x34] sm:$0xf]  ;;  %v7990_v54 = vld [vmem:[#allocation11 + $0x38] sm:$0xf0] }
 0x50b   :  { %3559 = vmatpush.bf16.msra.mxu0 %v8145_v57  ;;  %3572 = vmatpush.bf16.msra.mxu1 %v8209_v58  ;;  %v7982_v63 = vld [vmem:[#allocation11 + $0x28] sm:$0xf0]  ;;  %v9936_v49 = vld [vmem:[#allocation11 + $0x274] sm:$0xf] }
 0x50c   :  { %3436 = vmatmul.bf16.vlgmr.msra.gmra.mxu2 %v11914_v3  ;;  %3449 = vmatmul.bf16.vlgmr.msra.gmra.mxu3 %v11916_v17  ;;  %v2614_v28 = vpop.f32.mrf.mxu0 }
 0x50d   :  { %v2533_v15 = vpop.f32.mrf.mxu3  ;;  %3532 = vmatpush.bf16.msra.mxu2 %v8025_v22  ;;  %3545 = vmatpush.bf16.msra.mxu3 %v8089_v4  ;;  %v7993_v4 = vor.u32 %v9864_v53, %v7990_v54  ;;  %v8401_v53 = vor.u32 %v9966_v6, %v8398_v7  ;;  %v8465_v54 = vor.u32 %v9982_v34, %v8462_v42  ;;  %v9928_v6 = vld [vmem:[#allocation11 + $0x234] sm:$0xf]  ;;  %v8246_v7 = vld [vmem:[#allocation11 + $0x238] sm:$0xf0] }
 0x50e   :  { %v9878_v15 = vld [vmem:[#allocation11 + $0xa4] sm:$0xf]  ;;  %v9944_v34 = vld [vmem:[#allocation11 + $0x2b4] sm:$0xf] }
 0x50f   :  { %3560 = vmatpush.bf16.msra.mxu0 %v8137_v11  ;;  %3573 = vmatpush.bf16.msra.mxu1 %v8201_v12  ;;  %v2627_v16 = vpop.f32.mrf.mxu1  ;;  %v8057_v12 = vor.u32 %v9880_v55, %v8054_v56  ;;  %v9964_v55 = vld [vmem:[#allocation11 + $0x354] sm:$0xf] }
 0x510   :  { %v2631_v18 = vpack.c.bf16 %v2627_v16, %v2614_v28  ;;  %v9968_v28 = vld [vmem:[#allocation11 + $0x374] sm:$0xf]  ;;  %v8406_v16 = vld [vmem:[#allocation11 + $0x378] sm:$0xf0] }
 0x511   :  { %3533 = vmatpush.bf16.msra.mxu2 %v8017_v23  ;;  %3546 = vmatpush.bf16.msra.mxu3 %v8081_v24  ;;  %v9890_v23 = vld [vmem:[#allocation11 + $0x104] sm:$0xf]  ;;  %v8094_v24 = vld [vmem:[#allocation11 + $0x108] sm:$0xf0] }
 0x512   :  { %v2654_v39 = vunpack.c.l.b16 %v2631_v18  ;;  %v2655_v40 = vunpack.c.h.b16 %v2631_v18  ;;  %v2582_v47 = vpop.f32.mrf.mxu2  ;;  %v8470_v18 = vld [vmem:[#allocation11 + $0x3f8] sm:$0xf0] }
 0x513   :  { %3561 = vmatpush.bf16.msra.mxu0 %v8129_v29  ;;  %3574 = vmatpush.bf16.msra.mxu1 %v8193_v14  ;;  %v7985_v29 = vor.u32 %v9862_v13, %v7982_v63  ;;  %v8049_v14 = vor.u32 %v9878_v15, %v8046_v19  ;;  %v9962_v13 = vld [vmem:[#allocation11 + $0x344] sm:$0xf]  ;;  %v8382_v63 = vld [vmem:[#allocation11 + $0x348] sm:$0xf0] }
 0x514   :  { %v11920_v45 = vpack.c.b16 %v2654_v39, %v2654_v39  ;;  %v11922_v46 = vpack.c.b16 %v2655_v40, %v2655_v40  ;;  %v2616_v62 = vpop.f32.mrf.mxu0  ;;  %v8409_v39 = vor.u32 %v9968_v28, %v8406_v16  ;;  %v8473_v40 = vor.u32 %v9984_v30, %v8470_v18  ;;  %v9978_v15 = vld [vmem:[#allocation11 + $0x3c4] sm:$0xf]  ;;  %v8446_v19 = vld [vmem:[#allocation11 + $0x3c8] sm:$0xf0]  ;;  %v9976_v28 = vld [vmem:[#allocation11 + $0x3b4] sm:$0xf] }
 0x515   :  { %v2595_v48 = vpop.f32.mrf.mxu3  ;;  %3534 = vmatpush.bf16.msra.mxu2 %v8009_v36  ;;  %3547 = vmatpush.bf16.msra.mxu3 %v8073_v37  ;;  %v8038_v36 = vld [vmem:[#allocation11 + $0x98] sm:$0xf0]  ;;  %v8097_v37 = vor.u32 %v9890_v23, %v8094_v24  ;;  %v9948_v23 = vld [vmem:[#allocation11 + $0x2d4] sm:$0xf]  ;;  %v8385_v27 = vor.u32 %v9962_v13, %v8382_v63  ;;  %v9930_v30 = vld [vmem:[#allocation11 + $0x244] sm:$0xf] }
 0x516   :  { %v2599_v50 = vpack.c.bf16 %v2595_v48, %v2582_v47  ;;  %3514 = vmatmul.bf16.vlgmr.msrb.gmra.mxu0 %v11920_v45  ;;  %3527 = vmatmul.bf16.vlgmr.msrb.gmra.mxu1 %v11922_v46  ;;  %v9858_v47 = vld [vmem:[#allocation11 + $0x4] sm:$0xf]  ;;  %v7966_v48 = vld [vmem:[#allocation11 + $0x8] sm:$0xf0]  ;;  %v8326_v24 = vld [vmem:[#allocation11 + $0x2d8] sm:$0xf0] }
 0x517   :  { %3562 = vmatpush.bf16.msra.mxu0 %v8121_v35  ;;  %3575 = vmatpush.bf16.msra.mxu1 %v8185_v41  ;;  %v2629_v22 = vpop.f32.mrf.mxu1  ;;  %v7977_v35 = vor.u32 %v9860_v31, %v7974_v32  ;;  %v8041_v41 = vor.u32 %v9876_v33, %v8038_v36  ;;  %v7969_v56 = vor.u32 %v9858_v47, %v7966_v48  ;;  %v8438_v16 = vld [vmem:[#allocation11 + $0x3b8] sm:$0xf0]  ;;  %v8254_v18 = vld [vmem:[#allocation11 + $0x248] sm:$0xf0]  ;;  %v9946_v31 = vld [vmem:[#allocation11 + $0x2c4] sm:$0xf] }
 0x518   :  { %v2647_v57 = vunpack.c.l.b16 %v2599_v50  ;;  %v2648_v58 = vunpack.c.h.b16 %v2599_v50  ;;  %v8278_v50 = vld [vmem:[#allocation11 + $0x278] sm:$0xf0]  ;;  %v9934_v22 = vld [vmem:[#allocation11 + $0x264] sm:$0xf]  ;;  %v8318_v32 = vld [vmem:[#allocation11 + $0x2c8] sm:$0xf0]  ;;  %v8441_v36 = vor.u32 %v9976_v28, %v8438_v16 }
 0x519   :  { %3535 = vmatpush.bf16.msra.mxu2 %v8001_v51  ;;  %3548 = vmatpush.bf16.msra.mxu3 %v8065_v52  ;;  %v9952_v51 = vld [vmem:[#allocation11 + $0x2f4] sm:$0xf]  ;;  %v8342_v52 = vld [vmem:[#allocation11 + $0x2f8] sm:$0xf0]  ;;  %v8281_v61 = vor.u32 %v9936_v49, %v8278_v50  ;;  %v8249_v49 = vor.u32 %v9928_v6, %v8246_v7  ;;  %v3671_v28 = vld [vmem:[%s13639_s12 + $0x38] sm:$0xff] }
 0x51a   :  { %v11926_v10 = vpack.c.b16 %v2647_v57, %v2647_v57  ;;  %v11928_v11 = vpack.c.b16 %v2648_v58, %v2648_v58  ;;  %v2584_v1 = vpop.f32.mrf.mxu2  ;;  %v8033_v57 = vor.u32 %v9874_v25, %v8030_v26  ;;  %v8390_v58 = vld [vmem:[#allocation11 + $0x358] sm:$0xf0]  ;;  %v8345_v62 = vor.u32 %v9952_v51, %v8342_v52  ;;  %v9956_v47 = vld [vmem:[#allocation11 + $0x314] sm:$0xf]  ;;  %v9926_v51 = vld [vmem:[#allocation11 + $0x224] sm:$0xf] }
 0x51b   :  { %3563 = vmatpush.bf16.msra.mxu0 %v8113_v59  ;;  %3576 = vmatpush.bf16.msra.mxu1 %v8177_v60  ;;  %v9980_v59 = vld [vmem:[#allocation11 + $0x3d4] sm:$0xf]  ;;  %v8454_v60 = vld [vmem:[#allocation11 + $0x3d8] sm:$0xf0]  ;;  %v8393_v9 = vor.u32 %v9964_v55, %v8390_v58  ;;  %v8449_v1 = vor.u32 %v9978_v15, %v8446_v19  ;;  %v8238_v52 = vld [vmem:[#allocation11 + $0x228] sm:$0xf0] }
 0x51c   :  { %3488 = vmatmul.bf16.vlgmr.msrb.gmra.mxu2 %v11926_v10  ;;  %3501 = vmatmul.bf16.vlgmr.msrb.gmra.mxu3 %v11928_v11  ;;  %v8358_v48 = vld [vmem:[#allocation11 + $0x318] sm:$0xf0]  ;;  %v9972_v25 = vld [vmem:[#allocation11 + $0x394] sm:$0xf]  ;;  %v8350_v58 = vld [vmem:[#allocation11 + $0x308] sm:$0xf0] }
 0x51d   :  { %v2597_v2 = vpop.f32.mrf.mxu3  ;;  %3536 = vmatpush.bf16.msra.mxu2 %v7993_v4  ;;  %3549 = vmatpush.bf16.msra.mxu3 %v8057_v12  ;;  %v8270_v4 = vld [vmem:[#allocation11 + $0x268] sm:$0xf0]  ;;  %v8457_v12 = vor.u32 %v9980_v59, %v8454_v60  ;;  %v8422_v26 = vld [vmem:[#allocation11 + $0x398] sm:$0xf0]  ;;  %v8361_v55 = vor.u32 %v9956_v47, %v8358_v48  ;;  %v9970_v59 = vld [vmem:[#allocation11 + $0x384] sm:$0xf] }
 0x51e   :  { %v9960_v2 = vld [vmem:[#allocation11 + $0x334] sm:$0xf]  ;;  %v8414_v60 = vld [vmem:[#allocation11 + $0x388] sm:$0xf0]  ;;  %v9922_v15 = vld [vmem:[#allocation11 + $0x204] sm:$0xf] }
 0x51f   :  { %3564 = vmatpush.bf16.msra.mxu0 %v8105_v20  ;;  %3577 = vmatpush.bf16.msra.mxu1 %v8169_v21  ;;  %v9932_v20 = vld [vmem:[#allocation11 + $0x254] sm:$0xf]  ;;  %v8262_v21 = vld [vmem:[#allocation11 + $0x258] sm:$0xf0]  ;;  %v8377_v33 = vor.u32 %v9960_v2, %v8374_v0  ;;  %v8222_v19 = vld [vmem:[#allocation11 + $0x208] sm:$0xf0] }
 0x520   :  { %v3673_v2 = vld [vmem:[%s13639_s12 + $0x48] sm:$0xff]  ;;  %v3672_v0 = vld [vmem:[%s13639_s12 + $0x40] sm:$0xff]  ;;  %v3670_v16 = vld [vmem:[%s13639_s12 + $0x30] sm:$0xff] }
 0x521   :  { %3537 = vmatpush.bf16.msra.mxu2 %v7985_v29  ;;  %3550 = vmatpush.bf16.msra.mxu3 %v8049_v14  ;;  %v8265_v29 = vor.u32 %v9932_v20, %v8262_v21  ;;  %v8329_v14 = vor.u32 %v9948_v23, %v8326_v24  ;;  %v8225_v20 = vor.u32 %v9922_v15, %v8222_v19  ;;  %v3679_v23 = vld [vmem:[%s13639_s12 + $0x78] sm:$0xff]  ;;  %v3678_v24 = vld [vmem:[%s13639_s12 + $0x70] sm:$0xff] }
 0x523   :  { %3565 = vmatpush.bf16.msra.mxu0 %v8097_v37  ;;  %3578 = vmatpush.bf16.msra.mxu1 %v8161_v38  ;;  %v9958_v37 = vld [vmem:[#allocation11 + $0x324] sm:$0xf]  ;;  %v8366_v38 = vld [vmem:[#allocation11 + $0x328] sm:$0xf0] }
 0x525   :  { %3538 = vmatpush.bf16.msra.mxu2 %v7977_v35  ;;  %3551 = vmatpush.bf16.msra.mxu3 %v8041_v41  ;;  %v8310_v35 = vld [vmem:[#allocation11 + $0x2b8] sm:$0xf0]  ;;  %v8369_v41 = vor.u32 %v9958_v37, %v8366_v38 }
 0x526   :  { %3566 = vmatmul.bf16.vlgmr.msra.gmra.mxu0 %v11908_v43  ;;  %3579 = vmatmul.bf16.vlgmr.msra.gmra.mxu1 %v11910_v44  ;;  %v8273_v43 = vor.u32 %v9934_v22, %v8270_v4  ;;  %v8337_v44 = vor.u32 %v9950_v5, %v8334_v8  ;;  %v8313_v50 = vor.u32 %v9944_v34, %v8310_v35  ;;  %v9924_v22 = vld [vmem:[#allocation11 + $0x214] sm:$0xf]  ;;  %v8230_v4 = vld [vmem:[#allocation11 + $0x218] sm:$0xf0] }
 0x527   :  { %3610 = vmatpush.bf16.msrb.mxu0 %v8409_v39  ;;  %3623 = vmatpush.bf16.msrb.mxu1 %v8473_v40  ;;  %v8430_v39 = vld [vmem:[#allocation11 + $0x3a8] sm:$0xf0]  ;;  %v8321_v40 = vor.u32 %v9946_v31, %v8318_v32  ;;  %v9940_v5 = vld [vmem:[#allocation11 + $0x294] sm:$0xf]  ;;  %v8294_v8 = vld [vmem:[#allocation11 + $0x298] sm:$0xf0]  ;;  %v8233_v13 = vor.u32 %v9924_v22, %v8230_v4 }
 0x528   :  { %v8297_v63 = vor.u32 %v9940_v5, %v8294_v8  ;;  %v3691_v8 = vld [vmem:[%s13639_s12 + $0xd8] sm:$0xff] }
 0x529   :  { %3539 = vmatpush.bf16.msra.mxu2 %v7969_v56  ;;  %3552 = vmatpush.bf16.msra.mxu3 %v8033_v57  ;;  %v8425_v56 = vor.u32 %v9972_v25, %v8422_v26  ;;  %v9954_v57 = vld [vmem:[#allocation11 + $0x304] sm:$0xf]  ;;  %v3695_v25 = vld [vmem:[%s13639_s12 + $0xf8] sm:$0xff] }
 0x52a   :  { %v3694_v26 = vld [vmem:[%s13639_s12 + $0xf0] sm:$0xff] }
 0x52b   :  { %3611 = vmatpush.bf16.msrb.mxu0 %v8401_v53  ;;  %3624 = vmatpush.bf16.msrb.mxu1 %v8465_v54  ;;  %v9942_v53 = vld [vmem:[#allocation11 + $0x2a4] sm:$0xf]  ;;  %v8302_v54 = vld [vmem:[#allocation11 + $0x2a8] sm:$0xf0] }
 0x52c   :  { %3540 = vmatmul.bf16.vlgmr.msra.gmra.mxu2 %v11914_v3  ;;  %3553 = vmatmul.bf16.vlgmr.msra.gmra.mxu3 %v11916_v17  ;;  %v9974_v3 = vld [vmem:[#allocation11 + $0x3a4] sm:$0xf]  ;;  %v8257_v17 = vor.u32 %v9930_v30, %v8254_v18  ;;  %v3669_v30 = vld [vmem:[%s13639_s12 + $0x28] sm:$0xff]  ;;  %v3668_v18 = vld [vmem:[%s13639_s12 + $0x20] sm:$0xff] }
 0x52d   :  { %3584 = vmatpush.bf16.msrb.mxu2 %v8281_v61  ;;  %3597 = vmatpush.bf16.msrb.mxu3 %v8345_v62  ;;  %v8433_v42 = vor.u32 %v9974_v3, %v8430_v39  ;;  %v8241_v61 = vor.u32 %v9926_v51, %v8238_v52  ;;  %v8305_v62 = vor.u32 %v9942_v53, %v8302_v54  ;;  %v3665_v3 = vld [vmem:[%s13639_s12 + $0x8] sm:$0xff]  ;;  %v3664_v39 = vld [vmem:[%s13639_s12] sm:$0xff] }
 0x52f   :  { %3612 = vmatpush.bf16.msrb.mxu0 %v8393_v9  ;;  %3625 = vmatpush.bf16.msrb.mxu1 %v8457_v12  ;;  %v8353_v9 = vor.u32 %v9954_v57, %v8350_v58  ;;  %v8417_v12 = vor.u32 %v9970_v59, %v8414_v60  ;;  %v3693_v58 = vld [vmem:[%s13639_s12 + $0xe8] sm:$0xff]  ;;  %v3692_v59 = vld [vmem:[%s13639_s12 + $0xe0] sm:$0xff] }
 0x531   :  { %3585 = vmatpush.bf16.msrb.mxu2 %v8273_v43  ;;  %3598 = vmatpush.bf16.msrb.mxu3 %v8337_v44  ;;  %v9938_v43 = vld [vmem:[#allocation11 + $0x284] sm:$0xf]  ;;  %v8286_v44 = vld [vmem:[#allocation11 + $0x288] sm:$0xf0] }
 0x532   :  { %v8289_v21 = vor.u32 %v9938_v43, %v8286_v44  ;;  %v3689_v44 = vld [vmem:[%s13639_s12 + $0xc8] sm:$0xff] }
 0x533   :  { %3613 = vmatpush.bf16.msrb.mxu0 %v8385_v27  ;;  %3626 = vmatpush.bf16.msrb.mxu1 %v8449_v1 }
 0x535   :  { %3586 = vmatpush.bf16.msrb.mxu2 %v8265_v29  ;;  %3599 = vmatpush.bf16.msrb.mxu3 %v8329_v14 }
 0x537   :  { %3614 = vmatpush.bf16.msrb.mxu0 %v8377_v33  ;;  %3627 = vmatpush.bf16.msrb.mxu1 %v8441_v36  ;;  %v3667_v33 = vld [vmem:[%s13639_s12 + $0x18] sm:$0xff]  ;;  %v3666_v36 = vld [vmem:[%s13639_s12 + $0x10] sm:$0xff] }
 0x539   :  { %3587 = vmatpush.bf16.msrb.mxu2 %v8257_v17  ;;  %3600 = vmatpush.bf16.msrb.mxu3 %v8321_v40 }
 0x53b   :  { %3615 = vmatpush.bf16.msrb.mxu0 %v8369_v41  ;;  %3628 = vmatpush.bf16.msrb.mxu1 %v8433_v42 }
 0x53d   :  { %3588 = vmatpush.bf16.msrb.mxu2 %v8249_v49  ;;  %3601 = vmatpush.bf16.msrb.mxu3 %v8313_v50 }
 0x53f   :  { %3616 = vmatpush.bf16.msrb.mxu0 %v8361_v55  ;;  %3629 = vmatpush.bf16.msrb.mxu1 %v8425_v56 }
 0x541   :  { %3589 = vmatpush.bf16.msrb.mxu2 %v8241_v61  ;;  %3602 = vmatpush.bf16.msrb.mxu3 %v8305_v62 }
 0x543   :  { %3617 = vmatpush.bf16.msrb.mxu0 %v8353_v9  ;;  %3630 = vmatpush.bf16.msrb.mxu1 %v8417_v12 }
 0x545   :  { %3590 = vmatpush.bf16.msrb.mxu2 %v8233_v13  ;;  %3603 = vmatpush.bf16.msrb.mxu3 %v8297_v63  ;;  %v3690_v13 = vld [vmem:[%s13639_s12 + $0xd0] sm:$0xff] }
 0x546   :  { %3618 = vmatmul.bf16.vlgmr.msrb.gmra.mxu0 %v11920_v45  ;;  %3631 = vmatmul.bf16.vlgmr.msrb.gmra.mxu1 %v11922_v46  ;;  %v3677_v45 = vld [vmem:[%s13639_s12 + $0x68] sm:$0xff]  ;;  %v3676_v46 = vld [vmem:[%s13639_s12 + $0x60] sm:$0xff] }
 0x549   :  { %3591 = vmatpush.bf16.msrb.mxu2 %v8225_v20  ;;  %3604 = vmatpush.bf16.msrb.mxu3 %v8289_v21  ;;  %v3688_v21 = vld [vmem:[%s13639_s12 + $0xc0] sm:$0xff] }
 0x54c   :  { %3592 = vmatmul.bf16.vlgmr.msrb.gmra.mxu2 %v11926_v10  ;;  %3605 = vmatmul.bf16.vlgmr.msrb.gmra.mxu3 %v11928_v11  ;;  %v3675_v10 = vld [vmem:[%s13639_s12 + $0x58] sm:$0xff]  ;;  %v3674_v11 = vld [vmem:[%s13639_s12 + $0x50] sm:$0xff] }
 0x54d   :  { %3696 = vmatpush.msra.mxu2 %v3679_v23  ;;  %3716 = vmatpush.msra.mxu3 %v3695_v25 }
 0x54f   :  { %3697 = vmatpush.msra.mxu2 %v3678_v24  ;;  %3717 = vmatpush.msra.mxu3 %v3694_v26 }
 0x551   :  { %3698 = vmatpush.msra.mxu2 %v3677_v45  ;;  %3718 = vmatpush.msra.mxu3 %v3693_v58  ;;  %v3687_v45 = vld [vmem:[%s13639_s12 + $0xb8] sm:$0xff] }
 0x553   :  { %3699 = vmatpush.msra.mxu2 %v3676_v46  ;;  %3719 = vmatpush.msra.mxu3 %v3692_v59  ;;  %v3782_v59 = vld [vmem:[#allocation13 + $0x70] sm:$0xff] }
 0x554   :  { %3795 = vmatpush.msra.mxu0 %v3782_v59  ;;  %v8478_v59 = vld [vmem:[%s13643_s16 + $0x4] sm:$0x7] }
 0x555   :  { %3700 = vmatpush.msra.mxu2 %v3675_v10  ;;  %3720 = vmatpush.msra.mxu3 %v3691_v8  ;;  %v3686_v10 = vld [vmem:[%s13639_s12 + $0xb0] sm:$0xff]  ;;  %v3779_v8 = vld [vmem:[#allocation13 + $0x58] sm:$0xff] }
 0x557   :  { %3701 = vmatpush.msra.mxu2 %v3674_v11  ;;  %3721 = vmatpush.msra.mxu3 %v3690_v13  ;;  %v3685_v11 = vld [vmem:[%s13639_s12 + $0xa8] sm:$0xff]  ;;  %v3777_v13 = vld [vmem:[#allocation13 + $0x48] sm:$0xff] }
 0x559   :  { %3702 = vmatpush.msra.mxu2 %v3673_v2  ;;  %3722 = vmatpush.msra.mxu3 %v3689_v44  ;;  %v3684_v2 = vld [vmem:[%s13639_s12 + $0xa0] sm:$0xff]  ;;  %v3772_v44 = vld [vmem:[#allocation13 + $0x20] sm:$0xff] }
 0x55b   :  { %3703 = vmatpush.msra.mxu2 %v3672_v0  ;;  %3723 = vmatpush.msra.mxu3 %v3688_v21  ;;  %v3683_v0 = vld [vmem:[%s13639_s12 + $0x98] sm:$0xff] }
 0x55d   :  { %3704 = vmatpush.msra.mxu2 %v3671_v28  ;;  %3724 = vmatpush.msra.mxu3 %v3687_v45  ;;  %v3682_v28 = vld [vmem:[%s13639_s12 + $0x90] sm:$0xff] }
 0x55e   :  { %v3768_v45 = vld [vmem:[#allocation13] sm:$0xff] }
 0x55f   :  { %3705 = vmatpush.msra.mxu2 %v3670_v16  ;;  %3725 = vmatpush.msra.mxu3 %v3686_v10  ;;  %v3681_v16 = vld [vmem:[%s13639_s12 + $0x88] sm:$0xff] }
 0x561   :  { %3706 = vmatpush.msra.mxu2 %v3669_v30  ;;  %3726 = vmatpush.msra.mxu3 %v3685_v11  ;;  %v3680_v30 = vld [vmem:[%s13639_s12 + $0x80] sm:$0xff] }
 0x563   :  { %3707 = vmatpush.msra.mxu2 %v3668_v18  ;;  %3727 = vmatpush.msra.mxu3 %v3684_v2 }
 0x565   :  { %3708 = vmatpush.msra.mxu2 %v3667_v33  ;;  %3728 = vmatpush.msra.mxu3 %v3683_v0 }
 0x567   :  { %3709 = vmatpush.msra.mxu2 %v3666_v36  ;;  %3729 = vmatpush.msra.mxu3 %v3682_v28 }
 0x569   :  { %3710 = vmatpush.msra.mxu2 %v3665_v3  ;;  %3730 = vmatpush.msra.mxu3 %v3681_v16  ;;  %v3743_v16 = vld [vmem:[#allocation14] sm:$0x1] }
 0x56b   :  { %3711 = vmatpush.msra.mxu2 %v3664_v39  ;;  %3731 = vmatpush.msra.mxu3 %v3680_v30  ;;  %v3761_v30 = vld [vmem:[#allocation16] sm:$0x1] }
 0x583   :  { %v3463_v27 = vpop.f32.mrf.mxu0  ;;  %v3476_v1 = vpop.f32.mrf.mxu1 }
 0x58b   :  { %v3465_v29 = vpop.f32.mrf.mxu0  ;;  %v3478_v14 = vpop.f32.mrf.mxu1 }
 0x58f   :  { %v3437_v31 = vpop.f32.mrf.mxu2  ;;  %v3450_v32 = vpop.f32.mrf.mxu3 }
 0x590   :  { %v3451_v17 = vadd.f32 %v3450_v32, %v3437_v31 }
 0x592   :  { %v3464_v7 = vadd.f32 %v3463_v27, %v3451_v17 }
 0x593   :  { %v3515_v37 = vpop.f32.mrf.mxu0  ;;  %v3528_v38 = vpop.f32.mrf.mxu1 }
 0x594   :  { %v3477_v41 = vadd.f32 %v3476_v1, %v3464_v7 }
 0x597   :  { %v3439_v40 = vpop.f32.mrf.mxu2  ;;  %v3452_v6 = vpop.f32.mrf.mxu3 }
 0x59b   :  { %v3517_v34 = vpop.f32.mrf.mxu0  ;;  %v3530_v35 = vpop.f32.mrf.mxu1 }
 0x59f   :  { %v3489_v42 = vpop.f32.mrf.mxu2  ;;  %v3502_v47 = vpop.f32.mrf.mxu3 }
 0x5a0   :  { %v3490_v48 = vadd.f32 %v3489_v42, %v3477_v41 }
 0x5a2   :  { %v3503_v49 = vadd.f32 %v3502_v47, %v3490_v48 }
 0x5a3   :  { %v3567_v50 = vpop.f32.mrf.mxu0  ;;  %v3580_v51 = vpop.f32.mrf.mxu1 }
 0x5a4   :  { %v3516_v52 = vadd.f32 %v3515_v37, %v3503_v49 }
 0x5a6   :  { %v11994_v53 = vadd.f32 %v3528_v38, %v3516_v52 }
 0x5a7   :  { %v3491_v54 = vpop.f32.mrf.mxu2  ;;  %v3504_v55 = vpop.f32.mrf.mxu3 }
 0x5a8   :  { %v3636_v56 = vrot.slane %v11994_v53, 4  ;;  %v3648_v57 = vmul.f32 %v11994_v53, %v11994_v53 }
 0x5aa   :  { %v3637_v60 = vadd.f32 %v3636_v56, %v11994_v53  ;;  %v3650_v61 = vrot.slane %v3648_v57, 4 }
 0x5ab   :  { %v3569_v62 = vpop.f32.mrf.mxu0  ;;  %v3582_v22 = vpop.f32.mrf.mxu1 }
 0x5ac   :  { %v3638_v4 = vrot.slane %v3637_v60, 2  ;;  %v3651_v5 = vadd.f32 %v3650_v61, %v3648_v57  ;;  %v3780_v62 = vld [vmem:[#allocation13 + $0x60] sm:$0xff]  ;;  %v3781_v22 = vld [vmem:[#allocation13 + $0x68] sm:$0xff] }
 0x5ad   :  { %3796 = vmatpush.msra.mxu0 %v3780_v62  ;;  %v8561_v62 = vld [vmem:[%s13644_s17 + $0x90] sm:$0xf] }
 0x5ae   :  { %v3639_v9 = vadd.f32 %v3638_v4, %v3637_v60  ;;  %v3652_v12 = vrot.slane %v3651_v5, 2  ;;  %v3783_v60 = vld [vmem:[#allocation13 + $0x78] sm:$0xff] }
 0x5af   :  { %v3541_v63 = vpop.f32.mrf.mxu2  ;;  %v3554_v15 = vpop.f32.mrf.mxu3  ;;  %3815 = vmatpush.msra.mxu1 %v3783_v60 }
 0x5b0   :  { %v3640_v19 = vrot.slane %v3639_v9, 1  ;;  %v3653_v43 = vadd.f32 %v3652_v12, %v3651_v5  ;;  %v3555_v18 = vadd.f32 %v3554_v15, %v3541_v63  ;;  %v3778_v5 = vld [vmem:[#allocation13 + $0x50] sm:$0xff]  ;;  %v3776_v12 = vld [vmem:[#allocation13 + $0x40] sm:$0xff] }
 0x5b1   :  { %3816 = vmatpush.msra.mxu1 %v3781_v22  ;;  %3797 = vmatpush.msra.mxu0 %v3778_v5  ;;  %v3774_v15 = vld [vmem:[#allocation13 + $0x30] sm:$0xff] }
 0x5b2   :  { %v3654_v20 = vrot.slane %v3653_v43, 1  ;;  %v3641_v23 = vadd.f32 %v3640_v19, %v3639_v9  ;;  %v3568_v31 = vadd.f32 %v3567_v50, %v3555_v18  ;;  %v3775_v19 = vld [vmem:[#allocation13 + $0x38] sm:$0xff]  ;;  %v10005_v22 = vld [vmem:[%s13644_s17 + $0x98] sm:$0xf0] }
 0x5b3   :  { %3817 = vmatpush.msra.mxu1 %v3779_v8  ;;  %3798 = vmatpush.msra.mxu0 %v3776_v12  ;;  %v10029_v5 = vld [vmem:[%s13644_s17 + $0x158] sm:$0xf0]  ;;  %v8753_v12 = vld [vmem:[%s13644_s17 + $0x210] sm:$0xf] }
 0x5b4   :  { %v3655_v24 = vadd.f32 %v3654_v20, %v3653_v43  ;;  %v3581_v36 = vadd.f32 %v3580_v51, %v3568_v31  ;;  %v3773_v20 = vld [vmem:[#allocation13 + $0x28] sm:$0xff] }
 0x5b5   :  { %3818 = vmatpush.msra.mxu1 %v3777_v13  ;;  %3799 = vmatpush.msra.mxu0 %v3774_v15  ;;  %v10053_v13 = vld [vmem:[%s13644_s17 + $0x218] sm:$0xf0] }
 0x5b6   :  { %v3662_v46 = vsel %vm2320_vm10, %v3641_v23, %v3655_v24  ;;  %v3770_v23 = vld [vmem:[#allocation13 + $0x10] sm:$0xff]  ;;  %v3771_v24 = vld [vmem:[#allocation13 + $0x18] sm:$0xff] }
 0x5b7   :  { %3712 = vmatmul.f32.vlgmr.msra.gmra.mxu2 %v3662_v46  ;;  %v3543_v27 = vpop.f32.mrf.mxu2  ;;  %v3556_v1 = vpop.f32.mrf.mxu3  ;;  %3819 = vmatpush.msra.mxu1 %v3775_v19  ;;  %v3769_v46 = vld [vmem:[#allocation13 + $0x8] sm:$0xff]  ;;  %v10077_v15 = vld [vmem:[%s13644_s17 + $0x2d8] sm:$0xf0]  ;;  %v8562_v19 = vor.u32 %v10005_v22, %v8561_v62  ;;  %v10014_v22 = vld [vmem:[%s13644_s17 + $0xe0] sm:$0xf0] }
 0x5b8   :  { %3800 = vmatpush.msra.mxu0 %v3772_v44  ;;  %v8549_v44 = vld [vmem:[%s13644_s17 + $0x78] sm:$0xf] }
 0x5b9   :  { %3820 = vmatpush.msra.mxu1 %v3773_v20  ;;  %v10002_v20 = vld [vmem:[%s13644_s17 + $0x80] sm:$0xf0]  ;;  %v8597_v62 = vld [vmem:[%s13644_s17 + $0xd8] sm:$0xf] }
 0x5ba   :  { %3801 = vmatpush.msra.mxu0 %v3770_v23  ;;  %v10026_v23 = vld [vmem:[%s13644_s17 + $0x140] sm:$0xf0] }
 0x5bb   :  { %3821 = vmatpush.msra.mxu1 %v3771_v24  ;;  %v8754_v24 = vor.u32 %v10053_v13, %v8753_v12  ;;  %v8789_v12 = vld [vmem:[%s13644_s17 + $0x258] sm:$0xf]  ;;  %v10062_v13 = vld [vmem:[%s13644_s17 + $0x260] sm:$0xf0] }
 0x5bc   :  { %3802 = vmatpush.msra.mxu0 %v3768_v45 }
 0x5bd   :  { %3822 = vmatpush.msra.mxu1 %v3769_v46  ;;  %v8741_v46 = vld [vmem:[%s13644_s17 + $0x1f8] sm:$0xf] }
 0x5c3   :  { %v3619_v29 = vpop.f32.mrf.mxu0  ;;  %v3632_v14 = vpop.f32.mrf.mxu1 }
 0x5cb   :  { %v3621_v32 = vpop.f32.mrf.mxu0  ;;  %v3634_v33 = vpop.f32.mrf.mxu1 }
 0x5cf   :  { %v3593_v37 = vpop.f32.mrf.mxu2  ;;  %v3606_v38 = vpop.f32.mrf.mxu3 }
 0x5d0   :  { %v3594_v3 = vadd.f32 %v3593_v37, %v3581_v36 }
 0x5d2   :  { %v3607_v39 = vadd.f32 %v3606_v38, %v3594_v3 }
 0x5d4   :  { %v3620_v17 = vadd.f32 %v3619_v29, %v3607_v39 }
 0x5d6   :  { %v12043_v40 = vadd.f32 %v3632_v14, %v3620_v17 }
 0x5d7   :  { %v3595_v6 = vpop.f32.mrf.mxu2  ;;  %v3608_v7 = vpop.f32.mrf.mxu3 }
 0x5d8   :  { %v3642_v34 = vrot.slane %v12043_v40, 4  ;;  %v3649_v35 = vmul.f32 %v12043_v40, %v12043_v40 }
 0x5da   :  { %v3643_v41 = vadd.f32 %v3642_v34, %v12043_v40  ;;  %v3656_v42 = vrot.slane %v3649_v35, 4 }
 0x5dc   :  { %v3644_v47 = vrot.slane %v3643_v41, 2  ;;  %v3657_v48 = vadd.f32 %v3656_v42, %v3649_v35 }
 0x5de   :  { %v3645_v25 = vadd.f32 %v3644_v47, %v3643_v41  ;;  %v3658_v26 = vrot.slane %v3657_v48, 2 }
 0x5e0   :  { %v3646_v49 = vrot.slane %v3645_v25, 1  ;;  %v3659_v50 = vadd.f32 %v3658_v26, %v3657_v48 }
 0x5e2   :  { %v3660_v51 = vrot.slane %v3659_v50, 1  ;;  %v3647_v52 = vadd.f32 %v3646_v49, %v3645_v25  ;;  %v8573_v49 = vld [vmem:[%s13644_s17 + $0xa8] sm:$0xf] }
 0x5e4   :  { %v3661_v54 = vadd.f32 %v3660_v51, %v3659_v50 }
 0x5e6   :  { %v3663_v55 = vsel %vm2320_vm10, %v3647_v52, %v3661_v54  ;;  %v10032_v52 = vld [vmem:[%s13644_s17 + $0x170] sm:$0xf0]  ;;  %v8765_v54 = vld [vmem:[%s13644_s17 + $0x228] sm:$0xf] }
 0x5e7   :  { %3732 = vmatmul.f32.vlgmr.msra.gmra.mxu3 %v3663_v55  ;;  %v10056_v55 = vld [vmem:[%s13644_s17 + $0x230] sm:$0xf0] }
 0x5e8   :  { %v8766_v8 = vor.u32 %v10056_v55, %v8765_v54  ;;  %v8705_v54 = vld [vmem:[%s13644_s17 + $0x1b0] sm:$0xf]  ;;  %v10041_v55 = vld [vmem:[%s13644_s17 + $0x1b8] sm:$0xf0] }
 0x63a   :  { %v3713_v56 = vpop.f32.mrf.mxu2 }
 0x66a   :  { %v3733_v57 = vpop.f32.mrf.mxu3 }
 0x66b   :  { %v3734_v58 = vadd.f32 %v3733_v57, %v3713_v56  ;;  %v8861_v56 = vld [vmem:[%s13644_s17 + $0x2e8] sm:$0xf]  ;;  %v10080_v57 = vld [vmem:[%s13644_s17 + $0x2f0] sm:$0xf0] }
 0x66d   :  { %v3736_v61 = vmul.f32 0.03125, %v3734_v58  ;;  %v3843_v58 = vld [vmem:[%s13643_s16] sm:$0x7] }
 0x66f   :  { %v3737_v4 = vmul.f32 %v3736_v61, %v3736_v61 }
 0x671   :  { %v3739_v9 = vrot.slane %v3737_v4, 7  ;;  %v8657_v4 = vld [vmem:[%s13644_s17 + $0x150] sm:$0xf] }
 0x673   :  { %v3741_v63 = vsub.f32 %v3736_v61, %v3739_v9  ;;  %v8862_v9 = vor.u32 %v10080_v57, %v8861_v56  ;;  %v8801_v56 = vld [vmem:[%s13644_s17 + $0x270] sm:$0xf]  ;;  %v10065_v57 = vld [vmem:[%s13644_s17 + $0x278] sm:$0xf0] }
 0x675   :  { %v3742_v43 = vmax.f32 %v3741_v63, 0.0  ;;  %v8849_v63 = vld [vmem:[%s13644_s17 + $0x2d0] sm:$0xf] }
 0x676   :  { %v8850_v45 = vor.u32 %v10077_v15, %v8849_v63  ;;  %v8489_v63 = vld [vmem:[%s13644_s17] sm:$0xf] }
 0x677   :  { %v3744_v21 = vadd.f32 1e-05, %v3742_v43  ;;  %v8658_v43 = vor.u32 %v10029_v5, %v8657_v4  ;;  %v8706_v4 = vor.u32 %v10041_v55, %v8705_v54  ;;  %v8802_v5 = vor.u32 %v10065_v57, %v8801_v56  ;;  %v8921_v56 = vld [vmem:[%s13644_s17 + $0x360] sm:$0xf]  ;;  %v10095_v57 = vld [vmem:[%s13644_s17 + $0x368] sm:$0xf0] }
 0x679   :  { %10300 = vrsqrt.f32 %v3744_v21  ;;  %vm3751_vm5 = vweird.f32 %v3744_v21 }
 0x67f   :  { %v10301_v10 = vpop.eup %10300 }
 0x680   :  { %v3746_v11 = vmul.f32 %v10301_v10, %v3744_v21  ;;  %vm3752_vm4 = vweird.f32 %v10301_v10  ;;  %v8645_v21 = vld [vmem:[%s13644_s17 + $0x138] sm:$0xf] }
 0x681   :  { %vm3753_vm6 = vmor %vm3751_vm5, %vm3752_vm4  ;;  %vm7085_vm4 = vcmask 11264  }
 0x682   :  { %v3747_v27 = vmul.f32 %v10301_v10, %v3746_v11  ;;  %v8837_v11 = vld [vmem:[%s13644_s17 + $0x2b8] sm:$0xf] }
 0x684   :  { %v3748_v1 = vmul.f32 0.5, %v3747_v27  ;;  %v10074_v27 = vld [vmem:[%s13644_s17 + $0x2c0] sm:$0xf0] }
 0x686   :  { %v3749_v2 = vsub.f32 1.5, %v3748_v1  ;;  %v8550_v1 = vor.u32 %v10002_v20, %v8549_v44  ;;  %v8585_v44 = vld [vmem:[%s13644_s17 + $0xc0] sm:$0xf]  ;;  %v10011_v20 = vld [vmem:[%s13644_s17 + $0xc8] sm:$0xf0] }
 0x688   :  { %v3750_v0 = vmul.f32 %v10301_v10, %v3749_v2  ;;  %v8646_v2 = vor.u32 %v10026_v23, %v8645_v21  ;;  %v8957_v21 = vld [vmem:[%s13644_s17 + $0x3a8] sm:$0xf]  ;;  %v10104_v23 = vld [vmem:[%s13644_s17 + $0x3b0] sm:$0xf0] }
 0x68a   :  { %v3754_v28 = vsel %vm3753_vm6, %v10301_v10, %v3750_v0  ;;  %v10050_v10 = vld [vmem:[%s13644_s17 + $0x200] sm:$0xf0]  ;;  %v8537_v0 = vld [vmem:[%s13644_s17 + $0x60] sm:$0xf] }
 0x68b   :  { %3756 = vst [vmem:[#allocation1] sm:$0xff] %v3754_v28  ;;  %v9999_v28 = vld [vmem:[%s13644_s17 + $0x68] sm:$0xf0] }
 0x692   :  { %v3758_v29 = vld [vmem:[#allocation1 + $0x1] ss:$9 sm:$0xff] }
 0x693   :  { %v3760_v14 = vmul.f32 %v3758_v29, %v3743_v16  ;;  %v8633_v16 = vld [vmem:[%s13644_s17 + $0x120] sm:$0xf]  ;;  %v10023_v29 = vld [vmem:[%s13644_s17 + $0x128] sm:$0xf0] }
 0x695   :  { %v3762_v18 = vmul.f32 %v3760_v14, %v3736_v61 }
 0x697   :  { %v3763_v31 = vsub.f32 %v3761_v30, %v3762_v18  ;;  %v8838_v30 = vor.u32 %v10074_v27, %v8837_v11  ;;  %v8729_v18 = vld [vmem:[%s13644_s17 + $0x1e0] sm:$0xf]  ;;  %v10035_v27 = vld [vmem:[%s13644_s17 + $0x188] sm:$0xf0] }
 0x698   :  { %v8681_v11 = vld [vmem:[%s13644_s17 + $0x180] sm:$0xf] }
 0x699   :  { %v3765_v32 = vperm.slane %v3763_v31, 0  ;;  %v10047_v31 = vld [vmem:[%s13644_s17 + $0x1e8] sm:$0xf0] }
 0x69b   :  { %v3767_v33 = vsel %vm2320_vm10, %v3760_v14, %v3765_v32  ;;  %v8742_v14 = vor.u32 %v10050_v10, %v8741_v46  ;;  %v8825_v32 = vld [vmem:[%s13644_s17 + $0x2a0] sm:$0xf]  ;;  %v8790_v46 = vor.u32 %v10062_v13, %v8789_v12  ;;  %v10128_v10 = vld [vmem:[%s13644_s17 + $0x470] sm:$0xf0]  ;;  %v8909_v12 = vld [vmem:[%s13644_s17 + $0x348] sm:$0xf] }
 0x69c   :  { %8474 = vmatmul.msk.f32.vlgmr.msra.gmra.mxu0 %vm312_vm0, %v3767_v33  ;;  %8475 = vmatmul.msk.f32.vlgmr.msra.gmra.mxu1 %vm312_vm0, %v3767_v33  ;;  %vm3844_vm0 = vcmask 64512   ;;  %v10071_v33 = vld [vmem:[%s13644_s17 + $0x2a8] sm:$0xf0]  ;;  %v10092_v13 = vld [vmem:[%s13644_s17 + $0x350] sm:$0xf0] }
 0x719   :  { %v3804_v36 = vpop.f32.mrf.mxu0  ;;  %v3824_v37 = vpop.f32.mrf.mxu1 }
 0x71a   :  { %v3827_v38 = vperm.slane %v3804_v36, 0  ;;  %v3828_v3 = vperm.slane %v3824_v37, 0  ;;  %v3831_v17 = vperm.slane %v3804_v36, 1  ;;  %v3832_v7 = vperm.slane %v3824_v37, 1 }
 0x71b   :  { %v8538_v36 = vor.u32 %v9999_v28, %v8537_v0  ;;  %v8634_v37 = vor.u32 %v10023_v29, %v8633_v16  ;;  %v9149_v0 = vld [vmem:[%s13644_s17 + $0x528] sm:$0xf]  ;;  %v8586_v16 = vor.u32 %v10011_v20, %v8585_v44  ;;  %v10152_v29 = vld [vmem:[%s13644_s17 + $0x530] sm:$0xf0]  ;;  %v8910_v44 = vor.u32 %v10092_v13, %v8909_v12  ;;  %v8563_v12 = vld [vmem:[%s13644_s17 + $0x9c] sm:$0xf0] }
 0x71c   :  { %v3829_v39 = vmul.f32 %v3827_v38, %v11994_v53  ;;  %v3830_v6 = vmul.f32 %v3828_v3, %v12043_v40  ;;  %v10008_v53 = vld [vmem:[%s13644_s17 + $0xb0] sm:$0xf0]  ;;  %v8669_v40 = vld [vmem:[%s13644_s17 + $0x168] sm:$0xf] }
 0x71d   :  { %v8574_v60 = vor.u32 %v10008_v53, %v8573_v49  ;;  %v8670_v61 = vor.u32 %v10032_v52, %v8669_v40  ;;  %v8525_v38 = vld [vmem:[%s13644_s17 + $0x48] sm:$0xf]  ;;  %v9996_v3 = vld [vmem:[%s13644_s17 + $0x50] sm:$0xf0]  ;;  %v8513_v49 = vld [vmem:[%s13644_s17 + $0x30] sm:$0xf] }
 0x71e   :  { %v3833_v34 = vadd.f32 %v3831_v17, %v3829_v39  ;;  %v3834_v35 = vadd.f32 %v3832_v7, %v3830_v6  ;;  %v8621_v39 = vld [vmem:[%s13644_s17 + $0x108] sm:$0xf]  ;;  %v10020_v17 = vld [vmem:[%s13644_s17 + $0x110] sm:$0xf0]  ;;  %v8730_v6 = vor.u32 %v10047_v31, %v8729_v18  ;;  %v8826_v7 = vor.u32 %v10071_v33, %v8825_v32  ;;  %v9993_v53 = vld [vmem:[%s13644_s17 + $0x38] sm:$0xf0] }
 0x71f   :  { %v8609_v40 = vld [vmem:[%s13644_s17 + $0xf0] sm:$0xf]  ;;  %v8958_v18 = vor.u32 %v10104_v23, %v8957_v21  ;;  %v10101_v33 = vld [vmem:[%s13644_s17 + $0x398] sm:$0xf0]  ;;  %v10028_v13 = vld [vmem:[%s13644_s17 + $0x154] sm:$0xf] }
 0x720   :  { %v3837_v41 = vmul.f32 0.2, %v3833_v34  ;;  %v3838_v42 = vmul.f32 0.2, %v3834_v35  ;;  %vm3835_vm7 = vcmp.gt.f32.partialorder %v3833_v34, 0.0  ;;  %vm3836_vm8 = vcmp.gt.f32.partialorder %v3834_v35, 0.0 }
 0x721   :  { %v8945_v32 = vld [vmem:[%s13644_s17 + $0x390] sm:$0xf]  ;;  %v10089_v23 = vld [vmem:[%s13644_s17 + $0x338] sm:$0xf0] }
 0x722   :  { %v3839_v47 = vsel %vm3835_vm7, %v3833_v34, %v3837_v41  ;;  %v3840_v48 = vsel %vm3836_vm8, %v3834_v35, %v3838_v42  ;;  %v8717_v34 = vld [vmem:[%s13644_s17 + $0x1c8] sm:$0xf]  ;;  %v10044_v35 = vld [vmem:[%s13644_s17 + $0x1d0] sm:$0xf0]  ;;  %v8897_v21 = vld [vmem:[%s13644_s17 + $0x330] sm:$0xf] }
 0x723   :  { %v3841_v25 = vpack.c.bf16 %v3839_v47, %v3839_v47  ;;  %v3842_v26 = vpack.c.bf16 %v3840_v48, %v3840_v48  ;;  %v8813_v41 = vld [vmem:[%s13644_s17 + $0x288] sm:$0xf]  ;;  %v10068_v42 = vld [vmem:[%s13644_s17 + $0x290] sm:$0xf0]  ;;  %v8484_v48 = vld [vmem:[%s13643_s16 + $0xc] sm:$0x7] }
 0x724   :  { %v8481_v47 = vld [vmem:[%s13643_s16 + $0x8] sm:$0x7]  ;;  %v8814_v52 = vor.u32 %v10068_v42, %v8813_v41  ;;  %v8946_v41 = vor.u32 %v10101_v33, %v8945_v32  ;;  %v9089_v32 = vld [vmem:[%s13644_s17 + $0x4b0] sm:$0xf]  ;;  %v10137_v33 = vld [vmem:[%s13644_s17 + $0x4b8] sm:$0xf0] }
 0x725   :  { %v3850_v50 = vsel %vm3848_vm9, %v3841_v25, 0  ;;  %v3853_v51 = vsel %vm3848_vm9, %v3842_v26, 0  ;;  %v8526_v25 = vor.u32 %v9996_v3, %v8525_v38  ;;  %v8622_v26 = vor.u32 %v10020_v17, %v8621_v39 }
 0x726   :  { %3862 = vmatpush.bf16.msrb.mxu0 %v3850_v50  ;;  %3875 = vmatpush.bf16.msrb.mxu1 %v3853_v51  ;;  %v8682_v38 = vor.u32 %v10035_v27, %v8681_v11  ;;  %v9150_v39 = vor.u32 %v10152_v29, %v9149_v0  ;;  %v9101_v11 = vld [vmem:[%s13644_s17 + $0x4c8] sm:$0xf]  ;;  %v10140_v27 = vld [vmem:[%s13644_s17 + $0x4d0] sm:$0xf0]  ;;  %v10086_v29 = vld [vmem:[%s13644_s17 + $0x320] sm:$0xf0] }
 0x727   :  { %3894 = vmatpush.bf16.msrb.mxu2 %v3850_v50  ;;  %3907 = vmatpush.bf16.msrb.mxu3 %v3853_v51  ;;  %v10164_v0 = vld [vmem:[%s13644_s17 + $0x590] sm:$0xf0] }
 0x729   :  { %8476 = vmatmul.msk.bf16.vlgmr.msrb.gmra.mxu0 %vm3844_vm0, %v3843_v58  ;;  %8477 = vmatmul.msk.bf16.vlgmr.msrb.gmra.mxu1 %vm3844_vm0, %v3843_v58  ;;  %v8514_v58 = vor.u32 %v9993_v53, %v8513_v49 }
 0x72a   :  { %3926 = vmatpush.bf16.msra.mxu0 %v3850_v50  ;;  %3939 = vmatpush.bf16.msra.mxu1 %v3853_v51 }
 0x72b   :  { %3958 = vmatpush.bf16.msra.mxu2 %v3850_v50  ;;  %3971 = vmatpush.bf16.msra.mxu3 %v3853_v51  ;;  %v10017_v50 = vld [vmem:[%s13644_s17 + $0xf8] sm:$0xf0]  ;;  %v8718_v51 = vor.u32 %v10044_v35, %v8717_v34  ;;  %v9233_v34 = vld [vmem:[%s13644_s17 + $0x5d0] sm:$0xf] }
 0x72c   :  { %8479 = vmatmul.msk.bf16.vlgmr.msrb.gmra.mxu2 %vm3844_vm0, %v8478_v59  ;;  %8480 = vmatmul.msk.bf16.vlgmr.msrb.gmra.mxu3 %vm3844_vm0, %v8478_v59  ;;  %v8610_v59 = vor.u32 %v10017_v50, %v8609_v40  ;;  %v10173_v35 = vld [vmem:[%s13644_s17 + $0x5d8] sm:$0xf0]  ;;  %v9125_v40 = vld [vmem:[%s13644_s17 + $0x4f8] sm:$0xf]  ;;  %v10146_v50 = vld [vmem:[%s13644_s17 + $0x500] sm:$0xf0] }
 0x72d   :  { %v9234_v53 = vor.u32 %v10173_v35, %v9233_v34  ;;  %v10107_v34 = vld [vmem:[%s13644_s17 + $0x3c8] sm:$0xf0] }
 0x72e   :  { %5286 = vmatpush.bf16.msrb.mxu0 %v8574_v60  ;;  %5299 = vmatpush.bf16.msrb.mxu1 %v8670_v61  ;;  %v8501_v60 = vld [vmem:[%s13644_s17 + $0x18] sm:$0xf]  ;;  %v9990_v61 = vld [vmem:[%s13644_s17 + $0x20] sm:$0xf0] }
 0x72f   :  { %5312 = vmatpush.bf16.msrb.mxu2 %v8766_v8  ;;  %5325 = vmatpush.bf16.msrb.mxu3 %v8862_v9  ;;  %v8693_v8 = vld [vmem:[%s13644_s17 + $0x198] sm:$0xf]  ;;  %v10038_v9 = vld [vmem:[%s13644_s17 + $0x1a0] sm:$0xf0]  ;;  %v8502_v15 = vor.u32 %v9990_v61, %v8501_v60  ;;  %v9126_v60 = vor.u32 %v10146_v50, %v9125_v40  ;;  %v9161_v50 = vld [vmem:[%s13644_s17 + $0x540] sm:$0xf] }
 0x732   :  { %5287 = vmatpush.bf16.msrb.mxu0 %v8562_v19  ;;  %5300 = vmatpush.bf16.msrb.mxu1 %v8658_v43  ;;  %v8598_v19 = vor.u32 %v10014_v22, %v8597_v62  ;;  %v9987_v43 = vld [vmem:[%s13644_s17 + $0x8] sm:$0xf0]  ;;  %v9113_v62 = vld [vmem:[%s13644_s17 + $0x4e0] sm:$0xf] }
 0x733   :  { %5313 = vmatpush.bf16.msrb.mxu2 %v8754_v24  ;;  %5326 = vmatpush.bf16.msrb.mxu3 %v8850_v45  ;;  %v9053_v24 = vld [vmem:[%s13644_s17 + $0x468] sm:$0xf]  ;;  %v8694_v45 = vor.u32 %v10038_v9, %v8693_v8  ;;  %v8490_v28 = vor.u32 %v9987_v43, %v8489_v63  ;;  %v10143_v22 = vld [vmem:[%s13644_s17 + $0x4e8] sm:$0xf0]  ;;  %v8922_v8 = vor.u32 %v10095_v57, %v8921_v56 }
 0x734   :  { %v9054_v31 = vor.u32 %v10128_v10, %v9053_v24  ;;  %v9005_v63 = vld [vmem:[%s13644_s17 + $0x408] sm:$0xf]  ;;  %v8993_v24 = vld [vmem:[%s13644_s17 + $0x3f0] sm:$0xf]  ;;  %v10007_v56 = vld [vmem:[%s13644_s17 + $0xac] sm:$0xf] }
 0x736   :  { %5288 = vmatpush.bf16.msrb.mxu0 %v8550_v1  ;;  %5301 = vmatpush.bf16.msrb.mxu1 %v8646_v2  ;;  %v8777_v1 = vld [vmem:[%s13644_s17 + $0x240] sm:$0xf]  ;;  %v10059_v2 = vld [vmem:[%s13644_s17 + $0x248] sm:$0xf0] }
 0x737   :  { %5314 = vmatpush.bf16.msrb.mxu2 %v8742_v14  ;;  %5327 = vmatpush.bf16.msrb.mxu3 %v8838_v30  ;;  %v9245_v14 = vld [vmem:[%s13644_s17 + $0x5e8] sm:$0xf]  ;;  %v10176_v30 = vld [vmem:[%s13644_s17 + $0x5f0] sm:$0xf0]  ;;  %v8778_v3 = vor.u32 %v10059_v2, %v8777_v1  ;;  %v9102_v2 = vor.u32 %v10140_v27, %v9101_v11  ;;  %v10001_v11 = vld [vmem:[%s13644_s17 + $0x7c] sm:$0xf] }
 0x738   :  { %v9246_v17 = vor.u32 %v10176_v30, %v9245_v14  ;;  %v9197_v1 = vld [vmem:[%s13644_s17 + $0x588] sm:$0xf]  ;;  %v8981_v14 = vld [vmem:[%s13644_s17 + $0x3d8] sm:$0xf] }
 0x739   :  { %8482 = vmatmul.msk.bf16.vlgmr.msra.gmra.mxu0 %vm3844_vm0, %v8481_v47  ;;  %8483 = vmatmul.msk.bf16.vlgmr.msra.gmra.mxu1 %vm3844_vm0, %v8481_v47  ;;  %v8933_v47 = vld [vmem:[%s13644_s17 + $0x378] sm:$0xf]  ;;  %v8551_v27 = vld [vmem:[%s13644_s17 + $0x84] sm:$0xf0] }
 0x73a   :  { %5289 = vmatpush.bf16.msrb.mxu0 %v8538_v36  ;;  %5302 = vmatpush.bf16.msrb.mxu1 %v8634_v37  ;;  %v9041_v36 = vld [vmem:[%s13644_s17 + $0x450] sm:$0xf]  ;;  %v10125_v37 = vld [vmem:[%s13644_s17 + $0x458] sm:$0xf0] }
 0x73b   :  { %5315 = vmatpush.bf16.msrb.mxu2 %v8730_v6  ;;  %5328 = vmatpush.bf16.msrb.mxu3 %v8826_v7  ;;  %v9137_v6 = vld [vmem:[%s13644_s17 + $0x510] sm:$0xf]  ;;  %v10149_v7 = vld [vmem:[%s13644_s17 + $0x518] sm:$0xf0]  ;;  %v9042_v42 = vor.u32 %v10125_v37, %v9041_v36  ;;  %v9090_v37 = vor.u32 %v10137_v33, %v9089_v32 }
 0x73c   :  { %8485 = vmatmul.msk.bf16.vlgmr.msra.gmra.mxu2 %vm3844_vm0, %v8484_v48  ;;  %8486 = vmatmul.msk.bf16.vlgmr.msra.gmra.mxu3 %vm3844_vm0, %v8484_v48  ;;  %v10098_v48 = vld [vmem:[%s13644_s17 + $0x380] sm:$0xf0]  ;;  %v9138_v49 = vor.u32 %v10149_v7, %v9137_v6  ;;  %v9185_v36 = vld [vmem:[%s13644_s17 + $0x570] sm:$0xf]  ;;  %v8969_v6 = vld [vmem:[%s13644_s17 + $0x3c0] sm:$0xf] }
 0x73d   :  { %v8934_v54 = vor.u32 %v10098_v48, %v8933_v47  ;;  %v8970_v35 = vor.u32 %v10107_v34, %v8969_v6  ;;  %v9173_v47 = vld [vmem:[%s13644_s17 + $0x558] sm:$0xf]  ;;  %v10158_v48 = vld [vmem:[%s13644_s17 + $0x560] sm:$0xf0] }
 0x73e   :  { %5290 = vmatpush.bf16.msrb.mxu0 %v8526_v25  ;;  %5303 = vmatpush.bf16.msrb.mxu1 %v8622_v26  ;;  %v9029_v25 = vld [vmem:[%s13644_s17 + $0x438] sm:$0xf]  ;;  %v10122_v26 = vld [vmem:[%s13644_s17 + $0x440] sm:$0xf0] }
 0x73f   :  { %5316 = vmatpush.bf16.msrb.mxu2 %v8718_v51  ;;  %5329 = vmatpush.bf16.msrb.mxu3 %v8814_v52  ;;  %v9221_v51 = vld [vmem:[%s13644_s17 + $0x5b8] sm:$0xf]  ;;  %v10170_v52 = vld [vmem:[%s13644_s17 + $0x5c0] sm:$0xf0]  ;;  %v9030_v55 = vor.u32 %v10122_v26, %v9029_v25  ;;  %v9174_v26 = vor.u32 %v10158_v48, %v9173_v47 }
 0x740   :  { %v9222_v61 = vor.u32 %v10170_v52, %v9221_v51  ;;  %v10155_v51 = vld [vmem:[%s13644_s17 + $0x548] sm:$0xf0] }
 0x741   :  { %v9162_v52 = vor.u32 %v10155_v51, %v9161_v50  ;;  %v9995_v50 = vld [vmem:[%s13644_s17 + $0x4c] sm:$0xf]  ;;  %v8527_v51 = vld [vmem:[%s13644_s17 + $0x54] sm:$0xf0] }
 0x742   :  { %5291 = vmatpush.bf16.msrb.mxu0 %v8514_v58  ;;  %5304 = vmatpush.bf16.msrb.mxu1 %v8610_v59  ;;  %v9017_v58 = vld [vmem:[%s13644_s17 + $0x420] sm:$0xf]  ;;  %v10119_v59 = vld [vmem:[%s13644_s17 + $0x428] sm:$0xf0] }
 0x743   :  { %5317 = vmatpush.bf16.msrb.mxu2 %v8706_v4  ;;  %5330 = vmatpush.bf16.msrb.mxu3 %v8802_v5  ;;  %v9209_v4 = vld [vmem:[%s13644_s17 + $0x5a0] sm:$0xf]  ;;  %v10167_v5 = vld [vmem:[%s13644_s17 + $0x5a8] sm:$0xf0]  ;;  %v9018_v9 = vor.u32 %v10119_v59, %v9017_v58  ;;  %v8575_v58 = vld [vmem:[%s13644_s17 + $0xb4] sm:$0xf0] }
 0x744   :  { %v9210_v43 = vor.u32 %v10167_v5, %v9209_v4  ;;  %v10031_v59 = vld [vmem:[%s13644_s17 + $0x16c] sm:$0xf]  ;;  %v10004_v5 = vld [vmem:[%s13644_s17 + $0x94] sm:$0xf] }
 0x746   :  { %5292 = vmatpush.bf16.msrb.mxu0 %v8502_v15  ;;  %5305 = vmatpush.bf16.msrb.mxu1 %v8598_v19  ;;  %v10116_v15 = vld [vmem:[%s13644_s17 + $0x410] sm:$0xf0]  ;;  %v9114_v19 = vor.u32 %v10143_v22, %v9113_v62  ;;  %v8578_v22 = vor.u32 %v10007_v56, %v8575_v58 }
 0x747   :  { %5318 = vmatpush.bf16.msrb.mxu2 %v8694_v45  ;;  %5331 = vmatpush.bf16.msrb.mxu3 %v8790_v46  ;;  %v9006_v20 = vor.u32 %v10116_v15, %v9005_v63  ;;  %v10113_v45 = vld [vmem:[%s13644_s17 + $0x3f8] sm:$0xf0]  ;;  %v8898_v46 = vor.u32 %v10089_v23, %v8897_v21  ;;  %v8659_v63 = vld [vmem:[%s13644_s17 + $0x15c] sm:$0xf0] }
 0x748   :  { %v8994_v10 = vor.u32 %v10113_v45, %v8993_v24  ;;  %v8566_v45 = vor.u32 %v10004_v5, %v8563_v12  ;;  %v8530_v5 = vor.u32 %v9995_v50, %v8527_v51  ;;  %v9055_v50 = vld [vmem:[%s13644_s17 + $0x474] sm:$0xf0]  ;;  %v10037_v51 = vld [vmem:[%s13644_s17 + $0x19c] sm:$0xf] }
 0x74a   :  { %5293 = vmatpush.bf16.msrb.mxu0 %v8490_v28  ;;  %5306 = vmatpush.bf16.msrb.mxu1 %v8586_v16  ;;  %v9198_v28 = vor.u32 %v10164_v0, %v9197_v1  ;;  %v8885_v16 = vld [vmem:[%s13644_s17 + $0x318] sm:$0xf]  ;;  %v10025_v1 = vld [vmem:[%s13644_s17 + $0x13c] sm:$0xf] }
 0x74b   :  { %5319 = vmatpush.bf16.msrb.mxu2 %v8682_v38  ;;  %5332 = vmatpush.bf16.msrb.mxu3 %v8778_v3  ;;  %v8886_v30 = vor.u32 %v10086_v29, %v8885_v16  ;;  %v10161_v38 = vld [vmem:[%s13644_s17 + $0x578] sm:$0xf0] }
 0x74c   :  { %v9186_v3 = vor.u32 %v10161_v38, %v9185_v36  ;;  %v10076_v36 = vld [vmem:[%s13644_s17 + $0x2d4] sm:$0xf]  ;;  %v9998_v38 = vld [vmem:[%s13644_s17 + $0x64] sm:$0xf] }
 0x74e   :  { %5338 = vmatpush.bf16.msra.mxu0 %v8958_v18  ;;  %5351 = vmatpush.bf16.msra.mxu1 %v9054_v31  ;;  %v10110_v18 = vld [vmem:[%s13644_s17 + $0x3e0] sm:$0xf0] }
 0x74f   :  { %5364 = vmatpush.bf16.msra.mxu2 %v9150_v39  ;;  %5377 = vmatpush.bf16.msra.mxu3 %v9246_v17  ;;  %v8982_v31 = vor.u32 %v10110_v18, %v8981_v14  ;;  %v8873_v39 = vld [vmem:[%s13644_s17 + $0x300] sm:$0xf]  ;;  %v10083_v17 = vld [vmem:[%s13644_s17 + $0x308] sm:$0xf0]  ;;  %v8554_v14 = vor.u32 %v10001_v11, %v8551_v27 }
 0x750   :  { %v8874_v7 = vor.u32 %v10083_v17, %v8873_v39  ;;  %v8755_v18 = vld [vmem:[%s13644_s17 + $0x21c] sm:$0xf0]  ;;  %v10022_v39 = vld [vmem:[%s13644_s17 + $0x124] sm:$0xf]  ;;  %v8635_v17 = vld [vmem:[%s13644_s17 + $0x12c] sm:$0xf0] }
 0x752   :  { %5339 = vmatpush.bf16.msra.mxu0 %v8946_v41  ;;  %5352 = vmatpush.bf16.msra.mxu1 %v9042_v42  ;;  %v9077_v41 = vld [vmem:[%s13644_s17 + $0x498] sm:$0xf]  ;;  %v10134_v42 = vld [vmem:[%s13644_s17 + $0x4a0] sm:$0xf0] }
 0x753   :  { %5365 = vmatpush.bf16.msra.mxu2 %v9138_v49  ;;  %5378 = vmatpush.bf16.msra.mxu3 %v9234_v53  ;;  %v9078_v25 = vor.u32 %v10134_v42, %v9077_v41  ;;  %v9065_v49 = vld [vmem:[%s13644_s17 + $0x480] sm:$0xf]  ;;  %v10131_v53 = vld [vmem:[%s13644_s17 + $0x488] sm:$0xf0]  ;;  %v10049_v41 = vld [vmem:[%s13644_s17 + $0x1fc] sm:$0xf] }
 0x754   :  { %v9066_v40 = vor.u32 %v10131_v53, %v9065_v49  ;;  %v10073_v49 = vld [vmem:[%s13644_s17 + $0x2bc] sm:$0xf]  ;;  %v8839_v53 = vld [vmem:[%s13644_s17 + $0x2c4] sm:$0xf0] }
 0x755   :  { %v8842_v58 = vor.u32 %v10073_v49, %v8839_v53 }
 0x756   :  { %5340 = vmatpush.bf16.msra.mxu0 %v8934_v54  ;;  %5353 = vmatpush.bf16.msra.mxu1 %v9030_v55 }
 0x757   :  { %5366 = vmatpush.bf16.msra.mxu2 %v9126_v60  ;;  %5379 = vmatpush.bf16.msra.mxu3 %v9222_v61  ;;  %v8671_v60 = vld [vmem:[%s13644_s17 + $0x174] sm:$0xf0] }
 0x758   :  { %v8674_v4 = vor.u32 %v10031_v59, %v8671_v60  ;;  %v10046_v59 = vld [vmem:[%s13644_s17 + $0x1e4] sm:$0xf]  ;;  %v8731_v60 = vld [vmem:[%s13644_s17 + $0x1ec] sm:$0xf0] }
 0x75a   :  { %5341 = vmatpush.bf16.msra.mxu0 %v8922_v8  ;;  %5354 = vmatpush.bf16.msra.mxu1 %v9018_v9 }
 0x75b   :  { %5367 = vmatpush.bf16.msra.mxu2 %v9114_v19  ;;  %5380 = vmatpush.bf16.msra.mxu3 %v9210_v43  ;;  %v10055_v43 = vld [vmem:[%s13644_s17 + $0x22c] sm:$0xf] }
 0x75e   :  { %5342 = vmatpush.bf16.msra.mxu0 %v8910_v44  ;;  %5355 = vmatpush.bf16.msra.mxu1 %v9006_v20  ;;  %v8767_v44 = vld [vmem:[%s13644_s17 + $0x234] sm:$0xf0]  ;;  %v10079_v20 = vld [vmem:[%s13644_s17 + $0x2ec] sm:$0xf] }
 0x75f   :  { %5368 = vmatpush.bf16.msra.mxu2 %v9102_v2  ;;  %5381 = vmatpush.bf16.msra.mxu3 %v9198_v28  ;;  %v8647_v2 = vld [vmem:[%s13644_s17 + $0x144] sm:$0xf0]  ;;  %v8770_v16 = vor.u32 %v10055_v43, %v8767_v44 }
 0x760   :  { %v8650_v33 = vor.u32 %v10025_v1, %v8647_v2 }
 0x762   :  { %5343 = vmatpush.bf16.msra.mxu0 %v8898_v46  ;;  %5356 = vmatpush.bf16.msra.mxu1 %v8994_v10  ;;  %v8662_v46 = vor.u32 %v10028_v13, %v8659_v63  ;;  %v8863_v10 = vld [vmem:[%s13644_s17 + $0x2f4] sm:$0xf0]  ;;  %v9992_v13 = vld [vmem:[%s13644_s17 + $0x34] sm:$0xf]  ;;  %v8515_v63 = vld [vmem:[%s13644_s17 + $0x3c] sm:$0xf0] }
 0x763   :  { %5369 = vmatpush.bf16.msra.mxu2 %v9090_v37  ;;  %5382 = vmatpush.bf16.msra.mxu3 %v9186_v3  ;;  %v8866_v29 = vor.u32 %v10079_v20, %v8863_v10  ;;  %v8851_v37 = vld [vmem:[%s13644_s17 + $0x2dc] sm:$0xf0]  ;;  %v8539_v3 = vld [vmem:[%s13644_s17 + $0x6c] sm:$0xf0]  ;;  %v8734_v20 = vor.u32 %v10046_v59, %v8731_v60  ;;  %v8815_v10 = vld [vmem:[%s13644_s17 + $0x294] sm:$0xf0]  ;;  %v8518_v1 = vor.u32 %v9992_v13, %v8515_v63 }
 0x764   :  { %v8542_v48 = vor.u32 %v9998_v38, %v8539_v3  ;;  %v8707_v3 = vld [vmem:[%s13644_s17 + $0x1bc] sm:$0xf0]  ;;  %v10100_v60 = vld [vmem:[%s13644_s17 + $0x394] sm:$0xf]  ;;  %v10034_v63 = vld [vmem:[%s13644_s17 + $0x184] sm:$0xf] }
 0x765   :  { %v9043_v13 = vld [vmem:[%s13644_s17 + $0x45c] sm:$0xf0] }
 0x766   :  { %5344 = vmatpush.bf16.msra.mxu0 %v8886_v30  ;;  %5357 = vmatpush.bf16.msra.mxu1 %v8982_v31  ;;  %v10052_v30 = vld [vmem:[%s13644_s17 + $0x214] sm:$0xf] }
 0x767   :  { %5370 = vmatpush.bf16.msra.mxu2 %v9078_v25  ;;  %5383 = vmatpush.bf16.msra.mxu3 %v9174_v26  ;;  %v8758_v34 = vor.u32 %v10052_v30, %v8755_v18  ;;  %v8638_v25 = vor.u32 %v10022_v39, %v8635_v17  ;;  %v8743_v26 = vld [vmem:[%s13644_s17 + $0x204] sm:$0xf0]  ;;  %v10064_v39 = vld [vmem:[%s13644_s17 + $0x274] sm:$0xf]  ;;  %v8803_v17 = vld [vmem:[%s13644_s17 + $0x27c] sm:$0xf0] }
 0x768   :  { %v8599_v30 = vld [vmem:[%s13644_s17 + $0xe4] sm:$0xf0] }
 0x76a   :  { %5345 = vmatpush.bf16.msra.mxu0 %v8874_v7  ;;  %5358 = vmatpush.bf16.msra.mxu1 %v8970_v35  ;;  %v8854_v35 = vor.u32 %v10076_v36, %v8851_v37  ;;  %v10040_v36 = vld [vmem:[%s13644_s17 + $0x1b4] sm:$0xf] }
 0x76b   :  { %5371 = vmatpush.bf16.msra.mxu2 %v9066_v40  ;;  %5384 = vmatpush.bf16.msra.mxu3 %v9162_v52  ;;  %v10019_v52 = vld [vmem:[%s13644_s17 + $0x10c] sm:$0xf] }
 0x7a6   :  { %v3864_v54 = vpop.f32.mrf.mxu0  ;;  %v3877_v55 = vpop.f32.mrf.mxu1 }
 0x7a7   :  { %v3881_v57 = vpack.c.bf16 %v3877_v55, %v3864_v54  ;;  %v8623_v54 = vld [vmem:[%s13644_s17 + $0x114] sm:$0xf0] }
 0x7a8   :  { %v8626_v12 = vor.u32 %v10019_v52, %v8623_v54  ;;  %v8695_v52 = vld [vmem:[%s13644_s17 + $0x1a4] sm:$0xf0]  ;;  %v10061_v54 = vld [vmem:[%s13644_s17 + $0x25c] sm:$0xf] }
 0x7a9   :  { %v3979_v61 = vunpack.c.l.b16 %v3881_v57  ;;  %v3980_v62 = vunpack.c.h.b16 %v3881_v57  ;;  %v8746_v57 = vor.u32 %v10049_v41, %v8743_v26  ;;  %v10010_v41 = vld [vmem:[%s13644_s17 + $0xc4] sm:$0xf]  ;;  %v8806_v26 = vor.u32 %v10064_v39, %v8803_v17  ;;  %v9019_v17 = vld [vmem:[%s13644_s17 + $0x42c] sm:$0xf0] }
 0x7aa   :  { %v10118_v39 = vld [vmem:[%s13644_s17 + $0x424] sm:$0xf] }
 0x7ab   :  { %v12474_v8 = vpack.c.b16 %v3979_v61, %v3979_v61  ;;  %v12476_v9 = vpack.c.b16 %v3980_v62, %v3980_v62  ;;  %v10070_v61 = vld [vmem:[%s13644_s17 + $0x2a4] sm:$0xf]  ;;  %v8827_v62 = vld [vmem:[%s13644_s17 + $0x2ac] sm:$0xf0] }
 0x7ad   :  { %5294 = vmatmul.bf16.vlgmr.msrb.gmra.mxu0 %v12474_v8  ;;  %5307 = vmatmul.bf16.vlgmr.msrb.gmra.mxu1 %v12476_v9 }
 0x7ae   :  { %5390 = vmatpush.bf16.msrb.mxu0 %v8578_v22  ;;  %5403 = vmatpush.bf16.msrb.mxu1 %v8674_v4  ;;  %v3866_v23 = vpop.f32.mrf.mxu0  ;;  %v3879_v24 = vpop.f32.mrf.mxu1 }
 0x7af   :  { %v3896_v15 = vpop.f32.mrf.mxu2  ;;  %v3909_v19 = vpop.f32.mrf.mxu3  ;;  %v10043_v23 = vld [vmem:[%s13644_s17 + $0x1cc] sm:$0xf] }
 0x7b0   :  { %v3913_v21 = vpack.c.bf16 %v3909_v19, %v3896_v15  ;;  %v10016_v15 = vld [vmem:[%s13644_s17 + $0xf4] sm:$0xf]  ;;  %v8611_v19 = vld [vmem:[%s13644_s17 + $0xfc] sm:$0xf0] }
 0x7b1   :  { %v8614_v2 = vor.u32 %v10016_v15, %v8611_v19  ;;  %v8683_v15 = vld [vmem:[%s13644_s17 + $0x18c] sm:$0xf0]  ;;  %v10058_v19 = vld [vmem:[%s13644_s17 + $0x244] sm:$0xf] }
 0x7b2   :  { %v3986_v0 = vunpack.c.l.b16 %v3913_v21  ;;  %v3987_v28 = vunpack.c.h.b16 %v3913_v21  ;;  %5391 = vmatpush.bf16.msrb.mxu0 %v8566_v45  ;;  %5404 = vmatpush.bf16.msrb.mxu1 %v8662_v46  ;;  %v8830_v21 = vor.u32 %v10070_v61, %v8827_v62  ;;  %v8719_v45 = vld [vmem:[%s13644_s17 + $0x1d4] sm:$0xf0]  ;;  %v10067_v46 = vld [vmem:[%s13644_s17 + $0x28c] sm:$0xf]  ;;  %v8947_v61 = vld [vmem:[%s13644_s17 + $0x39c] sm:$0xf0] }
 0x7b3   :  { %v8722_v18 = vor.u32 %v10043_v23, %v8719_v45  ;;  %v10124_v62 = vld [vmem:[%s13644_s17 + $0x454] sm:$0xf]  ;;  %v9247_v23 = vld [vmem:[%s13644_s17 + $0x5f4] sm:$0xf0] }
 0x7b4   :  { %v12519_v31 = vpack.c.b16 %v3986_v0, %v3986_v0  ;;  %v12521_v32 = vpack.c.b16 %v3987_v28, %v3987_v28  ;;  %v9989_v0 = vld [vmem:[%s13644_s17 + $0x1c] sm:$0xf]  ;;  %v9046_v45 = vor.u32 %v10124_v62, %v9043_v13  ;;  %v9103_v13 = vld [vmem:[%s13644_s17 + $0x4d4] sm:$0xf0] }
 0x7b6   :  { %5320 = vmatmul.bf16.vlgmr.msrb.gmra.mxu2 %v12519_v31  ;;  %5333 = vmatmul.bf16.vlgmr.msrb.gmra.mxu3 %v12521_v32  ;;  %v3928_v42 = vpop.f32.mrf.mxu0  ;;  %v3941_v47 = vpop.f32.mrf.mxu1 }
 0x7b7   :  { %5416 = vmatpush.bf16.msrb.mxu2 %v8770_v16  ;;  %5429 = vmatpush.bf16.msrb.mxu3 %v8866_v29  ;;  %v3898_v6 = vpop.f32.mrf.mxu2  ;;  %v3911_v7 = vpop.f32.mrf.mxu3  ;;  %v3945_v40 = vpack.c.bf16 %v3941_v47, %v3928_v42  ;;  %v8503_v29 = vld [vmem:[%s13644_s17 + $0x24] sm:$0xf0]  ;;  %v8587_v42 = vld [vmem:[%s13644_s17 + $0xcc] sm:$0xf0]  ;;  %v10103_v47 = vld [vmem:[%s13644_s17 + $0x3ac] sm:$0xf] }
 0x7b8   :  { %5392 = vmatpush.bf16.msrb.mxu0 %v8554_v14  ;;  %5405 = vmatpush.bf16.msrb.mxu1 %v8650_v33  ;;  %v10013_v14 = vld [vmem:[%s13644_s17 + $0xdc] sm:$0xf]  ;;  %v8818_v33 = vor.u32 %v10067_v46, %v8815_v10  ;;  %v8506_v6 = vor.u32 %v9989_v0, %v8503_v29  ;;  %v8686_v10 = vor.u32 %v10034_v63, %v8683_v15  ;;  %v9139_v29 = vld [vmem:[%s13644_s17 + $0x51c] sm:$0xf0]  ;;  %v10163_v63 = vld [vmem:[%s13644_s17 + $0x58c] sm:$0xf] }
 0x7b9   :  { %v3993_v55 = vunpack.c.l.b16 %v3945_v40  ;;  %v3994_v56 = vunpack.c.h.b16 %v3945_v40  ;;  %v8602_v7 = vor.u32 %v10013_v14, %v8599_v30  ;;  %v10127_v40 = vld [vmem:[%s13644_s17 + $0x46c] sm:$0xf]  ;;  %v10097_v46 = vld [vmem:[%s13644_s17 + $0x37c] sm:$0xf]  ;;  %v10172_v14 = vld [vmem:[%s13644_s17 + $0x5d4] sm:$0xf] }
 0x7ba   :  { %v9058_v59 = vor.u32 %v10127_v40, %v9055_v50  ;;  %v9235_v30 = vld [vmem:[%s13644_s17 + $0x5dc] sm:$0xf0]  ;;  %v9199_v15 = vld [vmem:[%s13644_s17 + $0x594] sm:$0xf0] }
 0x7bb   :  { %5417 = vmatpush.bf16.msrb.mxu2 %v8758_v34  ;;  %5430 = vmatpush.bf16.msrb.mxu3 %v8854_v35  ;;  %v12579_v22 = vpack.c.b16 %v3993_v55, %v3993_v55  ;;  %v12581_v4 = vpack.c.b16 %v3994_v56, %v3994_v56  ;;  %v9986_v34 = vld [vmem:[%s13644_s17 + $0x4] sm:$0xf]  ;;  %v8491_v35 = vld [vmem:[%s13644_s17 + $0xc] sm:$0xf0]  ;;  %v8791_v55 = vld [vmem:[%s13644_s17 + $0x264] sm:$0xf0] }
 0x7bc   :  { %5393 = vmatpush.bf16.msrb.mxu0 %v8542_v48  ;;  %5406 = vmatpush.bf16.msrb.mxu1 %v8638_v25  ;;  %v8959_v48 = vld [vmem:[%s13644_s17 + $0x3b4] sm:$0xf0]  ;;  %v8710_v25 = vor.u32 %v10040_v36, %v8707_v3  ;;  %v8494_v56 = vor.u32 %v9986_v34, %v8491_v35  ;;  %v10094_v36 = vld [vmem:[%s13644_s17 + $0x364] sm:$0xf]  ;;  %v8923_v3 = vld [vmem:[%s13644_s17 + $0x36c] sm:$0xf0] }
 0x7bd   :  { %5346 = vmatmul.bf16.vlgmr.msra.gmra.mxu0 %v12579_v22  ;;  %5359 = vmatmul.bf16.vlgmr.msra.gmra.mxu1 %v12581_v4  ;;  %v10145_v34 = vld [vmem:[%s13644_s17 + $0x4fc] sm:$0xf]  ;;  %v9127_v35 = vld [vmem:[%s13644_s17 + $0x504] sm:$0xf0] }
 0x7be   :  { %v3930_v11 = vpop.f32.mrf.mxu0  ;;  %v3943_v27 = vpop.f32.mrf.mxu1  ;;  %v9130_v40 = vor.u32 %v10145_v34, %v9127_v35 }
 0x7bf   :  { %5418 = vmatpush.bf16.msrb.mxu2 %v8746_v57  ;;  %5431 = vmatpush.bf16.msrb.mxu3 %v8842_v58  ;;  %v3960_v43 = vpop.f32.mrf.mxu2  ;;  %v3973_v44 = vpop.f32.mrf.mxu3  ;;  %v8590_v57 = vor.u32 %v10010_v41, %v8587_v42  ;;  %v8962_v58 = vor.u32 %v10103_v47, %v8959_v48  ;;  %v8935_v27 = vld [vmem:[%s13644_s17 + $0x384] sm:$0xf0]  ;;  %v10169_v41 = vld [vmem:[%s13644_s17 + $0x5bc] sm:$0xf]  ;;  %v8926_v47 = vor.u32 %v10094_v36, %v8923_v3  ;;  %v8677_v36 = vld [vmem:[%s13644_s17 + $0x170] sm:$0xf] }
 0x7c0   :  { %v3977_v24 = vpack.c.bf16 %v3973_v44, %v3960_v43  ;;  %5394 = vmatpush.bf16.msrb.mxu0 %v8530_v5  ;;  %5407 = vmatpush.bf16.msrb.mxu1 %v8626_v12  ;;  %v8698_v5 = vor.u32 %v10037_v51, %v8695_v52  ;;  %v8794_v12 = vor.u32 %v10061_v54, %v8791_v55  ;;  %v8779_v43 = vld [vmem:[%s13644_s17 + $0x24c] sm:$0xf0]  ;;  %v10151_v44 = vld [vmem:[%s13644_s17 + $0x52c] sm:$0xf]  ;;  %v9223_v42 = vld [vmem:[%s13644_s17 + $0x5c4] sm:$0xf0] }
 0x7c1   :  { %v8782_v11 = vor.u32 %v10058_v19, %v8779_v43  ;;  %v9022_v48 = vor.u32 %v10118_v39, %v9019_v17  ;;  %v9226_v50 = vor.u32 %v10169_v41, %v9223_v42  ;;  %v10142_v51 = vld [vmem:[%s13644_s17 + $0x4e4] sm:$0xf]  ;;  %v9115_v52 = vld [vmem:[%s13644_s17 + $0x4ec] sm:$0xf0]  ;;  %v10033_v3 = vld [vmem:[%s13644_s17 + $0x178] sm:$0xf0] }
 0x7c2   :  { %v4000_v28 = vunpack.c.l.b16 %v3977_v24  ;;  %v4001_v16 = vunpack.c.h.b16 %v3977_v24  ;;  %v8950_v24 = vor.u32 %v10100_v60, %v8947_v61  ;;  %v10166_v54 = vld [vmem:[%s13644_s17 + $0x5a4] sm:$0xf]  ;;  %v9211_v55 = vld [vmem:[%s13644_s17 + $0x5ac] sm:$0xf0]  ;;  %v10112_v60 = vld [vmem:[%s13644_s17 + $0x3f4] sm:$0xf]  ;;  %v9118_v62 = vor.u32 %v10142_v51, %v9115_v52 }
 0x7c3   :  { %5419 = vmatpush.bf16.msrb.mxu2 %v8734_v20  ;;  %5432 = vmatpush.bf16.msrb.mxu3 %v8830_v21  ;;  %v9151_v20 = vld [vmem:[%s13644_s17 + $0x534] sm:$0xf0]  ;;  %v10175_v21 = vld [vmem:[%s13644_s17 + $0x5ec] sm:$0xf]  ;;  %v8995_v61 = vld [vmem:[%s13644_s17 + $0x3fc] sm:$0xf0]  ;;  %v8678_v42 = vor.u32 %v10033_v3, %v8677_v36 }
 0x7c4   :  { %v12624_v37 = vpack.c.b16 %v4000_v28, %v4000_v28  ;;  %v12626_v38 = vpack.c.b16 %v4001_v16, %v4001_v16  ;;  %5395 = vmatpush.bf16.msrb.mxu0 %v8518_v1  ;;  %5408 = vmatpush.bf16.msrb.mxu1 %v8614_v2  ;;  %v10121_v1 = vld [vmem:[%s13644_s17 + $0x43c] sm:$0xf]  ;;  %v9031_v2 = vld [vmem:[%s13644_s17 + $0x444] sm:$0xf0]  ;;  %v9154_v0 = vor.u32 %v10151_v44, %v9151_v20  ;;  %v10148_v16 = vld [vmem:[%s13644_s17 + $0x514] sm:$0xf] }
 0x7c5   :  { %v9250_v28 = vor.u32 %v10175_v21, %v9247_v23  ;;  %v8998_v43 = vor.u32 %v10112_v60, %v8995_v61  ;;  %v10085_v44 = vld [vmem:[%s13644_s17 + $0x31c] sm:$0xf]  ;;  %v8887_v20 = vld [vmem:[%s13644_s17 + $0x324] sm:$0xf0]  ;;  %v10154_v51 = vld [vmem:[%s13644_s17 + $0x544] sm:$0xf] }
 0x7c6   :  { %5372 = vmatmul.bf16.vlgmr.msra.gmra.mxu2 %v12624_v37  ;;  %5385 = vmatmul.bf16.vlgmr.msra.gmra.mxu3 %v12626_v38  ;;  %v10109_v21 = vld [vmem:[%s13644_s17 + $0x3dc] sm:$0xf]  ;;  %v8983_v23 = vld [vmem:[%s13644_s17 + $0x3e4] sm:$0xf0]  ;;  %v9163_v52 = vld [vmem:[%s13644_s17 + $0x54c] sm:$0xf0] }
 0x7c7   :  { %5420 = vmatpush.bf16.msrb.mxu2 %v8722_v18  ;;  %5433 = vmatpush.bf16.msrb.mxu3 %v8818_v33  ;;  %v3962_v49 = vpop.f32.mrf.mxu2  ;;  %v3975_v53 = vpop.f32.mrf.mxu3  ;;  %v8938_v18 = vor.u32 %v10097_v46, %v8935_v27  ;;  %v9034_v33 = vor.u32 %v10121_v1, %v9031_v2  ;;  %v10136_v46 = vld [vmem:[%s13644_s17 + $0x4b4] sm:$0xf]  ;;  %v9187_v27 = vld [vmem:[%s13644_s17 + $0x57c] sm:$0xf0]  ;;  %v8890_v1 = vor.u32 %v10085_v44, %v8887_v20  ;;  %v10133_v39 = vld [vmem:[%s13644_s17 + $0x49c] sm:$0xf] }
 0x7c8   :  { %5396 = vmatpush.bf16.msrb.mxu0 %v8506_v6  ;;  %5409 = vmatpush.bf16.msrb.mxu1 %v8602_v7  ;;  %v9142_v6 = vor.u32 %v10148_v16, %v9139_v29  ;;  %v9238_v7 = vor.u32 %v10172_v14, %v9235_v30  ;;  %v10115_v49 = vld [vmem:[%s13644_s17 + $0x40c] sm:$0xf]  ;;  %v9007_v53 = vld [vmem:[%s13644_s17 + $0x414] sm:$0xf0]  ;;  %v8986_v2 = vor.u32 %v10109_v21, %v8983_v23  ;;  %v10106_v16 = vld [vmem:[%s13644_s17 + $0x3c4] sm:$0xf] }
 0x7c9   :  { %v8971_v29 = vld [vmem:[%s13644_s17 + $0x3cc] sm:$0xf0]  ;;  %v10009_v30 = vld [vmem:[%s13644_s17 + $0xb8] sm:$0xf0]  ;;  %v9079_v17 = vld [vmem:[%s13644_s17 + $0x4a4] sm:$0xf0]  ;;  %v9166_v61 = vor.u32 %v10154_v51, %v9163_v52 }
 0x7ca   :  { %v8581_v14 = vld [vmem:[%s13644_s17 + $0xb0] sm:$0xf]  ;;  %v8974_v35 = vor.u32 %v10106_v16, %v8971_v29  ;;  %v8857_v44 = vld [vmem:[%s13644_s17 + $0x2d8] sm:$0xf]  ;;  %v10078_v20 = vld [vmem:[%s13644_s17 + $0x2e0] sm:$0xf0] }
 0x7cb   :  { %5421 = vmatpush.bf16.msrb.mxu2 %v8710_v25  ;;  %5434 = vmatpush.bf16.msrb.mxu3 %v8806_v26  ;;  %v10091_v25 = vld [vmem:[%s13644_s17 + $0x34c] sm:$0xf]  ;;  %v8911_v26 = vld [vmem:[%s13644_s17 + $0x354] sm:$0xf0]  ;;  %v8582_v41 = vor.u32 %v10009_v30, %v8581_v14  ;;  %v8533_v14 = vld [vmem:[%s13644_s17 + $0x50] sm:$0xf] }
 0x7cc   :  { %5397 = vmatpush.bf16.msrb.mxu0 %v8494_v56  ;;  %5410 = vmatpush.bf16.msrb.mxu1 %v8590_v57  ;;  %v8914_v56 = vor.u32 %v10091_v25, %v8911_v26  ;;  %v9010_v57 = vor.u32 %v10115_v49, %v9007_v53  ;;  %v8665_v25 = vld [vmem:[%s13644_s17 + $0x158] sm:$0xf]  ;;  %v9082_v26 = vor.u32 %v10133_v39, %v9079_v17  ;;  %v10030_v53 = vld [vmem:[%s13644_s17 + $0x160] sm:$0xf0]  ;;  %v9997_v30 = vld [vmem:[%s13644_s17 + $0x58] sm:$0xf0] }
 0x7cd   :  { %v8629_v36 = vld [vmem:[%s13644_s17 + $0x110] sm:$0xf]  ;;  %v10021_v3 = vld [vmem:[%s13644_s17 + $0x118] sm:$0xf0]  ;;  %v8737_v39 = vld [vmem:[%s13644_s17 + $0x1e8] sm:$0xf] }
 0x7ce   :  { %v10048_v17 = vld [vmem:[%s13644_s17 + $0x1f0] sm:$0xf0] }
 0x7cf   :  { %5422 = vmatpush.bf16.msrb.mxu2 %v8698_v5  ;;  %5435 = vmatpush.bf16.msrb.mxu3 %v8794_v12  ;;  %v9214_v5 = vor.u32 %v10166_v54, %v9211_v55  ;;  %v10139_v12 = vld [vmem:[%s13644_s17 + $0x4cc] sm:$0xf]  ;;  %v8773_v54 = vld [vmem:[%s13644_s17 + $0x230] sm:$0xf]  ;;  %v10057_v55 = vld [vmem:[%s13644_s17 + $0x238] sm:$0xf0] }
 0x7d0   :  { %5442 = vmatpush.bf16.msra.mxu0 %v8962_v58  ;;  %5455 = vmatpush.bf16.msra.mxu1 %v9058_v59  ;;  %v10088_v58 = vld [vmem:[%s13644_s17 + $0x334] sm:$0xf]  ;;  %v8899_v59 = vld [vmem:[%s13644_s17 + $0x33c] sm:$0xf0] }
 0x7d1   :  { %5398 = vmatmul.bf16.vlgmr.msrb.gmra.mxu0 %v12474_v8  ;;  %5411 = vmatmul.bf16.vlgmr.msrb.gmra.mxu1 %v12476_v9  ;;  %v8902_v19 = vor.u32 %v10088_v58, %v8899_v59  ;;  %v8666_v59 = vor.u32 %v10030_v53, %v8665_v25  ;;  %v8617_v25 = vld [vmem:[%s13644_s17 + $0xf8] sm:$0xf]  ;;  %v10045_v53 = vld [vmem:[%s13644_s17 + $0x1d8] sm:$0xf0] }
 0x7d3   :  { %5423 = vmatpush.bf16.msrb.mxu2 %v8686_v10  ;;  %5436 = vmatpush.bf16.msrb.mxu3 %v8782_v11  ;;  %v9091_v10 = vld [vmem:[%s13644_s17 + $0x4bc] sm:$0xf0]  ;;  %v10160_v11 = vld [vmem:[%s13644_s17 + $0x574] sm:$0xf] }
 0x7d4   :  { %5443 = vmatpush.bf16.msra.mxu0 %v8950_v24  ;;  %5456 = vmatpush.bf16.msra.mxu1 %v9046_v45  ;;  %v9106_v24 = vor.u32 %v10139_v12, %v9103_v13  ;;  %v9202_v45 = vor.u32 %v10163_v63, %v9199_v15  ;;  %v8774_v12 = vor.u32 %v10057_v55, %v8773_v54  ;;  %v8653_v63 = vld [vmem:[%s13644_s17 + $0x140] sm:$0xf]  ;;  %v10027_v15 = vld [vmem:[%s13644_s17 + $0x148] sm:$0xf0] }
 0x7d5   :  { %v8654_v23 = vor.u32 %v10027_v15, %v8653_v63  ;;  %v8509_v54 = vld [vmem:[%s13644_s17 + $0x20] sm:$0xf]  ;;  %v9991_v55 = vld [vmem:[%s13644_s17 + $0x28] sm:$0xf0]  ;;  %v8497_v63 = vld [vmem:[%s13644_s17 + $0x8] sm:$0xf] }
 0x7d6   :  { %5424 = vmatmul.bf16.vlgmr.msrb.gmra.mxu2 %v12519_v31  ;;  %5437 = vmatmul.bf16.vlgmr.msrb.gmra.mxu3 %v12521_v32  ;;  %v9988_v15 = vld [vmem:[%s13644_s17 + $0x10] sm:$0xf0] }
 0x7d7   :  { %5468 = vmatpush.bf16.msra.mxu2 %v9154_v0  ;;  %5481 = vmatpush.bf16.msra.mxu3 %v9250_v28  ;;  %v10082_v0 = vld [vmem:[%s13644_s17 + $0x304] sm:$0xf]  ;;  %v8875_v28 = vld [vmem:[%s13644_s17 + $0x30c] sm:$0xf0] }
 0x7d8   :  { %5444 = vmatpush.bf16.msra.mxu0 %v8938_v18  ;;  %5457 = vmatpush.bf16.msra.mxu1 %v9034_v33  ;;  %v9094_v18 = vor.u32 %v10136_v46, %v9091_v10  ;;  %v9190_v33 = vor.u32 %v10160_v11, %v9187_v27  ;;  %v8878_v34 = vor.u32 %v10082_v0, %v8875_v28  ;;  %v8641_v11 = vld [vmem:[%s13644_s17 + $0x128] sm:$0xf]  ;;  %v10024_v27 = vld [vmem:[%s13644_s17 + $0x130] sm:$0xf0]  ;;  %v8845_v0 = vld [vmem:[%s13644_s17 + $0x2c0] sm:$0xf] }
 0x7d9   :  { %v8858_v10 = vor.u32 %v10078_v20, %v8857_v44  ;;  %v10075_v28 = vld [vmem:[%s13644_s17 + $0x2c8] sm:$0xf0]  ;;  %v8642_v29 = vor.u32 %v10024_v27, %v8641_v11  ;;  %v10012_v20 = vld [vmem:[%s13644_s17 + $0xd0] sm:$0xf0]  ;;  %v8797_v11 = vld [vmem:[%s13644_s17 + $0x260] sm:$0xf] }
 0x7da   :  { %v10063_v27 = vld [vmem:[%s13644_s17 + $0x268] sm:$0xf0] }
 0x7db   :  { %5469 = vmatpush.bf16.msra.mxu2 %v9142_v6  ;;  %5482 = vmatpush.bf16.msra.mxu3 %v9238_v7  ;;  %v10157_v6 = vld [vmem:[%s13644_s17 + $0x55c] sm:$0xf]  ;;  %v9175_v7 = vld [vmem:[%s13644_s17 + $0x564] sm:$0xf0] }
 0x7dc   :  { %5445 = vmatpush.bf16.msra.mxu0 %v8926_v47  ;;  %5458 = vmatpush.bf16.msra.mxu1 %v9022_v48  ;;  %v8569_v47 = vld [vmem:[%s13644_s17 + $0x98] sm:$0xf]  ;;  %v10006_v48 = vld [vmem:[%s13644_s17 + $0xa0] sm:$0xf0]  ;;  %v9178_v49 = vor.u32 %v10157_v6, %v9175_v7  ;;  %v8833_v6 = vld [vmem:[%s13644_s17 + $0x2a8] sm:$0xf] }
 0x7dd   :  { %v8570_v58 = vor.u32 %v10006_v48, %v8569_v47  ;;  %v10072_v7 = vld [vmem:[%s13644_s17 + $0x2b0] sm:$0xf0]  ;;  %v8738_v47 = vor.u32 %v10048_v17, %v8737_v39  ;;  %v8785_v39 = vld [vmem:[%s13644_s17 + $0x248] sm:$0xf] }
 0x7de   :  { %v8834_v48 = vor.u32 %v10072_v7, %v8833_v6  ;;  %v10060_v17 = vld [vmem:[%s13644_s17 + $0x250] sm:$0xf0]  ;;  %v9157_v6 = vld [vmem:[%s13644_s17 + $0x530] sm:$0xf]  ;;  %v10153_v7 = vld [vmem:[%s13644_s17 + $0x538] sm:$0xf0] }
 0x7df   :  { %5470 = vmatpush.bf16.msra.mxu2 %v9130_v40  ;;  %5483 = vmatpush.bf16.msra.mxu3 %v9226_v50  ;;  %v10130_v40 = vld [vmem:[%s13644_s17 + $0x484] sm:$0xf]  ;;  %v9067_v50 = vld [vmem:[%s13644_s17 + $0x48c] sm:$0xf0] }
 0x7e0   :  { %5446 = vmatpush.bf16.msra.mxu0 %v8914_v56  ;;  %5459 = vmatpush.bf16.msra.mxu1 %v9010_v57  ;;  %v8869_v56 = vld [vmem:[%s13644_s17 + $0x2f0] sm:$0xf]  ;;  %v10081_v57 = vld [vmem:[%s13644_s17 + $0x2f8] sm:$0xf0]  ;;  %v9070_v60 = vor.u32 %v10130_v40, %v9067_v50 }
 0x7e1   :  { %v8870_v13 = vor.u32 %v10081_v57, %v8869_v56  ;;  %v8821_v40 = vld [vmem:[%s13644_s17 + $0x290] sm:$0xf]  ;;  %v10069_v50 = vld [vmem:[%s13644_s17 + $0x298] sm:$0xf0] }
 0x7e2   :  { %v8822_v57 = vor.u32 %v10069_v50, %v8821_v40  ;;  %v9037_v40 = vld [vmem:[%s13644_s17 + $0x440] sm:$0xf]  ;;  %v10123_v50 = vld [vmem:[%s13644_s17 + $0x448] sm:$0xf0] }
 0x7e3   :  { %5471 = vmatpush.bf16.msra.mxu2 %v9118_v62  ;;  %5484 = vmatpush.bf16.msra.mxu3 %v9214_v5  ;;  %v8557_v62 = vld [vmem:[%s13644_s17 + $0x80] sm:$0xf]  ;;  %v10003_v5 = vld [vmem:[%s13644_s17 + $0x88] sm:$0xf0] }
 0x7e4   :  { %5447 = vmatpush.bf16.msra.mxu0 %v8902_v19  ;;  %5460 = vmatpush.bf16.msra.mxu1 %v8998_v43  ;;  %v8761_v19 = vld [vmem:[%s13644_s17 + $0x218] sm:$0xf]  ;;  %v10054_v43 = vld [vmem:[%s13644_s17 + $0x220] sm:$0xf0]  ;;  %v8558_v21 = vor.u32 %v10003_v5, %v8557_v62 }
 0x7e5   :  { %v8762_v46 = vor.u32 %v10054_v43, %v8761_v19  ;;  %v8809_v62 = vld [vmem:[%s13644_s17 + $0x278] sm:$0xf]  ;;  %v10066_v5 = vld [vmem:[%s13644_s17 + $0x280] sm:$0xf0]  ;;  %v8593_v19 = vld [vmem:[%s13644_s17 + $0xc8] sm:$0xf] }
 0x7e6   :  { %v8810_v44 = vor.u32 %v10066_v5, %v8809_v62  ;;  %v9133_v62 = vld [vmem:[%s13644_s17 + $0x500] sm:$0xf]  ;;  %v10147_v5 = vld [vmem:[%s13644_s17 + $0x508] sm:$0xf0] }
 0x7e7   :  { %5472 = vmatpush.bf16.msra.mxu2 %v9106_v24  ;;  %5485 = vmatpush.bf16.msra.mxu3 %v9202_v45  ;;  %v8545_v24 = vld [vmem:[%s13644_s17 + $0x68] sm:$0xf]  ;;  %v10000_v45 = vld [vmem:[%s13644_s17 + $0x70] sm:$0xf0] }
 0x7e8   :  { %5448 = vmatpush.bf16.msra.mxu0 %v8890_v1  ;;  %5461 = vmatpush.bf16.msra.mxu1 %v8986_v2  ;;  %v8749_v1 = vld [vmem:[%s13644_s17 + $0x200] sm:$0xf]  ;;  %v10051_v2 = vld [vmem:[%s13644_s17 + $0x208] sm:$0xf0]  ;;  %v8546_v16 = vor.u32 %v10000_v45, %v8545_v24  ;;  %v9061_v24 = vld [vmem:[%s13644_s17 + $0x470] sm:$0xf] }
 0x7e9   :  { %v10129_v45 = vld [vmem:[%s13644_s17 + $0x478] sm:$0xf0] }
 0x7eb   :  { %5473 = vmatpush.bf16.msra.mxu2 %v9094_v18  ;;  %5486 = vmatpush.bf16.msra.mxu3 %v9190_v33  ;;  %v8750_v18 = vor.u32 %v10051_v2, %v8749_v1  ;;  %v8846_v33 = vor.u32 %v10075_v28, %v8845_v0  ;;  %v8498_v1 = vor.u32 %v9988_v15, %v8497_v63 }
 0x7ec   :  { %5449 = vmatpush.bf16.msra.mxu0 %v8878_v34  ;;  %5462 = vmatpush.bf16.msra.mxu1 %v8974_v35  ;;  %v8534_v34 = vor.u32 %v9997_v30, %v8533_v14  ;;  %v8630_v35 = vor.u32 %v10021_v3, %v8629_v36  ;;  %v8594_v2 = vor.u32 %v10012_v20, %v8593_v19  ;;  %v9049_v14 = vld [vmem:[%s13644_s17 + $0x458] sm:$0xf]  ;;  %v8689_v36 = vld [vmem:[%s13644_s17 + $0x188] sm:$0xf]  ;;  %v10036_v3 = vld [vmem:[%s13644_s17 + $0x190] sm:$0xf0] }
 0x7ed   :  { %v9062_v28 = vor.u32 %v10129_v45, %v9061_v24  ;;  %v8917_v19 = vld [vmem:[%s13644_s17 + $0x350] sm:$0xf]  ;;  %v9217_v24 = vld [vmem:[%s13644_s17 + $0x5a8] sm:$0xf]  ;;  %v10168_v45 = vld [vmem:[%s13644_s17 + $0x5b0] sm:$0xf0] }
 0x7ef   :  { %5474 = vmatpush.bf16.msra.mxu2 %v9082_v26  ;;  %5487 = vmatpush.bf16.msra.mxu3 %v9178_v49  ;;  %v10018_v26 = vld [vmem:[%s13644_s17 + $0x100] sm:$0xf0]  ;;  %v8725_v49 = vld [vmem:[%s13644_s17 + $0x1d0] sm:$0xf] }
 0x7f0   :  { %5494 = vmatpush.bf16.msrb.mxu0 %v8582_v41  ;;  %5507 = vmatpush.bf16.msrb.mxu1 %v8678_v42  ;;  %v8521_v41 = vld [vmem:[%s13644_s17 + $0x38] sm:$0xf]  ;;  %v9994_v42 = vld [vmem:[%s13644_s17 + $0x40] sm:$0xf0]  ;;  %v8618_v52 = vor.u32 %v10018_v26, %v8617_v25  ;;  %v8726_v56 = vor.u32 %v10045_v53, %v8725_v49  ;;  %v8941_v25 = vld [vmem:[%s13644_s17 + $0x380] sm:$0xf]  ;;  %v9158_v49 = vor.u32 %v10153_v7, %v9157_v6 }
 0x7f1   :  { %5450 = vmatmul.bf16.vlgmr.msra.gmra.mxu0 %v12579_v22  ;;  %5463 = vmatmul.bf16.vlgmr.msra.gmra.mxu1 %v12581_v4  ;;  %v8522_v51 = vor.u32 %v9994_v42, %v8521_v41  ;;  %v10099_v26 = vld [vmem:[%s13644_s17 + $0x388] sm:$0xf0]  ;;  %v8989_v6 = vld [vmem:[%s13644_s17 + $0x3e0] sm:$0xf] }
 0x7f2   :  { %v10111_v7 = vld [vmem:[%s13644_s17 + $0x3e8] sm:$0xf0] }
 0x7f3   :  { %5475 = vmatpush.bf16.msra.mxu2 %v9070_v60  ;;  %5488 = vmatpush.bf16.msra.mxu3 %v9166_v61  ;;  %v8713_v60 = vld [vmem:[%s13644_s17 + $0x1b8] sm:$0xf]  ;;  %v10042_v61 = vld [vmem:[%s13644_s17 + $0x1c0] sm:$0xf0] }
 0x7f4   :  { %5495 = vmatpush.bf16.msrb.mxu0 %v8570_v58  ;;  %5508 = vmatpush.bf16.msrb.mxu1 %v8666_v59  ;;  %v8605_v58 = vld [vmem:[%s13644_s17 + $0xe0] sm:$0xf]  ;;  %v10015_v59 = vld [vmem:[%s13644_s17 + $0xe8] sm:$0xf0]  ;;  %v8714_v43 = vor.u32 %v10042_v61, %v8713_v60  ;;  %v9025_v60 = vld [vmem:[%s13644_s17 + $0x428] sm:$0xf] }
 0x7f5   :  { %v10120_v61 = vld [vmem:[%s13644_s17 + $0x430] sm:$0xf0] }
 0x7f6   :  { %5476 = vmatmul.bf16.vlgmr.msra.gmra.mxu2 %v12624_v37  ;;  %5489 = vmatmul.bf16.vlgmr.msra.gmra.mxu3 %v12626_v38  ;;  %v9026_v15 = vor.u32 %v10120_v61, %v9025_v60  ;;  %v9169_v60 = vld [vmem:[%s13644_s17 + $0x548] sm:$0xf]  ;;  %v10156_v61 = vld [vmem:[%s13644_s17 + $0x550] sm:$0xf0] }
 0x7f7   :  { %5520 = vmatpush.bf16.msrb.mxu2 %v8774_v12  ;;  %5533 = vmatpush.bf16.msrb.mxu3 %v8870_v13  ;;  %v8510_v12 = vor.u32 %v9991_v55, %v8509_v54  ;;  %v8606_v13 = vor.u32 %v10015_v59, %v8605_v58  ;;  %v8942_v54 = vor.u32 %v10099_v26, %v8941_v25  ;;  %v8881_v25 = vld [vmem:[%s13644_s17 + $0x308] sm:$0xf]  ;;  %v10084_v26 = vld [vmem:[%s13644_s17 + $0x310] sm:$0xf0] }
 0x7f8   :  { %5496 = vmatpush.bf16.msrb.mxu0 %v8558_v21  ;;  %5509 = vmatpush.bf16.msrb.mxu1 %v8654_v23  ;;  %v8965_v21 = vld [vmem:[%s13644_s17 + $0x3b0] sm:$0xf]  ;;  %v10105_v23 = vld [vmem:[%s13644_s17 + $0x3b8] sm:$0xf0]  ;;  %v9038_v55 = vor.u32 %v10123_v50, %v9037_v40  ;;  %v8977_v40 = vld [vmem:[%s13644_s17 + $0x3c8] sm:$0xf] }
 0x7f9   :  { %v8966_v0 = vor.u32 %v10105_v23, %v8965_v21  ;;  %v9121_v21 = vld [vmem:[%s13644_s17 + $0x4e8] sm:$0xf]  ;;  %v10144_v23 = vld [vmem:[%s13644_s17 + $0x4f0] sm:$0xf0] }
 0x7fa   :  { %v10108_v50 = vld [vmem:[%s13644_s17 + $0x3d0] sm:$0xf0] }
 0x7fb   :  { %5521 = vmatpush.bf16.msrb.mxu2 %v8762_v46  ;;  %5534 = vmatpush.bf16.msrb.mxu3 %v8858_v10  ;;  %v8701_v46 = vld [vmem:[%s13644_s17 + $0x1a0] sm:$0xf]  ;;  %v10039_v10 = vld [vmem:[%s13644_s17 + $0x1a8] sm:$0xf0] }
 0x7fc   :  { %5497 = vmatpush.bf16.msrb.mxu0 %v8546_v16  ;;  %5510 = vmatpush.bf16.msrb.mxu1 %v8642_v29  ;;  %v8953_v16 = vld [vmem:[%s13644_s17 + $0x398] sm:$0xf]  ;;  %v10102_v29 = vld [vmem:[%s13644_s17 + $0x3a0] sm:$0xf0]  ;;  %v8702_v30 = vor.u32 %v10039_v10, %v8701_v46 }
 0x7fd   :  { %v8954_v41 = vor.u32 %v10102_v29, %v8953_v16  ;;  %v9109_v16 = vld [vmem:[%s13644_s17 + $0x4d0] sm:$0xf]  ;;  %v10141_v29 = vld [vmem:[%s13644_s17 + $0x4d8] sm:$0xf0] }
 0x7ff   :  { %5522 = vmatpush.bf16.msrb.mxu2 %v8750_v18  ;;  %5535 = vmatpush.bf16.msrb.mxu3 %v8846_v33  ;;  %v8798_v18 = vor.u32 %v10063_v27, %v8797_v11  ;;  %v10126_v33 = vld [vmem:[%s13644_s17 + $0x460] sm:$0xf0]  ;;  %v8905_v11 = vld [vmem:[%s13644_s17 + $0x338] sm:$0xf] }
 0x800   :  { %5498 = vmatpush.bf16.msrb.mxu0 %v8534_v34  ;;  %5511 = vmatpush.bf16.msrb.mxu1 %v8630_v35  ;;  %v9253_v34 = vld [vmem:[%s13644_s17 + $0x5f0] sm:$0xf]  ;;  %v10177_v35 = vld [vmem:[%s13644_s17 + $0x5f8] sm:$0xf0]  ;;  %v9050_v42 = vor.u32 %v10126_v33, %v9049_v14  ;;  %v10090_v27 = vld [vmem:[%s13644_s17 + $0x340] sm:$0xf0] }
 0x801   :  { %v9254_v53 = vor.u32 %v10177_v35, %v9253_v34  ;;  %v9205_v14 = vld [vmem:[%s13644_s17 + $0x590] sm:$0xf]  ;;  %v9097_v34 = vld [vmem:[%s13644_s17 + $0x4b8] sm:$0xf]  ;;  %v10138_v35 = vld [vmem:[%s13644_s17 + $0x4c0] sm:$0xf0] }
 0x803   :  { %5523 = vmatpush.bf16.msrb.mxu2 %v8738_v47  ;;  %5536 = vmatpush.bf16.msrb.mxu3 %v8834_v48  ;;  %v8690_v47 = vor.u32 %v10036_v3, %v8689_v36  ;;  %v8786_v48 = vor.u32 %v10060_v17, %v8785_v39  ;;  %v8893_v36 = vld [vmem:[%s13644_s17 + $0x320] sm:$0xf]  ;;  %v10087_v3 = vld [vmem:[%s13644_s17 + $0x328] sm:$0xf0]  ;;  %v9110_v39 = vor.u32 %v10141_v29, %v9109_v16  ;;  %v5648_v29 = vld [vmem:[#allocation17 + $0x8] sm:$0xff] }
 0x804   :  { %5499 = vmatpush.bf16.msrb.mxu0 %v8522_v51  ;;  %5512 = vmatpush.bf16.msrb.mxu1 %v8618_v52  ;;  %v9145_v51 = vld [vmem:[%s13644_s17 + $0x518] sm:$0xf]  ;;  %v10174_v52 = vld [vmem:[%s13644_s17 + $0x5e0] sm:$0xf0] }
 0x807   :  { %5524 = vmatpush.bf16.msrb.mxu2 %v8726_v56  ;;  %5537 = vmatpush.bf16.msrb.mxu3 %v8822_v57  ;;  %v8929_v56 = vld [vmem:[%s13644_s17 + $0x368] sm:$0xf]  ;;  %v10096_v57 = vld [vmem:[%s13644_s17 + $0x370] sm:$0xf0] }
 0x808   :  { %5500 = vmatpush.bf16.msrb.mxu0 %v8510_v12  ;;  %5513 = vmatpush.bf16.msrb.mxu1 %v8606_v13  ;;  %v9229_v12 = vld [vmem:[%s13644_s17 + $0x5c0] sm:$0xf]  ;;  %v10171_v13 = vld [vmem:[%s13644_s17 + $0x5c8] sm:$0xf0]  ;;  %v8930_v63 = vor.u32 %v10096_v57, %v8929_v56 }
 0x809   :  { %v9230_v20 = vor.u32 %v10171_v13, %v9229_v12  ;;  %v9170_v12 = vor.u32 %v10156_v61, %v9169_v60  ;;  %v5661_v13 = vld [vmem:[#allocation17 + $0x70] sm:$0xff] }
 0x80a   :  { %v5673_v60 = vld [vmem:[#allocation17 + $0xd0] sm:$0xff] }
 0x80b   :  { %5525 = vmatpush.bf16.msrb.mxu2 %v8714_v43  ;;  %5538 = vmatpush.bf16.msrb.mxu3 %v8810_v44  ;;  %v10093_v43 = vld [vmem:[%s13644_s17 + $0x358] sm:$0xf0]  ;;  %v9134_v44 = vor.u32 %v10147_v5, %v9133_v62  ;;  %v5662_v62 = vld [vmem:[#allocation17 + $0x78] sm:$0xff] }
 0x80c   :  { %5501 = vmatpush.bf16.msrb.mxu0 %v8498_v1  ;;  %5514 = vmatpush.bf16.msrb.mxu1 %v8594_v2  ;;  %v8918_v46 = vor.u32 %v10093_v43, %v8917_v19  ;;  %v9122_v1 = vor.u32 %v10144_v23, %v9121_v21  ;;  %v9218_v2 = vor.u32 %v10168_v45, %v9217_v24  ;;  %v5659_v43 = vld [vmem:[#allocation17 + $0x60] sm:$0xff]  ;;  %v5654_v21 = vld [vmem:[#allocation17 + $0x38] sm:$0xff]  ;;  %v5653_v23 = vld [vmem:[#allocation17 + $0x30] sm:$0xff] }
 0x80f   :  { %5526 = vmatpush.bf16.msrb.mxu2 %v8702_v30  ;;  %5539 = vmatpush.bf16.msrb.mxu3 %v8798_v18  ;;  %v10165_v30 = vld [vmem:[%s13644_s17 + $0x598] sm:$0xf0]  ;;  %v8906_v18 = vor.u32 %v10090_v27, %v8905_v11 }
 0x810   :  { %5546 = vmatpush.bf16.msra.mxu0 %v8966_v0  ;;  %5559 = vmatpush.bf16.msra.mxu1 %v9062_v28  ;;  %v9001_v0 = vld [vmem:[%s13644_s17 + $0x3f8] sm:$0xf]  ;;  %v10114_v28 = vld [vmem:[%s13644_s17 + $0x400] sm:$0xf0]  ;;  %v9206_v17 = vor.u32 %v10165_v30, %v9205_v14  ;;  %v5647_v30 = vld [vmem:[#allocation17] sm:$0xff] }
 0x811   :  { %5502 = vmatmul.bf16.vlgmr.msrb.gmra.mxu0 %v12474_v8  ;;  %5515 = vmatmul.bf16.vlgmr.msrb.gmra.mxu1 %v12476_v9  ;;  %v10150_v8 = vld [vmem:[%s13644_s17 + $0x520] sm:$0xf0]  ;;  %v9241_v9 = vld [vmem:[%s13644_s17 + $0x5d8] sm:$0xf]  ;;  %v9002_v33 = vor.u32 %v10114_v28, %v9001_v0 }
 0x812   :  { %v9146_v58 = vor.u32 %v10150_v8, %v9145_v51  ;;  %v9242_v59 = vor.u32 %v10174_v52, %v9241_v9  ;;  %v9085_v51 = vld [vmem:[%s13644_s17 + $0x4a0] sm:$0xf]  ;;  %v10135_v8 = vld [vmem:[%s13644_s17 + $0x4a8] sm:$0xf0] }
 0x813   :  { %5527 = vmatpush.bf16.msrb.mxu2 %v8690_v47  ;;  %5540 = vmatpush.bf16.msrb.mxu3 %v8786_v48  ;;  %v8894_v47 = vor.u32 %v10087_v3, %v8893_v36  ;;  %v8990_v48 = vor.u32 %v10111_v7, %v8989_v6  ;;  %v9181_v9 = vld [vmem:[%s13644_s17 + $0x560] sm:$0xf]  ;;  %v10159_v52 = vld [vmem:[%s13644_s17 + $0x568] sm:$0xf0]  ;;  %v9086_v56 = vor.u32 %v10135_v8, %v9085_v51  ;;  %v5675_v51 = vld [vmem:[#allocation17 + $0xe0] sm:$0xff] }
 0x814   :  { %5547 = vmatpush.bf16.msra.mxu0 %v8954_v41  ;;  %5560 = vmatpush.bf16.msra.mxu1 %v9050_v42  ;;  %v9193_v41 = vld [vmem:[%s13644_s17 + $0x578] sm:$0xf]  ;;  %v10162_v42 = vld [vmem:[%s13644_s17 + $0x580] sm:$0xf0]  ;;  %v9182_v57 = vor.u32 %v10159_v52, %v9181_v9  ;;  %v5674_v52 = vld [vmem:[#allocation17 + $0xd8] sm:$0xff] }
 0x815   :  { %v5649_v0 = vld [vmem:[#allocation17 + $0x10] sm:$0xff] }
 0x816   :  { %5528 = vmatmul.bf16.vlgmr.msrb.gmra.mxu2 %v12519_v31  ;;  %5541 = vmatmul.bf16.vlgmr.msrb.gmra.mxu3 %v12521_v32  ;;  %v9013_v31 = vld [vmem:[%s13644_s17 + $0x410] sm:$0xf]  ;;  %v10117_v32 = vld [vmem:[%s13644_s17 + $0x418] sm:$0xf0] }
 0x817   :  { %5572 = vmatpush.bf16.msra.mxu2 %v9158_v49  ;;  %5585 = vmatpush.bf16.msra.mxu3 %v9254_v53  ;;  %v9014_v10 = vor.u32 %v10117_v32, %v9013_v31  ;;  %v9098_v49 = vor.u32 %v10138_v35, %v9097_v34  ;;  %v9194_v53 = vor.u32 %v10162_v42, %v9193_v41  ;;  %v5656_v31 = vld [vmem:[#allocation17 + $0x48] sm:$0xff]  ;;  %v5655_v32 = vld [vmem:[#allocation17 + $0x40] sm:$0xff]  ;;  %v5678_v35 = vld [vmem:[#allocation17 + $0xf8] sm:$0xff] }
 0x818   :  { %5548 = vmatpush.bf16.msra.mxu0 %v8942_v54  ;;  %5561 = vmatpush.bf16.msra.mxu1 %v9038_v55  ;;  %v8882_v54 = vor.u32 %v10084_v26, %v8881_v25  ;;  %v8978_v55 = vor.u32 %v10108_v50, %v8977_v40  ;;  %v5677_v41 = vld [vmem:[#allocation17 + $0xf0] sm:$0xff]  ;;  %v5676_v25 = vld [vmem:[#allocation17 + $0xe8] sm:$0xff] }
 0x81b   :  { %5573 = vmatpush.bf16.msra.mxu2 %v9146_v58  ;;  %5586 = vmatpush.bf16.msra.mxu3 %v9242_v59  ;;  %v9073_v58 = vld [vmem:[%s13644_s17 + $0x488] sm:$0xf]  ;;  %v10132_v59 = vld [vmem:[%s13644_s17 + $0x490] sm:$0xf0] }
 0x81c   :  { %5549 = vmatpush.bf16.msra.mxu0 %v8930_v63  ;;  %5562 = vmatpush.bf16.msra.mxu1 %v9026_v15  ;;  %v9074_v5 = vor.u32 %v10132_v59, %v9073_v58  ;;  %v5660_v63 = vld [vmem:[#allocation17 + $0x68] sm:$0xff] }
 0x81f   :  { %5574 = vmatpush.bf16.msra.mxu2 %v9134_v44  ;;  %5587 = vmatpush.bf16.msra.mxu3 %v9230_v20  ;;  %v5658_v44 = vld [vmem:[#allocation17 + $0x58] sm:$0xff]  ;;  %v5657_v20 = vld [vmem:[#allocation17 + $0x50] sm:$0xff] }
 0x820   :  { %5550 = vmatpush.bf16.msra.mxu0 %v8918_v46  ;;  %5563 = vmatpush.bf16.msra.mxu1 %v9014_v10  ;;  %v5651_v10 = vld [vmem:[#allocation17 + $0x20] sm:$0xff] }
 0x823   :  { %5575 = vmatpush.bf16.msra.mxu2 %v9122_v1  ;;  %5588 = vmatpush.bf16.msra.mxu3 %v9218_v2  ;;  %v5650_v1 = vld [vmem:[#allocation17 + $0x18] sm:$0xff] }
 0x824   :  { %5551 = vmatpush.bf16.msra.mxu0 %v8906_v18  ;;  %5564 = vmatpush.bf16.msra.mxu1 %v9002_v33 }
 0x827   :  { %5576 = vmatpush.bf16.msra.mxu2 %v9110_v39  ;;  %5589 = vmatpush.bf16.msra.mxu3 %v9206_v17 }
 0x828   :  { %5552 = vmatpush.bf16.msra.mxu0 %v8894_v47  ;;  %5565 = vmatpush.bf16.msra.mxu1 %v8990_v48 }
 0x82a   :  { %v5295_v15 = vpop.f32.mrf.mxu0  ;;  %v5308_v19 = vpop.f32.mrf.mxu1 }
 0x82b   :  { %5577 = vmatpush.bf16.msra.mxu2 %v9098_v49  ;;  %5590 = vmatpush.bf16.msra.mxu3 %v9194_v53  ;;  %v5309_v46 = vadd.f32 %v5308_v19, %v5295_v15  ;;  %v5671_v15 = vld [vmem:[#allocation17 + $0xc0] sm:$0xff] }
 0x82c   :  { %5553 = vmatpush.bf16.msra.mxu0 %v8882_v54  ;;  %5566 = vmatpush.bf16.msra.mxu1 %v8978_v55 }
 0x82f   :  { %5578 = vmatpush.bf16.msra.mxu2 %v9086_v56  ;;  %5591 = vmatpush.bf16.msra.mxu3 %v9182_v57 }
 0x830   :  { %5695 = vmatpush.msrb.mxu0 %v5662_v62  ;;  %5567 = vmatmul.bf16.vlgmr.msra.gmra.mxu1 %v12581_v4  ;;  %v5672_v62 = vld [vmem:[#allocation17 + $0xc8] sm:$0xff] }
 0x831   :  { %5554 = vmatmul.bf16.vlgmr.msra.gmra.mxu0 %v12579_v22  ;;  %5715 = vmatpush.msrb.mxu1 %v5678_v35 }
 0x832   :  { %5696 = vmatpush.msrb.mxu0 %v5661_v13  ;;  %v5297_v22 = vpop.f32.mrf.mxu0  ;;  %v5310_v4 = vpop.f32.mrf.mxu1 }
 0x833   :  { %5579 = vmatpush.bf16.msra.mxu2 %v9074_v5  ;;  %5592 = vmatpush.bf16.msra.mxu3 %v9170_v12  ;;  %v5667_v4 = vld [vmem:[#allocation17 + $0xa0] sm:$0xff] }
 0x834   :  { %5697 = vmatpush.msrb.mxu0 %v5660_v63  ;;  %5716 = vmatpush.msrb.mxu1 %v5677_v41 }
 0x836   :  { %5580 = vmatmul.bf16.vlgmr.msra.gmra.mxu2 %v12624_v37  ;;  %5593 = vmatmul.bf16.vlgmr.msra.gmra.mxu3 %v12626_v38  ;;  %v5652_v37 = vld [vmem:[#allocation17 + $0x28] sm:$0xff] }
 0x837   :  { %5698 = vmatpush.msrb.mxu0 %v5659_v43  ;;  %5717 = vmatpush.msrb.mxu1 %v5676_v25  ;;  %v5670_v43 = vld [vmem:[#allocation17 + $0xb8] sm:$0xff] }
 0x838   :  { %v5694_v25 = vld [vmem:[#allocation17 + $0x178] sm:$0xff] }
 0x839   :  { %5699 = vmatpush.msrb.mxu0 %v5658_v44  ;;  %v5321_v24 = vpop.f32.mrf.mxu2  ;;  %v5334_v45 = vpop.f32.mrf.mxu3  ;;  %5718 = vmatpush.msrb.mxu1 %v5675_v51  ;;  %v5669_v44 = vld [vmem:[#allocation17 + $0xb0] sm:$0xff]  ;;  %v5692_v51 = vld [vmem:[#allocation17 + $0x168] sm:$0xff] }
 0x83a   :  { %v5322_v38 = vadd.f32 %v5321_v24, %v5309_v46  ;;  %v5347_v11 = vpop.f32.mrf.mxu0  ;;  %v5360_v27 = vpop.f32.mrf.mxu1  ;;  %v5664_v24 = vld [vmem:[#allocation17 + $0x88] sm:$0xff]  ;;  %5735 = vmatpush.msrb.mxu2 %v5694_v25  ;;  %v5830_v25 = vld [vmem:[#allocation19 + $0x158] sm:$0xff] }
 0x83b   :  { %5700 = vmatpush.msrb.mxu0 %v5657_v20  ;;  %5719 = vmatpush.msrb.mxu1 %v5674_v52  ;;  %v5668_v20 = vld [vmem:[#allocation17 + $0xa8] sm:$0xff]  ;;  %v5690_v52 = vld [vmem:[#allocation17 + $0x158] sm:$0xff] }
 0x83c   :  { %v5335_v2 = vadd.f32 %v5334_v45, %v5322_v38  ;;  %v5663_v45 = vld [vmem:[#allocation17 + $0x80] sm:$0xff] }
 0x83d   :  { %5701 = vmatpush.msrb.mxu0 %v5656_v31  ;;  %5720 = vmatpush.msrb.mxu1 %v5673_v60  ;;  %v5687_v60 = vld [vmem:[#allocation17 + $0x140] sm:$0xff] }
 0x83e   :  { %v5348_v14 = vadd.f32 %v5347_v11, %v5335_v2 }
 0x83f   :  { %5702 = vmatpush.msrb.mxu0 %v5655_v32  ;;  %5721 = vmatpush.msrb.mxu1 %v5672_v62  ;;  %v5666_v32 = vld [vmem:[#allocation17 + $0x98] sm:$0xff]  ;;  %v5685_v62 = vld [vmem:[#allocation17 + $0x130] sm:$0xff] }
 0x840   :  { %v5361_v36 = vadd.f32 %v5360_v27, %v5348_v14 }
 0x841   :  { %5703 = vmatpush.msrb.mxu0 %v5654_v21  ;;  %v5323_v28 = vpop.f32.mrf.mxu2  ;;  %v5336_v16 = vpop.f32.mrf.mxu3  ;;  %5722 = vmatpush.msrb.mxu1 %v5671_v15  ;;  %v5665_v21 = vld [vmem:[#allocation17 + $0x90] sm:$0xff]  ;;  %v5682_v15 = vld [vmem:[#allocation17 + $0x118] sm:$0xff] }
 0x842   :  { %v5349_v18 = vpop.f32.mrf.mxu0  ;;  %v5362_v33 = vpop.f32.mrf.mxu1 }
 0x843   :  { %5704 = vmatpush.msrb.mxu0 %v5653_v23  ;;  %5723 = vmatpush.msrb.mxu1 %v5670_v43  ;;  %v5680_v43 = vld [vmem:[#allocation17 + $0x108] sm:$0xff] }
 0x845   :  { %5705 = vmatpush.msrb.mxu0 %v5652_v37  ;;  %5724 = vmatpush.msrb.mxu1 %v5669_v44  ;;  %v5679_v44 = vld [vmem:[#allocation17 + $0x100] sm:$0xff] }
 0x847   :  { %5706 = vmatpush.msrb.mxu0 %v5651_v10  ;;  %5725 = vmatpush.msrb.mxu1 %v5668_v20 }
 0x849   :  { %5707 = vmatpush.msrb.mxu0 %v5650_v1  ;;  %v5373_v3 = vpop.f32.mrf.mxu2  ;;  %v5386_v39 = vpop.f32.mrf.mxu3  ;;  %5726 = vmatpush.msrb.mxu1 %v5667_v4 }
 0x84a   :  { %v5374_v17 = vadd.f32 %v5373_v3, %v5361_v36 }
 0x84b   :  { %5708 = vmatpush.msrb.mxu0 %v5649_v0  ;;  %5727 = vmatpush.msrb.mxu1 %v5666_v32 }
 0x84c   :  { %v13267_v6 = vadd.f32 %v5386_v39, %v5374_v17 }
 0x84d   :  { %5709 = vmatpush.msrb.mxu0 %v5648_v29  ;;  %5728 = vmatpush.msrb.mxu1 %v5665_v21 }
 0x84e   :  { %v5399_v7 = vpop.f32.mrf.mxu0  ;;  %v5412_v34 = vpop.f32.mrf.mxu1  ;;  %v5599_v42 = vsel %vm5598_vm11, %v13267_v6, 0.0  ;;  %v5620_v47 = vmul.f32 %v13267_v6, %v13267_v6 }
 0x84f   :  { %5710 = vmatpush.msrb.mxu0 %v5647_v30  ;;  %v5600_v48 = vrot.slane %v5599_v42, 4  ;;  %v5413_v23 = vadd.f32 %v5412_v34, %v5399_v7  ;;  %5729 = vmatpush.msrb.mxu1 %v5664_v24 }
 0x850   :  { %v5623_v26 = vsel %vm5598_vm11, %v5620_v47, 0.0 }
 0x851   :  { %v5601_v49 = vadd.f32 %v5600_v48, %v5599_v42  ;;  %v5624_v53 = vrot.slane %v5623_v26, 4  ;;  %v5375_v40 = vpop.f32.mrf.mxu2  ;;  %v5388_v50 = vpop.f32.mrf.mxu3  ;;  %5730 = vmatpush.msrb.mxu1 %v5663_v45 }
 0x852   :  { %v5693_v50 = vld [vmem:[#allocation17 + $0x170] sm:$0xff] }
 0x853   :  { %v5602_v8 = vrot.slane %v5601_v49, 2  ;;  %v5625_v9 = vadd.f32 %v5624_v53, %v5623_v26  ;;  %5736 = vmatpush.msrb.mxu2 %v5693_v50  ;;  %v5823_v50 = vld [vmem:[#allocation19 + $0x120] sm:$0xff] }
 0x855   :  { %v5603_v54 = vadd.f32 %v5602_v8, %v5601_v49  ;;  %v5626_v55 = vrot.slane %v5625_v9, 2  ;;  %5737 = vmatpush.msrb.mxu2 %v5692_v51  ;;  %v5824_v51 = vld [vmem:[#allocation19 + $0x128] sm:$0xff] }
 0x856   :  { %v5401_v56 = vpop.f32.mrf.mxu0  ;;  %v5414_v57 = vpop.f32.mrf.mxu1 }
 0x857   :  { %v5604_v58 = vrot.slane %v5603_v54, 1  ;;  %v5627_v59 = vadd.f32 %v5626_v55, %v5625_v9  ;;  %v5691_v9 = vld [vmem:[#allocation17 + $0x160] sm:$0xff]  ;;  %v5689_v56 = vld [vmem:[#allocation17 + $0x150] sm:$0xff]  ;;  %v5688_v57 = vld [vmem:[#allocation17 + $0x148] sm:$0xff] }
 0x858   :  { %5738 = vmatpush.msrb.mxu2 %v5691_v9  ;;  %v5820_v9 = vld [vmem:[#allocation19 + $0x108] sm:$0xff] }
 0x859   :  { %v5628_v61 = vrot.slane %v5627_v59, 1  ;;  %v5425_v5 = vpop.f32.mrf.mxu2  ;;  %v5438_v12 = vpop.f32.mrf.mxu3  ;;  %v5605_v13 = vadd.f32 %v5604_v58, %v5603_v54 }
 0x85a   :  { %v5426_v38 = vadd.f32 %v5425_v5, %v5413_v23  ;;  %5739 = vmatpush.msrb.mxu2 %v5690_v52  ;;  %v5684_v5 = vld [vmem:[#allocation17 + $0x128] sm:$0xff]  ;;  %v5821_v52 = vld [vmem:[#allocation19 + $0x110] sm:$0xff] }
 0x85b   :  { %v5629_v63 = vadd.f32 %v5628_v61, %v5627_v59  ;;  %v5686_v61 = vld [vmem:[#allocation17 + $0x138] sm:$0xff] }
 0x85c   :  { %v5439_v10 = vadd.f32 %v5438_v12, %v5426_v38  ;;  %5740 = vmatpush.msrb.mxu2 %v5689_v56  ;;  %v5817_v56 = vld [vmem:[#allocation19 + $0xf0] sm:$0xff] }
 0x85d   :  { %v5644_v19 = vsel %vm2320_vm10, %v5605_v13, %v5629_v63  ;;  %v5683_v63 = vld [vmem:[#allocation17 + $0x120] sm:$0xff] }
 0x85e   :  { %5711 = vmatmul.f32.vlgmr.msrb.gmra.mxu0 %v5644_v19  ;;  %5741 = vmatpush.msrb.mxu2 %v5688_v57  ;;  %v5681_v19 = vld [vmem:[#allocation17 + $0x110] sm:$0xff]  ;;  %v5818_v57 = vld [vmem:[#allocation19 + $0xf8] sm:$0xff] }
 0x860   :  { %5742 = vmatpush.msrb.mxu2 %v5687_v60 }
 0x861   :  { %v5427_v31 = vpop.f32.mrf.mxu2  ;;  %v5440_v22 = vpop.f32.mrf.mxu3 }
 0x862   :  { %5743 = vmatpush.msrb.mxu2 %v5686_v61  ;;  %v5814_v61 = vld [vmem:[#allocation19 + $0xd8] sm:$0xff] }
 0x864   :  { %5744 = vmatpush.msrb.mxu2 %v5685_v62  ;;  %v5815_v62 = vld [vmem:[#allocation19 + $0xe0] sm:$0xff] }
 0x866   :  { %5745 = vmatpush.msrb.mxu2 %v5684_v5  ;;  %v5816_v5 = vld [vmem:[#allocation19 + $0xe8] sm:$0xff] }
 0x868   :  { %5746 = vmatpush.msrb.mxu2 %v5683_v63  ;;  %v5811_v63 = vld [vmem:[#allocation19 + $0xc0] sm:$0xff] }
 0x86a   :  { %5747 = vmatpush.msrb.mxu2 %v5682_v15  ;;  %v5812_v15 = vld [vmem:[#allocation19 + $0xc8] sm:$0xff] }
 0x86c   :  { %5748 = vmatpush.msrb.mxu2 %v5681_v19  ;;  %v5813_v19 = vld [vmem:[#allocation19 + $0xd0] sm:$0xff] }
 0x86e   :  { %v5451_v46 = vpop.f32.mrf.mxu0  ;;  %v5464_v37 = vpop.f32.mrf.mxu1  ;;  %5749 = vmatpush.msrb.mxu2 %v5680_v43 }
 0x86f   :  { %v5452_v11 = vadd.f32 %v5451_v46, %v5439_v10 }
 0x870   :  { %5750 = vmatpush.msrb.mxu2 %v5679_v44  ;;  %v5808_v44 = vld [vmem:[#allocation19 + $0xa8] sm:$0xff] }
 0x871   :  { %v5465_v2 = vadd.f32 %v5464_v37, %v5452_v11 }
 0x876   :  { %v5453_v27 = vpop.f32.mrf.mxu0  ;;  %v5466_v1 = vpop.f32.mrf.mxu1 }
 0x879   :  { %v5477_v0 = vpop.f32.mrf.mxu2  ;;  %v5490_v28 = vpop.f32.mrf.mxu3 }
 0x87a   :  { %v5478_v16 = vadd.f32 %v5477_v0, %v5465_v2 }
 0x87c   :  { %v13275_v29 = vadd.f32 %v5490_v28, %v5478_v16 }
 0x87e   :  { %v5606_v14 = vsel %vm5598_vm11, %v13275_v29, 0.0  ;;  %v5621_v30 = vmul.f32 %v13275_v29, %v13275_v29 }
 0x87f   :  { %v5607_v18 = vrot.slane %v5606_v14, 4 }
 0x880   :  { %v5630_v33 = vsel %vm5598_vm11, %v5621_v30, 0.0 }
 0x881   :  { %v5608_v36 = vadd.f32 %v5607_v18, %v5606_v14  ;;  %v5631_v3 = vrot.slane %v5630_v33, 4  ;;  %v5479_v39 = vpop.f32.mrf.mxu2  ;;  %v5492_v17 = vpop.f32.mrf.mxu3 }
 0x883   :  { %v5609_v7 = vrot.slane %v5608_v36, 2  ;;  %v5632_v34 = vadd.f32 %v5631_v3, %v5630_v33 }
 0x885   :  { %v5610_v35 = vadd.f32 %v5609_v7, %v5608_v36  ;;  %v5633_v41 = vrot.slane %v5632_v34, 2 }
 0x887   :  { %v5611_v42 = vrot.slane %v5610_v35, 1  ;;  %v5634_v47 = vadd.f32 %v5633_v41, %v5632_v34  ;;  %v5832_v41 = vld [vmem:[#allocation19 + $0x168] sm:$0xff] }
 0x888   :  { %5835 = vmatpush.msrb.mxu3 %v5832_v41 }
 0x889   :  { %v5635_v48 = vrot.slane %v5634_v47, 1  ;;  %v5612_v26 = vadd.f32 %v5611_v42, %v5610_v35  ;;  %v5833_v42 = vld [vmem:[#allocation19 + $0x170] sm:$0xff] }
 0x88a   :  { %5855 = vmatpush.msra.mxu0 %v5833_v42 }
 0x88b   :  { %v5636_v40 = vadd.f32 %v5635_v48, %v5634_v47  ;;  %v5834_v47 = vld [vmem:[#allocation19 + $0x178] sm:$0xff]  ;;  %v5829_v48 = vld [vmem:[#allocation19 + $0x150] sm:$0xff] }
 0x88c   :  { %5875 = vmatpush.msra.mxu1 %v5834_v47  ;;  %5836 = vmatpush.msrb.mxu3 %v5829_v48 }
 0x88d   :  { %v5645_v8 = vsel %vm2320_vm10, %v5612_v26, %v5636_v40  ;;  %v5831_v26 = vld [vmem:[#allocation19 + $0x160] sm:$0xff]  ;;  %5856 = vmatpush.msra.mxu0 %v5830_v25  ;;  %v5828_v40 = vld [vmem:[#allocation19 + $0x148] sm:$0xff] }
 0x88e   :  { %v5503_v49 = vpop.f32.mrf.mxu0  ;;  %v5516_v53 = vpop.f32.mrf.mxu1  ;;  %5731 = vmatmul.f32.vlgmr.msrb.gmra.mxu1 %v5645_v8  ;;  %v5825_v8 = vld [vmem:[#allocation19 + $0x130] sm:$0xff] }
 0x88f   :  { %v5517_v20 = vadd.f32 %v5516_v53, %v5503_v49  ;;  %5876 = vmatpush.msra.mxu1 %v5831_v26  ;;  %v5826_v49 = vld [vmem:[#allocation19 + $0x138] sm:$0xff]  ;;  %v5827_v53 = vld [vmem:[#allocation19 + $0x140] sm:$0xff] }
 0x890   :  { %5837 = vmatpush.msrb.mxu3 %v5826_v49  ;;  %5857 = vmatpush.msra.mxu0 %v5827_v53  ;;  %v5762_v26 = vld [vmem:[#allocation20] sm:$0x1] }
 0x891   :  { %5877 = vmatpush.msra.mxu1 %v5828_v40  ;;  %v5780_v40 = vld [vmem:[#allocation22] sm:$0x1] }
 0x892   :  { %5838 = vmatpush.msrb.mxu3 %v5823_v50  ;;  %5858 = vmatpush.msra.mxu0 %v5824_v51 }
 0x893   :  { %5878 = vmatpush.msra.mxu1 %v5825_v8 }
 0x894   :  { %5839 = vmatpush.msrb.mxu3 %v5820_v9  ;;  %5859 = vmatpush.msra.mxu0 %v5821_v52 }
 0x896   :  { %v5505_v54 = vpop.f32.mrf.mxu0  ;;  %v5518_v55 = vpop.f32.mrf.mxu1  ;;  %5840 = vmatpush.msrb.mxu3 %v5817_v56  ;;  %5860 = vmatpush.msra.mxu0 %v5818_v57 }
 0x897   :  { %v5822_v54 = vld [vmem:[#allocation19 + $0x118] sm:$0xff] }
 0x898   :  { %5879 = vmatpush.msra.mxu1 %v5822_v54  ;;  %5841 = vmatpush.msrb.mxu3 %v5814_v61 }
 0x899   :  { %v5529_v58 = vpop.f32.mrf.mxu2  ;;  %v5542_v59 = vpop.f32.mrf.mxu3  ;;  %5861 = vmatpush.msra.mxu0 %v5815_v62 }
 0x89a   :  { %v5530_v31 = vadd.f32 %v5529_v58, %v5517_v20  ;;  %v5819_v58 = vld [vmem:[#allocation19 + $0x100] sm:$0xff]  ;;  %5842 = vmatpush.msrb.mxu3 %v5811_v63  ;;  %v5809_v20 = vld [vmem:[#allocation19 + $0xb0] sm:$0xff] }
 0x89b   :  { %5880 = vmatpush.msra.mxu1 %v5819_v58  ;;  %5862 = vmatpush.msra.mxu0 %v5812_v15 }
 0x89c   :  { %v5543_v32 = vadd.f32 %v5542_v59, %v5530_v31  ;;  %v5810_v31 = vld [vmem:[#allocation19 + $0xb8] sm:$0xff]  ;;  %5843 = vmatpush.msrb.mxu3 %v5808_v44 }
 0x89d   :  { %5881 = vmatpush.msra.mxu1 %v5816_v5  ;;  %5863 = vmatpush.msra.mxu0 %v5809_v20 }
 0x89f   :  { %5882 = vmatpush.msra.mxu1 %v5813_v19 }
 0x8a1   :  { %v5531_v12 = vpop.f32.mrf.mxu2  ;;  %v5544_v13 = vpop.f32.mrf.mxu3  ;;  %5883 = vmatpush.msra.mxu1 %v5810_v31 }
 0x8ad   :  { %v5568_v4 = vpop.f32.mrf.mxu1 }
 0x8ae   :  { %v5555_v22 = vpop.f32.mrf.mxu0 }
 0x8af   :  { %v5556_v21 = vadd.f32 %v5555_v22, %v5543_v32  ;;  %v5806_v32 = vld [vmem:[#allocation19 + $0x98] sm:$0xff] }
 0x8b0   :  { %5864 = vmatpush.msra.mxu0 %v5806_v32 }
 0x8b1   :  { %v5569_v45 = vadd.f32 %v5568_v4, %v5556_v21  ;;  %v5805_v4 = vld [vmem:[#allocation19 + $0x90] sm:$0xff]  ;;  %v5807_v21 = vld [vmem:[#allocation19 + $0xa0] sm:$0xff] }
 0x8b2   :  { %5844 = vmatpush.msrb.mxu3 %v5805_v4  ;;  %5884 = vmatpush.msra.mxu1 %v5807_v21  ;;  %v9258_v21 = vld [vmem:[%s13649_s22 + $0x2] sm:$0x3] }
 0x8b5   :  { %v5570_v24 = vpop.f32.mrf.mxu1 }
 0x8b6   :  { %v5557_v23 = vpop.f32.mrf.mxu0  ;;  %v5802_v24 = vld [vmem:[#allocation19 + $0x78] sm:$0xff] }
 0x8b7   :  { %5845 = vmatpush.msrb.mxu3 %v5802_v24 }
 0x8b9   :  { %v5581_v46 = vpop.f32.mrf.mxu2  ;;  %v5594_v37 = vpop.f32.mrf.mxu3 }
 0x8ba   :  { %v5582_v38 = vadd.f32 %v5581_v46, %v5569_v45  ;;  %v5803_v45 = vld [vmem:[#allocation19 + $0x80] sm:$0xff]  ;;  %v5804_v46 = vld [vmem:[#allocation19 + $0x88] sm:$0xff] }
 0x8bb   :  { %5865 = vmatpush.msra.mxu0 %v5803_v45  ;;  %5885 = vmatpush.msra.mxu1 %v5804_v46  ;;  %v9262_v45 = vld [vmem:[%s13649_s22 + $0x4] sm:$0x3]  ;;  %v13321_v46 = vld [vmem:[%s13649_s22 + $0x6] sm:$0x3] }
 0x8bc   :  { %v13283_v10 = vadd.f32 %v5594_v37, %v5582_v38  ;;  %v5799_v38 = vld [vmem:[#allocation19 + $0x60] sm:$0xff] }
 0x8bd   :  { %5846 = vmatpush.msrb.mxu3 %v5799_v38  ;;  %v10193_v38 = vld [vmem:[%s13650_s23 + $0x78] sm:$0xff] }
 0x8be   :  { %v5613_v11 = vsel %vm5598_vm11, %v13283_v10, 0.0  ;;  %v5622_v27 = vmul.f32 %v13283_v10, %v13283_v10 }
 0x8bf   :  { %v5614_v1 = vrot.slane %v5613_v11, 4 }
 0x8c0   :  { %v5637_v2 = vsel %vm5598_vm11, %v5622_v27, 0.0  ;;  %v5801_v27 = vld [vmem:[#allocation19 + $0x70] sm:$0xff] }
 0x8c1   :  { %v5615_v0 = vadd.f32 %v5614_v1, %v5613_v11  ;;  %v5638_v28 = vrot.slane %v5637_v2, 4  ;;  %v5583_v16 = vpop.f32.mrf.mxu2  ;;  %v5596_v14 = vpop.f32.mrf.mxu3  ;;  %v5800_v11 = vld [vmem:[#allocation19 + $0x68] sm:$0xff]  ;;  %5886 = vmatpush.msra.mxu1 %v5801_v27  ;;  %v10192_v27 = vld [vmem:[%s13650_s23 + $0x70] sm:$0xff] }
 0x8c2   :  { %5866 = vmatpush.msra.mxu0 %v5800_v11  ;;  %v5793_v14 = vld [vmem:[#allocation19 + $0x30] sm:$0xff]  ;;  %v10184_v11 = vld [vmem:[%s13650_s23 + $0x30] sm:$0xff] }
 0x8c3   :  { %v5616_v30 = vrot.slane %v5615_v0, 2  ;;  %v5639_v18 = vadd.f32 %v5638_v28, %v5637_v2  ;;  %v5796_v2 = vld [vmem:[#allocation19 + $0x48] sm:$0xff]  ;;  %v5798_v28 = vld [vmem:[#allocation19 + $0x58] sm:$0xff] }
 0x8c4   :  { %5847 = vmatpush.msrb.mxu3 %v5796_v2  ;;  %5887 = vmatpush.msra.mxu1 %v5798_v28  ;;  %v10209_v2 = vld [vmem:[%s13650_s23 + $0xf8] sm:$0xff]  ;;  %v10182_v28 = vld [vmem:[%s13650_s23 + $0x20] sm:$0xff] }
 0x8c5   :  { %v5617_v33 = vadd.f32 %v5616_v30, %v5615_v0  ;;  %v5640_v36 = vrot.slane %v5639_v18, 2  ;;  %v5797_v0 = vld [vmem:[#allocation19 + $0x50] sm:$0xff]  ;;  %v5794_v30 = vld [vmem:[#allocation19 + $0x38] sm:$0xff] }
 0x8c6   :  { %5867 = vmatpush.msra.mxu0 %v5797_v0  ;;  %5848 = vmatpush.msrb.mxu3 %v5793_v14  ;;  %v10191_v0 = vld [vmem:[%s13650_s23 + $0x68] sm:$0xff]  ;;  %v10190_v14 = vld [vmem:[%s13650_s23 + $0x60] sm:$0xff] }
 0x8c7   :  { %v5618_v3 = vrot.slane %v5617_v33, 1  ;;  %v5641_v39 = vadd.f32 %v5640_v36, %v5639_v18  ;;  %v5795_v18 = vld [vmem:[#allocation19 + $0x40] sm:$0xff] }
 0x8c8   :  { %5868 = vmatpush.msra.mxu0 %v5794_v30  ;;  %5888 = vmatpush.msra.mxu1 %v5795_v18  ;;  %v5791_v36 = vld [vmem:[#allocation19 + $0x20] sm:$0xff]  ;;  %v10201_v30 = vld [vmem:[%s13650_s23 + $0xb8] sm:$0xff] }
 0x8c9   :  { %v5642_v17 = vrot.slane %v5641_v39, 1  ;;  %v5619_v7 = vadd.f32 %v5618_v3, %v5617_v33  ;;  %v5790_v33 = vld [vmem:[#allocation19 + $0x18] sm:$0xff]  ;;  %v5792_v3 = vld [vmem:[#allocation19 + $0x28] sm:$0xff] }
 0x8ca   :  { %5849 = vmatpush.msrb.mxu3 %v5790_v33  ;;  %5869 = vmatpush.msra.mxu0 %v5791_v36  ;;  %v10181_v18 = vld [vmem:[%s13650_s23 + $0x18] sm:$0xff]  ;;  %v10207_v33 = vld [vmem:[%s13650_s23 + $0xe8] sm:$0xff] }
 0x8cb   :  { %v5643_v34 = vadd.f32 %v5642_v17, %v5641_v39  ;;  %v5787_v39 = vld [vmem:[#allocation19] sm:$0xff]  ;;  %v5788_v17 = vld [vmem:[#allocation19 + $0x8] sm:$0xff]  ;;  %5889 = vmatpush.msra.mxu1 %v5792_v3 }
 0x8cc   :  { %5850 = vmatpush.msrb.mxu3 %v5787_v39  ;;  %5870 = vmatpush.msra.mxu0 %v5788_v17  ;;  %v10189_v36 = vld [vmem:[%s13650_s23 + $0x58] sm:$0xff]  ;;  %v10200_v3 = vld [vmem:[%s13650_s23 + $0xb0] sm:$0xff]  ;;  %v10206_v17 = vld [vmem:[%s13650_s23 + $0xe0] sm:$0xff] }
 0x8cd   :  { %v5646_v35 = vsel %vm2320_vm10, %v5619_v7, %v5643_v34  ;;  %v5789_v7 = vld [vmem:[#allocation19 + $0x10] sm:$0xff]  ;;  %v10180_v39 = vld [vmem:[%s13650_s23 + $0x10] sm:$0xff] }
 0x8ce   :  { %5751 = vmatmul.f32.vlgmr.msrb.gmra.mxu2 %v5646_v35  ;;  %5890 = vmatpush.msra.mxu1 %v5789_v7  ;;  %v10188_v7 = vld [vmem:[%s13650_s23 + $0x50] sm:$0xff] }
 0x8db   :  { %v5712_v59 = vpop.f32.mrf.mxu0 }
 0x90b   :  { %v5732_v55 = vpop.f32.mrf.mxu1 }
 0x90c   :  { %v5733_v60 = vadd.f32 %v5732_v55, %v5712_v59 }
 0x951   :  { %v5752_v12 = vpop.f32.mrf.mxu2 }
 0x952   :  { %v5753_v13 = vadd.f32 %v5752_v12, %v5733_v60 }
 0x954   :  { %v13291_v43 = vmul.f32 0.055555556, %v5753_v13 }
 0x956   :  { %v5756_v22 = vmul.f32 %v13291_v43, %v13291_v43 }
 0x958   :  { %v5758_v23 = vrot.slane %v5756_v22, 7  ;;  %v5919_v22 = vld [vmem:[%s13649_s22] sm:$0x3] }
 0x95a   :  { %v5760_v37 = vsub.f32 %v13291_v43, %v5758_v23 }
 0x95c   :  { %v5761_v1 = vmax.f32 %v5760_v37, 0.0  ;;  %v10185_v37 = vld [vmem:[%s13650_s23 + $0x38] sm:$0xff] }
 0x95e   :  { %v5763_v16 = vadd.f32 1e-05, %v5761_v1  ;;  %v10183_v1 = vld [vmem:[%s13650_s23 + $0x28] sm:$0xff] }
 0x960   :  { %10302 = vrsqrt.f32 %v5763_v16  ;;  %vm5770_vm13 = vweird.f32 %v5763_v16 }
 0x966   :  { %v10303_v34 = vpop.eup %10302 }
 0x967   :  { %v5765_v35 = vmul.f32 %v10303_v34, %v5763_v16  ;;  %vm5771_vm12 = vweird.f32 %v10303_v34  ;;  %v10208_v16 = vld [vmem:[%s13650_s23 + $0xf0] sm:$0xff] }
 0x968   :  { %vm5772_vm14 = vmor %vm5770_vm13, %vm5771_vm12 }
 0x969   :  { %v5766_v41 = vmul.f32 %v10303_v34, %v5765_v35  ;;  %v10179_v35 = vld [vmem:[%s13650_s23 + $0x8] sm:$0xff] }
 0x96b   :  { %v5767_v42 = vmul.f32 0.5, %v5766_v41  ;;  %v10205_v41 = vld [vmem:[%s13650_s23 + $0xd8] sm:$0xff] }
 0x96d   :  { %v5768_v47 = vsub.f32 1.5, %v5767_v42  ;;  %v10187_v42 = vld [vmem:[%s13650_s23 + $0x48] sm:$0xff] }
 0x96f   :  { %v5769_v48 = vmul.f32 %v10303_v34, %v5768_v47  ;;  %v10198_v47 = vld [vmem:[%s13650_s23 + $0xa0] sm:$0xff] }
 0x971   :  { %v5773_v25 = vsel %vm5772_vm14, %v10303_v34, %v5769_v48  ;;  %v10199_v34 = vld [vmem:[%s13650_s23 + $0xa8] sm:$0xff]  ;;  %v10178_v48 = vld [vmem:[%s13650_s23] sm:$0xff] }
 0x972   :  { %5775 = vst [vmem:[#allocation1] sm:$0xff] %v5773_v25  ;;  %v10204_v25 = vld [vmem:[%s13650_s23 + $0xd0] sm:$0xff] }
 0x979   :  { %v5777_v49 = vld [vmem:[#allocation1 + $0x1] ss:$9 sm:$0xff] }
 0x97a   :  { %v5779_v53 = vmul.f32 %v5777_v49, %v5762_v26  ;;  %v10217_v26 = vld [vmem:[%s13650_s23 + $0x138] sm:$0xff]  ;;  %v10186_v49 = vld [vmem:[%s13650_s23 + $0x40] sm:$0xff] }
 0x97c   :  { %v5781_v50 = vmul.f32 %v5779_v53, %v13291_v43 }
 0x97e   :  { %v5782_v51 = vsub.f32 %v5780_v40, %v5781_v50  ;;  %v10225_v40 = vld [vmem:[%s13650_s23 + $0x178] sm:$0xff]  ;;  %v10203_v50 = vld [vmem:[%s13650_s23 + $0xc8] sm:$0xff] }
 0x980   :  { %v5784_v8 = vperm.slane %v5782_v51, 0  ;;  %v10216_v51 = vld [vmem:[%s13650_s23 + $0x130] sm:$0xff] }
 0x982   :  { %v5786_v9 = vsel %vm2320_vm10, %v5779_v53, %v5784_v8  ;;  %v10197_v53 = vld [vmem:[%s13650_s23 + $0x98] sm:$0xff]  ;;  %v10196_v8 = vld [vmem:[%s13650_s23 + $0x90] sm:$0xff] }
 0x983   :  { %5851 = vmatmul.f32.vlgmr.msrb.gmra.mxu3 %v5786_v9  ;;  %5871 = vmatmul.f32.vlgmr.msra.gmra.mxu0 %v5786_v9 }
 0x984   :  { %5891 = vmatmul.f32.vlgmr.msra.gmra.mxu1 %v5786_v9  ;;  %v10202_v9 = vld [vmem:[%s13650_s23 + $0xc0] sm:$0xff] }
 0xa00   :  { %v5872_v52 = vpop.f32.mrf.mxu0 }
 0xa01   :  { %v5896_v54 = vperm.slane %v5872_v52, 0  ;;  %v5892_v55 = vpop.f32.mrf.mxu1  ;;  %v5902_v58 = vperm.slane %v5872_v52, 1  ;;  %v10241_v52 = vld [vmem:[%s13650_s23 + $0x1f8] sm:$0xff] }
 0xa02   :  { %v5897_v56 = vperm.slane %v5892_v55, 0  ;;  %v5903_v60 = vperm.slane %v5892_v55, 1  ;;  %v10194_v55 = vld [vmem:[%s13650_s23 + $0x80] sm:$0xff] }
 0xa03   :  { %v5899_v57 = vmul.f32 %v5896_v54, %v13275_v29  ;;  %v10195_v54 = vld [vmem:[%s13650_s23 + $0x88] sm:$0xff] }
 0xa04   :  { %v5900_v59 = vmul.f32 %v5897_v56, %v13283_v10  ;;  %v10233_v56 = vld [vmem:[%s13650_s23 + $0x1b8] sm:$0xff] }
 0xa05   :  { %v5905_v61 = vadd.f32 %v5902_v58, %v5899_v57  ;;  %v10215_v57 = vld [vmem:[%s13650_s23 + $0x128] sm:$0xff]  ;;  %v10224_v58 = vld [vmem:[%s13650_s23 + $0x170] sm:$0xff] }
 0xa06   :  { %v5906_v62 = vadd.f32 %v5903_v60, %v5900_v59  ;;  %v5852_v5 = vpop.f32.mrf.mxu3  ;;  %v10232_v59 = vld [vmem:[%s13650_s23 + $0x1b0] sm:$0xff] }
 0xa07   :  { %v5911_v12 = vmul.f32 0.2, %v5905_v61  ;;  %v5895_v13 = vperm.slane %v5852_v5, 0  ;;  %vm5908_vm15 = vcmp.gt.f32.partialorder %v5905_v61, 0.0  ;;  %v5901_v19 = vperm.slane %v5852_v5, 1  ;;  %v10240_v60 = vld [vmem:[%s13650_s23 + $0x1f0] sm:$0xff] }
 0xa08   :  { %v5912_v63 = vmul.f32 0.2, %v5906_v62  ;;  %vm5909_vm10 = vcmp.gt.f32.partialorder %v5906_v62, 0.0  ;;  %v10231_v5 = vld [vmem:[%s13650_s23 + $0x1a8] sm:$0xff] }
 0xa09   :  { %v5898_v15 = vmul.f32 %v5895_v13, %v13267_v6  ;;  %v5914_v43 = vsel %vm5908_vm15, %v5905_v61, %v5911_v12  ;;  %v10214_v61 = vld [vmem:[%s13650_s23 + $0x120] sm:$0xff]  ;;  %v10239_v12 = vld [vmem:[%s13650_s23 + $0x1e8] sm:$0xff]  ;;  %v10213_v13 = vld [vmem:[%s13650_s23 + $0x118] sm:$0xff] }
 0xa0a   :  { %v5917_v44 = vpack.c.bf16 %v5914_v43, %v5914_v43  ;;  %v5915_v20 = vsel %vm5909_vm10, %v5906_v62, %v5912_v63  ;;  %v10223_v62 = vld [vmem:[%s13650_s23 + $0x168] sm:$0xff]  ;;  %v10222_v63 = vld [vmem:[%s13650_s23 + $0x160] sm:$0xff]  ;;  %v10212_v43 = vld [vmem:[%s13650_s23 + $0x110] sm:$0xff] }
 0xa0b   :  { %v5904_v29 = vadd.f32 %v5901_v19, %v5898_v15  ;;  %v5918_v31 = vpack.c.bf16 %v5915_v20, %v5915_v20  ;;  %v10230_v15 = vld [vmem:[%s13650_s23 + $0x1a0] sm:$0xff]  ;;  %v10229_v20 = vld [vmem:[%s13650_s23 + $0x198] sm:$0xff] }
 0xa0c   :  { %v5929_v10 = vsel %vm5924_vm1, %v5917_v44, 0  ;;  %v10238_v19 = vld [vmem:[%s13650_s23 + $0x1e0] sm:$0xff]  ;;  %v10221_v44 = vld [vmem:[%s13650_s23 + $0x158] sm:$0xff] }
 0xa0d   :  { %v5910_v4 = vmul.f32 0.2, %v5904_v29  ;;  %5954 = vmatpush.bf16.msra.mxu3 %v5929_v10  ;;  %6000 = vmatpush.bf16.msrb.mxu0 %v5929_v10  ;;  %v5932_v32 = vsel %vm5924_vm1, %v5918_v31, 0  ;;  %vm5907_vm3 = vcmp.gt.f32.partialorder %v5904_v29, 0.0  ;;  %v10211_v31 = vld [vmem:[%s13650_s23 + $0x108] sm:$0xff] }
 0xa0e   :  { %6013 = vmatpush.bf16.msrb.mxu1 %v5932_v32 }
 0xa0f   :  { %v5913_v6 = vsel %vm5907_vm3, %v5904_v29, %v5910_v4  ;;  %v10237_v29 = vld [vmem:[%s13650_s23 + $0x1d8] sm:$0xff]  ;;  %v10236_v4 = vld [vmem:[%s13650_s23 + $0x1d0] sm:$0xff] }
 0xa10   :  { %9256 = vmatmul.msk.bf16.vlgmr.msra.gmra.mxu3 %vm5920_vm2, %v5919_v22  ;;  %v5916_v23 = vpack.c.bf16 %v5913_v6, %v5913_v6  ;;  %9260 = vmatmul.msk.bf16.vlgmr.msrb.gmra.mxu0 %vm5920_vm2, %v9258_v21  ;;  %v10219_v6 = vld [vmem:[%s13650_s23 + $0x148] sm:$0xff] }
 0xa11   :  { %6059 = vmatpush.bf16.msra.mxu0 %v5932_v32  ;;  %9261 = vmatmul.msk.bf16.vlgmr.msrb.gmra.mxu1 %vm5920_vm2, %v9258_v21 }
 0xa12   :  { %v5926_v24 = vsel %vm5924_vm1, %v5916_v23, 0  ;;  %v10235_v23 = vld [vmem:[%s13650_s23 + $0x1c8] sm:$0xff] }
 0xa13   :  { %5941 = vmatpush.bf16.msra.mxu2 %v5926_v24  ;;  %5987 = vmatpush.bf16.msrb.mxu3 %v5926_v24 }
 0xa14   :  { %6079 = vmatpush.bf16.msra.mxu1 %v5926_v24 }
 0xa15   :  { %6929 = vmatpush.bf16.msrb.mxu0 %v10185_v37  ;;  %v10234_v37 = vld [vmem:[%s13650_s23 + $0x1c0] sm:$0xff] }
 0xa16   :  { %9255 = vmatmul.msk.bf16.vlgmr.msra.gmra.mxu2 %vm5920_vm2, %v5919_v22 }
 0xa17   :  { %5967 = vmatpush.bf16.msrb.mxu2 %v5932_v32  ;;  %6046 = vmatpush.bf16.msra.mxu3 %v5929_v10 }
 0xa18   :  { %6942 = vmatpush.bf16.msrb.mxu1 %v10193_v38 }
 0xa19   :  { %6930 = vmatpush.bf16.msrb.mxu0 %v10184_v11 }
 0xa1b   :  { %6033 = vmatpush.bf16.msra.mxu2 %v5926_v24 }
 0xa1c   :  { %6943 = vmatpush.bf16.msrb.mxu1 %v10192_v27 }
 0xa1d   :  { %6931 = vmatpush.bf16.msrb.mxu0 %v10183_v1 }
 0xa20   :  { %9259 = vmatmul.msk.bf16.vlgmr.msrb.gmra.mxu3 %vm5920_vm2, %v9258_v21  ;;  %9265 = vmatmul.msk.bf16.vlgmr.msra.gmra.mxu0 %vm5920_vm2, %v9262_v45  ;;  %v10227_v21 = vld [vmem:[%s13650_s23 + $0x188] sm:$0xff] }
 0xa21   :  { %6105 = vmatpush.bf16.msrb.mxu3 %v5932_v32  ;;  %9267 = vmatmul.msk.bf16.vlgmr.msra.gmra.mxu1 %vm5920_vm2, %v13321_v46  ;;  %v10210_v32 = vld [vmem:[%s13650_s23 + $0x100] sm:$0xff] }
 0xa22   :  { %6944 = vmatpush.bf16.msrb.mxu1 %v10191_v0  ;;  %6932 = vmatpush.bf16.msrb.mxu0 %v10182_v28 }
 0xa26   :  { %9257 = vmatmul.msk.bf16.vlgmr.msrb.gmra.mxu2 %vm5920_vm2, %v5919_v22  ;;  %6945 = vmatpush.bf16.msrb.mxu1 %v10190_v14  ;;  %v10228_v22 = vld [vmem:[%s13650_s23 + $0x190] sm:$0xff] }
 0xa27   :  { %6092 = vmatpush.bf16.msrb.mxu2 %v5929_v10  ;;  %6933 = vmatpush.bf16.msrb.mxu0 %v10181_v18  ;;  %v10220_v10 = vld [vmem:[%s13650_s23 + $0x150] sm:$0xff]  ;;  %v10257_v18 = vld [vmem:[%s13650_s23 + $0x278] sm:$0xff] }
 0xa2a   :  { %6946 = vmatpush.bf16.msrb.mxu1 %v10189_v36 }
 0xa2b   :  { %6934 = vmatpush.bf16.msrb.mxu0 %v10180_v39  ;;  %v10248_v39 = vld [vmem:[%s13650_s23 + $0x230] sm:$0xff] }
 0xa2e   :  { %6947 = vmatpush.bf16.msrb.mxu1 %v10188_v7 }
 0xa2f   :  { %6935 = vmatpush.bf16.msrb.mxu0 %v10179_v35 }
 0xa30   :  { %9264 = vmatmul.msk.bf16.vlgmr.msra.gmra.mxu3 %vm5920_vm2, %v9262_v45 }
 0xa31   :  { %6968 = vmatpush.bf16.msra.mxu3 %v10209_v2 }
 0xa32   :  { %6948 = vmatpush.bf16.msrb.mxu1 %v10187_v42  ;;  %v10247_v42 = vld [vmem:[%s13650_s23 + $0x228] sm:$0xff] }
 0xa33   :  { %6936 = vmatpush.bf16.msrb.mxu0 %v10178_v48 }
 0xa35   :  { %6969 = vmatpush.bf16.msra.mxu3 %v10208_v16 }
 0xa36   :  { %9263 = vmatmul.msk.bf16.vlgmr.msra.gmra.mxu2 %vm5920_vm2, %v9262_v45  ;;  %6949 = vmatpush.bf16.msrb.mxu1 %v10186_v49  ;;  %v10218_v45 = vld [vmem:[%s13650_s23 + $0x140] sm:$0xff] }
 0xa37   :  { %6955 = vmatpush.bf16.msra.mxu2 %v10201_v30  ;;  %6981 = vmatpush.bf16.msra.mxu0 %v10217_v26  ;;  %v10249_v30 = vld [vmem:[%s13650_s23 + $0x238] sm:$0xff] }
 0xa38   :  { %v10273_v26 = vld [vmem:[%s13650_s23 + $0x2f8] sm:$0xff] }
 0xa39   :  { %6970 = vmatpush.bf16.msra.mxu3 %v10207_v33 }
 0xa3a   :  { %6994 = vmatpush.bf16.msra.mxu1 %v10225_v40 }
 0xa3b   :  { %6956 = vmatpush.bf16.msra.mxu2 %v10200_v3  ;;  %6982 = vmatpush.bf16.msra.mxu0 %v10216_v51  ;;  %v10254_v51 = vld [vmem:[%s13650_s23 + $0x260] sm:$0xff] }
 0xa3d   :  { %6971 = vmatpush.bf16.msra.mxu3 %v10206_v17  ;;  %v10256_v17 = vld [vmem:[%s13650_s23 + $0x270] sm:$0xff] }
 0xa3e   :  { %6995 = vmatpush.bf16.msra.mxu1 %v10224_v58 }
 0xa3f   :  { %6957 = vmatpush.bf16.msra.mxu2 %v10199_v34  ;;  %6983 = vmatpush.bf16.msra.mxu0 %v10215_v57 }
 0xa40   :  { %9269 = vmatmul.msk.bf16.vlgmr.msrb.gmra.mxu3 %vm5920_vm2, %v13321_v46 }
 0xa41   :  { %6972 = vmatpush.bf16.msra.mxu3 %v10205_v41 }
 0xa42   :  { %6996 = vmatpush.bf16.msra.mxu1 %v10223_v62 }
 0xa43   :  { %6958 = vmatpush.bf16.msra.mxu2 %v10198_v47  ;;  %6984 = vmatpush.bf16.msra.mxu0 %v10214_v61  ;;  %v10255_v47 = vld [vmem:[%s13650_s23 + $0x268] sm:$0xff] }
 0xa45   :  { %6973 = vmatpush.bf16.msra.mxu3 %v10204_v25 }
 0xa46   :  { %9268 = vmatmul.msk.bf16.vlgmr.msrb.gmra.mxu2 %vm5920_vm2, %v13321_v46  ;;  %6997 = vmatpush.bf16.msra.mxu1 %v10222_v63  ;;  %v10226_v46 = vld [vmem:[%s13650_s23 + $0x180] sm:$0xff]  ;;  %v10264_v63 = vld [vmem:[%s13650_s23 + $0x2b0] sm:$0xff] }
 0xa47   :  { %6959 = vmatpush.bf16.msra.mxu2 %v10197_v53  ;;  %6985 = vmatpush.bf16.msra.mxu0 %v10213_v13 }
 0xa49   :  { %6974 = vmatpush.bf16.msra.mxu3 %v10203_v50  ;;  %v10246_v50 = vld [vmem:[%s13650_s23 + $0x220] sm:$0xff] }
 0xa4a   :  { %6998 = vmatpush.bf16.msra.mxu1 %v10221_v44  ;;  %v10252_v44 = vld [vmem:[%s13650_s23 + $0x250] sm:$0xff] }
 0xa4b   :  { %6960 = vmatpush.bf16.msra.mxu2 %v10196_v8  ;;  %6986 = vmatpush.bf16.msra.mxu0 %v10212_v43  ;;  %v10270_v43 = vld [vmem:[%s13650_s23 + $0x2e0] sm:$0xff] }
 0xa4d   :  { %6975 = vmatpush.bf16.msra.mxu3 %v10202_v9 }
 0xa4e   :  { %6999 = vmatpush.bf16.msra.mxu1 %v10220_v10  ;;  %v10269_v10 = vld [vmem:[%s13650_s23 + $0x2d8] sm:$0xff] }
 0xa4f   :  { %6961 = vmatpush.bf16.msra.mxu2 %v10195_v54  ;;  %6987 = vmatpush.bf16.msra.mxu0 %v10211_v31  ;;  %v10243_v31 = vld [vmem:[%s13650_s23 + $0x208] sm:$0xff] }
 0xa51   :  { %7020 = vmatpush.bf16.msrb.mxu3 %v10241_v52 }
 0xa52   :  { %7000 = vmatpush.bf16.msra.mxu1 %v10219_v6 }
 0xa53   :  { %6962 = vmatpush.bf16.msra.mxu2 %v10194_v55  ;;  %6988 = vmatpush.bf16.msra.mxu0 %v10210_v32  ;;  %v10262_v32 = vld [vmem:[%s13650_s23 + $0x2a0] sm:$0xff] }
 0xa55   :  { %7021 = vmatpush.bf16.msrb.mxu3 %v10240_v60  ;;  %v10245_v60 = vld [vmem:[%s13650_s23 + $0x218] sm:$0xff] }
 0xa56   :  { %7001 = vmatpush.bf16.msra.mxu1 %v10218_v45  ;;  %v10268_v45 = vld [vmem:[%s13650_s23 + $0x2d0] sm:$0xff] }
 0xa57   :  { %7007 = vmatpush.bf16.msrb.mxu2 %v10233_v56  ;;  %v10272_v56 = vld [vmem:[%s13650_s23 + $0x2f0] sm:$0xff] }
 0xa59   :  { %7022 = vmatpush.bf16.msrb.mxu3 %v10239_v12  ;;  %v10253_v12 = vld [vmem:[%s13650_s23 + $0x258] sm:$0xff] }
 0xa5b   :  { %7008 = vmatpush.bf16.msrb.mxu2 %v10232_v59  ;;  %v10265_v59 = vld [vmem:[%s13650_s23 + $0x2b8] sm:$0xff] }
 0xa5d   :  { %7023 = vmatpush.bf16.msrb.mxu3 %v10238_v19 }
 0xa5f   :  { %7009 = vmatpush.bf16.msrb.mxu2 %v10231_v5  ;;  %v10271_v5 = vld [vmem:[%s13650_s23 + $0x2e8] sm:$0xff] }
 0xa61   :  { %7024 = vmatpush.bf16.msrb.mxu3 %v10237_v29 }
 0xa63   :  { %7010 = vmatpush.bf16.msrb.mxu2 %v10230_v15  ;;  %v10244_v15 = vld [vmem:[%s13650_s23 + $0x210] sm:$0xff] }
 0xa65   :  { %7025 = vmatpush.bf16.msrb.mxu3 %v10236_v4 }
 0xa67   :  { %7011 = vmatpush.bf16.msrb.mxu2 %v10229_v20  ;;  %v10263_v20 = vld [vmem:[%s13650_s23 + $0x2a8] sm:$0xff] }
 0xa69   :  { %7026 = vmatpush.bf16.msrb.mxu3 %v10235_v23 }
 0xa6b   :  { %7012 = vmatpush.bf16.msrb.mxu2 %v10228_v22  ;;  %v10251_v22 = vld [vmem:[%s13650_s23 + $0x248] sm:$0xff] }
 0xa6d   :  { %7027 = vmatpush.bf16.msrb.mxu3 %v10234_v37 }
 0xa6f   :  { %7013 = vmatpush.bf16.msrb.mxu2 %v10227_v21  ;;  %v10242_v21 = vld [vmem:[%s13650_s23 + $0x200] sm:$0xff] }
 0xa73   :  { %7014 = vmatpush.bf16.msrb.mxu2 %v10226_v46  ;;  %v10250_v46 = vld [vmem:[%s13650_s23 + $0x240] sm:$0xff] }
 0xa8d   :  { %v6002_v24 = vpop.f32.mrf.mxu0 }
 0xa8e   :  { %v6015_v38 = vpop.f32.mrf.mxu1 }
 0xa8f   :  { %v6020_v25 = vpack.c.bf16 %v6015_v38, %v6015_v38 }
 0xa91   :  { %v6128_v52 = vunpack.c.l.b16 %v6020_v25 }
 0xa93   :  { %v5956_v11 = vpop.f32.mrf.mxu3  ;;  %v6131_v62 = vpack.c.b16 %v6128_v52, %v6128_v52 }
 0xa95   :  { %v6004_v27 = vpop.f32.mrf.mxu0 }
 0xa96   :  { %v6017_v2 = vpop.f32.mrf.mxu1 }
 0xa99   :  { %v5943_v1 = vpop.f32.mrf.mxu2 }
 0xa9a   :  { %v5973_v0 = vpack.c.bf16 %v5956_v11, %v5943_v1  ;;  %v10261_v11 = vld [vmem:[%s13650_s23 + $0x298] sm:$0xff] }
 0xa9b   :  { %v5958_v28 = vpop.f32.mrf.mxu3 }
 0xa9c   :  { %v6115_v16 = vunpack.c.l.b16 %v5973_v0  ;;  %v6116_v14 = vunpack.c.h.b16 %v5973_v0  ;;  %v10267_v0 = vld [vmem:[%s13650_s23 + $0x2c8] sm:$0xff] }
 0xa9d   :  { %v6061_v7 = vpop.f32.mrf.mxu0 }
 0xa9e   :  { %v6118_v33 = vpack.c.b16 %v6115_v16, %v6115_v16  ;;  %v6119_v36 = vpack.c.b16 %v6116_v14, %v6116_v14  ;;  %v13537_v34 = vpop.f32.mrf.mxu1  ;;  %v6066_v29 = vpack.c.bf16 %v6061_v7, %v6061_v7  ;;  %v10260_v16 = vld [vmem:[%s13650_s23 + $0x290] sm:$0xff] }
 0xaa0   :  { %6937 = vmatmul.bf16.vlgmr.msrb.gmra.mxu0 %v6118_v33  ;;  %6950 = vmatmul.bf16.vlgmr.msrb.gmra.mxu1 %v6119_v36  ;;  %v6139_v6 = vunpack.c.l.b16 %v6066_v29  ;;  %v10259_v33 = vld [vmem:[%s13650_s23 + $0x288] sm:$0xff] }
 0xaa1   :  { %v5945_v3 = vpop.f32.mrf.mxu2  ;;  %7033 = vmatpush.bf16.msrb.mxu0 %v10249_v30  ;;  %7046 = vmatpush.bf16.msrb.mxu1 %v10257_v18  ;;  %v10266_v30 = vld [vmem:[%s13650_s23 + $0x2c0] sm:$0xff] }
 0xaa2   :  { %v6142_v27 = vpack.c.b16 %v6139_v6, %v6139_v6 }
 0xaa3   :  { %v5989_v35 = vpop.f32.mrf.mxu3 }
 0xaa4   :  { %v6019_v41 = vpack.c.bf16 %v6002_v24, %v5989_v35 }
 0xaa5   :  { %7034 = vmatpush.bf16.msrb.mxu0 %v10248_v39  ;;  %7047 = vmatpush.bf16.msrb.mxu1 %v10256_v17  ;;  %v6063_v8 = vpop.f32.mrf.mxu0  ;;  %v10258_v39 = vld [vmem:[%s13650_s23 + $0x280] sm:$0xff]  ;;  %s10704_s23 = smov [#allocation25]  }
 0xaa6   :  { %v6126_v48 = vunpack.c.l.b16 %v6019_v41  ;;  %v6127_v49 = vunpack.c.h.b16 %v6019_v41  ;;  %v6083_v54 = vpop.f32.mrf.mxu1  ;;  %s7092_s28 = sshll.u32 %s10704_s23, 4  ;;  %s7093_s28 = int_to_ptr.vmem [resolvable:$true] %s7092_s28 }
 0xaa8   :  { %v6129_v53 = vpack.c.b16 %v6126_v48, %v6126_v48  ;;  %v6130_v57 = vpack.c.b16 %v6127_v49, %v6127_v49 }
 0xaa9   :  { %v5969_v40 = vpop.f32.mrf.mxu2  ;;  %7035 = vmatpush.bf16.msrb.mxu0 %v10247_v42  ;;  %7048 = vmatpush.bf16.msrb.mxu1 %v10255_v47 }
 0xaaa   :  { %v5974_v9 = vpack.c.bf16 %v5969_v40, %v5969_v40  ;;  %6976 = vmatmul.bf16.vlgmr.msra.gmra.mxu3 %v6129_v53 }
 0xaab   :  { %v5991_v55 = vpop.f32.mrf.mxu3  ;;  %7072 = vmatpush.bf16.msra.mxu3 %v10273_v26 }
 0xaac   :  { %v6117_v58 = vunpack.c.l.b16 %v5974_v9  ;;  %v10297_v9 = vld [vmem:[#allocation23] ss:$0 sm:$0xff] }
 0xaad   :  { %7036 = vmatpush.bf16.msrb.mxu0 %v10246_v50  ;;  %7049 = vmatpush.bf16.msrb.mxu1 %v10254_v51 }
 0xaae   :  { %v6120_v61 = vpack.c.b16 %v6117_v58, %v6117_v58 }
 0xaaf   :  { %7073 = vmatpush.bf16.msra.mxu3 %v10272_v56 }
 0xab0   :  { %6963 = vmatmul.bf16.vlgmr.msra.gmra.mxu2 %v6120_v61  ;;  %6989 = vmatmul.bf16.vlgmr.msra.gmra.mxu0 %v6130_v57 }
 0xab1   :  { %v5971_v13 = vpop.f32.mrf.mxu2  ;;  %7059 = vmatpush.bf16.msra.mxu2 %v10265_v59  ;;  %7037 = vmatpush.bf16.msrb.mxu0 %v10245_v60 }
 0xab2   :  { %7002 = vmatmul.bf16.vlgmr.msra.gmra.mxu1 %v6131_v62 }
 0xab3   :  { %v6048_v19 = vpop.f32.mrf.mxu3  ;;  %7074 = vmatpush.bf16.msra.mxu3 %v10271_v5  ;;  %7050 = vmatpush.bf16.msrb.mxu1 %v10253_v12 }
 0xab5   :  { %7060 = vmatpush.bf16.msra.mxu2 %v10264_v63  ;;  %7038 = vmatpush.bf16.msrb.mxu0 %v10244_v15 }
 0xab7   :  { %7075 = vmatpush.bf16.msra.mxu3 %v10270_v43  ;;  %7051 = vmatpush.bf16.msrb.mxu1 %v10252_v44 }
 0xab9   :  { %v6035_v4 = vpop.f32.mrf.mxu2  ;;  %7061 = vmatpush.bf16.msra.mxu2 %v10263_v20  ;;  %7039 = vmatpush.bf16.msrb.mxu0 %v10243_v31 }
 0xaba   :  { %v6065_v23 = vpack.c.bf16 %v6048_v19, %v6035_v4 }
 0xabb   :  { %v6050_v24 = vpop.f32.mrf.mxu3  ;;  %7076 = vmatpush.bf16.msra.mxu3 %v10269_v10  ;;  %7052 = vmatpush.bf16.msrb.mxu1 %v10251_v22 }
 0xabc   :  { %v6137_v37 = vunpack.c.l.b16 %v6065_v23  ;;  %v6138_v38 = vunpack.c.h.b16 %v6065_v23 }
 0xabd   :  { %7062 = vmatpush.bf16.msra.mxu2 %v10262_v32  ;;  %7040 = vmatpush.bf16.msrb.mxu0 %v10242_v21 }
 0xabe   :  { %v6140_v1 = vpack.c.b16 %v6137_v37, %v6137_v37  ;;  %v6141_v2 = vpack.c.b16 %v6138_v38, %v6138_v38 }
 0xabf   :  { %7077 = vmatpush.bf16.msra.mxu3 %v10268_v45  ;;  %7053 = vmatpush.bf16.msrb.mxu1 %v10250_v46 }
 0xac0   :  { %7015 = vmatmul.bf16.vlgmr.msrb.gmra.mxu2 %v6140_v1  ;;  %7028 = vmatmul.bf16.vlgmr.msrb.gmra.mxu3 %v6141_v2 }
 0xac1   :  { %v6037_v28 = vpop.f32.mrf.mxu2  ;;  %7063 = vmatpush.bf16.msra.mxu2 %v10261_v11  ;;  %7041 = vmatmul.bf16.vlgmr.msrb.gmra.mxu0 %v6142_v27 }
 0xac3   :  { %v6107_v14 = vpop.f32.mrf.mxu3  ;;  %7078 = vmatpush.bf16.msra.mxu3 %v10267_v0 }
 0xac4   :  { %v6112_v18 = vpack.c.bf16 %v6107_v14, %v6107_v14 }
 0xac5   :  { %7064 = vmatpush.bf16.msra.mxu2 %v10260_v16 }
 0xac6   :  { %v6150_v36 = vunpack.c.l.b16 %v6112_v18 }
 0xac7   :  { %7079 = vmatpush.bf16.msra.mxu3 %v10266_v30 }
 0xac8   :  { %v6153_v42 = vpack.c.b16 %v6150_v36, %v6150_v36 }
 0xac9   :  { %v6094_v3 = vpop.f32.mrf.mxu2  ;;  %7065 = vmatpush.bf16.msra.mxu2 %v10259_v33 }
 0xaca   :  { %v6111_v17 = vpack.c.bf16 %v6094_v3, %v13537_v34 }
 0xacb   :  { %v6109_v7 = vpop.f32.mrf.mxu3 }
 0xacc   :  { %v6148_v35 = vunpack.c.l.b16 %v6111_v17  ;;  %v6149_v41 = vunpack.c.h.b16 %v6111_v17 }
 0xacd   :  { %7066 = vmatpush.bf16.msra.mxu2 %v10258_v39 }
 0xace   :  { %v6151_v47 = vpack.c.b16 %v6148_v35, %v6148_v35  ;;  %v6152_v48 = vpack.c.b16 %v6149_v41, %v6149_v41 }
 0xad0   :  { %7054 = vmatmul.bf16.vlgmr.msrb.gmra.mxu1 %v6151_v47  ;;  %7067 = vmatmul.bf16.vlgmr.msra.gmra.mxu2 %v6152_v48 }
 0xad1   :  { %7080 = vmatmul.bf16.vlgmr.msra.gmra.mxu3 %v6153_v42  ;;  %v6096_v25 = vpop.f32.mrf.mxu2 }
 0xb1d   :  { %v6938_v26 = vpop.f32.mrf.mxu0  ;;  %v6951_v49 = vpop.f32.mrf.mxu1 }
 0xb1e   :  { %v6939_v52 = vadd.f32 %v10297_v9, %v6938_v26 }
 0xb20   :  { %v6952_v57 = vadd.f32 %v6951_v49, %v6939_v52 }
 0xb25   :  { %v6940_v53 = vpop.f32.mrf.mxu0  ;;  %v6953_v40 = vpop.f32.mrf.mxu1 }
 0xb2d   :  { %v6990_v50 = vpop.f32.mrf.mxu0  ;;  %v6977_v51 = vpop.f32.mrf.mxu3 }
 0xb2f   :  { %v7003_v8 = vpop.f32.mrf.mxu1 }
 0xb33   :  { %v6964_v34 = vpop.f32.mrf.mxu2 }
 0xb34   :  { %v6965_v58 = vadd.f32 %v6964_v34, %v6952_v57 }
 0xb35   :  { %v6992_v54 = vpop.f32.mrf.mxu0  ;;  %v6979_v55 = vpop.f32.mrf.mxu3 }
 0xb36   :  { %v6978_v60 = vadd.f32 %v6977_v51, %v6965_v58 }
 0xb37   :  { %v7005_v56 = vpop.f32.mrf.mxu1 }
 0xb38   :  { %v6991_v62 = vadd.f32 %v6990_v50, %v6978_v60 }
 0xb3a   :  { %v7004_v13 = vadd.f32 %v7003_v8, %v6991_v62 }
 0xb3b   :  { %v6966_v59 = vpop.f32.mrf.mxu2 }
 0xb3e   :  { %v7042_v61 = vpop.f32.mrf.mxu0 }
 0xb43   :  { %v7016_v5 = vpop.f32.mrf.mxu2  ;;  %v7029_v12 = vpop.f32.mrf.mxu3 }
 0xb44   :  { %v7017_v15 = vadd.f32 %v7016_v5, %v7004_v13 }
 0xb46   :  { %v7044_v63 = vpop.f32.mrf.mxu0  ;;  %v7030_v44 = vadd.f32 %v7029_v12, %v7017_v15 }
 0xb48   :  { %v7043_v29 = vadd.f32 %v7042_v61, %v7030_v44 }
 0xb4b   :  { %v7018_v19 = vpop.f32.mrf.mxu2  ;;  %v7031_v43 = vpop.f32.mrf.mxu3 }
 0xb4d   :  { %v7055_v20 = vpop.f32.mrf.mxu1 }
 0xb4e   :  { %v7056_v31 = vadd.f32 %v7055_v20, %v7043_v29 }
 0xb53   :  { %v7068_v10 = vpop.f32.mrf.mxu2 }
 0xb54   :  { %v7069_v22 = vadd.f32 %v7068_v10, %v7056_v31  ;;  %v7081_v4 = vpop.f32.mrf.mxu3 }
 0xb55   :  { %v7057_v32 = vpop.f32.mrf.mxu1 }
 0xb56   :  { %v7082_v6 = vadd.f32 %v7081_v4, %v7069_v22 }
 0xb58   :  { %7086 = vst.msk [vmem:[#allocation25] sm:$0xf] %vm7085_vm4, %v7082_v6 }
 0xb59   :  { %7097 = dma.vmem_to_hbm [thread:$0]  %s7093_s28, 64, %s7095_s20, [#allocation4]  }
 0xb5b   :  { %v7070_v21 = vpop.f32.mrf.mxu2 }
 0xb5c   :  { %v7083_v23 = vpop.f32.mrf.mxu3 }
 0xb5d   :  { %10680 = dma.done.wait [#allocation4], 64  }
 0xb5e   :  { %10681 = vsyncadd [#allocation4], 4294967232 }
 0xb5f   :  { %7102 = vsyncpa [#allocation3], 1 }
 0xb60   :  { %7103 = vsyncpa [#allocation6], 1 }
 0xb61   :  { %7104 = vsyncpa [#allocation9], 1 }
 0xb62   :  { %7105 = vsyncpa [#allocation12], 1 }
 0xb63   :  { %7106 = vsyncpa [#allocation15], 1 }
 0xb64   :  { %7107 = vsyncpa [#allocation18], 1 }
 0xb65   :  { %7108 = vsyncpa [#allocation21], 1 }
 0xb66   :  { %7109 = vsyncpa [#allocation24], 1 }
 0xb67   :  { %7110 = vsyncpa [#allocation4], 1 }

</bundles_post_ra>
